<compile_context>
chip_gen: v7x
topology: tpu7x:2x2x1
jax: 0.10.0
libtpu: 0.0.40
codegen_flags: <defaults>
</compile_context>

<pallas_src>
import jax
import jax.numpy as jnp
from jax.experimental import pallas as pl
from jax.experimental.pallas import tpu as pltpu

EPS = 1e-5
CP = 128  # lane-padded channel width (128 lanes => unmasked vst / full MXU output tile)


# ----------------------------- Pallas kernel --------------------------------
def _double_conv_kernel(x_ref, w1_ref, g1_ref, b1_ref,
                        w2_ref, g2_ref, b2_ref, o_ref, mid_ref):
    # x_ref:   (N, H+2, W+2, CP)  concat([x2, up(x1)]) with 1px spatial halo, channels
    #                             lane-padded to CP (padding channels are zero)
    # w1_ref:  (9, CP, CP)        conv1 weights, tap-major (dy*3+dx), zero-padded
    # w2_ref:  (9, CP, CP)        conv2 weights
    # g*/b*:   (1, CP)            BatchNorm affine params (zero in padded lanes)
    # o_ref:   (N*H*W, CP)        lane-dense output slab
    # mid_ref: (N, H+2, W+2, CP)  VMEM scratch: halo'd mid activation
    N, HP, WP, C = x_ref.shape
    H, W = HP - 2, WP - 2
    NHW = N * H * W
    inv_n = 1.0 / float(NHW)

    # ---- conv1: 9-tap shifted-slab accumulation (one 128-wide matmul per tap) ----
    acc1 = None
    for dy in range(3):
        for dx in range(3):
            slab = x_ref[:, dy:dy + H, dx:dx + W, :].reshape(NHW, C)
            contrib = jnp.dot(slab, w1_ref[dy * 3 + dx],
                              preferred_element_type=jnp.float32)
            acc1 = contrib if acc1 is None else acc1 + contrib

    # ---- BatchNorm (training-mode batch stats, mean-subtracted variance) + ReLU ----
    mean1 = jnp.sum(acc1, axis=0, keepdims=True) * inv_n
    c1 = acc1 - mean1
    var1 = jnp.sum(c1 * c1, axis=0, keepdims=True) * inv_n
    scale1 = g1_ref[...] * jax.lax.rsqrt(var1 + EPS)
    y1 = jnp.maximum(c1 * scale1 + b1_ref[...], 0.0)          # (NHW, CP)

    # ---- stage mid activation with 1px zero halo (lane-dense; only strips zeroed) ----
    mid_ref[:, 0:1, :, :] = jnp.zeros((N, 1, WP, C), jnp.float32)
    mid_ref[:, H + 1:H + 2, :, :] = jnp.zeros((N, 1, WP, C), jnp.float32)
    mid_ref[:, :, 0:1, :] = jnp.zeros((N, HP, 1, C), jnp.float32)
    mid_ref[:, :, W + 1:W + 2, :] = jnp.zeros((N, HP, 1, C), jnp.float32)
    mid_ref[:, 1:H + 1, 1:W + 1, :] = y1.reshape(N, H, W, C)

    # ---- conv2: 9-tap shifted-slab accumulation ----
    acc2 = None
    for dy in range(3):
        for dx in range(3):
            slab = mid_ref[:, dy:dy + H, dx:dx + W, :].reshape(NHW, C)
            contrib = jnp.dot(slab, w2_ref[dy * 3 + dx],
                              preferred_element_type=jnp.float32)
            acc2 = contrib if acc2 is None else acc2 + contrib

    # ---- BatchNorm + ReLU ----
    mean2 = jnp.sum(acc2, axis=0, keepdims=True) * inv_n
    c2 = acc2 - mean2
    var2 = jnp.sum(c2 * c2, axis=0, keepdims=True) * inv_n
    scale2 = g2_ref[...] * jax.lax.rsqrt(var2 + EPS)
    y2 = jnp.maximum(c2 * scale2 + b2_ref[...], 0.0)          # (NHW, CP)

    # ---- single unmasked lane-dense store ----
    o_ref[...] = y2


# ------------------------------ JAX glue -------------------------------------
def _upsample2x_bilinear_nhwc(x):
    # matches nn.Upsample(scale_factor=2, mode='bilinear', align_corners=True)
    _, Hin, Win, _ = x.shape
    Hout, Wout = 2 * Hin, 2 * Win

    def taps(n_in, n_out):
        src = jnp.arange(n_out, dtype=jnp.float32) * (n_in - 1) / (n_out - 1)
        lo = jnp.clip(jnp.floor(src).astype(jnp.int32), 0, n_in - 2)
        return lo, src - lo.astype(jnp.float32)

    lo_h, fh = taps(Hin, Hout)
    lo_w, fw = taps(Win, Wout)
    fh = fh[None, :, None, None]
    fw = fw[None, None, :, None]
    xh = x[:, lo_h] * (1.0 - fh) + x[:, lo_h + 1] * fh
    return xh[:, :, lo_w] * (1.0 - fw) + xh[:, :, lo_w + 1] * fw


def up_forward(x1, x2, params):
    # x1: (N, Cin//2, H/2, W/2), x2: (N, Cin//2, H, W)  -- NCHW in, NCHW out
    x1 = jnp.transpose(x1, (0, 2, 3, 1))                 # NCHW -> NHWC once per input
    x2 = jnp.transpose(x2, (0, 2, 3, 1))

    x1u = _upsample2x_bilinear_nhwc(x1)
    diffY = x2.shape[1] - x1u.shape[1]
    diffX = x2.shape[2] - x1u.shape[2]
    x1u = jnp.pad(x1u, ((0, 0),
                        (diffY // 2, diffY - diffY // 2),
                        (diffX // 2, diffX - diffX // 2),
                        (0, 0)))

    # channel concat done once in the wrapper -> ONE kernel input
    xcat = jnp.concatenate([x2, x1u], axis=-1)            # (N, H, W, Cin)
    N, H, W, Cin = xcat.shape
    Cmid = params['w1'].shape[-1]
    Cout = params['w2'].shape[-1]
    assert max(Cin, Cmid, Cout) <= CP

    # 1px spatial halo for the first SAME conv + lane-pad channels to CP
    xpad = jnp.pad(xcat, ((0, 0), (1, 1), (1, 1), (0, CP - Cin)))

    # weights: HWIO (3,3,Ci,Co) -> tap-major (9, CP, CP), zero-padded
    w1 = jnp.zeros((9, CP, CP), jnp.float32).at[:, :Cin, :Cmid].set(
        params['w1'].reshape(9, Cin, Cmid))
    w2 = jnp.zeros((9, CP, CP), jnp.float32).at[:, :Cmid, :Cout].set(
        params['w2'].reshape(9, Cmid, Cout))
    g1 = jnp.zeros((1, CP), jnp.float32).at[:, :Cmid].set(params['g1'])
    b1 = jnp.zeros((1, CP), jnp.float32).at[:, :Cmid].set(params['b1'])
    g2 = jnp.zeros((1, CP), jnp.float32).at[:, :Cout].set(params['g2'])
    b2 = jnp.zeros((1, CP), jnp.float32).at[:, :Cout].set(params['b2'])

    out_flat = pl.pallas_call(
        _double_conv_kernel,
        out_shape=jax.ShapeDtypeStruct((N * H * W, CP), jnp.float32),
        in_specs=[pl.BlockSpec(memory_space=pltpu.MemorySpace.VMEM)] * 7,
        out_specs=pl.BlockSpec(memory_space=pltpu.MemorySpace.VMEM),
        scratch_shapes=[
            pltpu.VMEM((N, H + 2, W + 2, CP), jnp.float32),  # halo'd mid activation
        ],
    )(xpad, w1, g1, b1, w2, g2, b2)

    out_nhwc = out_flat.reshape(N, H, W, CP)[..., :Cout]
    return jnp.transpose(out_nhwc, (0, 3, 1, 2))              # NHWC -> NCHW


# -------------------------- pure-JAX reference --------------------------------
def _interp_matrix(n_in, n_out):
    # linear interpolation matrix, align_corners=True semantics (n_out, n_in)
    src = jnp.arange(n_out, dtype=jnp.float32) * (n_in - 1) / (n_out - 1)
    lo = jnp.clip(jnp.floor(src).astype(jnp.int32), 0, n_in - 2)
    frac = src - lo.astype(jnp.float32)
    oh_lo = jax.nn.one_hot(lo, n_in, dtype=jnp.float32)
    oh_hi = jax.nn.one_hot(lo + 1, n_in, dtype=jnp.float32)
    return (1.0 - frac)[:, None] * oh_lo + frac[:, None] * oh_hi


def _bilinear_upsample_x2_ref(x):
    # x: NCHW -> NCHW, one-hot matrix formulation (independent of the kernel path)
    _, _, H, W = x.shape
    Mh = _interp_matrix(H, 2 * H)
    Mw = _interp_matrix(W, 2 * W)
    return jnp.einsum('oh,nchw,pw->ncop', Mh, x, Mw)


def _conv3x3_ref(x, w):
    return jax.lax.conv_general_dilated(
        x, w, window_strides=(1, 1), padding='SAME',
        dimension_numbers=('NCHW', 'HWIO', 'NCHW'))


def _bn_relu_ref(x, gamma, beta):
    mean = jnp.mean(x, axis=(0, 2, 3), keepdims=True)
    var = jnp.mean((x - mean) ** 2, axis=(0, 2, 3), keepdims=True)
    g = gamma.reshape(1, -1, 1, 1)
    b = beta.reshape(1, -1, 1, 1)
    return jnp.maximum((x - mean) * jax.lax.rsqrt(var + EPS) * g + b, 0.0)


def up_forward_ref(x1, x2, params):
    x1u = _bilinear_upsample_x2_ref(x1)
    diffY = x2.shape[2] - x1u.shape[2]
    diffX = x2.shape[3] - x1u.shape[3]
    x1u = jnp.pad(x1u, ((0, 0), (0, 0),
                        (diffY // 2, diffY - diffY // 2),
                        (diffX // 2, diffX - diffX // 2)))
    x = jnp.concatenate([x2, x1u], axis=1)
    y = _bn_relu_ref(_conv3x3_ref(x, params['w1']),
                     params['g1'].ravel(), params['b1'].ravel())
    y = _bn_relu_ref(_conv3x3_ref(y, params['w2']),
                     params['g2'].ravel(), params['b2'].ravel())
    return y


# ------------------------------- main ----------------------------------------
if __name__ == "__main__":
    in_channels, out_channels = 8, 8          # Up(in_channels=8, out_channels=8, bilinear=True)
    mid_channels = in_channels // 2
    N, H, W = 2, 16, 16

    key = jax.random.PRNGKey(0)
    kx1, kx2, kw1, kw2, kg1, kb1, kg2, kb2 = jax.random.split(key, 8)

    # x1: deep feature map (half spatial size), x2: skip connection
    x1 = jax.random.normal(kx1, (N, in_channels // 2, H // 2, W // 2), jnp.float32)
    x2 = jax.random.normal(kx2, (N, in_channels // 2, H, W), jnp.float32)

    params = {
        # conv weights stored as HWIO (synthetic deterministic init)
        'w1': 0.2 * jax.random.normal(kw1, (3, 3, in_channels, mid_channels), jnp.float32),
        'g1': 1.0 + 0.1 * jax.random.normal(kg1, (1, mid_channels), jnp.float32),
        'b1': 0.1 * jax.random.normal(kb1, (1, mid_channels), jnp.float32),
        'w2': 0.2 * jax.random.normal(kw2, (3, 3, mid_channels, out_channels), jnp.float32),
        'g2': 1.0 + 0.1 * jax.random.normal(kg2, (1, out_channels), jnp.float32),
        'b2': 0.1 * jax.random.normal(kb2, (1, out_channels), jnp.float32),
    }

    out = jax.block_until_ready(up_forward(x1, x2, params))
    ref = jax.block_until_ready(up_forward_ref(x1, x2, params))

    assert out.shape == (N, out_channels, H, W), out.shape
    max_err = float(jnp.max(jnp.abs(out - ref)))
    if max_err > 2e-3:
        raise AssertionError(f"kernel mismatch vs reference, max abs err = {max_err}")

    print("KERNEL_OK")
</pallas_src>

<mosaic_0001>
module attributes {stable_mosaic.version = 11 : i64} {
  func.func @_double_conv_kernel(%arg0: memref<2x18x18x128xf32, #tpu.memory_space<vmem>>, %arg1: memref<9x128x128xf32, #tpu.memory_space<vmem>>, %arg2: memref<1x128xf32, #tpu.memory_space<vmem>>, %arg3: memref<1x128xf32, #tpu.memory_space<vmem>>, %arg4: memref<9x128x128xf32, #tpu.memory_space<vmem>>, %arg5: memref<1x128xf32, #tpu.memory_space<vmem>>, %arg6: memref<1x128xf32, #tpu.memory_space<vmem>>, %arg7: memref<512x128xf32, #tpu.memory_space<vmem>>, %arg8: memref<2x18x18x128xf32, #tpu.memory_space<vmem>>) attributes {dimension_semantics = [], scalar_prefetch = 0 : i64, scratch_operands = 1 : i64, tpu.core_type = #tpu.core_type<tc>} {
    %c0 = arith.constant 0 : index
    %c0_0 = arith.constant 0 : index
    %c0_1 = arith.constant 0 : index
    %c0_2 = arith.constant 0 : index
    %0 = vector.load %arg0[%c0, %c0_0, %c0_1, %c0_2] : memref<2x18x18x128xf32, #tpu.memory_space<vmem>>, vector<2x16x16x128xf32>
    %1 = vector.shape_cast %0 : vector<2x16x16x128xf32> to vector<512x128xf32>
    %c0_3 = arith.constant 0 : index
    %c0_4 = arith.constant 0 : index
    %c0_5 = arith.constant 0 : index
    %2 = vector.load %arg1[%c0_3, %c0_4, %c0_5] : memref<9x128x128xf32, #tpu.memory_space<vmem>>, vector<1x128x128xf32>
    %3 = vector.shape_cast %2 : vector<1x128x128xf32> to vector<128x128xf32>
    %cst = arith.constant dense<0.000000e+00> : vector<512x128xf32>
    %4 = tpu.matmul %1, %3, %cst {dimension_numbers = #tpu.dot_dimension_numbers<[1], [0], [0], [1], [0, 0, 1, 1], [], []>} : vector<512x128xf32>, vector<128x128xf32>, vector<512x128xf32> -> vector<512x128xf32>
    %c0_6 = arith.constant 0 : index
    %c0_7 = arith.constant 0 : index
    %c1 = arith.constant 1 : index
    %c0_8 = arith.constant 0 : index
    %5 = vector.load %arg0[%c0_6, %c0_7, %c1, %c0_8] : memref<2x18x18x128xf32, #tpu.memory_space<vmem>>, vector<2x16x16x128xf32>
    %6 = vector.shape_cast %5 : vector<2x16x16x128xf32> to vector<512x128xf32>
    %c1_9 = arith.constant 1 : index
    %c0_10 = arith.constant 0 : index
    %c0_11 = arith.constant 0 : index
    %7 = vector.load %arg1[%c1_9, %c0_10, %c0_11] : memref<9x128x128xf32, #tpu.memory_space<vmem>>, vector<1x128x128xf32>
    %8 = vector.shape_cast %7 : vector<1x128x128xf32> to vector<128x128xf32>
    %cst_12 = arith.constant dense<0.000000e+00> : vector<512x128xf32>
    %9 = tpu.matmul %6, %8, %cst_12 {dimension_numbers = #tpu.dot_dimension_numbers<[1], [0], [0], [1], [0, 0, 1, 1], [], []>} : vector<512x128xf32>, vector<128x128xf32>, vector<512x128xf32> -> vector<512x128xf32>
    %10 = arith.addf %4, %9 : vector<512x128xf32>
    %c0_13 = arith.constant 0 : index
    %c0_14 = arith.constant 0 : index
    %c2 = arith.constant 2 : index
    %c0_15 = arith.constant 0 : index
    %11 = vector.load %arg0[%c0_13, %c0_14, %c2, %c0_15] : memref<2x18x18x128xf32, #tpu.memory_space<vmem>>, vector<2x16x16x128xf32>
    %12 = vector.shape_cast %11 : vector<2x16x16x128xf32> to vector<512x128xf32>
    %c2_16 = arith.constant 2 : index
    %c0_17 = arith.constant 0 : index
    %c0_18 = arith.constant 0 : index
    %13 = vector.load %arg1[%c2_16, %c0_17, %c0_18] : memref<9x128x128xf32, #tpu.memory_space<vmem>>, vector<1x128x128xf32>
    %14 = vector.shape_cast %13 : vector<1x128x128xf32> to vector<128x128xf32>
    %cst_19 = arith.constant dense<0.000000e+00> : vector<512x128xf32>
    %15 = tpu.matmul %12, %14, %cst_19 {dimension_numbers = #tpu.dot_dimension_numbers<[1], [0], [0], [1], [0, 0, 1, 1], [], []>} : vector<512x128xf32>, vector<128x128xf32>, vector<512x128xf32> -> vector<512x128xf32>
    %16 = arith.addf %10, %15 : vector<512x128xf32>
    %c0_20 = arith.constant 0 : index
    %c1_21 = arith.constant 1 : index
    %c0_22 = arith.constant 0 : index
    %c0_23 = arith.constant 0 : index
    %17 = vector.load %arg0[%c0_20, %c1_21, %c0_22, %c0_23] : memref<2x18x18x128xf32, #tpu.memory_space<vmem>>, vector<2x16x16x128xf32>
    %18 = vector.shape_cast %17 : vector<2x16x16x128xf32> to vector<512x128xf32>
    %c3 = arith.constant 3 : index
    %c0_24 = arith.constant 0 : index
    %c0_25 = arith.constant 0 : index
    %19 = vector.load %arg1[%c3, %c0_24, %c0_25] : memref<9x128x128xf32, #tpu.memory_space<vmem>>, vector<1x128x128xf32>
    %20 = vector.shape_cast %19 : vector<1x128x128xf32> to vector<128x128xf32>
    %cst_26 = arith.constant dense<0.000000e+00> : vector<512x128xf32>
    %21 = tpu.matmul %18, %20, %cst_26 {dimension_numbers = #tpu.dot_dimension_numbers<[1], [0], [0], [1], [0, 0, 1, 1], [], []>} : vector<512x128xf32>, vector<128x128xf32>, vector<512x128xf32> -> vector<512x128xf32>
    %22 = arith.addf %16, %21 : vector<512x128xf32>
    %c0_27 = arith.constant 0 : index
    %c1_28 = arith.constant 1 : index
    %c1_29 = arith.constant 1 : index
    %c0_30 = arith.constant 0 : index
    %23 = vector.load %arg0[%c0_27, %c1_28, %c1_29, %c0_30] : memref<2x18x18x128xf32, #tpu.memory_space<vmem>>, vector<2x16x16x128xf32>
    %24 = vector.shape_cast %23 : vector<2x16x16x128xf32> to vector<512x128xf32>
    %c4 = arith.constant 4 : index
    %c0_31 = arith.constant 0 : index
    %c0_32 = arith.constant 0 : index
    %25 = vector.load %arg1[%c4, %c0_31, %c0_32] : memref<9x128x128xf32, #tpu.memory_space<vmem>>, vector<1x128x128xf32>
    %26 = vector.shape_cast %25 : vector<1x128x128xf32> to vector<128x128xf32>
    %cst_33 = arith.constant dense<0.000000e+00> : vector<512x128xf32>
    %27 = tpu.matmul %24, %26, %cst_33 {dimension_numbers = #tpu.dot_dimension_numbers<[1], [0], [0], [1], [0, 0, 1, 1], [], []>} : vector<512x128xf32>, vector<128x128xf32>, vector<512x128xf32> -> vector<512x128xf32>
    %28 = arith.addf %22, %27 : vector<512x128xf32>
    %c0_34 = arith.constant 0 : index
    %c1_35 = arith.constant 1 : index
    %c2_36 = arith.constant 2 : index
    %c0_37 = arith.constant 0 : index
    %29 = vector.load %arg0[%c0_34, %c1_35, %c2_36, %c0_37] : memref<2x18x18x128xf32, #tpu.memory_space<vmem>>, vector<2x16x16x128xf32>
    %30 = vector.shape_cast %29 : vector<2x16x16x128xf32> to vector<512x128xf32>
    %c5 = arith.constant 5 : index
    %c0_38 = arith.constant 0 : index
    %c0_39 = arith.constant 0 : index
    %31 = vector.load %arg1[%c5, %c0_38, %c0_39] : memref<9x128x128xf32, #tpu.memory_space<vmem>>, vector<1x128x128xf32>
    %32 = vector.shape_cast %31 : vector<1x128x128xf32> to vector<128x128xf32>
    %cst_40 = arith.constant dense<0.000000e+00> : vector<512x128xf32>
    %33 = tpu.matmul %30, %32, %cst_40 {dimension_numbers = #tpu.dot_dimension_numbers<[1], [0], [0], [1], [0, 0, 1, 1], [], []>} : vector<512x128xf32>, vector<128x128xf32>, vector<512x128xf32> -> vector<512x128xf32>
    %34 = arith.addf %28, %33 : vector<512x128xf32>
    %c0_41 = arith.constant 0 : index
    %c2_42 = arith.constant 2 : index
    %c0_43 = arith.constant 0 : index
    %c0_44 = arith.constant 0 : index
    %35 = vector.load %arg0[%c0_41, %c2_42, %c0_43, %c0_44] : memref<2x18x18x128xf32, #tpu.memory_space<vmem>>, vector<2x16x16x128xf32>
    %36 = vector.shape_cast %35 : vector<2x16x16x128xf32> to vector<512x128xf32>
    %c6 = arith.constant 6 : index
    %c0_45 = arith.constant 0 : index
    %c0_46 = arith.constant 0 : index
    %37 = vector.load %arg1[%c6, %c0_45, %c0_46] : memref<9x128x128xf32, #tpu.memory_space<vmem>>, vector<1x128x128xf32>
    %38 = vector.shape_cast %37 : vector<1x128x128xf32> to vector<128x128xf32>
    %cst_47 = arith.constant dense<0.000000e+00> : vector<512x128xf32>
    %39 = tpu.matmul %36, %38, %cst_47 {dimension_numbers = #tpu.dot_dimension_numbers<[1], [0], [0], [1], [0, 0, 1, 1], [], []>} : vector<512x128xf32>, vector<128x128xf32>, vector<512x128xf32> -> vector<512x128xf32>
    %40 = arith.addf %34, %39 : vector<512x128xf32>
    %c0_48 = arith.constant 0 : index
    %c2_49 = arith.constant 2 : index
    %c1_50 = arith.constant 1 : index
    %c0_51 = arith.constant 0 : index
    %41 = vector.load %arg0[%c0_48, %c2_49, %c1_50, %c0_51] : memref<2x18x18x128xf32, #tpu.memory_space<vmem>>, vector<2x16x16x128xf32>
    %42 = vector.shape_cast %41 : vector<2x16x16x128xf32> to vector<512x128xf32>
    %c7 = arith.constant 7 : index
    %c0_52 = arith.constant 0 : index
    %c0_53 = arith.constant 0 : index
    %43 = vector.load %arg1[%c7, %c0_52, %c0_53] : memref<9x128x128xf32, #tpu.memory_space<vmem>>, vector<1x128x128xf32>
    %44 = vector.shape_cast %43 : vector<1x128x128xf32> to vector<128x128xf32>
    %cst_54 = arith.constant dense<0.000000e+00> : vector<512x128xf32>
    %45 = tpu.matmul %42, %44, %cst_54 {dimension_numbers = #tpu.dot_dimension_numbers<[1], [0], [0], [1], [0, 0, 1, 1], [], []>} : vector<512x128xf32>, vector<128x128xf32>, vector<512x128xf32> -> vector<512x128xf32>
    %46 = arith.addf %40, %45 : vector<512x128xf32>
    %c0_55 = arith.constant 0 : index
    %c2_56 = arith.constant 2 : index
    %c2_57 = arith.constant 2 : index
    %c0_58 = arith.constant 0 : index
    %47 = vector.load %arg0[%c0_55, %c2_56, %c2_57, %c0_58] : memref<2x18x18x128xf32, #tpu.memory_space<vmem>>, vector<2x16x16x128xf32>
    %48 = vector.shape_cast %47 : vector<2x16x16x128xf32> to vector<512x128xf32>
    %c8 = arith.constant 8 : index
    %c0_59 = arith.constant 0 : index
    %c0_60 = arith.constant 0 : index
    %49 = vector.load %arg1[%c8, %c0_59, %c0_60] : memref<9x128x128xf32, #tpu.memory_space<vmem>>, vector<1x128x128xf32>
    %50 = vector.shape_cast %49 : vector<1x128x128xf32> to vector<128x128xf32>
    %cst_61 = arith.constant dense<0.000000e+00> : vector<512x128xf32>
    %51 = tpu.matmul %48, %50, %cst_61 {dimension_numbers = #tpu.dot_dimension_numbers<[1], [0], [0], [1], [0, 0, 1, 1], [], []>} : vector<512x128xf32>, vector<128x128xf32>, vector<512x128xf32> -> vector<512x128xf32>
    %52 = arith.addf %46, %51 : vector<512x128xf32>
    %cst_62 = arith.constant dense<0.000000e+00> : vector<128xf32>
    %53 = vector.multi_reduction <add>, %52, %cst_62 [0] : vector<512x128xf32> to vector<128xf32>
    %54 = vector.shape_cast %53 : vector<128xf32> to vector<1x128xf32>
    %cst_63 = arith.constant 0.001953125 : f32
    %55 = vector.broadcast %cst_63 : f32 to vector<1x128xf32>
    %56 = arith.mulf %54, %55 : vector<1x128xf32>
    %57 = vector.broadcast %56 : vector<1x128xf32> to vector<512x128xf32>
    %58 = arith.subf %52, %57 : vector<512x128xf32>
    %59 = arith.mulf %58, %58 : vector<512x128xf32>
    %cst_64 = arith.constant dense<0.000000e+00> : vector<128xf32>
    %60 = vector.multi_reduction <add>, %59, %cst_64 [0] : vector<512x128xf32> to vector<128xf32>
    %61 = vector.shape_cast %60 : vector<128xf32> to vector<1x128xf32>
    %cst_65 = arith.constant 0.001953125 : f32
    %62 = vector.broadcast %cst_65 : f32 to vector<1x128xf32>
    %63 = arith.mulf %61, %62 : vector<1x128xf32>
    %c0_66 = arith.constant 0 : index
    %c0_67 = arith.constant 0 : index
    %64 = vector.load %arg2[%c0_66, %c0_67] : memref<1x128xf32, #tpu.memory_space<vmem>>, vector<1x128xf32>
    %cst_68 = arith.constant 9.99999974E-6 : f32
    %65 = vector.broadcast %cst_68 : f32 to vector<1x128xf32>
    %66 = arith.addf %63, %65 : vector<1x128xf32>
    %67 = math.rsqrt %66 : vector<1x128xf32>
    %68 = arith.mulf %64, %67 : vector<1x128xf32>
    %69 = vector.broadcast %68 : vector<1x128xf32> to vector<512x128xf32>
    %70 = arith.mulf %58, %69 : vector<512x128xf32>
    %c0_69 = arith.constant 0 : index
    %c0_70 = arith.constant 0 : index
    %71 = vector.load %arg3[%c0_69, %c0_70] : memref<1x128xf32, #tpu.memory_space<vmem>>, vector<1x128xf32>
    %72 = vector.broadcast %71 : vector<1x128xf32> to vector<512x128xf32>
    %73 = arith.addf %70, %72 : vector<512x128xf32>
    %cst_71 = arith.constant 0.000000e+00 : f32
    %74 = vector.broadcast %cst_71 : f32 to vector<512x128xf32>
    %75 = arith.maximumf %73, %74 : vector<512x128xf32>
    %cst_72 = arith.constant 0.000000e+00 : f32
    %76 = vector.broadcast %cst_72 : f32 to vector<2x1x18x128xf32>
    %c0_73 = arith.constant 0 : index
    %c0_74 = arith.constant 0 : index
    %c0_75 = arith.constant 0 : index
    %c0_76 = arith.constant 0 : index
    %77 = vector.load %arg8[%c0_73, %c0_74, %c0_75, %c0_76] : memref<2x18x18x128xf32, #tpu.memory_space<vmem>>, vector<2x1x18x128xf32>
    tpu.vector_store %arg8[%c0_73, %c0_74, %c0_75, %c0_76], %76 {strides = array<i32>} : memref<2x18x18x128xf32, #tpu.memory_space<vmem>>, vector<2x1x18x128xf32>,
    %cst_77 = arith.constant 0.000000e+00 : f32
    %78 = vector.broadcast %cst_77 : f32 to vector<2x1x18x128xf32>
    %c0_78 = arith.constant 0 : index
    %c17 = arith.constant 17 : index
    %c0_79 = arith.constant 0 : index
    %c0_80 = arith.constant 0 : index
    %79 = vector.load %arg8[%c0_78, %c17, %c0_79, %c0_80] : memref<2x18x18x128xf32, #tpu.memory_space<vmem>>, vector<2x1x18x128xf32>
    tpu.vector_store %arg8[%c0_78, %c17, %c0_79, %c0_80], %78 {strides = array<i32>} : memref<2x18x18x128xf32, #tpu.memory_space<vmem>>, vector<2x1x18x128xf32>,
    %cst_81 = arith.constant 0.000000e+00 : f32
    %80 = vector.broadcast %cst_81 : f32 to vector<2x18x1x128xf32>
    %c0_82 = arith.constant 0 : index
    %c0_83 = arith.constant 0 : index
    %c0_84 = arith.constant 0 : index
    %c0_85 = arith.constant 0 : index
    %81 = vector.load %arg8[%c0_82, %c0_83, %c0_84, %c0_85] : memref<2x18x18x128xf32, #tpu.memory_space<vmem>>, vector<2x18x1x128xf32>
    tpu.vector_store %arg8[%c0_82, %c0_83, %c0_84, %c0_85], %80 {strides = array<i32>} : memref<2x18x18x128xf32, #tpu.memory_space<vmem>>, vector<2x18x1x128xf32>,
    %cst_86 = arith.constant 0.000000e+00 : f32
    %82 = vector.broadcast %cst_86 : f32 to vector<2x18x1x128xf32>
    %c0_87 = arith.constant 0 : index
    %c0_88 = arith.constant 0 : index
    %c17_89 = arith.constant 17 : index
    %c0_90 = arith.constant 0 : index
    %83 = vector.load %arg8[%c0_87, %c0_88, %c17_89, %c0_90] : memref<2x18x18x128xf32, #tpu.memory_space<vmem>>, vector<2x18x1x128xf32>
    tpu.vector_store %arg8[%c0_87, %c0_88, %c17_89, %c0_90], %82 {strides = array<i32>} : memref<2x18x18x128xf32, #tpu.memory_space<vmem>>, vector<2x18x1x128xf32>,
    %84 = vector.shape_cast %75 : vector<512x128xf32> to vector<2x16x16x128xf32>
    %c0_91 = arith.constant 0 : index
    %c1_92 = arith.constant 1 : index
    %c1_93 = arith.constant 1 : index
    %c0_94 = arith.constant 0 : index
    %85 = vector.load %arg8[%c0_91, %c1_92, %c1_93, %c0_94] : memref<2x18x18x128xf32, #tpu.memory_space<vmem>>, vector<2x16x16x128xf32>
    tpu.vector_store %arg8[%c0_91, %c1_92, %c1_93, %c0_94], %84 {strides = array<i32>} : memref<2x18x18x128xf32, #tpu.memory_space<vmem>>, vector<2x16x16x128xf32>,
    %c0_95 = arith.constant 0 : index
    %c0_96 = arith.constant 0 : index
    %c0_97 = arith.constant 0 : index
    %c0_98 = arith.constant 0 : index
    %86 = vector.load %arg8[%c0_95, %c0_96, %c0_97, %c0_98] : memref<2x18x18x128xf32, #tpu.memory_space<vmem>>, vector<2x16x16x128xf32>
    %87 = vector.shape_cast %86 : vector<2x16x16x128xf32> to vector<512x128xf32>
    %c0_99 = arith.constant 0 : index
    %c0_100 = arith.constant 0 : index
    %c0_101 = arith.constant 0 : index
    %88 = vector.load %arg4[%c0_99, %c0_100, %c0_101] : memref<9x128x128xf32, #tpu.memory_space<vmem>>, vector<1x128x128xf32>
    %89 = vector.shape_cast %88 : vector<1x128x128xf32> to vector<128x128xf32>
    %cst_102 = arith.constant dense<0.000000e+00> : vector<512x128xf32>
    %90 = tpu.matmul %87, %89, %cst_102 {dimension_numbers = #tpu.dot_dimension_numbers<[1], [0], [0], [1], [0, 0, 1, 1], [], []>} : vector<512x128xf32>, vector<128x128xf32>, vector<512x128xf32> -> vector<512x128xf32>
    %c0_103 = arith.constant 0 : index
    %c0_104 = arith.constant 0 : index
    %c1_105 = arith.constant 1 : index
    %c0_106 = arith.constant 0 : index
    %91 = vector.load %arg8[%c0_103, %c0_104, %c1_105, %c0_106] : memref<2x18x18x128xf32, #tpu.memory_space<vmem>>, vector<2x16x16x128xf32>
    %92 = vector.shape_cast %91 : vector<2x16x16x128xf32> to vector<512x128xf32>
    %c1_107 = arith.constant 1 : index
    %c0_108 = arith.constant 0 : index
    %c0_109 = arith.constant 0 : index
    %93 = vector.load %arg4[%c1_107, %c0_108, %c0_109] : memref<9x128x128xf32, #tpu.memory_space<vmem>>, vector<1x128x128xf32>
    %94 = vector.shape_cast %93 : vector<1x128x128xf32> to vector<128x128xf32>
    %cst_110 = arith.constant dense<0.000000e+00> : vector<512x128xf32>
    %95 = tpu.matmul %92, %94, %cst_110 {dimension_numbers = #tpu.dot_dimension_numbers<[1], [0], [0], [1], [0, 0, 1, 1], [], []>} : vector<512x128xf32>, vector<128x128xf32>, vector<512x128xf32> -> vector<512x128xf32>
    %96 = arith.addf %90, %95 : vector<512x128xf32>
    %c0_111 = arith.constant 0 : index
    %c0_112 = arith.constant 0 : index
    %c2_113 = arith.constant 2 : index
    %c0_114 = arith.constant 0 : index
    %97 = vector.load %arg8[%c0_111, %c0_112, %c2_113, %c0_114] : memref<2x18x18x128xf32, #tpu.memory_space<vmem>>, vector<2x16x16x128xf32>
    %98 = vector.shape_cast %97 : vector<2x16x16x128xf32> to vector<512x128xf32>
    %c2_115 = arith.constant 2 : index
    %c0_116 = arith.constant 0 : index
    %c0_117 = arith.constant 0 : index
    %99 = vector.load %arg4[%c2_115, %c0_116, %c0_117] : memref<9x128x128xf32, #tpu.memory_space<vmem>>, vector<1x128x128xf32>
    %100 = vector.shape_cast %99 : vector<1x128x128xf32> to vector<128x128xf32>
    %cst_118 = arith.constant dense<0.000000e+00> : vector<512x128xf32>
    %101 = tpu.matmul %98, %100, %cst_118 {dimension_numbers = #tpu.dot_dimension_numbers<[1], [0], [0], [1], [0, 0, 1, 1], [], []>} : vector<512x128xf32>, vector<128x128xf32>, vector<512x128xf32> -> vector<512x128xf32>
    %102 = arith.addf %96, %101 : vector<512x128xf32>
    %c0_119 = arith.constant 0 : index
    %c1_120 = arith.constant 1 : index
    %c0_121 = arith.constant 0 : index
    %c0_122 = arith.constant 0 : index
    %103 = vector.load %arg8[%c0_119, %c1_120, %c0_121, %c0_122] : memref<2x18x18x128xf32, #tpu.memory_space<vmem>>, vector<2x16x16x128xf32>
    %104 = vector.shape_cast %103 : vector<2x16x16x128xf32> to vector<512x128xf32>
    %c3_123 = arith.constant 3 : index
    %c0_124 = arith.constant 0 : index
    %c0_125 = arith.constant 0 : index
    %105 = vector.load %arg4[%c3_123, %c0_124, %c0_125] : memref<9x128x128xf32, #tpu.memory_space<vmem>>, vector<1x128x128xf32>
    %106 = vector.shape_cast %105 : vector<1x128x128xf32> to vector<128x128xf32>
    %cst_126 = arith.constant dense<0.000000e+00> : vector<512x128xf32>
    %107 = tpu.matmul %104, %106, %cst_126 {dimension_numbers = #tpu.dot_dimension_numbers<[1], [0], [0], [1], [0, 0, 1, 1], [], []>} : vector<512x128xf32>, vector<128x128xf32>, vector<512x128xf32> -> vector<512x128xf32>
    %108 = arith.addf %102, %107 : vector<512x128xf32>
    %c0_127 = arith.constant 0 : index
    %c1_128 = arith.constant 1 : index
    %c1_129 = arith.constant 1 : index
    %c0_130 = arith.constant 0 : index
    %109 = vector.load %arg8[%c0_127, %c1_128, %c1_129, %c0_130] : memref<2x18x18x128xf32, #tpu.memory_space<vmem>>, vector<2x16x16x128xf32>
    %110 = vector.shape_cast %109 : vector<2x16x16x128xf32> to vector<512x128xf32>
    %c4_131 = arith.constant 4 : index
    %c0_132 = arith.constant 0 : index
    %c0_133 = arith.constant 0 : index
    %111 = vector.load %arg4[%c4_131, %c0_132, %c0_133] : memref<9x128x128xf32, #tpu.memory_space<vmem>>, vector<1x128x128xf32>
    %112 = vector.shape_cast %111 : vector<1x128x128xf32> to vector<128x128xf32>
    %cst_134 = arith.constant dense<0.000000e+00> : vector<512x128xf32>
    %113 = tpu.matmul %110, %112, %cst_134 {dimension_numbers = #tpu.dot_dimension_numbers<[1], [0], [0], [1], [0, 0, 1, 1], [], []>} : vector<512x128xf32>, vector<128x128xf32>, vector<512x128xf32> -> vector<512x128xf32>
    %114 = arith.addf %108, %113 : vector<512x128xf32>
    %c0_135 = arith.constant 0 : index
    %c1_136 = arith.constant 1 : index
    %c2_137 = arith.constant 2 : index
    %c0_138 = arith.constant 0 : index
    %115 = vector.load %arg8[%c0_135, %c1_136, %c2_137, %c0_138] : memref<2x18x18x128xf32, #tpu.memory_space<vmem>>, vector<2x16x16x128xf32>
    %116 = vector.shape_cast %115 : vector<2x16x16x128xf32> to vector<512x128xf32>
    %c5_139 = arith.constant 5 : index
    %c0_140 = arith.constant 0 : index
    %c0_141 = arith.constant 0 : index
    %117 = vector.load %arg4[%c5_139, %c0_140, %c0_141] : memref<9x128x128xf32, #tpu.memory_space<vmem>>, vector<1x128x128xf32>
    %118 = vector.shape_cast %117 : vector<1x128x128xf32> to vector<128x128xf32>
    %cst_142 = arith.constant dense<0.000000e+00> : vector<512x128xf32>
    %119 = tpu.matmul %116, %118, %cst_142 {dimension_numbers = #tpu.dot_dimension_numbers<[1], [0], [0], [1], [0, 0, 1, 1], [], []>} : vector<512x128xf32>, vector<128x128xf32>, vector<512x128xf32> -> vector<512x128xf32>
    %120 = arith.addf %114, %119 : vector<512x128xf32>
    %c0_143 = arith.constant 0 : index
    %c2_144 = arith.constant 2 : index
    %c0_145 = arith.constant 0 : index
    %c0_146 = arith.constant 0 : index
    %121 = vector.load %arg8[%c0_143, %c2_144, %c0_145, %c0_146] : memref<2x18x18x128xf32, #tpu.memory_space<vmem>>, vector<2x16x16x128xf32>
    %122 = vector.shape_cast %121 : vector<2x16x16x128xf32> to vector<512x128xf32>
    %c6_147 = arith.constant 6 : index
    %c0_148 = arith.constant 0 : index
    %c0_149 = arith.constant 0 : index
    %123 = vector.load %arg4[%c6_147, %c0_148, %c0_149] : memref<9x128x128xf32, #tpu.memory_space<vmem>>, vector<1x128x128xf32>
    %124 = vector.shape_cast %123 : vector<1x128x128xf32> to vector<128x128xf32>
    %cst_150 = arith.constant dense<0.000000e+00> : vector<512x128xf32>
    %125 = tpu.matmul %122, %124, %cst_150 {dimension_numbers = #tpu.dot_dimension_numbers<[1], [0], [0], [1], [0, 0, 1, 1], [], []>} : vector<512x128xf32>, vector<128x128xf32>, vector<512x128xf32> -> vector<512x128xf32>
    %126 = arith.addf %120, %125 : vector<512x128xf32>
    %c0_151 = arith.constant 0 : index
    %c2_152 = arith.constant 2 : index
    %c1_153 = arith.constant 1 : index
    %c0_154 = arith.constant 0 : index
    %127 = vector.load %arg8[%c0_151, %c2_152, %c1_153, %c0_154] : memref<2x18x18x128xf32, #tpu.memory_space<vmem>>, vector<2x16x16x128xf32>
    %128 = vector.shape_cast %127 : vector<2x16x16x128xf32> to vector<512x128xf32>
    %c7_155 = arith.constant 7 : index
    %c0_156 = arith.constant 0 : index
    %c0_157 = arith.constant 0 : index
    %129 = vector.load %arg4[%c7_155, %c0_156, %c0_157] : memref<9x128x128xf32, #tpu.memory_space<vmem>>, vector<1x128x128xf32>
    %130 = vector.shape_cast %129 : vector<1x128x128xf32> to vector<128x128xf32>
    %cst_158 = arith.constant dense<0.000000e+00> : vector<512x128xf32>
    %131 = tpu.matmul %128, %130, %cst_158 {dimension_numbers = #tpu.dot_dimension_numbers<[1], [0], [0], [1], [0, 0, 1, 1], [], []>} : vector<512x128xf32>, vector<128x128xf32>, vector<512x128xf32> -> vector<512x128xf32>
    %132 = arith.addf %126, %131 : vector<512x128xf32>
    %c0_159 = arith.constant 0 : index
    %c2_160 = arith.constant 2 : index
    %c2_161 = arith.constant 2 : index
    %c0_162 = arith.constant 0 : index
    %133 = vector.load %arg8[%c0_159, %c2_160, %c2_161, %c0_162] : memref<2x18x18x128xf32, #tpu.memory_space<vmem>>, vector<2x16x16x128xf32>
    %134 = vector.shape_cast %133 : vector<2x16x16x128xf32> to vector<512x128xf32>
    %c8_163 = arith.constant 8 : index
    %c0_164 = arith.constant 0 : index
    %c0_165 = arith.constant 0 : index
    %135 = vector.load %arg4[%c8_163, %c0_164, %c0_165] : memref<9x128x128xf32, #tpu.memory_space<vmem>>, vector<1x128x128xf32>
    %136 = vector.shape_cast %135 : vector<1x128x128xf32> to vector<128x128xf32>
    %cst_166 = arith.constant dense<0.000000e+00> : vector<512x128xf32>
    %137 = tpu.matmul %134, %136, %cst_166 {dimension_numbers = #tpu.dot_dimension_numbers<[1], [0], [0], [1], [0, 0, 1, 1], [], []>} : vector<512x128xf32>, vector<128x128xf32>, vector<512x128xf32> -> vector<512x128xf32>
    %138 = arith.addf %132, %137 : vector<512x128xf32>
    %cst_167 = arith.constant dense<0.000000e+00> : vector<128xf32>
    %139 = vector.multi_reduction <add>, %138, %cst_167 [0] : vector<512x128xf32> to vector<128xf32>
    %140 = vector.shape_cast %139 : vector<128xf32> to vector<1x128xf32>
    %cst_168 = arith.constant 0.001953125 : f32
    %141 = vector.broadcast %cst_168 : f32 to vector<1x128xf32>
    %142 = arith.mulf %140, %141 : vector<1x128xf32>
    %143 = vector.broadcast %142 : vector<1x128xf32> to vector<512x128xf32>
    %144 = arith.subf %138, %143 : vector<512x128xf32>
    %145 = arith.mulf %144, %144 : vector<512x128xf32>
    %cst_169 = arith.constant dense<0.000000e+00> : vector<128xf32>
    %146 = vector.multi_reduction <add>, %145, %cst_169 [0] : vector<512x128xf32> to vector<128xf32>
    %147 = vector.shape_cast %146 : vector<128xf32> to vector<1x128xf32>
    %cst_170 = arith.constant 0.001953125 : f32
    %148 = vector.broadcast %cst_170 : f32 to vector<1x128xf32>
    %149 = arith.mulf %147, %148 : vector<1x128xf32>
    %c0_171 = arith.constant 0 : index
    %c0_172 = arith.constant 0 : index
    %150 = vector.load %arg5[%c0_171, %c0_172] : memref<1x128xf32, #tpu.memory_space<vmem>>, vector<1x128xf32>
    %cst_173 = arith.constant 9.99999974E-6 : f32
    %151 = vector.broadcast %cst_173 : f32 to vector<1x128xf32>
    %152 = arith.addf %149, %151 : vector<1x128xf32>
    %153 = math.rsqrt %152 : vector<1x128xf32>
    %154 = arith.mulf %150, %153 : vector<1x128xf32>
    %155 = vector.broadcast %154 : vector<1x128xf32> to vector<512x128xf32>
    %156 = arith.mulf %144, %155 : vector<512x128xf32>
    %c0_174 = arith.constant 0 : index
    %c0_175 = arith.constant 0 : index
    %157 = vector.load %arg6[%c0_174, %c0_175] : memref<1x128xf32, #tpu.memory_space<vmem>>, vector<1x128xf32>
    %158 = vector.broadcast %157 : vector<1x128xf32> to vector<512x128xf32>
    %159 = arith.addf %156, %158 : vector<512x128xf32>
    %cst_176 = arith.constant 0.000000e+00 : f32
    %160 = vector.broadcast %cst_176 : f32 to vector<512x128xf32>
    %161 = arith.maximumf %159, %160 : vector<512x128xf32>
    %c0_177 = arith.constant 0 : index
    %c0_178 = arith.constant 0 : index
    %162 = vector.load %arg7[%c0_177, %c0_178] : memref<512x128xf32, #tpu.memory_space<vmem>>, vector<512x128xf32>
    tpu.vector_store %arg7[%c0_177, %c0_178], %161 {strides = array<i32>} : memref<512x128xf32, #tpu.memory_space<vmem>>, vector<512x128xf32>,
    return
  }
}

</mosaic_0001>

<bundles_post_ra>
// kernel: tpu_custom_call.1
= control target key start
LH: loop header
LB: loop body
LE: loop exit
PB: predicated region body
PF: predicated region fallthrough
CT: control target
= control target key end

     0   :  { %12 = vsyncpa [#allocation4], 0  ;;  %s22304_s0 = inlined_call_operand.vmem [shape: f32[2,18,18,128], index: 0, kind: input, shape index: {}]   ;;  %s22305_s1 = inlined_call_operand.vmem [shape: f32[9,128,128], index: 1, kind: input, shape index: {}]   ;;  %s22306_s2 = inlined_call_operand.vmem [shape: f32[1,128], index: 2, kind: input, shape index: {}]   ;;  %s22307_s3 = inlined_call_operand.vmem [shape: f32[1,128], index: 3, kind: input, shape index: {}]   ;;  %s22308_s4 = inlined_call_operand.hbm [shape: f32[9,128,128], index: 4, kind: input, shape index: {}]   ;;  %s22309_s5 = inlined_call_operand.vmem [shape: f32[1,128], index: 5, kind: input, shape index: {}]   ;;  %s22310_s6 = inlined_call_operand.vmem [shape: f32[1,128], index: 6, kind: input, shape index: {}]   ;;  %s22311_s7 = inlined_call_operand.hbm [shape: f32[512,128], index: 7, kind: output, shape index: {}]  }
   0x1   :  { %13 = vsyncpa [#allocation5], 0  ;;  %s16428_s24 = smov [#allocation3]   ;;  %s16380_s28 = scalar_lea.hbm %s22308_s4, 18432 }
   0x2   :  { %s27_s25 = sshll.u32 %s16428_s24, 4  ;;  %p16381_p0 = scmp.ne.s32.totalorder %s22308_s4, %s16380_s28  ;;  %s28_s25 = int_to_ptr.vmem [resolvable:$true] %s27_s25 }
   0x3   :  { %p16384_p1 = scmp.lt.u32.totalorder %s16380_s28, %s22308_s4 }
   0x5   :  { %p16386_p2 = pnand %p16384_p1, %p16381_p0 }
   0x7   :  { %16389 = shalt.err (!%p16386_p2)
}
   0x8   :  { %s16390_s10 = scalar_lea.vmem %s28_s25, 18432  ;;  %p16395_p4 = scmp.lt.s32.totalorder %s28_s25, %s28_s25 }
   0x9   :  { %p16391_p3 = scmp.ne.s32.totalorder %s28_s25, %s16390_s10  ;;  %p16396_p5 = scmp.lt.s32.totalorder %s16390_s10, %s16390_s10 }
   0xb   :  { %p16397_p6 = por %p16396_p5, %p16395_p4 }
   0xd   :  { %p16398_p7 = pnand %p16397_p6, %p16391_p3 }
   0xf   :  { %16401 = shalt.err (!%p16398_p7)
}
  0x10   :  { %s16429_s11 = smov 128   ;;  %s16430_s12 = smov 8  }
  0x11   :  { %33 = dma.hbm_to_vmem [thread:$0]  %s22308_s4, 18432, %s28_s25, [#allocation4], %s16429_s11, %s16429_s11, %s16430_s12  }
  0x12   :  { %16424 = dma.done.wait [#allocation4], 18432  }
  0x13   :  { %16425 = vsyncadd [#allocation4], 4294948864  ;;  %v10511_v0 = vld [vmem:[%s22305_s1 + $0x80] sm:$0xff]  ;;  %v10512_v1 = vld [vmem:[%s22305_s1 + $0x88] sm:$0xff] }
  0x14   :  { %v10513_v2 = vld [vmem:[%s22305_s1 + $0x90] sm:$0xff]  ;;  %v14769_v3 = vpack.c.bf16 %v10512_v1, %v10511_v0  ;;  %v10514_v4 = vld [vmem:[%s22305_s1 + $0x98] sm:$0xff]  ;;  %v10515_v6 = vld [vmem:[%s22305_s1 + $0xa0] sm:$0xff] }
  0x15   :  { %v14773_v5 = vpack.c.bf16 %v10514_v4, %v10513_v2  ;;  %v10516_v7 = vld [vmem:[%s22305_s1 + $0xa8] sm:$0xff]  ;;  %v10517_v10 = vld [vmem:[%s22305_s1 + $0xb0] sm:$0xff]  ;;  %v10518_v11 = vld [vmem:[%s22305_s1 + $0xb8] sm:$0xff] }
  0x16   :  { %14770 = vmatprep.subr.bf16.mxu0 %v14769_v3  ;;  %v14777_v8 = vpack.c.bf16 %v10516_v7, %v10515_v6  ;;  %v121_v9 = vld [vmem:[%s22304_s0 + $0x1] sm:$0xff]  ;;  %v14781_v12 = vpack.c.bf16 %v10518_v11, %v10517_v10  ;;  %v10521_v16 = vld [vmem:[%s22305_s1 + $0xd0] sm:$0xff]  ;;  %v10522_v17 = vld [vmem:[%s22305_s1 + $0xd8] sm:$0xff] }
  0x17   :  { %14772 = vmatpush3.bf16.msra.mxu0 %v14769_v3  ;;  %12497 = vmatprep.mubr.f32.mxu0 %v121_v9  ;;  %v10519_v13 = vld [vmem:[%s22305_s1 + $0xc0] sm:$0xff]  ;;  %v10520_v14 = vld [vmem:[%s22305_s1 + $0xc8] sm:$0xff]  ;;  %v14789_v18 = vpack.c.bf16 %v10522_v17, %v10521_v16  ;;  %v10525_v22 = vld [vmem:[%s22305_s1 + $0xf0] sm:$0xff] }
  0x18   :  { %14774 = vmatprep.subr.bf16.mxu0 %v14773_v5  ;;  %v14785_v15 = vpack.c.bf16 %v10520_v14, %v10519_v13  ;;  %v10523_v19 = vld [vmem:[%s22305_s1 + $0xe0] sm:$0xff]  ;;  %v10524_v20 = vld [vmem:[%s22305_s1 + $0xe8] sm:$0xff]  ;;  %v10526_v23 = vld [vmem:[%s22305_s1 + $0xf8] sm:$0xff] }
  0x19   :  { %v14793_v21 = vpack.c.bf16 %v10524_v20, %v10523_v19  ;;  %v14797_v24 = vpack.c.bf16 %v10526_v23, %v10525_v22  ;;  %v105_v25 = vld [vmem:[%s22305_s1] sm:$0xff]  ;;  %v106_v26 = vld [vmem:[%s22305_s1 + $0x8] sm:$0xff]  ;;  %v107_v28 = vld [vmem:[%s22305_s1 + $0x10] sm:$0xff] }
  0x1a   :  { %v14801_v27 = vpack.c.bf16 %v106_v26, %v105_v25  ;;  %v108_v29 = vld [vmem:[%s22305_s1 + $0x18] sm:$0xff]  ;;  %v122_v30 = vld [vmem:[%s22304_s0 + $0x9] sm:$0xff]  ;;  %v109_v33 = vld [vmem:[%s22305_s1 + $0x20] sm:$0xff] }
  0x1b   :  { %14776 = vmatpush3.bf16.msra.mxu0 %v14773_v5  ;;  %v123_v31 = vld [vmem:[%s22304_s0 + $0x19] sm:$0xff]  ;;  %v14805_v32 = vpack.c.bf16 %v108_v29, %v107_v28  ;;  %v110_v34 = vld [vmem:[%s22305_s1 + $0x28] sm:$0xff]  ;;  %v125_v36 = vld [vmem:[%s22304_s0 + $0x31] sm:$0xff] }
  0x1c   :  { %14778 = vmatprep.subr.bf16.mxu0 %v14777_v8  ;;  %v124_v35 = vld [vmem:[%s22304_s0 + $0x21] sm:$0xff]  ;;  %v14809_v37 = vpack.c.bf16 %v110_v34, %v109_v33  ;;  %v111_v38 = vld [vmem:[%s22305_s1 + $0x30] sm:$0xff]  ;;  %v112_v39 = vld [vmem:[%s22305_s1 + $0x38] sm:$0xff] }
  0x1d   :  { %v126_v40 = vld [vmem:[%s22304_s0 + $0x39] sm:$0xff]  ;;  %v127_v41 = vld [vmem:[%s22304_s0 + $0x49] sm:$0xff]  ;;  %v14813_v42 = vpack.c.bf16 %v112_v39, %v111_v38  ;;  %v128_v45 = vld [vmem:[%s22304_s0 + $0x51] sm:$0xff] }
  0x1e   :  { %v113_v43 = vld [vmem:[%s22305_s1 + $0x40] sm:$0xff]  ;;  %v114_v44 = vld [vmem:[%s22305_s1 + $0x48] sm:$0xff]  ;;  %v115_v48 = vld [vmem:[%s22305_s1 + $0x50] sm:$0xff] }
  0x1f   :  { %14780 = vmatpush3.bf16.msra.mxu0 %v14777_v8  ;;  %v129_v46 = vld [vmem:[%s22304_s0 + $0x61] sm:$0xff]  ;;  %v14817_v47 = vpack.c.bf16 %v114_v44, %v113_v43  ;;  %v116_v49 = vld [vmem:[%s22305_s1 + $0x58] sm:$0xff]  ;;  %v130_v50 = vld [vmem:[%s22304_s0 + $0x69] sm:$0xff] }
  0x20   :  { %14782 = vmatprep.subr.bf16.mxu0 %v14781_v12  ;;  %v131_v51 = vld [vmem:[%s22304_s0 + $0x79] sm:$0xff]  ;;  %v14821_v52 = vpack.c.bf16 %v116_v49, %v115_v48  ;;  %v118_v54 = vld [vmem:[%s22305_s1 + $0x68] sm:$0xff]  ;;  %v133_v56 = vld [vmem:[%s22304_s0 + $0x91] sm:$0xff] }
  0x21   :  { %v117_v53 = vld [vmem:[%s22305_s1 + $0x60] sm:$0xff]  ;;  %v119_v58 = vld [vmem:[%s22305_s1 + $0x70] sm:$0xff]  ;;  %v120_v59 = vld [vmem:[%s22305_s1 + $0x78] sm:$0xff] }
  0x22   :  { %v132_v55 = vld [vmem:[%s22304_s0 + $0x81] sm:$0xff]  ;;  %v14825_v57 = vpack.c.bf16 %v118_v54, %v117_v53  ;;  %v134_v60 = vld [vmem:[%s22304_s0 + $0x99] sm:$0xff]  ;;  %v135_v61 = vld [vmem:[%s22304_s0 + $0xa9] sm:$0xff]  ;;  %v14829_v62 = vpack.c.bf16 %v120_v59, %v119_v58 }
  0x23   :  { %14784 = vmatpush3.bf16.msra.mxu0 %v14781_v12  ;;  %v10527_v63 = vld [vmem:[%s22305_s1 + $0x100] sm:$0xff]  ;;  %v10528_v0 = vld [vmem:[%s22305_s1 + $0x108] sm:$0xff]  ;;  %v136_v1 = vld [vmem:[%s22304_s0 + $0xb1] sm:$0xff] }
  0x24   :  { %14786 = vmatprep.subr.bf16.mxu0 %v14785_v15  ;;  %v137_v2 = vld [vmem:[%s22304_s0 + $0xc1] sm:$0xff]  ;;  %v16641_v3 = vpack.c.bf16 %v10528_v0, %v10527_v63  ;;  %v138_v4 = vld [vmem:[%s22304_s0 + $0xc9] sm:$0xff]  ;;  %v139_v5 = vld [vmem:[%s22304_s0 + $0xd9] sm:$0xff] }
  0x25   :  { %v140_v6 = vld [vmem:[%s22304_s0 + $0xe1] sm:$0xff]  ;;  %v141_v7 = vld [vmem:[%s22304_s0 + $0xf1] sm:$0xff]  ;;  %v142_v8 = vld [vmem:[%s22304_s0 + $0xf9] sm:$0xff] }
  0x26   :  { %v143_v9 = vld [vmem:[%s22304_s0 + $0x109] sm:$0xff]  ;;  %v144_v10 = vld [vmem:[%s22304_s0 + $0x111] sm:$0xff]  ;;  %v145_v11 = vld [vmem:[%s22304_s0 + $0x121] sm:$0xff] }
  0x27   :  { %14788 = vmatpush3.bf16.msra.mxu0 %v14785_v15  ;;  %v146_v12 = vld [vmem:[%s22304_s0 + $0x129] sm:$0xff]  ;;  %v147_v13 = vld [vmem:[%s22304_s0 + $0x139] sm:$0xff]  ;;  %v148_v14 = vld [vmem:[%s22304_s0 + $0x141] sm:$0xff] }
  0x28   :  { %14790 = vmatprep.subr.bf16.mxu0 %v14789_v18  ;;  %v149_v15 = vld [vmem:[%s22304_s0 + $0x151] sm:$0xff]  ;;  %v150_v16 = vld [vmem:[%s22304_s0 + $0x159] sm:$0xff]  ;;  %v151_v17 = vld [vmem:[%s22304_s0 + $0x169] sm:$0xff] }
  0x29   :  { %v153_v19 = vld [vmem:[%s22304_s0 + $0x1b1] sm:$0xff]  ;;  %v154_v20 = vld [vmem:[%s22304_s0 + $0x1b9] sm:$0xff]  ;;  %v157_v23 = vld [vmem:[%s22304_s0 + $0x1e1] sm:$0xff] }
  0x2a   :  { %v156_v22 = vld [vmem:[%s22304_s0 + $0x1d1] sm:$0xff]  ;;  %v159_v25 = vld [vmem:[%s22304_s0 + $0x1f9] sm:$0xff]  ;;  %v160_v26 = vld [vmem:[%s22304_s0 + $0x201] sm:$0xff] }
  0x2b   :  { %14792 = vmatpush3.bf16.msra.mxu0 %v14789_v18  ;;  %v152_v18 = vld [vmem:[%s22304_s0 + $0x171] sm:$0xff]  ;;  %v162_v28 = vld [vmem:[%s22304_s0 + $0x219] sm:$0xff]  ;;  %v163_v29 = vld [vmem:[%s22304_s0 + $0x229] sm:$0xff] }
  0x2c   :  { %14794 = vmatprep.subr.bf16.mxu0 %v14793_v21  ;;  %v167_v33 = vld [vmem:[%s22304_s0 + $0x259] sm:$0xff]  ;;  %v168_v34 = vld [vmem:[%s22304_s0 + $0x261] sm:$0xff]  ;;  %v172_v38 = vld [vmem:[%s22304_s0 + $0x291] sm:$0xff] }
  0x2d   :  { %v173_v39 = vld [vmem:[%s22304_s0 + $0x2a1] sm:$0xff]  ;;  %v177_v43 = vld [vmem:[%s22304_s0 + $0x2d1] sm:$0xff]  ;;  %v178_v44 = vld [vmem:[%s22304_s0 + $0x2d9] sm:$0xff] }
  0x2e   :  { %v182_v48 = vld [vmem:[%s22304_s0 + $0x309] sm:$0xff]  ;;  %v183_v49 = vld [vmem:[%s22304_s0 + $0x319] sm:$0xff] }
  0x2f   :  { %14796 = vmatpush3.bf16.msra.mxu0 %v14793_v21  ;;  %v155_v21 = vld [vmem:[%s22304_s0 + $0x1c9] sm:$0xff]  ;;  %v10530_v53 = vld [vmem:[%s22305_s1 + $0x118] sm:$0xff]  ;;  %v16813_v59 = vld [vmem:[%s22304_s0 + $0x20] sm:$0xff] }
  0x30   :  { %14798 = vmatprep.subr.bf16.mxu0 %v14797_v24  ;;  %v42_v54 = vld [vmem:[%s22304_s0 + $0x8] sm:$0xff]  ;;  %v10534_v63 = vld [vmem:[%s22305_s1 + $0x138] sm:$0xff] }
  0x31   :  { %v10532_v58 = vld [vmem:[%s22305_s1 + $0x128] sm:$0xff]  ;;  %v16831_v0 = vld [vmem:[%s22304_s0 + $0x38] sm:$0xff] }
  0x33   :  { %14800 = vmatpush3.bf16.msra.mxu0 %v14797_v24  ;;  %v158_v24 = vld [vmem:[%s22304_s0 + $0x1e9] sm:$0xff] }
  0x34   :  { %14802 = vmatprep.subr.bf16.mxu0 %v14801_v27 }
  0x36   :  { %12498 = vmatmul.mubr.f32.vlgmr.msra.gmra.mrb[0].mxu0 %v122_v30  ;;  %v164_v30 = vld [vmem:[%s22304_s0 + $0x231] sm:$0xff] }
  0x37   :  { %14804 = vmatpush3.bf16.msra.mxu0 %v14801_v27  ;;  %12500 = vmatprep.mubr.f32.mxu0 %v123_v31  ;;  %v161_v27 = vld [vmem:[%s22304_s0 + $0x211] sm:$0xff]  ;;  %v165_v31 = vld [vmem:[%s22304_s0 + $0x241] sm:$0xff] }
  0x38   :  { %14806 = vmatprep.subr.bf16.mxu0 %v14805_v32 }
  0x3a   :  { %12501 = vmatmul.mubr.f32.gmra.mrb[2].mxu0 %v124_v35  ;;  %v169_v35 = vld [vmem:[%s22304_s0 + $0x271] sm:$0xff] }
  0x3b   :  { %12503 = vmatprep.mubr.f32.mxu0 %v125_v36  ;;  %14808 = vmatpush3.bf16.msra.mxu0 %v14805_v32  ;;  %v166_v32 = vld [vmem:[%s22304_s0 + $0x249] sm:$0xff]  ;;  %v170_v36 = vld [vmem:[%s22304_s0 + $0x279] sm:$0xff] }
  0x3c   :  { %14810 = vmatprep.subr.bf16.mxu0 %v14809_v37 }
  0x3e   :  { %12504 = vmatmul.mubr.f32.gmra.mrb[4].mxu0 %v126_v40  ;;  %v174_v40 = vld [vmem:[%s22304_s0 + $0x2a9] sm:$0xff] }
  0x3f   :  { %12506 = vmatprep.mubr.f32.mxu0 %v127_v41  ;;  %14812 = vmatpush3.bf16.msra.mxu0 %v14809_v37  ;;  %v171_v37 = vld [vmem:[%s22304_s0 + $0x289] sm:$0xff]  ;;  %v175_v41 = vld [vmem:[%s22304_s0 + $0x2b9] sm:$0xff] }
  0x40   :  { %14814 = vmatprep.subr.bf16.mxu0 %v14813_v42 }
  0x42   :  { %12507 = vmatmul.mubr.f32.gmra.mrb[6].mxu0 %v128_v45  ;;  %v179_v45 = vld [vmem:[%s22304_s0 + $0x2e9] sm:$0xff] }
  0x43   :  { %12509 = vmatprep.mubr.f32.mxu0 %v129_v46  ;;  %14816 = vmatpush3.bf16.msra.mxu0 %v14813_v42  ;;  %v176_v42 = vld [vmem:[%s22304_s0 + $0x2c1] sm:$0xff]  ;;  %v180_v46 = vld [vmem:[%s22304_s0 + $0x2f1] sm:$0xff] }
  0x44   :  { %14818 = vmatprep.subr.bf16.mxu0 %v14817_v47 }
  0x46   :  { %12510 = vmatmul.mubr.f32.gmra.mrb[8].mxu0 %v130_v50  ;;  %v184_v50 = vld [vmem:[%s22304_s0 + $0x321] sm:$0xff] }
  0x47   :  { %12512 = vmatprep.mubr.f32.mxu0 %v131_v51  ;;  %14820 = vmatpush3.bf16.msra.mxu0 %v14817_v47  ;;  %v181_v47 = vld [vmem:[%s22304_s0 + $0x301] sm:$0xff] }
  0x48   :  { %14822 = vmatprep.subr.bf16.mxu0 %v14821_v52  ;;  %v41_v51 = vld [vmem:[%s22304_s0] sm:$0xff] }
  0x4a   :  { %12513 = vmatmul.mubr.f32.gmra.mrb[10].mxu0 %v132_v55  ;;  %v16800_v55 = vld [vmem:[%s22304_s0 + $0x18] sm:$0xff] }
  0x4b   :  { %12515 = vmatprep.mubr.f32.mxu0 %v133_v56  ;;  %14824 = vmatpush3.bf16.msra.mxu0 %v14821_v52  ;;  %v10529_v52 = vld [vmem:[%s22305_s1 + $0x110] sm:$0xff] }
  0x4c   :  { %14826 = vmatprep.subr.bf16.mxu0 %v14825_v57  ;;  %v14837_v56 = vpack.c.bf16 %v10530_v53, %v10529_v52  ;;  %v17074_v52 = vld [vmem:[%s22304_s0 + $0x218] sm:$0xff]  ;;  %v17079_v53 = vld [vmem:[%s22304_s0 + $0x228] sm:$0xff] }
  0x4e   :  { %12516 = vmatmul.mubr.f32.gmra.mrb[12].mxu0 %v134_v60  ;;  %v16818_v60 = vld [vmem:[%s22304_s0 + $0x30] sm:$0xff] }
  0x4f   :  { %12518 = vmatprep.mubr.f32.mxu0 %v135_v61  ;;  %14828 = vmatpush3.bf16.msra.mxu0 %v14825_v57  ;;  %v10531_v57 = vld [vmem:[%s22305_s1 + $0x120] sm:$0xff] }
  0x50   :  { %14830 = vmatprep.subr.bf16.mxu0 %v14829_v62  ;;  %v14841_v61 = vpack.c.bf16 %v10532_v58, %v10531_v57  ;;  %v17098_v57 = vld [vmem:[%s22304_s0 + $0x248] sm:$0xff]  ;;  %v17103_v58 = vld [vmem:[%s22304_s0 + $0x258] sm:$0xff] }
  0x52   :  { %12519 = vmatmul.mubr.f32.gmra.mrb[14].mxu0 %v136_v1  ;;  %v16836_v1 = vld [vmem:[%s22304_s0 + $0x48] sm:$0xff] }
  0x53   :  { %12521 = vmatprep.mubr.f32.mxu0 %v137_v2  ;;  %14832 = vmatpush3.bf16.msra.mxu0 %v14829_v62  ;;  %v10533_v62 = vld [vmem:[%s22305_s1 + $0x130] sm:$0xff] }
  0x54   :  { %14834 = vmatprep.subr.bf16.mxu0 %v16641_v3  ;;  %v14845_v2 = vpack.c.bf16 %v10534_v63, %v10533_v62  ;;  %v17115_v62 = vld [vmem:[%s22304_s0 + $0x270] sm:$0xff]  ;;  %v17122_v63 = vld [vmem:[%s22304_s0 + $0x278] sm:$0xff] }
  0x56   :  { %12522 = vmatmul.mubr.f32.gmra.mrb[16].mxu0 %v138_v4  ;;  %v10536_v4 = vld [vmem:[%s22305_s1 + $0x148] sm:$0xff] }
  0x57   :  { %12524 = vmatprep.mubr.f32.mxu0 %v139_v5  ;;  %v16849_v5 = vld [vmem:[%s22304_s0 + $0x50] sm:$0xff] }
  0x5a   :  { %12525 = vmatmul.mubr.f32.gmra.mrb[18].mxu0 %v140_v6  ;;  %v16854_v6 = vld [vmem:[%s22304_s0 + $0x60] sm:$0xff] }
  0x5b   :  { %12527 = vmatprep.mubr.f32.mxu0 %v141_v7 }
  0x5e   :  { %12528 = vmatmul.mubr.f32.gmra.mrb[20].mxu0 %v142_v8  ;;  %v10537_v8 = vld [vmem:[%s22305_s1 + $0x150] sm:$0xff] }
  0x5f   :  { %12530 = vmatprep.mubr.f32.mxu0 %v143_v9  ;;  %v10538_v9 = vld [vmem:[%s22305_s1 + $0x158] sm:$0xff] }
  0x62   :  { %12531 = vmatmul.mubr.f32.gmra.mrb[22].mxu0 %v144_v10  ;;  %v16867_v10 = vld [vmem:[%s22304_s0 + $0x68] sm:$0xff] }
  0x63   :  { %12533 = vmatprep.mubr.f32.mxu0 %v145_v11  ;;  %v16872_v11 = vld [vmem:[%s22304_s0 + $0x78] sm:$0xff] }
  0x66   :  { %12534 = vmatmul.mubr.f32.gmra.mrb[24].mxu0 %v146_v12  ;;  %v14853_v12 = vpack.c.bf16 %v10538_v9, %v10537_v8  ;;  %v17151_v8 = vld [vmem:[%s22304_s0 + $0x2b8] sm:$0xff]  ;;  %v17158_v9 = vld [vmem:[%s22304_s0 + $0x2c0] sm:$0xff] }
  0x67   :  { %12536 = vmatprep.mubr.f32.mxu0 %v147_v13  ;;  %v10539_v13 = vld [vmem:[%s22305_s1 + $0x160] sm:$0xff] }
  0x6a   :  { %12537 = vmatmul.mubr.f32.gmra.mrb[26].mxu0 %v148_v14  ;;  %v10540_v14 = vld [vmem:[%s22305_s1 + $0x168] sm:$0xff] }
  0x6b   :  { %12539 = vmatprep.mubr.f32.mxu0 %v149_v15  ;;  %v16885_v15 = vld [vmem:[%s22304_s0 + $0x80] sm:$0xff] }
  0x6e   :  { %12540 = vmatmul.mubr.f32.gmra.mrb[28].mxu0 %v150_v16  ;;  %v16890_v16 = vld [vmem:[%s22304_s0 + $0x90] sm:$0xff] }
  0x6f   :  { %12542 = vmatprep.mubr.f32.mxu0 %v151_v17  ;;  %v14857_v17 = vpack.c.bf16 %v10540_v14, %v10539_v13  ;;  %v17170_v13 = vld [vmem:[%s22304_s0 + $0x2d8] sm:$0xff]  ;;  %v17175_v14 = vld [vmem:[%s22304_s0 + $0x2e8] sm:$0xff] }
  0x70   :  { %22596 = vst [vmem:[#allocation9_spill] sm:$0xff] %v17175_v14 }
  0x72   :  { %12543 = vmatmul.mubr.f32.gmra.mrb[30].mxu0 %v152_v18  ;;  %v10541_v18 = vld [vmem:[%s22305_s1 + $0x170] sm:$0xff] }
  0x73   :  { %12545 = vmatprep.mubr.f32.mxu0 %v153_v19  ;;  %v10542_v19 = vld [vmem:[%s22305_s1 + $0x178] sm:$0xff] }
  0x76   :  { %12546 = vmatmul.mubr.f32.gmra.mrb[32].mxu0 %v154_v20  ;;  %v16903_v20 = vld [vmem:[%s22304_s0 + $0x98] sm:$0xff] }
  0x77   :  { %12548 = vmatprep.mubr.f32.mxu0 %v155_v21  ;;  %v16908_v21 = vld [vmem:[%s22304_s0 + $0xa8] sm:$0xff] }
  0x7a   :  { %12549 = vmatmul.mubr.f32.gmra.mrb[34].mxu0 %v156_v22  ;;  %v14861_v22 = vpack.c.bf16 %v10542_v19, %v10541_v18  ;;  %v17187_v18 = vld [vmem:[%s22304_s0 + $0x300] sm:$0xff]  ;;  %v17194_v19 = vld [vmem:[%s22304_s0 + $0x308] sm:$0xff] }
  0x7b   :  { %12551 = vmatprep.mubr.f32.mxu0 %v157_v23  ;;  %v10607_v23 = vld [vmem:[%s22305_s1 + $0x180] sm:$0xff]  ;;  %22598 = vst [vmem:[#allocation11_spill] sm:$0xff] %v17187_v18  ;;  %22599 = vst [vmem:[#allocation12_spill] sm:$0xff] %v17194_v19 }
  0x7e   :  { %12552 = vmatmul.mubr.f32.gmra.mrb[36].mxu0 %v158_v24  ;;  %v10608_v24 = vld [vmem:[%s22305_s1 + $0x188] sm:$0xff] }
  0x7f   :  { %12554 = vmatprep.mubr.f32.mxu0 %v159_v25  ;;  %v16921_v25 = vld [vmem:[%s22304_s0 + $0xb0] sm:$0xff] }
  0x82   :  { %12555 = vmatmul.mubr.f32.gmra.mrb[38].mxu0 %v160_v26  ;;  %v16926_v26 = vld [vmem:[%s22304_s0 + $0xc0] sm:$0xff] }
  0x83   :  { %12557 = vmatprep.mubr.f32.mxu0 %v161_v27  ;;  %v16928_v27 = vpack.c.bf16 %v10608_v24, %v10607_v23  ;;  %v17206_v23 = vld [vmem:[%s22304_s0 + $0x320] sm:$0xff] }
  0x84   :  { %22601 = vst [vmem:[#allocation14_spill] sm:$0xff] %v17206_v23  ;;  %v972_v24 = vld [vmem:[%s22304_s0 + $0x2] sm:$0xff] }
  0x86   :  { %12558 = vmatmul.mubr.f32.gmra.mrb[40].mxu0 %v162_v28  ;;  %v16935_v28 = vld [vmem:[%s22304_s0 + $0xc8] sm:$0xff] }
  0x87   :  { %12560 = vmatprep.mubr.f32.mxu0 %v163_v29  ;;  %v16940_v29 = vld [vmem:[%s22304_s0 + $0xd8] sm:$0xff] }
  0x8a   :  { %12561 = vmatmul.mubr.f32.gmra.mrb[42].mxu0 %v164_v30  ;;  %v16948_v30 = vld [vmem:[%s22304_s0 + $0xe0] sm:$0xff] }
  0x8b   :  { %12563 = vmatprep.mubr.f32.mxu0 %v165_v31  ;;  %v16953_v31 = vld [vmem:[%s22304_s0 + $0xf0] sm:$0xff] }
  0x8e   :  { %12564 = vmatmul.mubr.f32.gmra.mrb[44].mxu0 %v166_v32  ;;  %v16960_v32 = vld [vmem:[%s22304_s0 + $0xf8] sm:$0xff] }
  0x8f   :  { %12566 = vmatprep.mubr.f32.mxu0 %v167_v33  ;;  %v16965_v33 = vld [vmem:[%s22304_s0 + $0x108] sm:$0xff] }
  0x92   :  { %12567 = vmatmul.mubr.f32.gmra.mrb[46].mxu0 %v168_v34  ;;  %v16972_v34 = vld [vmem:[%s22304_s0 + $0x110] sm:$0xff] }
  0x93   :  { %12569 = vmatprep.mubr.f32.mxu0 %v169_v35  ;;  %v16977_v35 = vld [vmem:[%s22304_s0 + $0x120] sm:$0xff] }
  0x96   :  { %12570 = vmatmul.mubr.f32.gmra.mrb[48].mxu0 %v170_v36  ;;  %v16984_v36 = vld [vmem:[%s22304_s0 + $0x128] sm:$0xff] }
  0x97   :  { %12572 = vmatprep.mubr.f32.mxu0 %v171_v37  ;;  %v16989_v37 = vld [vmem:[%s22304_s0 + $0x138] sm:$0xff] }
  0x9a   :  { %12573 = vmatmul.mubr.f32.gmra.mrb[50].mxu0 %v172_v38  ;;  %v16996_v38 = vld [vmem:[%s22304_s0 + $0x140] sm:$0xff] }
  0x9b   :  { %12575 = vmatprep.mubr.f32.mxu0 %v173_v39  ;;  %v17001_v39 = vld [vmem:[%s22304_s0 + $0x150] sm:$0xff] }
  0x9e   :  { %12576 = vmatmul.mubr.f32.gmra.mrb[52].mxu0 %v174_v40  ;;  %v17008_v40 = vld [vmem:[%s22304_s0 + $0x158] sm:$0xff] }
  0x9f   :  { %12578 = vmatprep.mubr.f32.mxu0 %v175_v41  ;;  %v17013_v41 = vld [vmem:[%s22304_s0 + $0x168] sm:$0xff] }
  0xa2   :  { %12579 = vmatmul.mubr.f32.gmra.mrb[54].mxu0 %v176_v42  ;;  %v17020_v42 = vld [vmem:[%s22304_s0 + $0x170] sm:$0xff] }
  0xa3   :  { %12581 = vmatprep.mubr.f32.mxu0 %v177_v43  ;;  %v73_v43 = vld [vmem:[%s22304_s0 + $0x1b0] sm:$0xff] }
  0xa6   :  { %12582 = vmatmul.mubr.f32.gmra.mrb[56].mxu0 %v178_v44  ;;  %v74_v44 = vld [vmem:[%s22304_s0 + $0x1b8] sm:$0xff] }
  0xa7   :  { %12584 = vmatprep.mubr.f32.mxu0 %v179_v45  ;;  %v17032_v45 = vld [vmem:[%s22304_s0 + $0x1c8] sm:$0xff] }
  0xaa   :  { %12585 = vmatmul.mubr.f32.gmra.mrb[58].mxu0 %v180_v46  ;;  %v17038_v46 = vld [vmem:[%s22304_s0 + $0x1d0] sm:$0xff] }
  0xab   :  { %12587 = vmatprep.mubr.f32.mxu0 %v181_v47  ;;  %v17043_v47 = vld [vmem:[%s22304_s0 + $0x1e0] sm:$0xff] }
  0xae   :  { %12588 = vmatmul.mubr.f32.gmra.mrb[60].mxu0 %v182_v48  ;;  %v17050_v48 = vld [vmem:[%s22304_s0 + $0x1e8] sm:$0xff] }
  0xaf   :  { %12590 = vmatprep.mubr.f32.mxu0 %v183_v49  ;;  %v17055_v49 = vld [vmem:[%s22304_s0 + $0x1f8] sm:$0xff] }
  0xb2   :  { %12591 = vmatmul.mubr.f32.gmra.mrb[62].mxu0 %v184_v50  ;;  %v17062_v50 = vld [vmem:[%s22304_s0 + $0x200] sm:$0xff] }
  0xb3   :  { %12625 = vmatprep.mubr.f32.mxu0 %v41_v51  ;;  %v17067_v51 = vld [vmem:[%s22304_s0 + $0x210] sm:$0xff] }
  0xb6   :  { %12626 = vmatmul.mubr.f32.vlgmr.msra.gmra.mrb[0].mxu0 %v42_v54  ;;  %v17086_v54 = vld [vmem:[%s22304_s0 + $0x230] sm:$0xff] }
  0xb7   :  { %14836 = vmatpush3.bf16.msra.mxu0 %v16641_v3  ;;  %12628 = vmatprep.mubr.f32.mxu0 %v16800_v55  ;;  %v10535_v3 = vld [vmem:[%s22305_s1 + $0x140] sm:$0xff] }
  0xb8   :  { %14838 = vmatprep.subr.bf16.mxu0 %v14837_v56  ;;  %v14849_v7 = vpack.c.bf16 %v10536_v4, %v10535_v3  ;;  %v17134_v3 = vld [vmem:[%s22304_s0 + $0x290] sm:$0xff]  ;;  %v17139_v4 = vld [vmem:[%s22304_s0 + $0x2a0] sm:$0xff] }
  0xba   :  { %12629 = vmatmul.mubr.f32.gmra.mrb[2].mxu0 %v16813_v59 }
  0xbb   :  { %12631 = vmatprep.mubr.f32.mxu0 %v16818_v60  ;;  %14840 = vmatpush3.bf16.msra.mxu0 %v14837_v56  ;;  %v17091_v56 = vld [vmem:[%s22304_s0 + $0x240] sm:$0xff] }
  0xbc   :  { %14842 = vmatprep.subr.bf16.mxu0 %v14841_v61 }
  0xbe   :  { %12632 = vmatmul.mubr.f32.gmra.mrb[4].mxu0 %v16831_v0 }
  0xbf   :  { %12634 = vmatprep.mubr.f32.mxu0 %v16836_v1  ;;  %14844 = vmatpush3.bf16.msra.mxu0 %v14841_v61  ;;  %v17110_v61 = vld [vmem:[%s22304_s0 + $0x260] sm:$0xff] }
  0xc0   :  { %14846 = vmatprep.subr.bf16.mxu0 %v14845_v2 }
  0xc2   :  { %12635 = vmatmul.mubr.f32.gmra.mrb[6].mxu0 %v16849_v5 }
  0xc3   :  { %12637 = vmatprep.mubr.f32.mxu0 %v16854_v6  ;;  %14848 = vmatpush3.bf16.msra.mxu0 %v14845_v2  ;;  %v17127_v2 = vld [vmem:[%s22304_s0 + $0x288] sm:$0xff] }
  0xc4   :  { %14850 = vmatprep.subr.bf16.mxu0 %v14849_v7 }
  0xc6   :  { %12638 = vmatmul.mubr.f32.gmra.mrb[8].mxu0 %v16867_v10 }
  0xc7   :  { %12640 = vmatprep.mubr.f32.mxu0 %v16872_v11  ;;  %14852 = vmatpush3.bf16.msra.mxu0 %v14849_v7  ;;  %v17146_v7 = vld [vmem:[%s22304_s0 + $0x2a8] sm:$0xff] }
  0xc8   :  { %14854 = vmatprep.subr.bf16.mxu0 %v14853_v12 }
  0xca   :  { %12641 = vmatmul.mubr.f32.gmra.mrb[10].mxu0 %v16885_v15 }
  0xcb   :  { %12643 = vmatprep.mubr.f32.mxu0 %v16890_v16  ;;  %14856 = vmatpush3.bf16.msra.mxu0 %v14853_v12  ;;  %v17163_v12 = vld [vmem:[%s22304_s0 + $0x2d0] sm:$0xff] }
  0xcc   :  { %14858 = vmatprep.subr.bf16.mxu0 %v14857_v17 }
  0xce   :  { %12644 = vmatmul.mubr.f32.gmra.mrb[12].mxu0 %v16903_v20 }
  0xcf   :  { %12646 = vmatprep.mubr.f32.mxu0 %v16908_v21  ;;  %14860 = vmatpush3.bf16.msra.mxu0 %v14857_v17  ;;  %v17182_v17 = vld [vmem:[%s22304_s0 + $0x2f0] sm:$0xff] }
  0xd0   :  { %14862 = vmatprep.subr.bf16.mxu0 %v14861_v22  ;;  %22597 = vst [vmem:[#allocation10_spill] sm:$0xff] %v17182_v17 }
  0xd2   :  { %12647 = vmatmul.mubr.f32.gmra.mrb[14].mxu0 %v16921_v25 }
  0xd3   :  { %12649 = vmatprep.mubr.f32.mxu0 %v16926_v26  ;;  %14864 = vmatpush3.bf16.msra.mxu0 %v14861_v22  ;;  %v17199_v22 = vld [vmem:[%s22304_s0 + $0x318] sm:$0xff] }
  0xd4   :  { %14866 = vmatprep.subr.bf16.mxu0 %v16928_v27  ;;  %22600 = vst [vmem:[#allocation13_spill] sm:$0xff] %v17199_v22 }
  0xd6   :  { %12650 = vmatmul.mubr.f32.gmra.mrb[16].mxu0 %v16935_v28 }
  0xd7   :  { %12652 = vmatprep.mubr.f32.mxu0 %v16940_v29 }
  0xda   :  { %12653 = vmatmul.mubr.f32.gmra.mrb[18].mxu0 %v16948_v30 }
  0xdb   :  { %12655 = vmatprep.mubr.f32.mxu0 %v16953_v31 }
  0xde   :  { %12656 = vmatmul.mubr.f32.gmra.mrb[20].mxu0 %v16960_v32 }
  0xdf   :  { %12658 = vmatprep.mubr.f32.mxu0 %v16965_v33 }
  0xe2   :  { %12659 = vmatmul.mubr.f32.gmra.mrb[22].mxu0 %v16972_v34 }
  0xe3   :  { %12661 = vmatprep.mubr.f32.mxu0 %v16977_v35 }
  0xe6   :  { %12662 = vmatmul.mubr.f32.gmra.mrb[24].mxu0 %v16984_v36 }
  0xe7   :  { %12664 = vmatprep.mubr.f32.mxu0 %v16989_v37 }
  0xea   :  { %12665 = vmatmul.mubr.f32.gmra.mrb[26].mxu0 %v16996_v38 }
  0xeb   :  { %12667 = vmatprep.mubr.f32.mxu0 %v17001_v39 }
  0xee   :  { %12668 = vmatmul.mubr.f32.gmra.mrb[28].mxu0 %v17008_v40 }
  0xef   :  { %12670 = vmatprep.mubr.f32.mxu0 %v17013_v41 }
  0xf2   :  { %12671 = vmatmul.mubr.f32.gmra.mrb[30].mxu0 %v17020_v42 }
  0xf3   :  { %12673 = vmatprep.mubr.f32.mxu0 %v73_v43  ;;  %v10609_v43 = vld [vmem:[%s22305_s1 + $0x190] sm:$0xff] }
  0xf6   :  { %12674 = vmatmul.mubr.f32.gmra.mrb[32].mxu0 %v74_v44  ;;  %v10610_v44 = vld [vmem:[%s22305_s1 + $0x198] sm:$0xff] }
  0xf7   :  { %12676 = vmatprep.mubr.f32.mxu0 %v17032_v45 }
  0xfa   :  { %12677 = vmatmul.mubr.f32.gmra.mrb[34].mxu0 %v17038_v46 }
  0xfb   :  { %12679 = vmatprep.mubr.f32.mxu0 %v17043_v47 }
  0xfe   :  { %12680 = vmatmul.mubr.f32.gmra.mrb[36].mxu0 %v17050_v48 }
  0xff   :  { %12682 = vmatprep.mubr.f32.mxu0 %v17055_v49 }
 0x102   :  { %12683 = vmatmul.mubr.f32.gmra.mrb[38].mxu0 %v17062_v50 }
 0x103   :  { %12685 = vmatprep.mubr.f32.mxu0 %v17067_v51 }
 0x106   :  { %12686 = vmatmul.mubr.f32.gmra.mrb[40].mxu0 %v17074_v52 }
 0x107   :  { %12688 = vmatprep.mubr.f32.mxu0 %v17079_v53 }
 0x10a   :  { %12689 = vmatmul.mubr.f32.gmra.mrb[42].mxu0 %v17086_v54 }
 0x10b   :  { %12691 = vmatprep.mubr.f32.mxu0 %v17091_v56 }
 0x10e   :  { %12692 = vmatmul.mubr.f32.gmra.mrb[44].mxu0 %v17098_v57 }
 0x10f   :  { %12694 = vmatprep.mubr.f32.mxu0 %v17103_v58 }
 0x112   :  { %12695 = vmatmul.mubr.f32.gmra.mrb[46].mxu0 %v17110_v61 }
 0x113   :  { %12697 = vmatprep.mubr.f32.mxu0 %v17115_v62 }
 0x116   :  { %12698 = vmatmul.mubr.f32.gmra.mrb[48].mxu0 %v17122_v63 }
 0x117   :  { %12700 = vmatprep.mubr.f32.mxu0 %v17127_v2 }
 0x11a   :  { %12701 = vmatmul.mubr.f32.gmra.mrb[50].mxu0 %v17134_v3 }
 0x11b   :  { %12703 = vmatprep.mubr.f32.mxu0 %v17139_v4 }
 0x11e   :  { %12704 = vmatmul.mubr.f32.gmra.mrb[52].mxu0 %v17146_v7 }
 0x11f   :  { %12706 = vmatprep.mubr.f32.mxu0 %v17151_v8 }
 0x122   :  { %12707 = vmatmul.mubr.f32.gmra.mrb[54].mxu0 %v17158_v9 }
 0x123   :  { %12709 = vmatprep.mubr.f32.mxu0 %v17163_v12 }
 0x126   :  { %12710 = vmatmul.mubr.f32.gmra.mrb[56].mxu0 %v17170_v13 }
 0x127   :  { %12712 = vmatprep.mubr.f32.mxu0 %v17175_v14  ;;  %v10612_v14 = vld [vmem:[%s22305_s1 + $0x1a8] sm:$0xff] }
 0x12a   :  { %12713 = vmatmul.mubr.f32.gmra.mrb[58].mxu0 %v17182_v17  ;;  %v10611_v17 = vld [vmem:[%s22305_s1 + $0x1a0] sm:$0xff] }
 0x12b   :  { %12715 = vmatprep.mubr.f32.mxu0 %v17187_v18  ;;  %v14869_v18 = vpack.c.bf16 %v10610_v44, %v10609_v43  ;;  %v17242_v43 = vld [vmem:[%s22304_s0 + $0x32] sm:$0xff]  ;;  %v14873_v44 = vpack.c.bf16 %v10612_v14, %v10611_v17  ;;  %v17260_v14 = vld [vmem:[%s22304_s0 + $0x4a] sm:$0xff] }
 0x12c   :  { %22604 = vst [vmem:[#allocation17_spill] sm:$0xff] %v17242_v43  ;;  %22606 = vst [vmem:[#allocation19_spill] sm:$0xff] %v17260_v14 }
 0x12e   :  { %12716 = vmatmul.mubr.f32.gmra.mrb[60].mxu0 %v17194_v19  ;;  %v17224_v19 = vld [vmem:[%s22304_s0 + $0x1a] sm:$0xff] }
 0x12f   :  { %12718 = vmatprep.mubr.f32.mxu0 %v17199_v22  ;;  %v973_v22 = vld [vmem:[%s22304_s0 + $0xa] sm:$0xff]  ;;  %22602 = vst [vmem:[#allocation15_spill] sm:$0xff] %v17224_v19 }
 0x132   :  { %12719 = vmatmul.mubr.f32.gmra.mrb[62].mxu0 %v17206_v23  ;;  %v10615_v23 = vld [vmem:[%s22305_s1 + $0x1c0] sm:$0xff] }
 0x133   :  { %12753 = vmatprep.mubr.f32.mxu0 %v972_v24  ;;  %v17237_v24 = vld [vmem:[%s22304_s0 + $0x22] sm:$0xff] }
 0x134   :  { %22603 = vst [vmem:[#allocation16_spill] sm:$0xff] %v17237_v24 }
 0x136   :  { %12754 = vmatmul.mubr.f32.vlgmr.msra.gmra.mrb[0].mxu0 %v973_v22  ;;  %v10613_v22 = vld [vmem:[%s22305_s1 + $0x1b0] sm:$0xff] }
 0x137   :  { %14868 = vmatpush3.bf16.msra.mxu0 %v16928_v27  ;;  %12756 = vmatprep.mubr.f32.mxu0 %v17224_v19  ;;  %v10614_v27 = vld [vmem:[%s22305_s1 + $0x1b8] sm:$0xff] }
 0x138   :  { %14870 = vmatprep.subr.bf16.mxu0 %v14869_v18  ;;  %v17255_v19 = vld [vmem:[%s22304_s0 + $0x3a] sm:$0xff]  ;;  %v14877_v17 = vpack.c.bf16 %v10614_v27, %v10613_v22  ;;  %v17278_v22 = vld [vmem:[%s22304_s0 + $0x62] sm:$0xff] }
 0x139   :  { %22605 = vst [vmem:[#allocation18_spill] sm:$0xff] %v17255_v19  ;;  %22608 = vst [vmem:[#allocation21_spill] sm:$0xff] %v17278_v22 }
 0x13a   :  { %12757 = vmatmul.mubr.f32.gmra.mrb[2].mxu0 %v17237_v24  ;;  %v10617_v24 = vld [vmem:[%s22305_s1 + $0x1d0] sm:$0xff] }
 0x13b   :  { %12759 = vmatprep.mubr.f32.mxu0 %v17242_v43  ;;  %14872 = vmatpush3.bf16.msra.mxu0 %v14869_v18  ;;  %v10616_v43 = vld [vmem:[%s22305_s1 + $0x1c8] sm:$0xff]  ;;  %v17273_v18 = vld [vmem:[%s22304_s0 + $0x52] sm:$0xff] }
 0x13c   :  { %14874 = vmatprep.subr.bf16.mxu0 %v14873_v44  ;;  %22607 = vst [vmem:[#allocation20_spill] sm:$0xff] %v17273_v18  ;;  %v14881_v27 = vpack.c.bf16 %v10616_v43, %v10615_v23  ;;  %v17296_v23 = vld [vmem:[%s22304_s0 + $0x7a] sm:$0xff] }
 0x13d   :  { %22610 = vst [vmem:[#allocation23_spill] sm:$0xff] %v17296_v23 }
 0x13e   :  { %12760 = vmatmul.mubr.f32.gmra.mrb[4].mxu0 %v17255_v19  ;;  %v10619_v19 = vld [vmem:[%s22305_s1 + $0x1e0] sm:$0xff] }
 0x13f   :  { %12762 = vmatprep.mubr.f32.mxu0 %v17260_v14  ;;  %14876 = vmatpush3.bf16.msra.mxu0 %v14873_v44  ;;  %v10618_v14 = vld [vmem:[%s22305_s1 + $0x1d8] sm:$0xff]  ;;  %v17291_v44 = vld [vmem:[%s22304_s0 + $0x6a] sm:$0xff] }
 0x140   :  { %14878 = vmatprep.subr.bf16.mxu0 %v14877_v17  ;;  %22609 = vst [vmem:[#allocation22_spill] sm:$0xff] %v17291_v44  ;;  %v14885_v43 = vpack.c.bf16 %v10618_v14, %v10617_v24  ;;  %v17314_v24 = vld [vmem:[%s22304_s0 + $0x92] sm:$0xff] }
 0x141   :  { %22611 = vst [vmem:[#allocation24_spill] sm:$0xff] %v17314_v24 }
 0x142   :  { %12763 = vmatmul.mubr.f32.gmra.mrb[6].mxu0 %v17273_v18  ;;  %v10621_v18 = vld [vmem:[%s22305_s1 + $0x1f0] sm:$0xff] }
 0x143   :  { %12765 = vmatprep.mubr.f32.mxu0 %v17278_v22  ;;  %14880 = vmatpush3.bf16.msra.mxu0 %v14877_v17  ;;  %v10620_v22 = vld [vmem:[%s22305_s1 + $0x1e8] sm:$0xff] }
 0x144   :  { %14882 = vmatprep.subr.bf16.mxu0 %v14881_v27  ;;  %v17309_v17 = vld [vmem:[%s22304_s0 + $0x82] sm:$0xff]  ;;  %v14889_v14 = vpack.c.bf16 %v10620_v22, %v10619_v19  ;;  %v17332_v19 = vld [vmem:[%s22304_s0 + $0xaa] sm:$0xff] }
 0x145   :  { %22612 = vst [vmem:[#allocation25_spill] sm:$0xff] %v17332_v19 }
 0x146   :  { %12766 = vmatmul.mubr.f32.gmra.mrb[8].mxu0 %v17291_v44  ;;  %v10687_v44 = vld [vmem:[%s22305_s1 + $0x200] sm:$0xff] }
 0x147   :  { %12768 = vmatprep.mubr.f32.mxu0 %v17296_v23  ;;  %14884 = vmatpush3.bf16.msra.mxu0 %v14881_v27  ;;  %v10622_v23 = vld [vmem:[%s22305_s1 + $0x1f8] sm:$0xff] }
 0x148   :  { %14886 = vmatprep.subr.bf16.mxu0 %v14885_v43  ;;  %v17327_v27 = vld [vmem:[%s22304_s0 + $0x9a] sm:$0xff]  ;;  %v14893_v22 = vpack.c.bf16 %v10622_v23, %v10621_v18  ;;  %v17350_v18 = vld [vmem:[%s22304_s0 + $0xc2] sm:$0xff] }
 0x149   :  { %22614 = vst [vmem:[#allocation27_spill] sm:$0xff] %v17350_v18 }
 0x14a   :  { %12769 = vmatmul.mubr.f32.gmra.mrb[10].mxu0 %v17309_v17 }
 0x14b   :  { %12771 = vmatprep.mubr.f32.mxu0 %v17314_v24  ;;  %14888 = vmatpush3.bf16.msra.mxu0 %v14885_v43  ;;  %v10688_v24 = vld [vmem:[%s22305_s1 + $0x208] sm:$0xff]  ;;  %v17345_v43 = vld [vmem:[%s22304_s0 + $0xb2] sm:$0xff] }
 0x14c   :  { %14890 = vmatprep.subr.bf16.mxu0 %v14889_v14  ;;  %22613 = vst [vmem:[#allocation26_spill] sm:$0xff] %v17345_v43  ;;  %v17352_v23 = vpack.c.bf16 %v10688_v24, %v10687_v44  ;;  %v17372_v44 = vld [vmem:[%s22304_s0 + $0xe2] sm:$0xff]  ;;  %v17377_v24 = vld [vmem:[%s22304_s0 + $0xf2] sm:$0xff] }
 0x14d   :  { %22617 = vst [vmem:[#allocation30_spill] sm:$0xff] %v17372_v44  ;;  %22618 = vst [vmem:[#allocation31_spill] sm:$0xff] %v17377_v24 }
 0x14e   :  { %12772 = vmatmul.mubr.f32.gmra.mrb[12].mxu0 %v17327_v27 }
 0x14f   :  { %12774 = vmatprep.mubr.f32.mxu0 %v17332_v19  ;;  %14892 = vmatpush3.bf16.msra.mxu0 %v14889_v14  ;;  %v17359_v19 = vld [vmem:[%s22304_s0 + $0xca] sm:$0xff]  ;;  %v17364_v14 = vld [vmem:[%s22304_s0 + $0xda] sm:$0xff] }
 0x150   :  { %14894 = vmatprep.subr.bf16.mxu0 %v14893_v22  ;;  %22615 = vst [vmem:[#allocation28_spill] sm:$0xff] %v17359_v19  ;;  %22616 = vst [vmem:[#allocation29_spill] sm:$0xff] %v17364_v14 }
 0x152   :  { %12775 = vmatmul.mubr.f32.gmra.mrb[14].mxu0 %v17345_v43 }
 0x153   :  { %12777 = vmatprep.mubr.f32.mxu0 %v17350_v18  ;;  %14896 = vmatpush3.bf16.msra.mxu0 %v14893_v22  ;;  %v17384_v22 = vld [vmem:[%s22304_s0 + $0xfa] sm:$0xff]  ;;  %v10692_v18 = vld [vmem:[%s22305_s1 + $0x228] sm:$0xff] }
 0x154   :  { %14898 = vmatprep.subr.bf16.mxu0 %v17352_v23  ;;  %22619 = vst [vmem:[#allocation32_spill] sm:$0xff] %v17384_v22 }
 0x156   :  { %12778 = vmatmul.mubr.f32.gmra.mrb[16].mxu0 %v17359_v19  ;;  %v1005_v19 = vld [vmem:[%s22304_s0 + $0x1ba] sm:$0xff] }
 0x157   :  { %12780 = vmatprep.mubr.f32.mxu0 %v17364_v14  ;;  %v17389_v14 = vld [vmem:[%s22304_s0 + $0x10a] sm:$0xff] }
 0x158   :  { %22620 = vst [vmem:[#allocation33_spill] sm:$0xff] %v17389_v14 }
 0x15a   :  { %12781 = vmatmul.mubr.f32.gmra.mrb[18].mxu0 %v17372_v44  ;;  %v17396_v44 = vld [vmem:[%s22304_s0 + $0x112] sm:$0xff] }
 0x15b   :  { %12783 = vmatprep.mubr.f32.mxu0 %v17377_v24  ;;  %22621 = vst [vmem:[#allocation34_spill] sm:$0xff] %v17396_v44  ;;  %v17401_v24 = vld [vmem:[%s22304_s0 + $0x122] sm:$0xff] }
 0x15c   :  { %22622 = vst [vmem:[#allocation35_spill] sm:$0xff] %v17401_v24 }
 0x15e   :  { %12784 = vmatmul.mubr.f32.gmra.mrb[20].mxu0 %v17384_v22  ;;  %v17408_v22 = vld [vmem:[%s22304_s0 + $0x12a] sm:$0xff] }
 0x15f   :  { %12786 = vmatprep.mubr.f32.mxu0 %v17389_v14  ;;  %22623 = vst [vmem:[#allocation36_spill] sm:$0xff] %v17408_v22  ;;  %v17413_v14 = vld [vmem:[%s22304_s0 + $0x13a] sm:$0xff] }
 0x160   :  { %22624 = vst [vmem:[#allocation37_spill] sm:$0xff] %v17413_v14 }
 0x162   :  { %12787 = vmatmul.mubr.f32.gmra.mrb[22].mxu0 %v17396_v44  ;;  %v17420_v44 = vld [vmem:[%s22304_s0 + $0x142] sm:$0xff] }
 0x163   :  { %12789 = vmatprep.mubr.f32.mxu0 %v17401_v24  ;;  %22625 = vst [vmem:[#allocation38_spill] sm:$0xff] %v17420_v44  ;;  %v17425_v24 = vld [vmem:[%s22304_s0 + $0x152] sm:$0xff] }
 0x164   :  { %22626 = vst [vmem:[#allocation39_spill] sm:$0xff] %v17425_v24 }
 0x166   :  { %12790 = vmatmul.mubr.f32.gmra.mrb[24].mxu0 %v17408_v22  ;;  %v17432_v22 = vld [vmem:[%s22304_s0 + $0x15a] sm:$0xff] }
 0x167   :  { %12792 = vmatprep.mubr.f32.mxu0 %v17413_v14  ;;  %22627 = vst [vmem:[#allocation40_spill] sm:$0xff] %v17432_v22  ;;  %v17437_v14 = vld [vmem:[%s22304_s0 + $0x16a] sm:$0xff] }
 0x168   :  { %22628 = vst [vmem:[#allocation41_spill] sm:$0xff] %v17437_v14 }
 0x16a   :  { %12793 = vmatmul.mubr.f32.gmra.mrb[26].mxu0 %v17420_v44  ;;  %v17444_v44 = vld [vmem:[%s22304_s0 + $0x172] sm:$0xff] }
 0x16b   :  { %12795 = vmatprep.mubr.f32.mxu0 %v17425_v24  ;;  %22629 = vst [vmem:[#allocation42_spill] sm:$0xff] %v17444_v44  ;;  %v1004_v24 = vld [vmem:[%s22304_s0 + $0x1b2] sm:$0xff] }
 0x16e   :  { %12796 = vmatmul.mubr.f32.gmra.mrb[28].mxu0 %v17432_v22  ;;  %v17462_v22 = vld [vmem:[%s22304_s0 + $0x1d2] sm:$0xff] }
 0x16f   :  { %12798 = vmatprep.mubr.f32.mxu0 %v17437_v14  ;;  %v17456_v14 = vld [vmem:[%s22304_s0 + $0x1ca] sm:$0xff]  ;;  %22631 = vst [vmem:[#allocation44_spill] sm:$0xff] %v17462_v22 }
 0x170   :  { %22630 = vst [vmem:[#allocation43_spill] sm:$0xff] %v17456_v14 }
 0x172   :  { %12799 = vmatmul.mubr.f32.gmra.mrb[30].mxu0 %v17444_v44  ;;  %v10690_v44 = vld [vmem:[%s22305_s1 + $0x218] sm:$0xff] }
 0x173   :  { %12801 = vmatprep.mubr.f32.mxu0 %v1004_v24  ;;  %v17467_v24 = vld [vmem:[%s22304_s0 + $0x1e2] sm:$0xff] }
 0x174   :  { %22632 = vst [vmem:[#allocation45_spill] sm:$0xff] %v17467_v24 }
 0x176   :  { %12802 = vmatmul.mubr.f32.gmra.mrb[32].mxu0 %v1005_v19  ;;  %v17474_v19 = vld [vmem:[%s22304_s0 + $0x1ea] sm:$0xff] }
 0x177   :  { %12804 = vmatprep.mubr.f32.mxu0 %v17456_v14  ;;  %22633 = vst [vmem:[#allocation46_spill] sm:$0xff] %v17474_v19  ;;  %v17479_v14 = vld [vmem:[%s22304_s0 + $0x1fa] sm:$0xff] }
 0x178   :  { %22634 = vst [vmem:[#allocation47_spill] sm:$0xff] %v17479_v14 }
 0x17a   :  { %12805 = vmatmul.mubr.f32.gmra.mrb[34].mxu0 %v17462_v22  ;;  %v17486_v22 = vld [vmem:[%s22304_s0 + $0x202] sm:$0xff] }
 0x17b   :  { %12807 = vmatprep.mubr.f32.mxu0 %v17467_v24  ;;  %22635 = vst [vmem:[#allocation48_spill] sm:$0xff] %v17486_v22  ;;  %v17491_v24 = vld [vmem:[%s22304_s0 + $0x212] sm:$0xff] }
 0x17c   :  { %22636 = vst [vmem:[#allocation49_spill] sm:$0xff] %v17491_v24 }
 0x17e   :  { %12808 = vmatmul.mubr.f32.gmra.mrb[36].mxu0 %v17474_v19  ;;  %v17498_v19 = vld [vmem:[%s22304_s0 + $0x21a] sm:$0xff] }
 0x17f   :  { %12810 = vmatprep.mubr.f32.mxu0 %v17479_v14  ;;  %22637 = vst [vmem:[#allocation50_spill] sm:$0xff] %v17498_v19  ;;  %v17503_v14 = vld [vmem:[%s22304_s0 + $0x22a] sm:$0xff] }
 0x180   :  { %22638 = vst [vmem:[#allocation51_spill] sm:$0xff] %v17503_v14 }
 0x182   :  { %12811 = vmatmul.mubr.f32.gmra.mrb[38].mxu0 %v17486_v22  ;;  %v17510_v22 = vld [vmem:[%s22304_s0 + $0x232] sm:$0xff] }
 0x183   :  { %12813 = vmatprep.mubr.f32.mxu0 %v17491_v24  ;;  %22639 = vst [vmem:[#allocation52_spill] sm:$0xff] %v17510_v22  ;;  %v17515_v24 = vld [vmem:[%s22304_s0 + $0x242] sm:$0xff] }
 0x184   :  { %22640 = vst [vmem:[#allocation53_spill] sm:$0xff] %v17515_v24 }
 0x186   :  { %12814 = vmatmul.mubr.f32.gmra.mrb[40].mxu0 %v17498_v19  ;;  %v17522_v19 = vld [vmem:[%s22304_s0 + $0x24a] sm:$0xff] }
 0x187   :  { %12816 = vmatprep.mubr.f32.mxu0 %v17503_v14  ;;  %22641 = vst [vmem:[#allocation54_spill] sm:$0xff] %v17522_v19  ;;  %v17527_v14 = vld [vmem:[%s22304_s0 + $0x25a] sm:$0xff] }
 0x188   :  { %22642 = vst [vmem:[#allocation55_spill] sm:$0xff] %v17527_v14 }
 0x18a   :  { %12817 = vmatmul.mubr.f32.gmra.mrb[42].mxu0 %v17510_v22  ;;  %v17534_v22 = vld [vmem:[%s22304_s0 + $0x262] sm:$0xff] }
 0x18b   :  { %12819 = vmatprep.mubr.f32.mxu0 %v17515_v24  ;;  %22643 = vst [vmem:[#allocation56_spill] sm:$0xff] %v17534_v22  ;;  %v17539_v24 = vld [vmem:[%s22304_s0 + $0x272] sm:$0xff] }
 0x18c   :  { %22644 = vst [vmem:[#allocation57_spill] sm:$0xff] %v17539_v24 }
 0x18e   :  { %12820 = vmatmul.mubr.f32.gmra.mrb[44].mxu0 %v17522_v19  ;;  %v17546_v19 = vld [vmem:[%s22304_s0 + $0x27a] sm:$0xff] }
 0x18f   :  { %12822 = vmatprep.mubr.f32.mxu0 %v17527_v14  ;;  %22645 = vst [vmem:[#allocation58_spill] sm:$0xff] %v17546_v19  ;;  %v17551_v14 = vld [vmem:[%s22304_s0 + $0x28a] sm:$0xff] }
 0x190   :  { %22646 = vst [vmem:[#allocation59_spill] sm:$0xff] %v17551_v14 }
 0x192   :  { %12823 = vmatmul.mubr.f32.gmra.mrb[46].mxu0 %v17534_v22  ;;  %v17558_v22 = vld [vmem:[%s22304_s0 + $0x292] sm:$0xff] }
 0x193   :  { %12825 = vmatprep.mubr.f32.mxu0 %v17539_v24  ;;  %22647 = vst [vmem:[#allocation60_spill] sm:$0xff] %v17558_v22  ;;  %v17563_v24 = vld [vmem:[%s22304_s0 + $0x2a2] sm:$0xff] }
 0x194   :  { %22648 = vst [vmem:[#allocation61_spill] sm:$0xff] %v17563_v24 }
 0x196   :  { %12826 = vmatmul.mubr.f32.gmra.mrb[48].mxu0 %v17546_v19  ;;  %v17570_v19 = vld [vmem:[%s22304_s0 + $0x2aa] sm:$0xff] }
 0x197   :  { %12828 = vmatprep.mubr.f32.mxu0 %v17551_v14  ;;  %22649 = vst [vmem:[#allocation62_spill] sm:$0xff] %v17570_v19  ;;  %v17575_v14 = vld [vmem:[%s22304_s0 + $0x2ba] sm:$0xff] }
 0x198   :  { %22650 = vst [vmem:[#allocation63_spill] sm:$0xff] %v17575_v14 }
 0x19a   :  { %12829 = vmatmul.mubr.f32.gmra.mrb[50].mxu0 %v17558_v22  ;;  %v17582_v22 = vld [vmem:[%s22304_s0 + $0x2c2] sm:$0xff] }
 0x19b   :  { %12831 = vmatprep.mubr.f32.mxu0 %v17563_v24  ;;  %22651 = vst [vmem:[#allocation64_spill] sm:$0xff] %v17582_v22  ;;  %v17587_v24 = vld [vmem:[%s22304_s0 + $0x2d2] sm:$0xff] }
 0x19c   :  { %22652 = vst [vmem:[#allocation65_spill] sm:$0xff] %v17587_v24 }
 0x19e   :  { %12832 = vmatmul.mubr.f32.gmra.mrb[52].mxu0 %v17570_v19  ;;  %v17594_v19 = vld [vmem:[%s22304_s0 + $0x2da] sm:$0xff] }
 0x19f   :  { %12834 = vmatprep.mubr.f32.mxu0 %v17575_v14  ;;  %22653 = vst [vmem:[#allocation66_spill] sm:$0xff] %v17594_v19  ;;  %v17599_v14 = vld [vmem:[%s22304_s0 + $0x2ea] sm:$0xff] }
 0x1a0   :  { %22654 = vst [vmem:[#allocation67_spill] sm:$0xff] %v17599_v14 }
 0x1a2   :  { %12835 = vmatmul.mubr.f32.gmra.mrb[54].mxu0 %v17582_v22  ;;  %v17606_v22 = vld [vmem:[%s22304_s0 + $0x2f2] sm:$0xff] }
 0x1a3   :  { %12837 = vmatprep.mubr.f32.mxu0 %v17587_v24  ;;  %22655 = vst [vmem:[#allocation68_spill] sm:$0xff] %v17606_v22  ;;  %v17611_v24 = vld [vmem:[%s22304_s0 + $0x302] sm:$0xff] }
 0x1a4   :  { %22656 = vst [vmem:[#allocation69_spill] sm:$0xff] %v17611_v24 }
 0x1a6   :  { %12838 = vmatmul.mubr.f32.gmra.mrb[56].mxu0 %v17594_v19  ;;  %v17618_v19 = vld [vmem:[%s22304_s0 + $0x30a] sm:$0xff] }
 0x1a7   :  { %12840 = vmatprep.mubr.f32.mxu0 %v17599_v14  ;;  %22657 = vst [vmem:[#allocation70_spill] sm:$0xff] %v17618_v19  ;;  %v17623_v14 = vld [vmem:[%s22304_s0 + $0x31a] sm:$0xff] }
 0x1a8   :  { %22658 = vst [vmem:[#allocation71_spill] sm:$0xff] %v17623_v14 }
 0x1aa   :  { %12841 = vmatmul.mubr.f32.gmra.mrb[58].mxu0 %v17606_v22  ;;  %v17630_v22 = vld [vmem:[%s22304_s0 + $0x322] sm:$0xff] }
 0x1ab   :  { %12843 = vmatprep.mubr.f32.mxu0 %v17611_v24  ;;  %v10689_v24 = vld [vmem:[%s22305_s1 + $0x210] sm:$0xff] }
 0x1ae   :  { %12844 = vmatmul.mubr.f32.gmra.mrb[60].mxu0 %v17618_v19  ;;  %v14901_v19 = vpack.c.bf16 %v10690_v44, %v10689_v24  ;;  %v10694_v44 = vld [vmem:[%s22305_s1 + $0x238] sm:$0xff]  ;;  %v10768_v24 = vld [vmem:[%s22305_s1 + $0x288] sm:$0xff] }
 0x1af   :  { %12846 = vmatprep.mubr.f32.mxu0 %v17623_v14  ;;  %v10691_v14 = vld [vmem:[%s22305_s1 + $0x220] sm:$0xff] }
 0x1b0   :  { %v14905_v43 = vpack.c.bf16 %v10692_v18, %v10691_v14  ;;  %v10696_v18 = vld [vmem:[%s22305_s1 + $0x248] sm:$0xff]  ;;  %v10702_v14 = vld [vmem:[%s22305_s1 + $0x278] sm:$0xff] }
 0x1b2   :  { %12847 = vmatmul.mubr.f32.gmra.mrb[62].mxu0 %v17630_v22 }
 0x1b3   :  { %12881 = vmatprep.mubr.f32.mxu0 %v16800_v55  ;;  %v10693_v55 = vld [vmem:[%s22305_s1 + $0x230] sm:$0xff] }
 0x1b6   :  { %12882 = vmatmul.mubr.f32.vlgmr.msra.gmra.mrb[0].mxu0 %v16813_v59  ;;  %v14909_v59 = vpack.c.bf16 %v10694_v44, %v10693_v55  ;;  %v17887_v55 = vld [vmem:[%s22304_s0 + $0xb1] sm:$0xff]  ;;  %v17892_v44 = vld [vmem:[%s22304_s0 + $0xc1] sm:$0xff] }
 0x1b7   :  { %14900 = vmatpush3.bf16.msra.mxu0 %v17352_v23  ;;  %12884 = vmatprep.mubr.f32.mxu0 %v16818_v60  ;;  %v10695_v60 = vld [vmem:[%s22305_s1 + $0x240] sm:$0xff]  ;;  %v10698_v23 = vld [vmem:[%s22305_s1 + $0x258] sm:$0xff] }
 0x1b8   :  { %14902 = vmatprep.subr.bf16.mxu0 %v14901_v19 }
 0x1ba   :  { %12885 = vmatmul.mubr.f32.gmra.mrb[2].mxu0 %v16831_v0  ;;  %v14913_v0 = vpack.c.bf16 %v10696_v18, %v10695_v60  ;;  %v10847_v60 = vld [vmem:[%s22305_s1 + $0x300] sm:$0xff]  ;;  %v10848_v18 = vld [vmem:[%s22305_s1 + $0x308] sm:$0xff] }
 0x1bb   :  { %12887 = vmatprep.mubr.f32.mxu0 %v16836_v1  ;;  %14904 = vmatpush3.bf16.msra.mxu0 %v14901_v19  ;;  %v10697_v1 = vld [vmem:[%s22305_s1 + $0x250] sm:$0xff]  ;;  %v10782_v19 = vld [vmem:[%s22305_s1 + $0x2f8] sm:$0xff] }
 0x1bc   :  { %14906 = vmatprep.subr.bf16.mxu0 %v14905_v43 }
 0x1be   :  { %12888 = vmatmul.mubr.f32.gmra.mrb[4].mxu0 %v16849_v5  ;;  %v14917_v5 = vpack.c.bf16 %v10698_v23, %v10697_v1  ;;  %v17910_v1 = vld [vmem:[%s22304_s0 + $0xd9] sm:$0xff]  ;;  %v17912_v23 = vpack.c.bf16 %v10848_v18, %v10847_v60  ;;  %v18147_v60 = vld [vmem:[%s22304_s0 + $0x2e9] sm:$0xff]  ;;  %v18154_v18 = vld [vmem:[%s22304_s0 + $0x2f1] sm:$0xff] }
 0x1bf   :  { %12890 = vmatprep.mubr.f32.mxu0 %v16854_v6  ;;  %14908 = vmatpush3.bf16.msra.mxu0 %v14905_v43  ;;  %v10699_v6 = vld [vmem:[%s22305_s1 + $0x260] sm:$0xff]  ;;  %v10700_v43 = vld [vmem:[%s22305_s1 + $0x268] sm:$0xff]  ;;  %22671 = vst [vmem:[#allocation72_spill] sm:$0xff] %v18147_v60  ;;  %22672 = vst [vmem:[#allocation73_spill] sm:$0xff] %v18154_v18 }
 0x1c0   :  { %14910 = vmatprep.subr.bf16.mxu0 %v14909_v59 }
 0x1c2   :  { %12891 = vmatmul.mubr.f32.gmra.mrb[6].mxu0 %v16867_v10  ;;  %v14921_v10 = vpack.c.bf16 %v10700_v43, %v10699_v6  ;;  %v17924_v6 = vld [vmem:[%s22304_s0 + $0xf1] sm:$0xff]  ;;  %v17932_v43 = vld [vmem:[%s22304_s0 + $0xf9] sm:$0xff] }
 0x1c3   :  { %12893 = vmatprep.mubr.f32.mxu0 %v16872_v11  ;;  %14912 = vmatpush3.bf16.msra.mxu0 %v14909_v59  ;;  %v10701_v11 = vld [vmem:[%s22305_s1 + $0x270] sm:$0xff] }
 0x1c4   :  { %14914 = vmatprep.subr.bf16.mxu0 %v14913_v0 }
 0x1c6   :  { %12894 = vmatmul.mubr.f32.gmra.mrb[8].mxu0 %v16885_v15  ;;  %v14925_v15 = vpack.c.bf16 %v10702_v14, %v10701_v11  ;;  %v17944_v11 = vld [vmem:[%s22304_s0 + $0x111] sm:$0xff]  ;;  %v17949_v14 = vld [vmem:[%s22304_s0 + $0x121] sm:$0xff] }
 0x1c7   :  { %12896 = vmatprep.mubr.f32.mxu0 %v16890_v16  ;;  %14916 = vmatpush3.bf16.msra.mxu0 %v14913_v0  ;;  %v10767_v16 = vld [vmem:[%s22305_s1 + $0x280] sm:$0xff]  ;;  %v17905_v0 = vld [vmem:[%s22304_s0 + $0xc9] sm:$0xff] }
 0x1c8   :  { %14918 = vmatprep.subr.bf16.mxu0 %v14917_v5 }
 0x1ca   :  { %12897 = vmatmul.mubr.f32.gmra.mrb[10].mxu0 %v16903_v20  ;;  %v17697_v20 = vpack.c.bf16 %v10768_v24, %v10767_v16  ;;  %v17961_v16 = vld [vmem:[%s22304_s0 + $0x139] sm:$0xff]  ;;  %v17968_v24 = vld [vmem:[%s22304_s0 + $0x141] sm:$0xff] }
 0x1cb   :  { %12899 = vmatprep.mubr.f32.mxu0 %v16908_v21  ;;  %14920 = vmatpush3.bf16.msra.mxu0 %v14917_v5  ;;  %v17717_v21 = vld [vmem:[%s22304_s0 + $0x180] sm:$0xff] }
 0x1cc   :  { %14922 = vmatprep.subr.bf16.mxu0 %v14921_v10  ;;  %v17919_v5 = vld [vmem:[%s22304_s0 + $0xe1] sm:$0xff] }
 0x1ce   :  { %12900 = vmatmul.mubr.f32.gmra.mrb[12].mxu0 %v16921_v25  ;;  %v17724_v25 = vld [vmem:[%s22304_s0 + $0x188] sm:$0xff] }
 0x1cf   :  { %12902 = vmatprep.mubr.f32.mxu0 %v16926_v26  ;;  %14924 = vmatpush3.bf16.msra.mxu0 %v14921_v10  ;;  %v22659_v26 = vld [vmem:[#allocation9_spill] sm:$0xff]  ;;  %v17937_v10 = vld [vmem:[%s22304_s0 + $0x109] sm:$0xff] }
 0x1d0   :  { %14926 = vmatprep.subr.bf16.mxu0 %v14925_v15 }
 0x1d2   :  { %12903 = vmatmul.mubr.f32.gmra.mrb[14].mxu0 %v16935_v28  ;;  %v22660_v28 = vld [vmem:[#allocation10_spill] sm:$0xff] }
 0x1d3   :  { %12905 = vmatprep.mubr.f32.mxu0 %v16940_v29  ;;  %14928 = vmatpush3.bf16.msra.mxu0 %v14925_v15  ;;  %v22661_v29 = vld [vmem:[#allocation11_spill] sm:$0xff] }
 0x1d4   :  { %14930 = vmatprep.subr.bf16.mxu0 %v17697_v20  ;;  %v17956_v15 = vld [vmem:[%s22304_s0 + $0x129] sm:$0xff] }
 0x1d6   :  { %12906 = vmatmul.mubr.f32.gmra.mrb[16].mxu0 %v16948_v30  ;;  %v22662_v30 = vld [vmem:[#allocation12_spill] sm:$0xff] }
 0x1d7   :  { %12908 = vmatprep.mubr.f32.mxu0 %v16953_v31  ;;  %v22663_v31 = vld [vmem:[#allocation13_spill] sm:$0xff] }
 0x1da   :  { %12909 = vmatmul.mubr.f32.gmra.mrb[18].mxu0 %v16960_v32  ;;  %v17759_v32 = vld [vmem:[%s22304_s0 + $0x330] sm:$0xff] }
 0x1db   :  { %12911 = vmatprep.mubr.f32.mxu0 %v16965_v33  ;;  %v22664_v33 = vld [vmem:[#allocation14_spill] sm:$0xff] }
 0x1de   :  { %12912 = vmatmul.mubr.f32.gmra.mrb[20].mxu0 %v16972_v34  ;;  %v17766_v34 = vld [vmem:[%s22304_s0 + $0x338] sm:$0xff] }
 0x1df   :  { %12914 = vmatprep.mubr.f32.mxu0 %v16977_v35  ;;  %v10623_v35 = vld [vmem:[%s22304_s0 + $0x19] sm:$0xff] }
 0x1e2   :  { %12915 = vmatmul.mubr.f32.gmra.mrb[22].mxu0 %v16984_v36  ;;  %v10769_v36 = vld [vmem:[%s22305_s1 + $0x290] sm:$0xff] }
 0x1e3   :  { %12917 = vmatprep.mubr.f32.mxu0 %v16989_v37  ;;  %v10770_v37 = vld [vmem:[%s22305_s1 + $0x298] sm:$0xff] }
 0x1e6   :  { %12918 = vmatmul.mubr.f32.gmra.mrb[24].mxu0 %v16996_v38  ;;  %v10624_v38 = vld [vmem:[%s22304_s0 + $0x21] sm:$0xff] }
 0x1e7   :  { %12920 = vmatprep.mubr.f32.mxu0 %v17001_v39  ;;  %v17784_v39 = vld [vmem:[%s22304_s0 + $0x31] sm:$0xff] }
 0x1ea   :  { %12921 = vmatmul.mubr.f32.gmra.mrb[26].mxu0 %v17008_v40  ;;  %v14933_v40 = vpack.c.bf16 %v10770_v37, %v10769_v36  ;;  %v18016_v36 = vld [vmem:[%s22304_s0 + $0x1e1] sm:$0xff]  ;;  %v18022_v37 = vld [vmem:[%s22304_s0 + $0x1e9] sm:$0xff] }
 0x1eb   :  { %12923 = vmatprep.mubr.f32.mxu0 %v17013_v41  ;;  %v10771_v41 = vld [vmem:[%s22305_s1 + $0x2a0] sm:$0xff] }
 0x1ee   :  { %12924 = vmatmul.mubr.f32.gmra.mrb[28].mxu0 %v17020_v42  ;;  %v10772_v42 = vld [vmem:[%s22305_s1 + $0x2a8] sm:$0xff] }
 0x1ef   :  { %12926 = vmatprep.mubr.f32.mxu0 %v17717_v21 }
 0x1f2   :  { %12927 = vmatmul.mubr.f32.gmra.mrb[30].mxu0 %v17724_v25 }
 0x1f3   :  { %12929 = vmatprep.mubr.f32.mxu0 %v17032_v45  ;;  %v17797_v45 = vld [vmem:[%s22304_s0 + $0x39] sm:$0xff] }
 0x1f6   :  { %12930 = vmatmul.mubr.f32.gmra.mrb[32].mxu0 %v17038_v46  ;;  %v17802_v46 = vld [vmem:[%s22304_s0 + $0x49] sm:$0xff] }
 0x1f7   :  { %12932 = vmatprep.mubr.f32.mxu0 %v17043_v47  ;;  %v14937_v47 = vpack.c.bf16 %v10772_v42, %v10771_v41  ;;  %v18039_v41 = vld [vmem:[%s22304_s0 + $0x211] sm:$0xff]  ;;  %v18046_v42 = vld [vmem:[%s22304_s0 + $0x219] sm:$0xff] }
 0x1fa   :  { %12933 = vmatmul.mubr.f32.gmra.mrb[34].mxu0 %v17050_v48  ;;  %v10773_v48 = vld [vmem:[%s22305_s1 + $0x2b0] sm:$0xff] }
 0x1fb   :  { %12935 = vmatprep.mubr.f32.mxu0 %v17055_v49  ;;  %v10774_v49 = vld [vmem:[%s22305_s1 + $0x2b8] sm:$0xff] }
 0x1fe   :  { %12936 = vmatmul.mubr.f32.gmra.mrb[36].mxu0 %v17062_v50  ;;  %v17815_v50 = vld [vmem:[%s22304_s0 + $0x51] sm:$0xff] }
 0x1ff   :  { %12938 = vmatprep.mubr.f32.mxu0 %v17067_v51  ;;  %v17820_v51 = vld [vmem:[%s22304_s0 + $0x61] sm:$0xff] }
 0x202   :  { %12939 = vmatmul.mubr.f32.gmra.mrb[38].mxu0 %v17074_v52  ;;  %v14941_v52 = vpack.c.bf16 %v10774_v49, %v10773_v48  ;;  %v18058_v48 = vld [vmem:[%s22304_s0 + $0x231] sm:$0xff]  ;;  %v18063_v49 = vld [vmem:[%s22304_s0 + $0x241] sm:$0xff] }
 0x203   :  { %12941 = vmatprep.mubr.f32.mxu0 %v17079_v53  ;;  %v10775_v53 = vld [vmem:[%s22305_s1 + $0x2c0] sm:$0xff] }
 0x206   :  { %12942 = vmatmul.mubr.f32.gmra.mrb[40].mxu0 %v17086_v54  ;;  %v10776_v54 = vld [vmem:[%s22305_s1 + $0x2c8] sm:$0xff] }
 0x207   :  { %12944 = vmatprep.mubr.f32.mxu0 %v17091_v56  ;;  %v17833_v56 = vld [vmem:[%s22304_s0 + $0x69] sm:$0xff] }
 0x20a   :  { %12945 = vmatmul.mubr.f32.gmra.mrb[42].mxu0 %v17098_v57  ;;  %v17838_v57 = vld [vmem:[%s22304_s0 + $0x79] sm:$0xff] }
 0x20b   :  { %12947 = vmatprep.mubr.f32.mxu0 %v17103_v58  ;;  %v14945_v58 = vpack.c.bf16 %v10776_v54, %v10775_v53  ;;  %v18075_v53 = vld [vmem:[%s22304_s0 + $0x259] sm:$0xff]  ;;  %v18082_v54 = vld [vmem:[%s22304_s0 + $0x261] sm:$0xff] }
 0x20e   :  { %12948 = vmatmul.mubr.f32.gmra.mrb[44].mxu0 %v17110_v61  ;;  %v10777_v61 = vld [vmem:[%s22305_s1 + $0x2d0] sm:$0xff] }
 0x20f   :  { %12950 = vmatprep.mubr.f32.mxu0 %v17115_v62  ;;  %v10778_v62 = vld [vmem:[%s22305_s1 + $0x2d8] sm:$0xff] }
 0x212   :  { %12951 = vmatmul.mubr.f32.gmra.mrb[46].mxu0 %v17122_v63  ;;  %v17851_v63 = vld [vmem:[%s22304_s0 + $0x81] sm:$0xff] }
 0x213   :  { %12953 = vmatprep.mubr.f32.mxu0 %v17127_v2  ;;  %v17856_v2 = vld [vmem:[%s22304_s0 + $0x91] sm:$0xff] }
 0x216   :  { %12954 = vmatmul.mubr.f32.gmra.mrb[48].mxu0 %v17134_v3  ;;  %v14949_v3 = vpack.c.bf16 %v10778_v62, %v10777_v61  ;;  %v18094_v61 = vld [vmem:[%s22304_s0 + $0x279] sm:$0xff]  ;;  %v18099_v62 = vld [vmem:[%s22304_s0 + $0x289] sm:$0xff] }
 0x217   :  { %12956 = vmatprep.mubr.f32.mxu0 %v17139_v4  ;;  %v10779_v4 = vld [vmem:[%s22305_s1 + $0x2e0] sm:$0xff] }
 0x21a   :  { %12957 = vmatmul.mubr.f32.gmra.mrb[50].mxu0 %v17146_v7  ;;  %v10780_v7 = vld [vmem:[%s22305_s1 + $0x2e8] sm:$0xff] }
 0x21b   :  { %12959 = vmatprep.mubr.f32.mxu0 %v17151_v8  ;;  %v17869_v8 = vld [vmem:[%s22304_s0 + $0x99] sm:$0xff] }
 0x21e   :  { %12960 = vmatmul.mubr.f32.gmra.mrb[52].mxu0 %v17158_v9  ;;  %v17874_v9 = vld [vmem:[%s22304_s0 + $0xa9] sm:$0xff] }
 0x21f   :  { %12962 = vmatprep.mubr.f32.mxu0 %v17163_v12  ;;  %v14953_v12 = vpack.c.bf16 %v10780_v7, %v10779_v4  ;;  %v18111_v4 = vld [vmem:[%s22304_s0 + $0x2a1] sm:$0xff]  ;;  %v18118_v7 = vld [vmem:[%s22304_s0 + $0x2a9] sm:$0xff] }
 0x220   :  { %22665 = vst [vmem:[#allocation9_spill] sm:$0xff] %v18111_v4  ;;  %22666 = vst [vmem:[#allocation10_spill] sm:$0xff] %v18118_v7 }
 0x222   :  { %12963 = vmatmul.mubr.f32.gmra.mrb[54].mxu0 %v17170_v13  ;;  %v10781_v13 = vld [vmem:[%s22305_s1 + $0x2f0] sm:$0xff] }
 0x223   :  { %12965 = vmatprep.mubr.f32.mxu0 %v22659_v26  ;;  %v14957_v59 = vpack.c.bf16 %v10782_v19, %v10781_v13  ;;  %v17980_v26 = vld [vmem:[%s22304_s0 + $0x159] sm:$0xff]  ;;  %v18130_v13 = vld [vmem:[%s22304_s0 + $0x2c1] sm:$0xff]  ;;  %v18135_v19 = vld [vmem:[%s22304_s0 + $0x2d1] sm:$0xff] }
 0x224   :  { %22668 = vst [vmem:[#allocation12_spill] sm:$0xff] %v18130_v13  ;;  %22669 = vst [vmem:[#allocation13_spill] sm:$0xff] %v18135_v19 }
 0x226   :  { %12966 = vmatmul.mubr.f32.gmra.mrb[56].mxu0 %v22660_v28  ;;  %v17985_v28 = vld [vmem:[%s22304_s0 + $0x169] sm:$0xff] }
 0x227   :  { %12968 = vmatprep.mubr.f32.mxu0 %v22661_v29  ;;  %v17992_v29 = vld [vmem:[%s22304_s0 + $0x171] sm:$0xff] }
 0x22a   :  { %12969 = vmatmul.mubr.f32.gmra.mrb[58].mxu0 %v22662_v30  ;;  %v17997_v30 = vld [vmem:[%s22304_s0 + $0x181] sm:$0xff] }
 0x22b   :  { %12971 = vmatprep.mubr.f32.mxu0 %v22663_v31  ;;  %v18004_v31 = vld [vmem:[%s22304_s0 + $0x189] sm:$0xff] }
 0x22e   :  { %12972 = vmatmul.mubr.f32.gmra.mrb[60].mxu0 %v22664_v33  ;;  %v10655_v33 = vld [vmem:[%s22304_s0 + $0x1c9] sm:$0xff] }
 0x22f   :  { %12974 = vmatprep.mubr.f32.mxu0 %v17759_v32 }
 0x232   :  { %12975 = vmatmul.mubr.f32.gmra.mrb[62].mxu0 %v17766_v34 }
 0x233   :  { %13009 = vmatprep.mubr.f32.mxu0 %v10623_v35  ;;  %v10656_v35 = vld [vmem:[%s22304_s0 + $0x1d1] sm:$0xff] }
 0x236   :  { %13010 = vmatmul.mubr.f32.vlgmr.msra.gmra.mrb[0].mxu0 %v10624_v38  ;;  %v18027_v38 = vld [vmem:[%s22304_s0 + $0x1f9] sm:$0xff] }
 0x237   :  { %14932 = vmatpush3.bf16.msra.mxu0 %v17697_v20  ;;  %13012 = vmatprep.mubr.f32.mxu0 %v17784_v39  ;;  %v17973_v20 = vld [vmem:[%s22304_s0 + $0x151] sm:$0xff] }
 0x238   :  { %14934 = vmatprep.subr.bf16.mxu0 %v14933_v40 }
 0x23a   :  { %13013 = vmatmul.mubr.f32.gmra.mrb[2].mxu0 %v17797_v45 }
 0x23b   :  { %13015 = vmatprep.mubr.f32.mxu0 %v17802_v46  ;;  %14936 = vmatpush3.bf16.msra.mxu0 %v14933_v40  ;;  %v18034_v40 = vld [vmem:[%s22304_s0 + $0x201] sm:$0xff] }
 0x23c   :  { %14938 = vmatprep.subr.bf16.mxu0 %v14937_v47 }
 0x23e   :  { %13016 = vmatmul.mubr.f32.gmra.mrb[4].mxu0 %v17815_v50 }
 0x23f   :  { %13018 = vmatprep.mubr.f32.mxu0 %v17820_v51  ;;  %14940 = vmatpush3.bf16.msra.mxu0 %v14937_v47  ;;  %v18051_v47 = vld [vmem:[%s22304_s0 + $0x229] sm:$0xff] }
 0x240   :  { %14942 = vmatprep.subr.bf16.mxu0 %v14941_v52 }
 0x242   :  { %13019 = vmatmul.mubr.f32.gmra.mrb[6].mxu0 %v17833_v56 }
 0x243   :  { %13021 = vmatprep.mubr.f32.mxu0 %v17838_v57  ;;  %14944 = vmatpush3.bf16.msra.mxu0 %v14941_v52  ;;  %v18070_v52 = vld [vmem:[%s22304_s0 + $0x249] sm:$0xff] }
 0x244   :  { %14946 = vmatprep.subr.bf16.mxu0 %v14945_v58 }
 0x246   :  { %13022 = vmatmul.mubr.f32.gmra.mrb[8].mxu0 %v17851_v63 }
 0x247   :  { %13024 = vmatprep.mubr.f32.mxu0 %v17856_v2  ;;  %14948 = vmatpush3.bf16.msra.mxu0 %v14945_v58  ;;  %v18087_v58 = vld [vmem:[%s22304_s0 + $0x271] sm:$0xff] }
 0x248   :  { %14950 = vmatprep.subr.bf16.mxu0 %v14949_v3 }
 0x24a   :  { %13025 = vmatmul.mubr.f32.gmra.mrb[10].mxu0 %v17869_v8 }
 0x24b   :  { %13027 = vmatprep.mubr.f32.mxu0 %v17874_v9  ;;  %14952 = vmatpush3.bf16.msra.mxu0 %v14949_v3  ;;  %v18106_v3 = vld [vmem:[%s22304_s0 + $0x291] sm:$0xff] }
 0x24c   :  { %14954 = vmatprep.subr.bf16.mxu0 %v14953_v12 }
 0x24e   :  { %13028 = vmatmul.mubr.f32.gmra.mrb[12].mxu0 %v17887_v55 }
 0x24f   :  { %13030 = vmatprep.mubr.f32.mxu0 %v17892_v44  ;;  %14956 = vmatpush3.bf16.msra.mxu0 %v14953_v12  ;;  %v18123_v12 = vld [vmem:[%s22304_s0 + $0x2b9] sm:$0xff] }
 0x250   :  { %14958 = vmatprep.subr.bf16.mxu0 %v14957_v59  ;;  %22667 = vst [vmem:[#allocation11_spill] sm:$0xff] %v18123_v12 }
 0x252   :  { %13031 = vmatmul.mubr.f32.gmra.mrb[14].mxu0 %v17905_v0 }
 0x253   :  { %13033 = vmatprep.mubr.f32.mxu0 %v17910_v1  ;;  %14960 = vmatpush3.bf16.msra.mxu0 %v14957_v59  ;;  %v18142_v59 = vld [vmem:[%s22304_s0 + $0x2d9] sm:$0xff] }
 0x254   :  { %14962 = vmatprep.subr.bf16.mxu0 %v17912_v23  ;;  %22670 = vst [vmem:[#allocation14_spill] sm:$0xff] %v18142_v59 }
 0x256   :  { %13034 = vmatmul.mubr.f32.gmra.mrb[16].mxu0 %v17919_v5 }
 0x257   :  { %13036 = vmatprep.mubr.f32.mxu0 %v17924_v6 }
 0x25a   :  { %13037 = vmatmul.mubr.f32.gmra.mrb[18].mxu0 %v17932_v43 }
 0x25b   :  { %13039 = vmatprep.mubr.f32.mxu0 %v17937_v10 }
 0x25e   :  { %13040 = vmatmul.mubr.f32.gmra.mrb[20].mxu0 %v17944_v11 }
 0x25f   :  { %13042 = vmatprep.mubr.f32.mxu0 %v17949_v14 }
 0x262   :  { %13043 = vmatmul.mubr.f32.gmra.mrb[22].mxu0 %v17956_v15 }
 0x263   :  { %13045 = vmatprep.mubr.f32.mxu0 %v17961_v16 }
 0x266   :  { %13046 = vmatmul.mubr.f32.gmra.mrb[24].mxu0 %v17968_v24 }
 0x267   :  { %13048 = vmatprep.mubr.f32.mxu0 %v17973_v20 }
 0x26a   :  { %13049 = vmatmul.mubr.f32.gmra.mrb[26].mxu0 %v17980_v26 }
 0x26b   :  { %13051 = vmatprep.mubr.f32.mxu0 %v17985_v28 }
 0x26e   :  { %13052 = vmatmul.mubr.f32.gmra.mrb[28].mxu0 %v17992_v29 }
 0x26f   :  { %13054 = vmatprep.mubr.f32.mxu0 %v17997_v30 }
 0x272   :  { %13055 = vmatmul.mubr.f32.gmra.mrb[30].mxu0 %v18004_v31 }
 0x273   :  { %13057 = vmatprep.mubr.f32.mxu0 %v10655_v33  ;;  %v18159_v33 = vld [vmem:[%s22304_s0 + $0x301] sm:$0xff] }
 0x274   :  { %22673 = vst [vmem:[#allocation74_spill] sm:$0xff] %v18159_v33 }
 0x276   :  { %13058 = vmatmul.mubr.f32.gmra.mrb[32].mxu0 %v10656_v35  ;;  %v18166_v35 = vld [vmem:[%s22304_s0 + $0x309] sm:$0xff] }
 0x277   :  { %13060 = vmatprep.mubr.f32.mxu0 %v18016_v36  ;;  %22674 = vst [vmem:[#allocation75_spill] sm:$0xff] %v18166_v35 }
 0x27a   :  { %13061 = vmatmul.mubr.f32.gmra.mrb[34].mxu0 %v18022_v37 }
 0x27b   :  { %13063 = vmatprep.mubr.f32.mxu0 %v18027_v38 }
 0x27e   :  { %13064 = vmatmul.mubr.f32.gmra.mrb[36].mxu0 %v18034_v40 }
 0x27f   :  { %13066 = vmatprep.mubr.f32.mxu0 %v18039_v41 }
 0x282   :  { %13067 = vmatmul.mubr.f32.gmra.mrb[38].mxu0 %v18046_v42 }
 0x283   :  { %13069 = vmatprep.mubr.f32.mxu0 %v18051_v47 }
 0x286   :  { %13070 = vmatmul.mubr.f32.gmra.mrb[40].mxu0 %v18058_v48 }
 0x287   :  { %13072 = vmatprep.mubr.f32.mxu0 %v18063_v49 }
 0x28a   :  { %13073 = vmatmul.mubr.f32.gmra.mrb[42].mxu0 %v18070_v52 }
 0x28b   :  { %13075 = vmatprep.mubr.f32.mxu0 %v18075_v53 }
 0x28e   :  { %13076 = vmatmul.mubr.f32.gmra.mrb[44].mxu0 %v18082_v54 }
 0x28f   :  { %13078 = vmatprep.mubr.f32.mxu0 %v18087_v58 }
 0x292   :  { %13079 = vmatmul.mubr.f32.gmra.mrb[46].mxu0 %v18094_v61 }
 0x293   :  { %13081 = vmatprep.mubr.f32.mxu0 %v18099_v62 }
 0x296   :  { %13082 = vmatmul.mubr.f32.gmra.mrb[48].mxu0 %v18106_v3 }
 0x297   :  { %13084 = vmatprep.mubr.f32.mxu0 %v18111_v4 }
 0x29a   :  { %13085 = vmatmul.mubr.f32.gmra.mrb[50].mxu0 %v18118_v7  ;;  %v22681_v7 = vld [vmem:[#allocation17_spill] sm:$0xff] }
 0x29b   :  { %13087 = vmatprep.mubr.f32.mxu0 %v18123_v12  ;;  %v22680_v12 = vld [vmem:[#allocation16_spill] sm:$0xff] }
 0x29e   :  { %13088 = vmatmul.mubr.f32.gmra.mrb[52].mxu0 %v18130_v13  ;;  %v10852_v13 = vld [vmem:[%s22305_s1 + $0x328] sm:$0xff] }
 0x29f   :  { %13090 = vmatprep.mubr.f32.mxu0 %v18135_v19  ;;  %v22679_v19 = vld [vmem:[#allocation15_spill] sm:$0xff] }
 0x2a2   :  { %13091 = vmatmul.mubr.f32.gmra.mrb[54].mxu0 %v18142_v59  ;;  %v10850_v59 = vld [vmem:[%s22305_s1 + $0x318] sm:$0xff] }
 0x2a3   :  { %13093 = vmatprep.mubr.f32.mxu0 %v18147_v60  ;;  %v18171_v60 = vld [vmem:[%s22304_s0 + $0x319] sm:$0xff] }
 0x2a4   :  { %22675 = vst [vmem:[#allocation76_spill] sm:$0xff] %v18171_v60 }
 0x2a6   :  { %13094 = vmatmul.mubr.f32.gmra.mrb[56].mxu0 %v18154_v18  ;;  %v18178_v18 = vld [vmem:[%s22304_s0 + $0x321] sm:$0xff] }
 0x2a7   :  { %13096 = vmatprep.mubr.f32.mxu0 %v18159_v33  ;;  %22676 = vst [vmem:[#allocation77_spill] sm:$0xff] %v18178_v18  ;;  %v18183_v33 = vld [vmem:[%s22304_s0 + $0x331] sm:$0xff] }
 0x2a8   :  { %22677 = vst [vmem:[#allocation78_spill] sm:$0xff] %v18183_v33 }
 0x2aa   :  { %13097 = vmatmul.mubr.f32.gmra.mrb[58].mxu0 %v18166_v35  ;;  %v18190_v35 = vld [vmem:[%s22304_s0 + $0x339] sm:$0xff] }
 0x2ab   :  { %13099 = vmatprep.mubr.f32.mxu0 %v18171_v60  ;;  %22678 = vst [vmem:[#allocation79_spill] sm:$0xff] %v18190_v35  ;;  %v10849_v60 = vld [vmem:[%s22305_s1 + $0x310] sm:$0xff] }
 0x2ae   :  { %13100 = vmatmul.mubr.f32.gmra.mrb[60].mxu0 %v18178_v18  ;;  %v14965_v18 = vpack.c.bf16 %v10850_v59, %v10849_v60  ;;  %v10854_v59 = vld [vmem:[%s22305_s1 + $0x338] sm:$0xff]  ;;  %v22682_v60 = vld [vmem:[#allocation18_spill] sm:$0xff] }
 0x2af   :  { %13102 = vmatprep.mubr.f32.mxu0 %v18183_v33  ;;  %v10851_v33 = vld [vmem:[%s22305_s1 + $0x320] sm:$0xff] }
 0x2b0   :  { %v14969_v4 = vpack.c.bf16 %v10852_v13, %v10851_v33  ;;  %v22684_v13 = vld [vmem:[#allocation20_spill] sm:$0xff]  ;;  %v22685_v33 = vld [vmem:[#allocation21_spill] sm:$0xff] }
 0x2b2   :  { %13103 = vmatmul.mubr.f32.gmra.mrb[62].mxu0 %v18190_v35  ;;  %v22683_v35 = vld [vmem:[#allocation19_spill] sm:$0xff] }
 0x2b3   :  { %13137 = vmatprep.mubr.f32.mxu0 %v22679_v19  ;;  %v10853_v19 = vld [vmem:[%s22305_s1 + $0x330] sm:$0xff] }
 0x2b6   :  { %13138 = vmatmul.mubr.f32.vlgmr.msra.gmra.mrb[0].mxu0 %v22680_v12  ;;  %v14973_v12 = vpack.c.bf16 %v10854_v59, %v10853_v19  ;;  %v22686_v19 = vld [vmem:[#allocation22_spill] sm:$0xff]  ;;  %v22687_v59 = vld [vmem:[#allocation23_spill] sm:$0xff] }
 0x2b7   :  { %14964 = vmatpush3.bf16.msra.mxu0 %v17912_v23  ;;  %13140 = vmatprep.mubr.f32.mxu0 %v22681_v7  ;;  %v10855_v23 = vld [vmem:[%s22305_s1 + $0x340] sm:$0xff]  ;;  %v10856_v7 = vld [vmem:[%s22305_s1 + $0x348] sm:$0xff] }
 0x2b8   :  { %14966 = vmatprep.subr.bf16.mxu0 %v14965_v18 }
 0x2ba   :  { %13141 = vmatmul.mubr.f32.gmra.mrb[2].mxu0 %v22682_v60  ;;  %v14977_v60 = vpack.c.bf16 %v10856_v7, %v10855_v23  ;;  %v10860_v23 = vld [vmem:[%s22305_s1 + $0x368] sm:$0xff]  ;;  %v22688_v7 = vld [vmem:[#allocation24_spill] sm:$0xff] }
 0x2bb   :  { %13143 = vmatprep.mubr.f32.mxu0 %v22683_v35  ;;  %14968 = vmatpush3.bf16.msra.mxu0 %v14965_v18  ;;  %v10857_v18 = vld [vmem:[%s22305_s1 + $0x350] sm:$0xff]  ;;  %v10858_v35 = vld [vmem:[%s22305_s1 + $0x358] sm:$0xff] }
 0x2bc   :  { %14970 = vmatprep.subr.bf16.mxu0 %v14969_v4 }
 0x2be   :  { %13144 = vmatmul.mubr.f32.gmra.mrb[4].mxu0 %v22684_v13  ;;  %v14981_v13 = vpack.c.bf16 %v10858_v35, %v10857_v18  ;;  %v10862_v18 = vld [vmem:[%s22305_s1 + $0x378] sm:$0xff]  ;;  %v22689_v35 = vld [vmem:[#allocation25_spill] sm:$0xff] }
 0x2bf   :  { %13146 = vmatprep.mubr.f32.mxu0 %v22685_v33  ;;  %14972 = vmatpush3.bf16.msra.mxu0 %v14969_v4  ;;  %v10859_v4 = vld [vmem:[%s22305_s1 + $0x360] sm:$0xff] }
 0x2c0   :  { %14974 = vmatprep.subr.bf16.mxu0 %v14973_v12  ;;  %v14985_v33 = vpack.c.bf16 %v10860_v23, %v10859_v4  ;;  %v22691_v4 = vld [vmem:[#allocation27_spill] sm:$0xff]  ;;  %v22692_v23 = vld [vmem:[#allocation28_spill] sm:$0xff] }
 0x2c2   :  { %13147 = vmatmul.mubr.f32.gmra.mrb[6].mxu0 %v22686_v19  ;;  %v10928_v19 = vld [vmem:[%s22305_s1 + $0x388] sm:$0xff] }
 0x2c3   :  { %13149 = vmatprep.mubr.f32.mxu0 %v22687_v59  ;;  %14976 = vmatpush3.bf16.msra.mxu0 %v14973_v12  ;;  %v10861_v12 = vld [vmem:[%s22305_s1 + $0x370] sm:$0xff]  ;;  %v22690_v59 = vld [vmem:[#allocation26_spill] sm:$0xff] }
 0x2c4   :  { %14978 = vmatprep.subr.bf16.mxu0 %v14977_v60 }
 0x2c6   :  { %13150 = vmatmul.mubr.f32.gmra.mrb[8].mxu0 %v17309_v17  ;;  %v14989_v17 = vpack.c.bf16 %v10862_v18, %v10861_v12  ;;  %v22695_v12 = vld [vmem:[#allocation31_spill] sm:$0xff]  ;;  %v22696_v18 = vld [vmem:[#allocation32_spill] sm:$0xff] }
 0x2c7   :  { %13152 = vmatprep.mubr.f32.mxu0 %v22688_v7  ;;  %14980 = vmatpush3.bf16.msra.mxu0 %v14977_v60  ;;  %v10927_v60 = vld [vmem:[%s22305_s1 + $0x380] sm:$0xff]  ;;  %v22694_v7 = vld [vmem:[#allocation30_spill] sm:$0xff] }
 0x2c8   :  { %14982 = vmatprep.subr.bf16.mxu0 %v14981_v13 }
 0x2ca   :  { %13153 = vmatmul.mubr.f32.gmra.mrb[10].mxu0 %v17327_v27  ;;  %v18257_v27 = vpack.c.bf16 %v10928_v19, %v10927_v60  ;;  %v22700_v60 = vld [vmem:[#allocation36_spill] sm:$0xff]  ;;  %v22701_v19 = vld [vmem:[#allocation37_spill] sm:$0xff] }
 0x2cb   :  { %13155 = vmatprep.mubr.f32.mxu0 %v22689_v35  ;;  %14984 = vmatpush3.bf16.msra.mxu0 %v14981_v13  ;;  %v22693_v13 = vld [vmem:[#allocation29_spill] sm:$0xff] }
 0x2cc   :  { %14986 = vmatprep.subr.bf16.mxu0 %v14985_v33  ;;  %v22697_v35 = vld [vmem:[#allocation33_spill] sm:$0xff] }
 0x2ce   :  { %13156 = vmatmul.mubr.f32.gmra.mrb[12].mxu0 %v22690_v59  ;;  %v22698_v59 = vld [vmem:[#allocation34_spill] sm:$0xff] }
 0x2cf   :  { %13158 = vmatprep.mubr.f32.mxu0 %v22691_v4  ;;  %14988 = vmatpush3.bf16.msra.mxu0 %v14985_v33  ;;  %v22699_v33 = vld [vmem:[#allocation35_spill] sm:$0xff]  ;;  %v22702_v4 = vld [vmem:[#allocation38_spill] sm:$0xff] }
 0x2d0   :  { %14990 = vmatprep.subr.bf16.mxu0 %v14989_v17 }
 0x2d2   :  { %13159 = vmatmul.mubr.f32.gmra.mrb[14].mxu0 %v22692_v23  ;;  %v22704_v23 = vld [vmem:[#allocation40_spill] sm:$0xff] }
 0x2d3   :  { %13161 = vmatprep.mubr.f32.mxu0 %v22693_v13  ;;  %14992 = vmatpush3.bf16.msra.mxu0 %v14989_v17  ;;  %v22703_v17 = vld [vmem:[#allocation39_spill] sm:$0xff]  ;;  %v22705_v13 = vld [vmem:[#allocation41_spill] sm:$0xff] }
 0x2d4   :  { %14994 = vmatprep.subr.bf16.mxu0 %v18257_v27 }
 0x2d6   :  { %13162 = vmatmul.mubr.f32.gmra.mrb[16].mxu0 %v22694_v7  ;;  %v18277_v7 = vld [vmem:[%s22304_s0 + $0x182] sm:$0xff] }
 0x2d7   :  { %13164 = vmatprep.mubr.f32.mxu0 %v22695_v12  ;;  %v22706_v12 = vld [vmem:[#allocation42_spill] sm:$0xff] }
 0x2da   :  { %13165 = vmatmul.mubr.f32.gmra.mrb[18].mxu0 %v22696_v18  ;;  %v18284_v18 = vld [vmem:[%s22304_s0 + $0x18a] sm:$0xff] }
 0x2db   :  { %13167 = vmatprep.mubr.f32.mxu0 %v22697_v35  ;;  %22707 = vst [vmem:[#allocation15_spill] sm:$0xff] %v18284_v18  ;;  %v22708_v35 = vld [vmem:[#allocation43_spill] sm:$0xff] }
 0x2de   :  { %13168 = vmatmul.mubr.f32.gmra.mrb[20].mxu0 %v22698_v59  ;;  %v22709_v59 = vld [vmem:[#allocation44_spill] sm:$0xff] }
 0x2df   :  { %13170 = vmatprep.mubr.f32.mxu0 %v22699_v33  ;;  %v22710_v33 = vld [vmem:[#allocation45_spill] sm:$0xff] }
 0x2e2   :  { %13171 = vmatmul.mubr.f32.gmra.mrb[22].mxu0 %v22700_v60  ;;  %v22711_v60 = vld [vmem:[#allocation46_spill] sm:$0xff] }
 0x2e3   :  { %13173 = vmatprep.mubr.f32.mxu0 %v22701_v19  ;;  %v22712_v19 = vld [vmem:[#allocation47_spill] sm:$0xff] }
 0x2e6   :  { %13174 = vmatmul.mubr.f32.gmra.mrb[24].mxu0 %v22702_v4  ;;  %v22713_v4 = vld [vmem:[#allocation48_spill] sm:$0xff] }
 0x2e7   :  { %13176 = vmatprep.mubr.f32.mxu0 %v22703_v17  ;;  %v22714_v17 = vld [vmem:[#allocation49_spill] sm:$0xff] }
 0x2ea   :  { %13177 = vmatmul.mubr.f32.gmra.mrb[26].mxu0 %v22704_v23  ;;  %v22715_v23 = vld [vmem:[#allocation50_spill] sm:$0xff] }
 0x2eb   :  { %13179 = vmatprep.mubr.f32.mxu0 %v22705_v13  ;;  %v22716_v13 = vld [vmem:[#allocation51_spill] sm:$0xff] }
 0x2ee   :  { %13180 = vmatmul.mubr.f32.gmra.mrb[28].mxu0 %v22706_v12  ;;  %v22717_v12 = vld [vmem:[#allocation52_spill] sm:$0xff] }
 0x2ef   :  { %13182 = vmatprep.mubr.f32.mxu0 %v18277_v7 }
 0x2f2   :  { %13183 = vmatmul.mubr.f32.gmra.mrb[30].mxu0 %v18284_v18  ;;  %v22718_v18 = vld [vmem:[#allocation53_spill] sm:$0xff] }
 0x2f3   :  { %13185 = vmatprep.mubr.f32.mxu0 %v22708_v35  ;;  %v22719_v35 = vld [vmem:[#allocation54_spill] sm:$0xff] }
 0x2f6   :  { %13186 = vmatmul.mubr.f32.gmra.mrb[32].mxu0 %v22709_v59  ;;  %v22720_v59 = vld [vmem:[#allocation55_spill] sm:$0xff] }
 0x2f7   :  { %13188 = vmatprep.mubr.f32.mxu0 %v22710_v33  ;;  %v22721_v33 = vld [vmem:[#allocation56_spill] sm:$0xff] }
 0x2fa   :  { %13189 = vmatmul.mubr.f32.gmra.mrb[34].mxu0 %v22711_v60  ;;  %v22722_v60 = vld [vmem:[#allocation57_spill] sm:$0xff] }
 0x2fb   :  { %13191 = vmatprep.mubr.f32.mxu0 %v22712_v19  ;;  %v22723_v19 = vld [vmem:[#allocation58_spill] sm:$0xff] }
 0x2fe   :  { %13192 = vmatmul.mubr.f32.gmra.mrb[36].mxu0 %v22713_v4  ;;  %v22724_v4 = vld [vmem:[#allocation59_spill] sm:$0xff] }
 0x2ff   :  { %13194 = vmatprep.mubr.f32.mxu0 %v22714_v17  ;;  %v22725_v17 = vld [vmem:[#allocation60_spill] sm:$0xff] }
 0x302   :  { %13195 = vmatmul.mubr.f32.gmra.mrb[38].mxu0 %v22715_v23  ;;  %v22726_v23 = vld [vmem:[#allocation61_spill] sm:$0xff] }
 0x303   :  { %13197 = vmatprep.mubr.f32.mxu0 %v22716_v13  ;;  %v22727_v13 = vld [vmem:[#allocation62_spill] sm:$0xff] }
 0x306   :  { %13198 = vmatmul.mubr.f32.gmra.mrb[40].mxu0 %v22717_v12  ;;  %v22728_v12 = vld [vmem:[#allocation63_spill] sm:$0xff] }
 0x307   :  { %13200 = vmatprep.mubr.f32.mxu0 %v22718_v18  ;;  %v22729_v18 = vld [vmem:[#allocation64_spill] sm:$0xff] }
 0x30a   :  { %13201 = vmatmul.mubr.f32.gmra.mrb[42].mxu0 %v22719_v35  ;;  %v22730_v35 = vld [vmem:[#allocation65_spill] sm:$0xff] }
 0x30b   :  { %13203 = vmatprep.mubr.f32.mxu0 %v22720_v59  ;;  %v22731_v59 = vld [vmem:[#allocation66_spill] sm:$0xff] }
 0x30e   :  { %13204 = vmatmul.mubr.f32.gmra.mrb[44].mxu0 %v22721_v33  ;;  %v22732_v33 = vld [vmem:[#allocation67_spill] sm:$0xff] }
 0x30f   :  { %13206 = vmatprep.mubr.f32.mxu0 %v22722_v60  ;;  %v22733_v60 = vld [vmem:[#allocation68_spill] sm:$0xff] }
 0x312   :  { %13207 = vmatmul.mubr.f32.gmra.mrb[46].mxu0 %v22723_v19  ;;  %v22734_v19 = vld [vmem:[#allocation69_spill] sm:$0xff] }
 0x313   :  { %13209 = vmatprep.mubr.f32.mxu0 %v22724_v4  ;;  %v22735_v4 = vld [vmem:[#allocation70_spill] sm:$0xff] }
 0x316   :  { %13210 = vmatmul.mubr.f32.gmra.mrb[48].mxu0 %v22725_v17  ;;  %v22736_v17 = vld [vmem:[#allocation71_spill] sm:$0xff] }
 0x317   :  { %13212 = vmatprep.mubr.f32.mxu0 %v22726_v23  ;;  %v18319_v23 = vld [vmem:[%s22304_s0 + $0x332] sm:$0xff] }
 0x31a   :  { %13213 = vmatmul.mubr.f32.gmra.mrb[50].mxu0 %v22727_v13  ;;  %v18326_v13 = vld [vmem:[%s22304_s0 + $0x33a] sm:$0xff] }
 0x31b   :  { %13215 = vmatprep.mubr.f32.mxu0 %v22728_v12  ;;  %v10783_v12 = vld [vmem:[%s22304_s0 + $0x30] sm:$0xff] }
 0x31e   :  { %13216 = vmatmul.mubr.f32.gmra.mrb[52].mxu0 %v22729_v18  ;;  %v10929_v18 = vld [vmem:[%s22305_s1 + $0x390] sm:$0xff] }
 0x31f   :  { %13218 = vmatprep.mubr.f32.mxu0 %v22730_v35  ;;  %v10930_v35 = vld [vmem:[%s22305_s1 + $0x398] sm:$0xff] }
 0x322   :  { %13219 = vmatmul.mubr.f32.gmra.mrb[54].mxu0 %v22731_v59  ;;  %v10785_v59 = vld [vmem:[%s22304_s0 + $0x48] sm:$0xff] }
 0x323   :  { %13221 = vmatprep.mubr.f32.mxu0 %v22732_v33  ;;  %v14997_v33 = vpack.c.bf16 %v10930_v35, %v10929_v18  ;;  %v10933_v18 = vld [vmem:[%s22305_s1 + $0x3b0] sm:$0xff]  ;;  %v10934_v35 = vld [vmem:[%s22305_s1 + $0x3b8] sm:$0xff] }
 0x326   :  { %13222 = vmatmul.mubr.f32.gmra.mrb[56].mxu0 %v22733_v60  ;;  %v10931_v60 = vld [vmem:[%s22305_s1 + $0x3a0] sm:$0xff] }
 0x327   :  { %13224 = vmatprep.mubr.f32.mxu0 %v22734_v19  ;;  %v10932_v19 = vld [vmem:[%s22305_s1 + $0x3a8] sm:$0xff] }
 0x32a   :  { %13225 = vmatmul.mubr.f32.gmra.mrb[58].mxu0 %v22735_v4  ;;  %v10786_v4 = vld [vmem:[%s22304_s0 + $0x50] sm:$0xff] }
 0x32b   :  { %13227 = vmatprep.mubr.f32.mxu0 %v22736_v17  ;;  %v10787_v17 = vld [vmem:[%s22304_s0 + $0x60] sm:$0xff] }
 0x32e   :  { %13228 = vmatmul.mubr.f32.gmra.mrb[60].mxu0 %v17630_v22  ;;  %v10784_v22 = vld [vmem:[%s22304_s0 + $0x38] sm:$0xff] }
 0x32f   :  { %13230 = vmatprep.mubr.f32.mxu0 %v18319_v23 }
 0x332   :  { %13231 = vmatmul.mubr.f32.gmra.mrb[62].mxu0 %v18326_v13 }
 0x333   :  { %13265 = vmatprep.mubr.f32.mxu0 %v10783_v12  ;;  %v15001_v12 = vpack.c.bf16 %v10932_v19, %v10931_v60  ;;  %v10935_v60 = vld [vmem:[%s22305_s1 + $0x3c0] sm:$0xff]  ;;  %v10936_v19 = vld [vmem:[%s22305_s1 + $0x3c8] sm:$0xff] }
 0x336   :  { %13266 = vmatmul.mubr.f32.vlgmr.msra.gmra.mrb[0].mxu0 %v10784_v22  ;;  %v10789_v22 = vld [vmem:[%s22304_s0 + $0x78] sm:$0xff] }
 0x337   :  { %14996 = vmatpush3.bf16.msra.mxu0 %v18257_v27  ;;  %13268 = vmatprep.mubr.f32.mxu0 %v10785_v59  ;;  %v10788_v27 = vld [vmem:[%s22304_s0 + $0x68] sm:$0xff]  ;;  %v15005_v59 = vpack.c.bf16 %v10934_v35, %v10933_v18  ;;  %v10937_v18 = vld [vmem:[%s22305_s1 + $0x3d0] sm:$0xff]  ;;  %v10938_v35 = vld [vmem:[%s22305_s1 + $0x3d8] sm:$0xff] }
 0x338   :  { %14998 = vmatprep.subr.bf16.mxu0 %v14997_v33 }
 0x33a   :  { %13269 = vmatmul.mubr.f32.gmra.mrb[2].mxu0 %v10786_v4  ;;  %v10791_v4 = vld [vmem:[%s22304_s0 + $0x90] sm:$0xff] }
 0x33b   :  { %13271 = vmatprep.mubr.f32.mxu0 %v10787_v17  ;;  %15000 = vmatpush3.bf16.msra.mxu0 %v14997_v33  ;;  %v10790_v33 = vld [vmem:[%s22304_s0 + $0x80] sm:$0xff]  ;;  %v15009_v17 = vpack.c.bf16 %v10936_v19, %v10935_v60  ;;  %v10940_v19 = vld [vmem:[%s22305_s1 + $0x3e8] sm:$0xff] }
 0x33c   :  { %15002 = vmatprep.subr.bf16.mxu0 %v15001_v12  ;;  %v10939_v60 = vld [vmem:[%s22305_s1 + $0x3e0] sm:$0xff] }
 0x33e   :  { %13272 = vmatmul.mubr.f32.gmra.mrb[4].mxu0 %v10788_v27  ;;  %v10793_v27 = vld [vmem:[%s22304_s0 + $0xa8] sm:$0xff] }
 0x33f   :  { %13274 = vmatprep.mubr.f32.mxu0 %v10789_v22  ;;  %15004 = vmatpush3.bf16.msra.mxu0 %v15001_v12  ;;  %v10792_v12 = vld [vmem:[%s22304_s0 + $0x98] sm:$0xff]  ;;  %v15013_v22 = vpack.c.bf16 %v10938_v35, %v10937_v18  ;;  %v10941_v18 = vld [vmem:[%s22305_s1 + $0x3f0] sm:$0xff] }
 0x340   :  { %15006 = vmatprep.subr.bf16.mxu0 %v15005_v59  ;;  %v10942_v35 = vld [vmem:[%s22305_s1 + $0x3f8] sm:$0xff] }
 0x342   :  { %13275 = vmatmul.mubr.f32.gmra.mrb[6].mxu0 %v10790_v33  ;;  %v10795_v33 = vld [vmem:[%s22304_s0 + $0xc0] sm:$0xff] }
 0x343   :  { %13277 = vmatprep.mubr.f32.mxu0 %v10791_v4  ;;  %15008 = vmatpush3.bf16.msra.mxu0 %v15005_v59  ;;  %v10794_v59 = vld [vmem:[%s22304_s0 + $0xb0] sm:$0xff]  ;;  %v15017_v4 = vpack.c.bf16 %v10940_v19, %v10939_v60  ;;  %v11007_v60 = vld [vmem:[%s22305_s1 + $0x400] sm:$0xff]  ;;  %v11008_v19 = vld [vmem:[%s22305_s1 + $0x408] sm:$0xff] }
 0x344   :  { %15010 = vmatprep.subr.bf16.mxu0 %v15009_v17 }
 0x346   :  { %13278 = vmatmul.mubr.f32.gmra.mrb[8].mxu0 %v10792_v12  ;;  %v10797_v12 = vld [vmem:[%s22304_s0 + $0xd8] sm:$0xff] }
 0x347   :  { %13280 = vmatprep.mubr.f32.mxu0 %v10793_v27  ;;  %15012 = vmatpush3.bf16.msra.mxu0 %v15009_v17  ;;  %v10796_v17 = vld [vmem:[%s22304_s0 + $0xc8] sm:$0xff]  ;;  %v15021_v27 = vpack.c.bf16 %v10942_v35, %v10941_v18  ;;  %v10800_v18 = vld [vmem:[%s22304_s0 + $0xf8] sm:$0xff] }
 0x348   :  { %15014 = vmatprep.subr.bf16.mxu0 %v15013_v22  ;;  %v10801_v35 = vld [vmem:[%s22304_s0 + $0x108] sm:$0xff] }
 0x34a   :  { %13281 = vmatmul.mubr.f32.gmra.mrb[10].mxu0 %v10794_v59  ;;  %v10799_v59 = vld [vmem:[%s22304_s0 + $0xf0] sm:$0xff] }
 0x34b   :  { %13283 = vmatprep.mubr.f32.mxu0 %v10795_v33  ;;  %15016 = vmatpush3.bf16.msra.mxu0 %v15013_v22  ;;  %v10798_v22 = vld [vmem:[%s22304_s0 + $0xe0] sm:$0xff]  ;;  %v18429_v33 = vpack.c.bf16 %v11008_v19, %v11007_v60  ;;  %v10807_v19 = vld [vmem:[%s22304_s0 + $0x150] sm:$0xff] }
 0x34c   :  { %15018 = vmatprep.subr.bf16.mxu0 %v15017_v4  ;;  %v10806_v60 = vld [vmem:[%s22304_s0 + $0x140] sm:$0xff] }
 0x34e   :  { %13284 = vmatmul.mubr.f32.gmra.mrb[12].mxu0 %v10796_v17  ;;  %v10803_v17 = vld [vmem:[%s22304_s0 + $0x120] sm:$0xff] }
 0x34f   :  { %13286 = vmatprep.mubr.f32.mxu0 %v10797_v12  ;;  %15020 = vmatpush3.bf16.msra.mxu0 %v15017_v4  ;;  %v10802_v4 = vld [vmem:[%s22304_s0 + $0x110] sm:$0xff]  ;;  %v10804_v12 = vld [vmem:[%s22304_s0 + $0x128] sm:$0xff] }
 0x350   :  { %15022 = vmatprep.subr.bf16.mxu0 %v15021_v27 }
 0x352   :  { %13287 = vmatmul.mubr.f32.gmra.mrb[14].mxu0 %v10798_v22  ;;  %v10808_v22 = vld [vmem:[%s22304_s0 + $0x158] sm:$0xff] }
 0x353   :  { %13289 = vmatprep.mubr.f32.mxu0 %v10799_v59  ;;  %15024 = vmatpush3.bf16.msra.mxu0 %v15021_v27  ;;  %v10805_v27 = vld [vmem:[%s22304_s0 + $0x138] sm:$0xff]  ;;  %v10809_v59 = vld [vmem:[%s22304_s0 + $0x168] sm:$0xff] }
 0x354   :  { %15026 = vmatprep.subr.bf16.mxu0 %v18429_v33 }
 0x356   :  { %13290 = vmatmul.mubr.f32.gmra.mrb[16].mxu0 %v10800_v18  ;;  %v10810_v18 = vld [vmem:[%s22304_s0 + $0x170] sm:$0xff] }
 0x357   :  { %13292 = vmatprep.mubr.f32.mxu0 %v10801_v35  ;;  %v10813_v35 = vld [vmem:[%s22304_s0 + $0x198] sm:$0xff] }
 0x35a   :  { %13293 = vmatmul.mubr.f32.gmra.mrb[18].mxu0 %v10802_v4  ;;  %v10814_v4 = vld [vmem:[%s22304_s0 + $0x1a0] sm:$0xff] }
 0x35b   :  { %13295 = vmatprep.mubr.f32.mxu0 %v10803_v17  ;;  %v10815_v17 = vld [vmem:[%s22304_s0 + $0x1e0] sm:$0xff] }
 0x35e   :  { %13296 = vmatmul.mubr.f32.gmra.mrb[20].mxu0 %v10804_v12  ;;  %v10817_v12 = vld [vmem:[%s22304_s0 + $0x1f8] sm:$0xff] }
 0x35f   :  { %13298 = vmatprep.mubr.f32.mxu0 %v10805_v27  ;;  %v10819_v27 = vld [vmem:[%s22304_s0 + $0x210] sm:$0xff] }
 0x362   :  { %13299 = vmatmul.mubr.f32.gmra.mrb[22].mxu0 %v10806_v60  ;;  %v10820_v60 = vld [vmem:[%s22304_s0 + $0x218] sm:$0xff] }
 0x363   :  { %13301 = vmatprep.mubr.f32.mxu0 %v10807_v19  ;;  %v10821_v19 = vld [vmem:[%s22304_s0 + $0x228] sm:$0xff] }
 0x366   :  { %13302 = vmatmul.mubr.f32.gmra.mrb[24].mxu0 %v10808_v22  ;;  %v10822_v22 = vld [vmem:[%s22304_s0 + $0x230] sm:$0xff] }
 0x367   :  { %13304 = vmatprep.mubr.f32.mxu0 %v10809_v59  ;;  %v10823_v59 = vld [vmem:[%s22304_s0 + $0x240] sm:$0xff] }
 0x36a   :  { %13305 = vmatmul.mubr.f32.gmra.mrb[26].mxu0 %v10810_v18  ;;  %v10824_v18 = vld [vmem:[%s22304_s0 + $0x248] sm:$0xff] }
 0x36b   :  { %13307 = vmatprep.mubr.f32.mxu0 %v17717_v21  ;;  %v10816_v21 = vld [vmem:[%s22304_s0 + $0x1e8] sm:$0xff] }
 0x36e   :  { %13308 = vmatmul.mubr.f32.gmra.mrb[28].mxu0 %v17724_v25  ;;  %v10818_v25 = vld [vmem:[%s22304_s0 + $0x200] sm:$0xff] }
 0x36f   :  { %13310 = vmatprep.mubr.f32.mxu0 %v10813_v35  ;;  %v10825_v35 = vld [vmem:[%s22304_s0 + $0x258] sm:$0xff] }
 0x372   :  { %13311 = vmatmul.mubr.f32.gmra.mrb[30].mxu0 %v10814_v4  ;;  %v10826_v4 = vld [vmem:[%s22304_s0 + $0x260] sm:$0xff] }
 0x373   :  { %13313 = vmatprep.mubr.f32.mxu0 %v10815_v17  ;;  %v10827_v17 = vld [vmem:[%s22304_s0 + $0x270] sm:$0xff] }
 0x376   :  { %13314 = vmatmul.mubr.f32.gmra.mrb[32].mxu0 %v10816_v21  ;;  %v10828_v21 = vld [vmem:[%s22304_s0 + $0x278] sm:$0xff] }
 0x377   :  { %13316 = vmatprep.mubr.f32.mxu0 %v10817_v12  ;;  %v10829_v12 = vld [vmem:[%s22304_s0 + $0x288] sm:$0xff] }
 0x37a   :  { %13317 = vmatmul.mubr.f32.gmra.mrb[34].mxu0 %v10818_v25  ;;  %v10830_v25 = vld [vmem:[%s22304_s0 + $0x290] sm:$0xff] }
 0x37b   :  { %13319 = vmatprep.mubr.f32.mxu0 %v10819_v27  ;;  %v10831_v27 = vld [vmem:[%s22304_s0 + $0x2a0] sm:$0xff] }
 0x37e   :  { %13320 = vmatmul.mubr.f32.gmra.mrb[36].mxu0 %v10820_v60  ;;  %v10832_v60 = vld [vmem:[%s22304_s0 + $0x2a8] sm:$0xff] }
 0x37f   :  { %13322 = vmatprep.mubr.f32.mxu0 %v10821_v19  ;;  %v10833_v19 = vld [vmem:[%s22304_s0 + $0x2b8] sm:$0xff] }
 0x382   :  { %13323 = vmatmul.mubr.f32.gmra.mrb[38].mxu0 %v10822_v22  ;;  %v10834_v22 = vld [vmem:[%s22304_s0 + $0x2c0] sm:$0xff] }
 0x383   :  { %13325 = vmatprep.mubr.f32.mxu0 %v10823_v59  ;;  %v10835_v59 = vld [vmem:[%s22304_s0 + $0x2d0] sm:$0xff] }
 0x386   :  { %13326 = vmatmul.mubr.f32.gmra.mrb[40].mxu0 %v10824_v18  ;;  %v10836_v18 = vld [vmem:[%s22304_s0 + $0x2d8] sm:$0xff] }
 0x387   :  { %13328 = vmatprep.mubr.f32.mxu0 %v10825_v35  ;;  %v10837_v35 = vld [vmem:[%s22304_s0 + $0x2e8] sm:$0xff] }
 0x38a   :  { %13329 = vmatmul.mubr.f32.gmra.mrb[42].mxu0 %v10826_v4  ;;  %v10838_v4 = vld [vmem:[%s22304_s0 + $0x2f0] sm:$0xff] }
 0x38b   :  { %13331 = vmatprep.mubr.f32.mxu0 %v10827_v17  ;;  %v10839_v17 = vld [vmem:[%s22304_s0 + $0x300] sm:$0xff] }
 0x38e   :  { %13332 = vmatmul.mubr.f32.gmra.mrb[44].mxu0 %v10828_v21  ;;  %v10840_v21 = vld [vmem:[%s22304_s0 + $0x308] sm:$0xff] }
 0x38f   :  { %13334 = vmatprep.mubr.f32.mxu0 %v10829_v12  ;;  %v10841_v12 = vld [vmem:[%s22304_s0 + $0x318] sm:$0xff] }
 0x392   :  { %13335 = vmatmul.mubr.f32.gmra.mrb[46].mxu0 %v10830_v25  ;;  %v10842_v25 = vld [vmem:[%s22304_s0 + $0x320] sm:$0xff] }
 0x393   :  { %13337 = vmatprep.mubr.f32.mxu0 %v10831_v27  ;;  %v10845_v27 = vld [vmem:[%s22304_s0 + $0x348] sm:$0xff] }
 0x396   :  { %13338 = vmatmul.mubr.f32.gmra.mrb[48].mxu0 %v10832_v60  ;;  %v10846_v60 = vld [vmem:[%s22304_s0 + $0x350] sm:$0xff] }
 0x397   :  { %13340 = vmatprep.mubr.f32.mxu0 %v10833_v19  ;;  %v11009_v19 = vld [vmem:[%s22305_s1 + $0x410] sm:$0xff] }
 0x39a   :  { %13341 = vmatmul.mubr.f32.gmra.mrb[50].mxu0 %v10834_v22  ;;  %v11010_v22 = vld [vmem:[%s22305_s1 + $0x418] sm:$0xff] }
 0x39b   :  { %13343 = vmatprep.mubr.f32.mxu0 %v10835_v59  ;;  %v11012_v59 = vld [vmem:[%s22305_s1 + $0x428] sm:$0xff] }
 0x39e   :  { %13344 = vmatmul.mubr.f32.gmra.mrb[52].mxu0 %v10836_v18 }
 0x39f   :  { %13346 = vmatprep.mubr.f32.mxu0 %v10837_v35  ;;  %v11014_v35 = vld [vmem:[%s22305_s1 + $0x438] sm:$0xff] }
 0x3a2   :  { %13347 = vmatmul.mubr.f32.gmra.mrb[54].mxu0 %v10838_v4  ;;  %v11018_v4 = vld [vmem:[%s22305_s1 + $0x458] sm:$0xff] }
 0x3a3   :  { %13349 = vmatprep.mubr.f32.mxu0 %v10839_v17  ;;  %v11020_v17 = vld [vmem:[%s22305_s1 + $0x468] sm:$0xff] }
 0x3a6   :  { %13350 = vmatmul.mubr.f32.gmra.mrb[56].mxu0 %v10840_v21  ;;  %v11022_v21 = vld [vmem:[%s22305_s1 + $0x478] sm:$0xff] }
 0x3a7   :  { %13352 = vmatprep.mubr.f32.mxu0 %v10841_v12  ;;  %v10961_v12 = vld [vmem:[%s22304_s0 + $0x10a] sm:$0xff] }
 0x3aa   :  { %13353 = vmatmul.mubr.f32.gmra.mrb[58].mxu0 %v10842_v25  ;;  %v10962_v25 = vld [vmem:[%s22304_s0 + $0x112] sm:$0xff] }
 0x3ab   :  { %13355 = vmatprep.mubr.f32.mxu0 %v17759_v32  ;;  %v15029_v32 = vpack.c.bf16 %v11010_v22, %v11009_v19  ;;  %v10965_v19 = vld [vmem:[%s22304_s0 + $0x13a] sm:$0xff]  ;;  %v10966_v22 = vld [vmem:[%s22304_s0 + $0x142] sm:$0xff] }
 0x3ae   :  { %13356 = vmatmul.mubr.f32.gmra.mrb[60].mxu0 %v17766_v34  ;;  %v11011_v34 = vld [vmem:[%s22305_s1 + $0x420] sm:$0xff] }
 0x3af   :  { %13358 = vmatprep.mubr.f32.mxu0 %v10845_v27  ;;  %v15033_v18 = vpack.c.bf16 %v11012_v59, %v11011_v34  ;;  %v10963_v27 = vld [vmem:[%s22304_s0 + $0x122] sm:$0xff]  ;;  %v10968_v34 = vld [vmem:[%s22304_s0 + $0x15a] sm:$0xff]  ;;  %v10969_v59 = vld [vmem:[%s22304_s0 + $0x16a] sm:$0xff] }
 0x3b2   :  { %13359 = vmatmul.mubr.f32.gmra.mrb[62].mxu0 %v10846_v60  ;;  %v10964_v60 = vld [vmem:[%s22304_s0 + $0x12a] sm:$0xff] }
 0x3b3   :  { %13393 = vmatprep.mubr.f32.mxu0 %v17784_v39  ;;  %v11013_v39 = vld [vmem:[%s22305_s1 + $0x430] sm:$0xff] }
 0x3b6   :  { %13394 = vmatmul.mubr.f32.vlgmr.msra.gmra.mrb[0].mxu0 %v17797_v45  ;;  %v15037_v45 = vpack.c.bf16 %v11014_v35, %v11013_v39  ;;  %v10973_v39 = vld [vmem:[%s22304_s0 + $0x19a] sm:$0xff]  ;;  %v22751_v35 = vld [vmem:[#allocation15_spill] sm:$0xff] }
 0x3b7   :  { %15028 = vmatpush3.bf16.msra.mxu0 %v18429_v33  ;;  %13396 = vmatprep.mubr.f32.mxu0 %v17802_v46  ;;  %v11015_v46 = vld [vmem:[%s22305_s1 + $0x440] sm:$0xff]  ;;  %v11016_v33 = vld [vmem:[%s22305_s1 + $0x448] sm:$0xff] }
 0x3b8   :  { %15030 = vmatprep.subr.bf16.mxu0 %v15029_v32 }
 0x3ba   :  { %13397 = vmatmul.mubr.f32.gmra.mrb[2].mxu0 %v17815_v50  ;;  %v15041_v50 = vpack.c.bf16 %v11016_v33, %v11015_v46  ;;  %v10975_v46 = vld [vmem:[%s22304_s0 + $0x1e2] sm:$0xff]  ;;  %v10977_v33 = vld [vmem:[%s22304_s0 + $0x1fa] sm:$0xff] }
 0x3bb   :  { %13399 = vmatprep.mubr.f32.mxu0 %v17820_v51  ;;  %15032 = vmatpush3.bf16.msra.mxu0 %v15029_v32  ;;  %v11017_v51 = vld [vmem:[%s22305_s1 + $0x450] sm:$0xff] }
 0x3bc   :  { %15034 = vmatprep.subr.bf16.mxu0 %v15033_v18  ;;  %v10967_v32 = vld [vmem:[%s22304_s0 + $0x152] sm:$0xff] }
 0x3be   :  { %13400 = vmatmul.mubr.f32.gmra.mrb[4].mxu0 %v17833_v56  ;;  %v15045_v56 = vpack.c.bf16 %v11018_v4, %v11017_v51  ;;  %v10979_v51 = vld [vmem:[%s22304_s0 + $0x212] sm:$0xff]  ;;  %v10980_v4 = vld [vmem:[%s22304_s0 + $0x21a] sm:$0xff] }
 0x3bf   :  { %13402 = vmatprep.mubr.f32.mxu0 %v17838_v57  ;;  %15036 = vmatpush3.bf16.msra.mxu0 %v15033_v18  ;;  %v11019_v57 = vld [vmem:[%s22305_s1 + $0x460] sm:$0xff]  ;;  %v10970_v18 = vld [vmem:[%s22304_s0 + $0x172] sm:$0xff] }
 0x3c0   :  { %15038 = vmatprep.subr.bf16.mxu0 %v15037_v45 }
 0x3c2   :  { %13403 = vmatmul.mubr.f32.gmra.mrb[6].mxu0 %v17851_v63  ;;  %v15049_v63 = vpack.c.bf16 %v11020_v17, %v11019_v57  ;;  %v10982_v57 = vld [vmem:[%s22304_s0 + $0x232] sm:$0xff]  ;;  %v10983_v17 = vld [vmem:[%s22304_s0 + $0x242] sm:$0xff] }
 0x3c3   :  { %13405 = vmatprep.mubr.f32.mxu0 %v17856_v2  ;;  %15040 = vmatpush3.bf16.msra.mxu0 %v15037_v45  ;;  %v11021_v2 = vld [vmem:[%s22305_s1 + $0x470] sm:$0xff]  ;;  %v10974_v45 = vld [vmem:[%s22304_s0 + $0x1a2] sm:$0xff] }
 0x3c4   :  { %15042 = vmatprep.subr.bf16.mxu0 %v15041_v50 }
 0x3c6   :  { %13406 = vmatmul.mubr.f32.gmra.mrb[8].mxu0 %v17869_v8  ;;  %v15053_v8 = vpack.c.bf16 %v11022_v21, %v11021_v2  ;;  %v10985_v2 = vld [vmem:[%s22304_s0 + $0x25a] sm:$0xff]  ;;  %v10986_v21 = vld [vmem:[%s22304_s0 + $0x262] sm:$0xff] }
 0x3c7   :  { %13408 = vmatprep.mubr.f32.mxu0 %v17874_v9  ;;  %15044 = vmatpush3.bf16.msra.mxu0 %v15041_v50  ;;  %v10893_v9 = vld [vmem:[%s22304_s0 + $0x199] sm:$0xff]  ;;  %v10978_v50 = vld [vmem:[%s22304_s0 + $0x202] sm:$0xff] }
 0x3c8   :  { %15046 = vmatprep.subr.bf16.mxu0 %v15045_v56 }
 0x3ca   :  { %13409 = vmatmul.mubr.f32.gmra.mrb[10].mxu0 %v17887_v55  ;;  %v10894_v55 = vld [vmem:[%s22304_s0 + $0x1a1] sm:$0xff] }
 0x3cb   :  { %13411 = vmatprep.mubr.f32.mxu0 %v17892_v44  ;;  %15048 = vmatpush3.bf16.msra.mxu0 %v15045_v56  ;;  %v22737_v44 = vld [vmem:[#allocation9_spill] sm:$0xff]  ;;  %v10981_v56 = vld [vmem:[%s22304_s0 + $0x22a] sm:$0xff] }
 0x3cc   :  { %15050 = vmatprep.subr.bf16.mxu0 %v15049_v63 }
 0x3ce   :  { %13412 = vmatmul.mubr.f32.gmra.mrb[12].mxu0 %v17905_v0  ;;  %v22738_v0 = vld [vmem:[#allocation10_spill] sm:$0xff] }
 0x3cf   :  { %13414 = vmatprep.mubr.f32.mxu0 %v17910_v1  ;;  %15052 = vmatpush3.bf16.msra.mxu0 %v15049_v63  ;;  %v22739_v1 = vld [vmem:[#allocation11_spill] sm:$0xff] }
 0x3d0   :  { %15054 = vmatprep.subr.bf16.mxu0 %v15053_v8  ;;  %v10984_v63 = vld [vmem:[%s22304_s0 + $0x24a] sm:$0xff] }
 0x3d2   :  { %13415 = vmatmul.mubr.f32.gmra.mrb[14].mxu0 %v17919_v5  ;;  %v22740_v5 = vld [vmem:[#allocation12_spill] sm:$0xff] }
 0x3d3   :  { %13417 = vmatprep.mubr.f32.mxu0 %v17924_v6  ;;  %15056 = vmatpush3.bf16.msra.mxu0 %v15053_v8  ;;  %v22741_v6 = vld [vmem:[#allocation13_spill] sm:$0xff]  ;;  %v10987_v8 = vld [vmem:[%s22304_s0 + $0x272] sm:$0xff] }
 0x3d6   :  { %13418 = vmatmul.mubr.f32.gmra.mrb[16].mxu0 %v17932_v43  ;;  %v22742_v43 = vld [vmem:[#allocation14_spill] sm:$0xff] }
 0x3d7   :  { %13420 = vmatprep.mubr.f32.mxu0 %v17937_v10  ;;  %v22743_v10 = vld [vmem:[#allocation72_spill] sm:$0xff] }
 0x3da   :  { %13421 = vmatmul.mubr.f32.gmra.mrb[18].mxu0 %v17944_v11  ;;  %v22744_v11 = vld [vmem:[#allocation73_spill] sm:$0xff] }
 0x3db   :  { %13423 = vmatprep.mubr.f32.mxu0 %v17949_v14  ;;  %v22745_v14 = vld [vmem:[#allocation74_spill] sm:$0xff] }
 0x3de   :  { %13424 = vmatmul.mubr.f32.gmra.mrb[20].mxu0 %v17956_v15  ;;  %v22746_v15 = vld [vmem:[#allocation75_spill] sm:$0xff] }
 0x3df   :  { %13426 = vmatprep.mubr.f32.mxu0 %v17961_v16  ;;  %v22747_v16 = vld [vmem:[#allocation76_spill] sm:$0xff] }
 0x3e2   :  { %13427 = vmatmul.mubr.f32.gmra.mrb[22].mxu0 %v17968_v24  ;;  %v22748_v24 = vld [vmem:[#allocation77_spill] sm:$0xff] }
 0x3e3   :  { %13429 = vmatprep.mubr.f32.mxu0 %v17973_v20  ;;  %v22749_v20 = vld [vmem:[#allocation78_spill] sm:$0xff] }
 0x3e6   :  { %13430 = vmatmul.mubr.f32.gmra.mrb[24].mxu0 %v17980_v26  ;;  %v10925_v26 = vld [vmem:[%s22304_s0 + $0x349] sm:$0xff] }
 0x3e7   :  { %13432 = vmatprep.mubr.f32.mxu0 %v17985_v28  ;;  %v22750_v28 = vld [vmem:[#allocation79_spill] sm:$0xff] }
 0x3ea   :  { %13433 = vmatmul.mubr.f32.gmra.mrb[26].mxu0 %v17992_v29  ;;  %v10926_v29 = vld [vmem:[%s22304_s0 + $0x351] sm:$0xff] }
 0x3eb   :  { %13435 = vmatprep.mubr.f32.mxu0 %v17997_v30  ;;  %v10943_v30 = vld [vmem:[%s22304_s0 + $0x32] sm:$0xff] }
 0x3ee   :  { %13436 = vmatmul.mubr.f32.gmra.mrb[28].mxu0 %v18004_v31  ;;  %v10944_v31 = vld [vmem:[%s22304_s0 + $0x3a] sm:$0xff] }
 0x3ef   :  { %13438 = vmatprep.mubr.f32.mxu0 %v10893_v9  ;;  %v10988_v9 = vld [vmem:[%s22304_s0 + $0x27a] sm:$0xff] }
 0x3f2   :  { %13439 = vmatmul.mubr.f32.gmra.mrb[30].mxu0 %v10894_v55  ;;  %v10989_v55 = vld [vmem:[%s22304_s0 + $0x28a] sm:$0xff] }
 0x3f3   :  { %13441 = vmatprep.mubr.f32.mxu0 %v18016_v36  ;;  %v10945_v36 = vld [vmem:[%s22304_s0 + $0x4a] sm:$0xff] }
 0x3f6   :  { %13442 = vmatmul.mubr.f32.gmra.mrb[32].mxu0 %v18022_v37  ;;  %v10946_v37 = vld [vmem:[%s22304_s0 + $0x52] sm:$0xff] }
 0x3f7   :  { %13444 = vmatprep.mubr.f32.mxu0 %v18027_v38  ;;  %v10947_v38 = vld [vmem:[%s22304_s0 + $0x62] sm:$0xff] }
 0x3fa   :  { %13445 = vmatmul.mubr.f32.gmra.mrb[34].mxu0 %v18034_v40  ;;  %v10948_v40 = vld [vmem:[%s22304_s0 + $0x6a] sm:$0xff] }
 0x3fb   :  { %13447 = vmatprep.mubr.f32.mxu0 %v18039_v41  ;;  %v10949_v41 = vld [vmem:[%s22304_s0 + $0x7a] sm:$0xff] }
 0x3fe   :  { %13448 = vmatmul.mubr.f32.gmra.mrb[36].mxu0 %v18046_v42  ;;  %v10950_v42 = vld [vmem:[%s22304_s0 + $0x82] sm:$0xff] }
 0x3ff   :  { %13450 = vmatprep.mubr.f32.mxu0 %v18051_v47  ;;  %v10951_v47 = vld [vmem:[%s22304_s0 + $0x92] sm:$0xff] }
 0x402   :  { %13451 = vmatmul.mubr.f32.gmra.mrb[38].mxu0 %v18058_v48  ;;  %v10952_v48 = vld [vmem:[%s22304_s0 + $0x9a] sm:$0xff] }
 0x403   :  { %13453 = vmatprep.mubr.f32.mxu0 %v18063_v49  ;;  %v10953_v49 = vld [vmem:[%s22304_s0 + $0xaa] sm:$0xff] }
 0x406   :  { %13454 = vmatmul.mubr.f32.gmra.mrb[40].mxu0 %v18070_v52  ;;  %v10954_v52 = vld [vmem:[%s22304_s0 + $0xb2] sm:$0xff] }
 0x407   :  { %13456 = vmatprep.mubr.f32.mxu0 %v18075_v53  ;;  %v10955_v53 = vld [vmem:[%s22304_s0 + $0xc2] sm:$0xff] }
 0x40a   :  { %13457 = vmatmul.mubr.f32.gmra.mrb[42].mxu0 %v18082_v54  ;;  %v10956_v54 = vld [vmem:[%s22304_s0 + $0xca] sm:$0xff] }
 0x40b   :  { %13459 = vmatprep.mubr.f32.mxu0 %v18087_v58  ;;  %v10957_v58 = vld [vmem:[%s22304_s0 + $0xda] sm:$0xff] }
 0x40e   :  { %13460 = vmatmul.mubr.f32.gmra.mrb[44].mxu0 %v18094_v61  ;;  %v10958_v61 = vld [vmem:[%s22304_s0 + $0xe2] sm:$0xff] }
 0x40f   :  { %13462 = vmatprep.mubr.f32.mxu0 %v18099_v62  ;;  %v10959_v62 = vld [vmem:[%s22304_s0 + $0xf2] sm:$0xff] }
 0x412   :  { %13463 = vmatmul.mubr.f32.gmra.mrb[46].mxu0 %v18106_v3  ;;  %v10960_v3 = vld [vmem:[%s22304_s0 + $0xfa] sm:$0xff] }
 0x413   :  { %13465 = vmatprep.mubr.f32.mxu0 %v22737_v44  ;;  %v10990_v44 = vld [vmem:[%s22304_s0 + $0x292] sm:$0xff] }
 0x416   :  { %13466 = vmatmul.mubr.f32.gmra.mrb[48].mxu0 %v22738_v0  ;;  %v10991_v0 = vld [vmem:[%s22304_s0 + $0x2a2] sm:$0xff] }
 0x417   :  { %13468 = vmatprep.mubr.f32.mxu0 %v22739_v1  ;;  %v10992_v1 = vld [vmem:[%s22304_s0 + $0x2aa] sm:$0xff] }
 0x41a   :  { %13469 = vmatmul.mubr.f32.gmra.mrb[50].mxu0 %v22740_v5  ;;  %v10993_v5 = vld [vmem:[%s22304_s0 + $0x2ba] sm:$0xff] }
 0x41b   :  { %13471 = vmatprep.mubr.f32.mxu0 %v22741_v6  ;;  %v10994_v6 = vld [vmem:[%s22304_s0 + $0x2c2] sm:$0xff] }
 0x41e   :  { %13472 = vmatmul.mubr.f32.gmra.mrb[52].mxu0 %v22742_v43  ;;  %v10995_v43 = vld [vmem:[%s22304_s0 + $0x2d2] sm:$0xff] }
 0x41f   :  { %13474 = vmatprep.mubr.f32.mxu0 %v22743_v10  ;;  %v10996_v10 = vld [vmem:[%s22304_s0 + $0x2da] sm:$0xff] }
 0x422   :  { %13475 = vmatmul.mubr.f32.gmra.mrb[54].mxu0 %v22744_v11  ;;  %v10997_v11 = vld [vmem:[%s22304_s0 + $0x2ea] sm:$0xff] }
 0x423   :  { %13477 = vmatprep.mubr.f32.mxu0 %v22745_v14  ;;  %v10998_v14 = vld [vmem:[%s22304_s0 + $0x2f2] sm:$0xff] }
 0x426   :  { %13478 = vmatmul.mubr.f32.gmra.mrb[56].mxu0 %v22746_v15  ;;  %v10999_v15 = vld [vmem:[%s22304_s0 + $0x302] sm:$0xff] }
 0x427   :  { %13480 = vmatprep.mubr.f32.mxu0 %v22747_v16  ;;  %v11000_v16 = vld [vmem:[%s22304_s0 + $0x30a] sm:$0xff] }
 0x42a   :  { %13481 = vmatmul.mubr.f32.gmra.mrb[58].mxu0 %v22748_v24  ;;  %v11001_v24 = vld [vmem:[%s22304_s0 + $0x31a] sm:$0xff] }
 0x42b   :  { %13483 = vmatprep.mubr.f32.mxu0 %v22749_v20  ;;  %v11002_v20 = vld [vmem:[%s22304_s0 + $0x322] sm:$0xff] }
 0x42e   :  { %13484 = vmatmul.mubr.f32.gmra.mrb[60].mxu0 %v22750_v28  ;;  %v11006_v28 = vld [vmem:[%s22304_s0 + $0x352] sm:$0xff] }
 0x42f   :  { %13486 = vmatprep.mubr.f32.mxu0 %v10925_v26  ;;  %v11005_v26 = vld [vmem:[%s22304_s0 + $0x34a] sm:$0xff] }
 0x432   :  { %13487 = vmatmul.mubr.f32.gmra.mrb[62].mxu0 %v10926_v29 }
 0x433   :  { %13521 = vmatprep.mubr.f32.mxu0 %v10943_v30 }
 0x436   :  { %13522 = vmatmul.mubr.f32.vlgmr.msra.gmra.mrb[0].mxu0 %v10944_v31 }
 0x437   :  { %13524 = vmatprep.mubr.f32.mxu0 %v10945_v36 }
 0x43a   :  { %13525 = vmatmul.mubr.f32.gmra.mrb[2].mxu0 %v10946_v37 }
 0x43b   :  { %13527 = vmatprep.mubr.f32.mxu0 %v10947_v38 }
 0x43e   :  { %13528 = vmatmul.mubr.f32.gmra.mrb[4].mxu0 %v10948_v40 }
 0x43f   :  { %13530 = vmatprep.mubr.f32.mxu0 %v10949_v41 }
 0x442   :  { %13531 = vmatmul.mubr.f32.gmra.mrb[6].mxu0 %v10950_v42 }
 0x443   :  { %13533 = vmatprep.mubr.f32.mxu0 %v10951_v47 }
 0x446   :  { %13534 = vmatmul.mubr.f32.gmra.mrb[8].mxu0 %v10952_v48 }
 0x447   :  { %13536 = vmatprep.mubr.f32.mxu0 %v10953_v49 }
 0x44a   :  { %13537 = vmatmul.mubr.f32.gmra.mrb[10].mxu0 %v10954_v52 }
 0x44b   :  { %13539 = vmatprep.mubr.f32.mxu0 %v10955_v53 }
 0x44e   :  { %13540 = vmatmul.mubr.f32.gmra.mrb[12].mxu0 %v10956_v54 }
 0x44f   :  { %13542 = vmatprep.mubr.f32.mxu0 %v10957_v58 }
 0x452   :  { %13543 = vmatmul.mubr.f32.gmra.mrb[14].mxu0 %v10958_v61 }
 0x453   :  { %13545 = vmatprep.mubr.f32.mxu0 %v10959_v62 }
 0x456   :  { %13546 = vmatmul.mubr.f32.gmra.mrb[16].mxu0 %v10960_v3 }
 0x457   :  { %13548 = vmatprep.mubr.f32.mxu0 %v10961_v12 }
 0x45a   :  { %13549 = vmatmul.mubr.f32.gmra.mrb[18].mxu0 %v10962_v25 }
 0x45b   :  { %13551 = vmatprep.mubr.f32.mxu0 %v10963_v27 }
 0x45e   :  { %13552 = vmatmul.mubr.f32.gmra.mrb[20].mxu0 %v10964_v60 }
 0x45f   :  { %13554 = vmatprep.mubr.f32.mxu0 %v10965_v19 }
 0x462   :  { %13555 = vmatmul.mubr.f32.gmra.mrb[22].mxu0 %v10966_v22 }
 0x463   :  { %13557 = vmatprep.mubr.f32.mxu0 %v10967_v32 }
 0x466   :  { %13558 = vmatmul.mubr.f32.gmra.mrb[24].mxu0 %v10968_v34 }
 0x467   :  { %13560 = vmatprep.mubr.f32.mxu0 %v10969_v59 }
 0x46a   :  { %13561 = vmatmul.mubr.f32.gmra.mrb[26].mxu0 %v10970_v18 }
 0x46b   :  { %13563 = vmatprep.mubr.f32.mxu0 %v18277_v7  ;;  %v10976_v7 = vld [vmem:[%s22304_s0 + $0x1ea] sm:$0xff] }
 0x46e   :  { %13564 = vmatmul.mubr.f32.gmra.mrb[28].mxu0 %v22751_v35 }
 0x46f   :  { %13566 = vmatprep.mubr.f32.mxu0 %v10973_v39 }
 0x472   :  { %13567 = vmatmul.mubr.f32.gmra.mrb[30].mxu0 %v10974_v45 }
 0x473   :  { %13569 = vmatprep.mubr.f32.mxu0 %v10975_v46 }
 0x476   :  { %13570 = vmatmul.mubr.f32.gmra.mrb[32].mxu0 %v10976_v7 }
 0x477   :  { %13572 = vmatprep.mubr.f32.mxu0 %v10977_v33 }
 0x47a   :  { %13573 = vmatmul.mubr.f32.gmra.mrb[34].mxu0 %v10978_v50 }
 0x47b   :  { %13575 = vmatprep.mubr.f32.mxu0 %v10979_v51 }
 0x47e   :  { %13576 = vmatmul.mubr.f32.gmra.mrb[36].mxu0 %v10980_v4 }
 0x47f   :  { %13578 = vmatprep.mubr.f32.mxu0 %v10981_v56 }
 0x482   :  { %13579 = vmatmul.mubr.f32.gmra.mrb[38].mxu0 %v10982_v57 }
 0x483   :  { %13581 = vmatprep.mubr.f32.mxu0 %v10983_v17 }
 0x486   :  { %13582 = vmatmul.mubr.f32.gmra.mrb[40].mxu0 %v10984_v63 }
 0x487   :  { %13584 = vmatprep.mubr.f32.mxu0 %v10985_v2 }
 0x48a   :  { %13585 = vmatmul.mubr.f32.gmra.mrb[42].mxu0 %v10986_v21 }
 0x48b   :  { %13587 = vmatprep.mubr.f32.mxu0 %v10987_v8 }
 0x48e   :  { %13588 = vmatmul.mubr.f32.gmra.mrb[44].mxu0 %v10988_v9 }
 0x48f   :  { %13590 = vmatprep.mubr.f32.mxu0 %v10989_v55 }
 0x492   :  { %13591 = vmatmul.mubr.f32.gmra.mrb[46].mxu0 %v10990_v44 }
 0x493   :  { %13593 = vmatprep.mubr.f32.mxu0 %v10991_v0 }
 0x496   :  { %13594 = vmatmul.mubr.f32.gmra.mrb[48].mxu0 %v10992_v1 }
 0x497   :  { %13596 = vmatprep.mubr.f32.mxu0 %v10993_v5 }
 0x49a   :  { %13597 = vmatmul.mubr.f32.gmra.mrb[50].mxu0 %v10994_v6 }
 0x49b   :  { %13599 = vmatprep.mubr.f32.mxu0 %v10995_v43 }
 0x49e   :  { %13600 = vmatmul.mubr.f32.gmra.mrb[52].mxu0 %v10996_v10 }
 0x49f   :  { %13602 = vmatprep.mubr.f32.mxu0 %v10997_v11 }
 0x4a2   :  { %13603 = vmatmul.mubr.f32.gmra.mrb[54].mxu0 %v10998_v14 }
 0x4a3   :  { %13605 = vmatprep.mubr.f32.mxu0 %v10999_v15 }
 0x4a6   :  { %13606 = vmatmul.mubr.f32.gmra.mrb[56].mxu0 %v11000_v16 }
 0x4a7   :  { %13608 = vmatprep.mubr.f32.mxu0 %v11001_v24 }
 0x4aa   :  { %13609 = vmatmul.mubr.f32.gmra.mrb[58].mxu0 %v11002_v20 }
 0x4ab   :  { %13611 = vmatprep.mubr.f32.mxu0 %v18319_v23 }
 0x4ae   :  { %13612 = vmatmul.mubr.f32.gmra.mrb[60].mxu0 %v18326_v13 }
 0x4af   :  { %13614 = vmatprep.mubr.f32.mxu0 %v11005_v26 }
 0x4b2   :  { %13615 = vmatmul.mubr.f32.gmra.mrb[62].mxu0 %v11006_v28 }
 0x509   :  { %v18864_v29 = vpop.f32.mrb[0].mxu0 }
 0x50a   :  { %v18866_v30 = vpop.f32.mrb[1].mxu0 }
 0x50b   :  { %v4684_v31 = vadd.f32 %v18864_v29, %v18866_v30 }
 0x50d   :  { %v18870_v23 = vpop.f32.mrb[2].mxu0 }
 0x50e   :  { %v18872_v36 = vpop.f32.mrb[3].mxu0 }
 0x50f   :  { %v4685_v37 = vadd.f32 %v4684_v31, %v18872_v36 }
 0x511   :  { %v4686_v13 = vadd.f32 %v18870_v23, %v4685_v37  ;;  %v18876_v38 = vpop.f32.mrb[4].mxu0 }
 0x512   :  { %v18878_v40 = vpop.f32.mrb[5].mxu0 }
 0x513   :  { %v4687_v41 = vadd.f32 %v4686_v13, %v18878_v40 }
 0x515   :  { %v18881_v42 = vpop.f32.mrb[6].mxu0  ;;  %v4688_v47 = vadd.f32 %v18876_v38, %v4687_v41 }
 0x516   :  { %v18884_v48 = vpop.f32.mrb[7].mxu0 }
 0x517   :  { %v4689_v49 = vadd.f32 %v4688_v47, %v18884_v48 }
 0x519   :  { %v18887_v52 = vpop.f32.mrb[8].mxu0  ;;  %v4690_v53 = vadd.f32 %v18881_v42, %v4689_v49 }
 0x51a   :  { %v18890_v54 = vpop.f32.mrb[9].mxu0 }
 0x51b   :  { %v4691_v58 = vadd.f32 %v4690_v53, %v18890_v54 }
 0x51d   :  { %v18893_v61 = vpop.f32.mrb[10].mxu0  ;;  %v4692_v62 = vadd.f32 %v18887_v52, %v4691_v58 }
 0x51e   :  { %v18896_v3 = vpop.f32.mrb[11].mxu0 }
 0x51f   :  { %v4693_v12 = vadd.f32 %v4692_v62, %v18896_v3 }
 0x521   :  { %v18899_v25 = vpop.f32.mrb[12].mxu0  ;;  %v4694_v27 = vadd.f32 %v18893_v61, %v4693_v12 }
 0x522   :  { %v18902_v60 = vpop.f32.mrb[13].mxu0 }
 0x523   :  { %v4695_v19 = vadd.f32 %v4694_v27, %v18902_v60 }
 0x525   :  { %v18905_v22 = vpop.f32.mrb[14].mxu0  ;;  %v4696_v32 = vadd.f32 %v18899_v25, %v4695_v19 }
 0x526   :  { %v18908_v34 = vpop.f32.mrb[15].mxu0 }
 0x527   :  { %v4697_v59 = vadd.f32 %v4696_v32, %v18908_v34 }
 0x529   :  { %v18911_v18 = vpop.f32.mrb[16].mxu0  ;;  %v4698_v39 = vadd.f32 %v18905_v22, %v4697_v59 }
 0x52a   :  { %v18914_v35 = vpop.f32.mrb[17].mxu0 }
 0x52b   :  { %v4699_v45 = vadd.f32 %v4698_v39, %v18914_v35 }
 0x52d   :  { %v18917_v46 = vpop.f32.mrb[18].mxu0  ;;  %v4700_v7 = vadd.f32 %v18911_v18, %v4699_v45 }
 0x52e   :  { %v18920_v33 = vpop.f32.mrb[19].mxu0 }
 0x52f   :  { %v4701_v50 = vadd.f32 %v4700_v7, %v18920_v33 }
 0x531   :  { %v18923_v51 = vpop.f32.mrb[20].mxu0  ;;  %v4702_v4 = vadd.f32 %v18917_v46, %v4701_v50 }
 0x532   :  { %v18926_v56 = vpop.f32.mrb[21].mxu0 }
 0x533   :  { %v4703_v57 = vadd.f32 %v4702_v4, %v18926_v56 }
 0x535   :  { %v18929_v17 = vpop.f32.mrb[22].mxu0  ;;  %v4704_v63 = vadd.f32 %v18923_v51, %v4703_v57 }
 0x536   :  { %v18932_v2 = vpop.f32.mrb[23].mxu0 }
 0x537   :  { %v4705_v21 = vadd.f32 %v4704_v63, %v18932_v2 }
 0x539   :  { %v18935_v8 = vpop.f32.mrb[24].mxu0  ;;  %v4706_v9 = vadd.f32 %v18929_v17, %v4705_v21 }
 0x53a   :  { %v18938_v55 = vpop.f32.mrb[25].mxu0 }
 0x53b   :  { %v4707_v44 = vadd.f32 %v4706_v9, %v18938_v55 }
 0x53d   :  { %v18941_v0 = vpop.f32.mrb[26].mxu0  ;;  %v4708_v1 = vadd.f32 %v18935_v8, %v4707_v44 }
 0x53e   :  { %v18944_v5 = vpop.f32.mrb[27].mxu0 }
 0x53f   :  { %v4709_v6 = vadd.f32 %v4708_v1, %v18944_v5 }
 0x541   :  { %v18947_v43 = vpop.f32.mrb[28].mxu0  ;;  %v4710_v10 = vadd.f32 %v18941_v0, %v4709_v6 }
 0x542   :  { %v18950_v11 = vpop.f32.mrb[29].mxu0 }
 0x543   :  { %v4711_v14 = vadd.f32 %v4710_v10, %v18950_v11 }
 0x545   :  { %v18953_v15 = vpop.f32.mrb[30].mxu0  ;;  %v4712_v16 = vadd.f32 %v18947_v43, %v4711_v14 }
 0x546   :  { %v18956_v24 = vpop.f32.mrb[31].mxu0 }
 0x547   :  { %v4713_v20 = vadd.f32 %v4712_v16, %v18956_v24 }
 0x549   :  { %v18959_v26 = vpop.f32.mrb[32].mxu0  ;;  %v4714_v28 = vadd.f32 %v18953_v15, %v4713_v20 }
 0x54a   :  { %v18962_v31 = vpop.f32.mrb[33].mxu0 }
 0x54b   :  { %v4715_v37 = vadd.f32 %v4714_v28, %v18962_v31 }
 0x54d   :  { %v18965_v13 = vpop.f32.mrb[34].mxu0  ;;  %v4716_v41 = vadd.f32 %v18959_v26, %v4715_v37 }
 0x54e   :  { %v18968_v47 = vpop.f32.mrb[35].mxu0 }
 0x54f   :  { %v4717_v49 = vadd.f32 %v4716_v41, %v18968_v47 }
 0x551   :  { %v18971_v53 = vpop.f32.mrb[36].mxu0  ;;  %v4718_v58 = vadd.f32 %v18965_v13, %v4717_v49 }
 0x552   :  { %v18974_v62 = vpop.f32.mrb[37].mxu0 }
 0x553   :  { %v4719_v12 = vadd.f32 %v4718_v58, %v18974_v62 }
 0x555   :  { %v18977_v27 = vpop.f32.mrb[38].mxu0  ;;  %v4720_v19 = vadd.f32 %v18971_v53, %v4719_v12 }
 0x556   :  { %v18980_v32 = vpop.f32.mrb[39].mxu0 }
 0x557   :  { %v4721_v59 = vadd.f32 %v4720_v19, %v18980_v32 }
 0x559   :  { %v18983_v39 = vpop.f32.mrb[40].mxu0  ;;  %v4722_v45 = vadd.f32 %v18977_v27, %v4721_v59 }
 0x55a   :  { %v18986_v7 = vpop.f32.mrb[41].mxu0 }
 0x55b   :  { %v4723_v50 = vadd.f32 %v4722_v45, %v18986_v7 }
 0x55d   :  { %v18989_v4 = vpop.f32.mrb[42].mxu0  ;;  %v4724_v57 = vadd.f32 %v18983_v39, %v4723_v50 }
 0x55e   :  { %v18992_v63 = vpop.f32.mrb[43].mxu0 }
 0x55f   :  { %v4725_v21 = vadd.f32 %v4724_v57, %v18992_v63 }
 0x561   :  { %v18995_v9 = vpop.f32.mrb[44].mxu0  ;;  %v4726_v44 = vadd.f32 %v18989_v4, %v4725_v21 }
 0x562   :  { %v18998_v1 = vpop.f32.mrb[45].mxu0 }
 0x563   :  { %v4727_v6 = vadd.f32 %v4726_v44, %v18998_v1 }
 0x565   :  { %v19001_v10 = vpop.f32.mrb[46].mxu0  ;;  %v4728_v14 = vadd.f32 %v18995_v9, %v4727_v6 }
 0x566   :  { %v19004_v16 = vpop.f32.mrb[47].mxu0 }
 0x567   :  { %v4729_v20 = vadd.f32 %v4728_v14, %v19004_v16 }
 0x569   :  { %v19007_v28 = vpop.f32.mrb[48].mxu0  ;;  %v4730_v37 = vadd.f32 %v19001_v10, %v4729_v20 }
 0x56a   :  { %22752 = vst [vmem:[#allocation16_spill] sm:$0xff] %v19007_v28  ;;  %v19010_v41 = vpop.f32.mrb[49].mxu0 }
 0x56b   :  { %22753 = vst [vmem:[#allocation17_spill] sm:$0xff] %v19010_v41  ;;  %v4731_v49 = vadd.f32 %v4730_v37, %v19010_v41 }
 0x56d   :  { %v19013_v58 = vpop.f32.mrb[50].mxu0  ;;  %v4732_v12 = vadd.f32 %v19007_v28, %v4731_v49 }
 0x56e   :  { %22754 = vst [vmem:[#allocation18_spill] sm:$0xff] %v19013_v58  ;;  %v19016_v19 = vpop.f32.mrb[51].mxu0 }
 0x56f   :  { %22755 = vst [vmem:[#allocation19_spill] sm:$0xff] %v19016_v19  ;;  %v4733_v59 = vadd.f32 %v4732_v12, %v19016_v19 }
 0x571   :  { %v19019_v45 = vpop.f32.mrb[52].mxu0  ;;  %v4734_v50 = vadd.f32 %v19013_v58, %v4733_v59 }
 0x572   :  { %22756 = vst [vmem:[#allocation20_spill] sm:$0xff] %v19019_v45  ;;  %v19022_v57 = vpop.f32.mrb[53].mxu0 }
 0x573   :  { %22757 = vst [vmem:[#allocation21_spill] sm:$0xff] %v19022_v57  ;;  %v4735_v21 = vadd.f32 %v4734_v50, %v19022_v57 }
 0x575   :  { %v19025_v44 = vpop.f32.mrb[54].mxu0  ;;  %v4736_v6 = vadd.f32 %v19019_v45, %v4735_v21 }
 0x576   :  { %22758 = vst [vmem:[#allocation22_spill] sm:$0xff] %v19025_v44  ;;  %v19028_v14 = vpop.f32.mrb[55].mxu0 }
 0x577   :  { %22759 = vst [vmem:[#allocation23_spill] sm:$0xff] %v19028_v14  ;;  %v4737_v20 = vadd.f32 %v4736_v6, %v19028_v14 }
 0x579   :  { %v19031_v37 = vpop.f32.mrb[56].mxu0  ;;  %v4738_v49 = vadd.f32 %v19025_v44, %v4737_v20 }
 0x57a   :  { %22760 = vst [vmem:[#allocation24_spill] sm:$0xff] %v19031_v37  ;;  %v19034_v12 = vpop.f32.mrb[57].mxu0 }
 0x57b   :  { %22761 = vst [vmem:[#allocation25_spill] sm:$0xff] %v19034_v12  ;;  %v4739_v59 = vadd.f32 %v4738_v49, %v19034_v12 }
 0x57d   :  { %v19037_v58 = vpop.f32.mrb[58].mxu0  ;;  %v4740_v50 = vadd.f32 %v19031_v37, %v4739_v59 }
 0x57e   :  { %22762 = vst [vmem:[#allocation26_spill] sm:$0xff] %v19037_v58  ;;  %v19040_v57 = vpop.f32.mrb[59].mxu0 }
 0x57f   :  { %22763 = vst [vmem:[#allocation27_spill] sm:$0xff] %v19040_v57  ;;  %v4741_v21 = vadd.f32 %v4740_v50, %v19040_v57 }
 0x581   :  { %v19043_v45 = vpop.f32.mrb[60].mxu0  ;;  %v4742_v6 = vadd.f32 %v19037_v58, %v4741_v21 }
 0x582   :  { %v19046_v14 = vpop.f32.mrb[61].mxu0 }
 0x583   :  { %v4743_v20 = vadd.f32 %v4742_v6, %v19046_v14 }
 0x585   :  { %v19049_v44 = vpop.f32.mrb[62].mxu0  ;;  %v4744_v49 = vadd.f32 %v19043_v45, %v4743_v20 }
 0x586   :  { %v19052_v12 = vpop.f32.mrb[63].mxu0 }
 0x587   :  { %v4745_v59 = vadd.f32 %v4744_v49, %v19052_v12 }
 0x589   :  { %v4746_v37 = vadd.f32 %v19049_v44, %v4745_v59  ;;  %v22778_v59 = vld [vmem:[#allocation18_spill] sm:$0xff] }
 0x58b   :  { %v4747_v19 = vrot.slane %v4746_v37, 4 }
 0x58d   :  { %v4748_v50 = vadd.f32 %v4747_v19, %v4746_v37  ;;  %v22776_v37 = vld [vmem:[#allocation19_spill] sm:$0xff] }
 0x58f   :  { %v4749_v57 = vrot.slane %v4748_v50, 2 }
 0x591   :  { %v4750_v28 = vadd.f32 %v4749_v57, %v4748_v50  ;;  %v22774_v57 = vld [vmem:[#allocation16_spill] sm:$0xff]  ;;  %v22780_v50 = vld [vmem:[#allocation21_spill] sm:$0xff] }
 0x593   :  { %v4751_v41 = vrot.slane %v4750_v28, 1 }
 0x595   :  { %v4752_v21 = vadd.f32 %v4751_v41, %v4750_v28  ;;  %v22772_v41 = vld [vmem:[#allocation17_spill] sm:$0xff] }
 0x597   :  { %v19056_v58 = vmul.f32 0.001953125, %v4752_v21  ;;  %v22782_v21 = vld [vmem:[#allocation20_spill] sm:$0xff] }
 0x599   :  { %v19060_v6 = vsub.f32 %v18866_v30, %v19056_v58  ;;  %v19064_v20 = vsub.f32 %v18864_v29, %v19056_v58  ;;  %v19068_v49 = vsub.f32 %v18872_v36, %v19056_v58  ;;  %v19072_v19 = vsub.f32 %v18870_v23, %v19056_v58 }
 0x59a   :  { %v19076_v28 = vsub.f32 %v18878_v40, %v19056_v58  ;;  %v19080_v30 = vsub.f32 %v18876_v38, %v19056_v58  ;;  %v19084_v29 = vsub.f32 %v18884_v48, %v19056_v58  ;;  %v19088_v36 = vsub.f32 %v18881_v42, %v19056_v58 }
 0x59b   :  { %22764 = vst [vmem:[#allocation28_spill] sm:$0xff] %v19060_v6  ;;  %22765 = vst [vmem:[#allocation29_spill] sm:$0xff] %v19064_v20  ;;  %v19092_v23 = vsub.f32 %v18890_v54, %v19056_v58  ;;  %v19096_v40 = vsub.f32 %v18887_v52, %v19056_v58  ;;  %v19100_v38 = vsub.f32 %v18896_v3, %v19056_v58 }
 0x59c   :  { %22766 = vst [vmem:[#allocation30_spill] sm:$0xff] %v19068_v49  ;;  %v19104_v48 = vsub.f32 %v18893_v61, %v19056_v58  ;;  %v19108_v42 = vsub.f32 %v18902_v60, %v19056_v58  ;;  %v19112_v54 = vsub.f32 %v18899_v25, %v19056_v58  ;;  %v19116_v52 = vsub.f32 %v18908_v34, %v19056_v58 }
 0x59d   :  { %v19120_v3 = vsub.f32 %v18905_v22, %v19056_v58  ;;  %v19124_v61 = vsub.f32 %v18914_v35, %v19056_v58  ;;  %v19128_v60 = vsub.f32 %v18911_v18, %v19056_v58  ;;  %v19132_v25 = vsub.f32 %v18920_v33, %v19056_v58 }
 0x59e   :  { %v19136_v34 = vsub.f32 %v18917_v46, %v19056_v58  ;;  %v19140_v22 = vsub.f32 %v18926_v56, %v19056_v58  ;;  %v19144_v35 = vsub.f32 %v18923_v51, %v19056_v58  ;;  %v19148_v18 = vsub.f32 %v18932_v2, %v19056_v58 }
 0x59f   :  { %22767 = vst [vmem:[#allocation31_spill] sm:$0xff] %v19128_v60  ;;  %22768 = vst [vmem:[#allocation32_spill] sm:$0xff] %v19132_v25  ;;  %v19152_v33 = vsub.f32 %v18929_v17, %v19056_v58  ;;  %v19156_v46 = vsub.f32 %v18938_v55, %v19056_v58  ;;  %v19160_v56 = vsub.f32 %v18935_v8, %v19056_v58 }
 0x5a0   :  { %v19164_v51 = vsub.f32 %v18944_v5, %v19056_v58  ;;  %v19168_v2 = vsub.f32 %v18941_v0, %v19056_v58  ;;  %v19172_v17 = vsub.f32 %v18950_v11, %v19056_v58  ;;  %v19176_v55 = vsub.f32 %v18947_v43, %v19056_v58 }
 0x5a1   :  { %v19180_v8 = vsub.f32 %v18956_v24, %v19056_v58  ;;  %v19184_v5 = vsub.f32 %v18953_v15, %v19056_v58  ;;  %v19188_v0 = vsub.f32 %v18962_v31, %v19056_v58  ;;  %v19192_v11 = vsub.f32 %v18959_v26, %v19056_v58 }
 0x5a2   :  { %v19196_v43 = vsub.f32 %v18968_v47, %v19056_v58  ;;  %v19200_v24 = vsub.f32 %v18965_v13, %v19056_v58  ;;  %v19204_v15 = vsub.f32 %v18974_v62, %v19056_v58  ;;  %v19208_v31 = vsub.f32 %v18971_v53, %v19056_v58 }
 0x5a3   :  { %v19212_v26 = vsub.f32 %v18980_v32, %v19056_v58  ;;  %v19216_v47 = vsub.f32 %v18977_v27, %v19056_v58  ;;  %v19220_v13 = vsub.f32 %v18986_v7, %v19056_v58  ;;  %v19224_v62 = vsub.f32 %v18983_v39, %v19056_v58 }
 0x5a4   :  { %v19228_v53 = vsub.f32 %v18992_v63, %v19056_v58  ;;  %v19232_v32 = vsub.f32 %v18989_v4, %v19056_v58  ;;  %v19236_v27 = vsub.f32 %v18998_v1, %v19056_v58  ;;  %v19240_v7 = vsub.f32 %v18995_v9, %v19056_v58 }
 0x5a5   :  { %22769 = vst [vmem:[#allocation33_spill] sm:$0xff] %v19216_v47  ;;  %v19244_v39 = vsub.f32 %v19004_v16, %v19056_v58  ;;  %v19248_v63 = vsub.f32 %v19001_v10, %v19056_v58  ;;  %v19252_v4 = vsub.f32 %v22772_v41, %v19056_v58  ;;  %v19256_v1 = vsub.f32 %v22774_v57, %v19056_v58 }
 0x5a6   :  { %22770 = vst [vmem:[#allocation34_spill] sm:$0xff] %v19240_v7  ;;  %v19260_v9 = vsub.f32 %v22776_v37, %v19056_v58  ;;  %v19264_v16 = vsub.f32 %v22778_v59, %v19056_v58  ;;  %v19268_v10 = vsub.f32 %v22780_v50, %v19056_v58  ;;  %v19272_v41 = vsub.f32 %v22782_v21, %v19056_v58 }
 0x5a7   :  { %22771 = vst [vmem:[#allocation35_spill] sm:$0xff] %v19248_v63  ;;  %22773 = vst [vmem:[#allocation36_spill] sm:$0xff] %v19252_v4  ;;  %v22784_v4 = vld [vmem:[#allocation23_spill] sm:$0xff] }
 0x5a8   :  { %22775 = vst [vmem:[#allocation37_spill] sm:$0xff] %v19256_v1  ;;  %22777 = vst [vmem:[#allocation38_spill] sm:$0xff] %v19260_v9  ;;  %v19276_v57 = vsub.f32 %v22784_v4, %v19056_v58  ;;  %v22786_v1 = vld [vmem:[#allocation22_spill] sm:$0xff]  ;;  %v22788_v9 = vld [vmem:[#allocation25_spill] sm:$0xff] }
 0x5a9   :  { %22779 = vst [vmem:[#allocation39_spill] sm:$0xff] %v19264_v16  ;;  %22781 = vst [vmem:[#allocation40_spill] sm:$0xff] %v19268_v10  ;;  %v19280_v37 = vsub.f32 %v22786_v1, %v19056_v58  ;;  %v19284_v59 = vsub.f32 %v22788_v9, %v19056_v58  ;;  %v22790_v16 = vld [vmem:[#allocation24_spill] sm:$0xff]  ;;  %v22792_v10 = vld [vmem:[#allocation27_spill] sm:$0xff]  ;;  %v19300_v1 = vsub.f32 %v19046_v14, %v19056_v58 }
 0x5aa   :  { %22783 = vst [vmem:[#allocation41_spill] sm:$0xff] %v19272_v41  ;;  %22785 = vst [vmem:[#allocation42_spill] sm:$0xff] %v19276_v57  ;;  %v19288_v50 = vsub.f32 %v22790_v16, %v19056_v58  ;;  %v19292_v21 = vsub.f32 %v22792_v10, %v19056_v58  ;;  %v22794_v41 = vld [vmem:[#allocation26_spill] sm:$0xff]  ;;  %v19304_v9 = vsub.f32 %v19043_v45, %v19056_v58 }
 0x5ab   :  { %22787 = vst [vmem:[#allocation43_spill] sm:$0xff] %v19280_v37  ;;  %22789 = vst [vmem:[#allocation44_spill] sm:$0xff] %v19284_v59  ;;  %v19296_v4 = vsub.f32 %v22794_v41, %v19056_v58  ;;  %v19308_v16 = vsub.f32 %v19052_v12, %v19056_v58  ;;  %v19312_v10 = vsub.f32 %v19049_v44, %v19056_v58 }
 0x5ac   :  { %22791 = vst [vmem:[#allocation45_spill] sm:$0xff] %v19288_v50  ;;  %22793 = vst [vmem:[#allocation46_spill] sm:$0xff] %v19292_v21  ;;  %v4818_v41 = vmul.f32 %v19060_v6, %v19060_v6  ;;  %v4820_v14 = vmul.f32 %v19068_v49, %v19068_v49  ;;  %v4821_v45 = vmul.f32 %v19072_v19, %v19072_v19 }
 0x5ad   :  { %22795 = vst [vmem:[#allocation47_spill] sm:$0xff] %v19296_v4  ;;  %22796 = vst [vmem:[#allocation48_spill] sm:$0xff] %v19300_v1  ;;  %v4819_v4 = vmul.f32 %v19064_v20, %v19064_v20  ;;  %v4822_v12 = vmul.f32 %v19076_v28, %v19076_v28  ;;  %v4823_v58 = vmul.f32 %v19080_v30, %v19080_v30 }
 0x5ae   :  { %22797 = vst [vmem:[#allocation49_spill] sm:$0xff] %v19304_v9  ;;  %22798 = vst [vmem:[#allocation50_spill] sm:$0xff] %v19308_v16  ;;  %v4824_v6 = vmul.f32 %v19084_v29, %v19084_v29  ;;  %v4825_v49 = vmul.f32 %v19088_v36, %v19088_v36 }
 0x5af   :  { %22799 = vst [vmem:[#allocation51_spill] sm:$0xff] %v19312_v10  ;;  %v4882_v1 = vadd.f32 %v4819_v4, %v4818_v41  ;;  %v4826_v41 = vmul.f32 %v19092_v23, %v19092_v23 }
 0x5b1   :  { %v4883_v9 = vadd.f32 %v4882_v1, %v4820_v14  ;;  %v4827_v14 = vmul.f32 %v19096_v40, %v19096_v40 }
 0x5b3   :  { %v4884_v16 = vadd.f32 %v4883_v9, %v4821_v45  ;;  %v4828_v45 = vmul.f32 %v19100_v38, %v19100_v38 }
 0x5b5   :  { %v4885_v44 = vadd.f32 %v4884_v16, %v4822_v12  ;;  %v4829_v12 = vmul.f32 %v19104_v48, %v19104_v48 }
 0x5b7   :  { %v4886_v20 = vadd.f32 %v4885_v44, %v4823_v58  ;;  %v4830_v44 = vmul.f32 %v19108_v42, %v19108_v42 }
 0x5b9   :  { %v4887_v4 = vadd.f32 %v4886_v20, %v4824_v6  ;;  %v4831_v20 = vmul.f32 %v19112_v54, %v19112_v54 }
 0x5bb   :  { %v4888_v1 = vadd.f32 %v4887_v4, %v4825_v49  ;;  %v4832_v4 = vmul.f32 %v19116_v52, %v19116_v52 }
 0x5bd   :  { %v4889_v9 = vadd.f32 %v4888_v1, %v4826_v41  ;;  %v4833_v1 = vmul.f32 %v19120_v3, %v19120_v3 }
 0x5bf   :  { %v4890_v16 = vadd.f32 %v4889_v9, %v4827_v14  ;;  %v4834_v9 = vmul.f32 %v19124_v61, %v19124_v61 }
 0x5c1   :  { %v4891_v58 = vadd.f32 %v4890_v16, %v4828_v45  ;;  %v4835_v16 = vmul.f32 %v19128_v60, %v19128_v60  ;;  %v5457_v60 = vld [vmem:[#allocation3 + $0x88] sm:$0xff] }
 0x5c3   :  { %v4892_v6 = vadd.f32 %v4891_v58, %v4829_v12  ;;  %v4836_v58 = vmul.f32 %v19132_v25, %v19132_v25 }
 0x5c5   :  { %v4893_v49 = vadd.f32 %v4892_v6, %v4830_v44  ;;  %v4837_v6 = vmul.f32 %v19136_v34, %v19136_v34 }
 0x5c7   :  { %v4894_v41 = vadd.f32 %v4893_v49, %v4831_v20  ;;  %v4838_v49 = vmul.f32 %v19140_v22, %v19140_v22 }
 0x5c9   :  { %v4895_v14 = vadd.f32 %v4894_v41, %v4832_v4  ;;  %v4839_v41 = vmul.f32 %v19144_v35, %v19144_v35 }
 0x5cb   :  { %v4896_v45 = vadd.f32 %v4895_v14, %v4833_v1  ;;  %v4840_v14 = vmul.f32 %v19148_v18, %v19148_v18 }
 0x5cd   :  { %v4897_v12 = vadd.f32 %v4896_v45, %v4834_v9  ;;  %v5456_v45 = vld [vmem:[#allocation3 + $0x80] sm:$0xff] }
 0x5ce   :  { %v15057_v25 = vpack.c.bf16 %v5457_v60, %v5456_v45  ;;  %v4844_v60 = vmul.f32 %v19164_v51, %v19164_v51 }
 0x5cf   :  { %v4898_v44 = vadd.f32 %v4897_v12, %v4835_v16  ;;  %v4841_v16 = vmul.f32 %v19152_v33, %v19152_v33 }
 0x5d0   :  { %15058 = vmatprep.subr.bf16.mxu1 %v15057_v25 }
 0x5d1   :  { %v4899_v20 = vadd.f32 %v4898_v44, %v4836_v58  ;;  %v4842_v58 = vmul.f32 %v19156_v46, %v19156_v46  ;;  %15060 = vmatpush3.bf16.msra.mxu1 %v15057_v25 }
 0x5d3   :  { %v4900_v4 = vadd.f32 %v4899_v20, %v4837_v6  ;;  %v5458_v6 = vld [vmem:[#allocation3 + $0x90] sm:$0xff]  ;;  %v5459_v20 = vld [vmem:[#allocation3 + $0x98] sm:$0xff] }
 0x5d5   :  { %v4901_v1 = vadd.f32 %v4900_v4, %v4838_v49  ;;  %v15061_v49 = vpack.c.bf16 %v5459_v20, %v5458_v6  ;;  %v4843_v4 = vmul.f32 %v19160_v56, %v19160_v56 }
 0x5d7   :  { %v4902_v9 = vadd.f32 %v4901_v1, %v4839_v41  ;;  %15062 = vmatprep.subr.bf16.mxu1 %v15061_v49 }
 0x5d8   :  { %15064 = vmatpush3.bf16.msra.mxu1 %v15061_v49 }
 0x5d9   :  { %v4903_v12 = vadd.f32 %v4902_v9, %v4840_v14  ;;  %v5460_v14 = vld [vmem:[#allocation3 + $0xa0] sm:$0xff]  ;;  %v5461_v9 = vld [vmem:[#allocation3 + $0xa8] sm:$0xff] }
 0x5da   :  { %v15065_v45 = vpack.c.bf16 %v5461_v9, %v5460_v14 }
 0x5db   :  { %v4904_v44 = vadd.f32 %v4903_v12, %v4841_v16  ;;  %v4845_v16 = vmul.f32 %v19168_v2, %v19168_v2  ;;  %v4846_v12 = vmul.f32 %v19172_v17, %v19172_v17 }
 0x5dc   :  { %15066 = vmatprep.subr.bf16.mxu1 %v15065_v45 }
 0x5dd   :  { %v4905_v41 = vadd.f32 %v4904_v44, %v4842_v58  ;;  %15068 = vmatpush3.bf16.msra.mxu1 %v15065_v45  ;;  %v5462_v58 = vld [vmem:[#allocation3 + $0xb0] sm:$0xff]  ;;  %v5463_v44 = vld [vmem:[#allocation3 + $0xb8] sm:$0xff] }
 0x5de   :  { %v15069_v20 = vpack.c.bf16 %v5463_v44, %v5462_v58 }
 0x5df   :  { %v4906_v1 = vadd.f32 %v4905_v41, %v4843_v4  ;;  %v4847_v4 = vmul.f32 %v19176_v55, %v19176_v55  ;;  %v4848_v41 = vmul.f32 %v19180_v8, %v19180_v8 }
 0x5e0   :  { %15070 = vmatprep.subr.bf16.mxu1 %v15069_v20 }
 0x5e1   :  { %v4907_v25 = vadd.f32 %v4906_v1, %v4844_v60  ;;  %15072 = vmatpush3.bf16.msra.mxu1 %v15069_v20  ;;  %v5464_v60 = vld [vmem:[#allocation3 + $0xc0] sm:$0xff]  ;;  %v5465_v1 = vld [vmem:[#allocation3 + $0xc8] sm:$0xff] }
 0x5e2   :  { %v15073_v9 = vpack.c.bf16 %v5465_v1, %v5464_v60 }
 0x5e3   :  { %v4908_v6 = vadd.f32 %v4907_v25, %v4845_v16  ;;  %v4849_v16 = vmul.f32 %v19184_v5, %v19184_v5  ;;  %v4850_v25 = vmul.f32 %v19188_v0, %v19188_v0 }
 0x5e4   :  { %15074 = vmatprep.subr.bf16.mxu1 %v15073_v9 }
 0x5e5   :  { %v4909_v49 = vadd.f32 %v4908_v6, %v4846_v12  ;;  %15076 = vmatpush3.bf16.msra.mxu1 %v15073_v9  ;;  %v5466_v12 = vld [vmem:[#allocation3 + $0xd0] sm:$0xff]  ;;  %v5467_v6 = vld [vmem:[#allocation3 + $0xd8] sm:$0xff]  ;;  %v19388_v9 = vmul.f32 %v19200_v24, %v19200_v24 }
 0x5e6   :  { %v15077_v44 = vpack.c.bf16 %v5467_v6, %v5466_v12  ;;  %v5470_v12 = vld [vmem:[#allocation3 + $0xf0] sm:$0xff]  ;;  %v5471_v6 = vld [vmem:[#allocation3 + $0xf8] sm:$0xff] }
 0x5e7   :  { %v4910_v14 = vadd.f32 %v4909_v49, %v4847_v4  ;;  %v4851_v4 = vmul.f32 %v19192_v11, %v19192_v11  ;;  %v4852_v49 = vmul.f32 %v19196_v43, %v19196_v43 }
 0x5e8   :  { %15078 = vmatprep.subr.bf16.mxu1 %v15077_v44 }
 0x5e9   :  { %v4911_v45 = vadd.f32 %v4910_v14, %v4848_v41  ;;  %15080 = vmatpush3.bf16.msra.mxu1 %v15077_v44  ;;  %v5468_v41 = vld [vmem:[#allocation3 + $0xe0] sm:$0xff]  ;;  %v5469_v14 = vld [vmem:[#allocation3 + $0xe8] sm:$0xff]  ;;  %v15085_v44 = vpack.c.bf16 %v5471_v6, %v5470_v12 }
 0x5ea   :  { %v19384_v1 = vpack.c.bf16 %v5469_v14, %v5468_v41  ;;  %v4857_v14 = vmul.f32 %v19216_v47, %v19216_v47  ;;  %v5375_v12 = vld [vmem:[#allocation3] sm:$0xff]  ;;  %v5376_v6 = vld [vmem:[#allocation3 + $0x8] sm:$0xff]  ;;  %v4860_v47 = vmul.f32 %v19228_v53, %v19228_v53 }
 0x5eb   :  { %v4912_v58 = vadd.f32 %v4911_v45, %v4849_v16  ;;  %v16431_v45 = vmov 0.0  }
 0x5ec   :  { %5161 = vst [vmem:[#allocation2] sm:$0xff] %v16431_v45  ;;  %5162 = vst [vmem:[#allocation2 + $0x8] sm:$0xff] %v16431_v45  ;;  %15082 = vmatprep.subr.bf16.mxu1 %v19384_v1 }
 0x5ed   :  { %v4913_v20 = vadd.f32 %v4912_v58, %v4850_v25  ;;  %5163 = vst [vmem:[#allocation2 + $0x10] sm:$0x3] %v16431_v45  ;;  %5164 = vst [vmem:[#allocation2 + $0x1b0] sm:$0xff] %v16431_v45  ;;  %v4854_v25 = vmul.f32 %v19204_v15, %v19204_v15  ;;  %15084 = vmatpush3.bf16.msra.mxu1 %v19384_v1 }
 0x5ee   :  { %5165 = vst [vmem:[#allocation2 + $0x1b8] sm:$0xff] %v16431_v45  ;;  %5166 = vst [vmem:[#allocation2 + $0x1c0] sm:$0x3] %v16431_v45  ;;  %15086 = vmatprep.subr.bf16.mxu1 %v15085_v44 }
 0x5ef   :  { %v4914_v60 = vadd.f32 %v4913_v20, %v4851_v4  ;;  %5168 = vst [vmem:[#allocation2 + $0x198] sm:$0xff] %v16431_v45  ;;  %5169 = vst [vmem:[#allocation2 + $0x1a0] sm:$0xff] %v16431_v45  ;;  %v4855_v4 = vmul.f32 %v19208_v31, %v19208_v31 }
 0x5f0   :  { %5170 = vst [vmem:[#allocation2 + $0x1a8] sm:$0x3] %v16431_v45  ;;  %5171 = vst [vmem:[#allocation2 + $0x348] sm:$0xff] %v16431_v45 }
 0x5f1   :  { %v19390_v16 = vadd.f32 %v4914_v60, %v4852_v49  ;;  %5172 = vst [vmem:[#allocation2 + $0x350] sm:$0xff] %v16431_v45  ;;  %5173 = vst [vmem:[#allocation2 + $0x358] sm:$0x3] %v16431_v45  ;;  %v4856_v49 = vmul.f32 %v19212_v26, %v19212_v26  ;;  %15088 = vmatpush3.bf16.msra.mxu1 %v15085_v44  ;;  %v15089_v44 = vpack.c.bf16 %v5376_v6, %v5375_v12 }
 0x5f2   :  { %5175 = vst [vmem:[#allocation2 + $0x18] sm:$0x1] %v16431_v45  ;;  %5176 = vst [vmem:[#allocation2 + $0x30] sm:$0x1] %v16431_v45  ;;  %v4865_v12 = vmul.f32 %v19248_v63, %v19248_v63  ;;  %v22804_v63 = vld [vmem:[#allocation40_spill] sm:$0xff] }
 0x5f3   :  { %5177 = vst [vmem:[#allocation2 + $0x48] sm:$0x1] %v16431_v45  ;;  %5178 = vst [vmem:[#allocation2 + $0x60] sm:$0x1] %v16431_v45  ;;  %v4916_v58 = vadd.f32 %v19390_v16, %v19388_v9  ;;  %v5391_v41 = vld [vmem:[#allocation2 + $0x1] sm:$0xff]  ;;  %v4858_v16 = vmul.f32 %v19220_v13, %v19220_v13  ;;  %15090 = vmatprep.subr.bf16.mxu1 %v15089_v44 }
 0x5f4   :  { %5179 = vst [vmem:[#allocation2 + $0x78] sm:$0x1] %v16431_v45  ;;  %5180 = vst [vmem:[#allocation2 + $0x90] sm:$0x1] %v16431_v45  ;;  %13649 = vmatprep.mubr.f32.mxu1 %v5391_v41  ;;  %v5392_v1 = vld [vmem:[#allocation2 + $0x9] sm:$0xff]  ;;  %v4861_v41 = vmul.f32 %v19232_v32, %v19232_v32 }
 0x5f5   :  { %5181 = vst [vmem:[#allocation2 + $0xa8] sm:$0x1] %v16431_v45  ;;  %5182 = vst [vmem:[#allocation2 + $0xc0] sm:$0x1] %v16431_v45  ;;  %v4917_v20 = vadd.f32 %v4916_v58, %v4854_v25  ;;  %13650 = vmatmul.mubr.f32.vlgmr.msra.gmra.mrb[0].mxu1 %v5392_v1  ;;  %v4859_v25 = vmul.f32 %v19224_v62, %v19224_v62 }
 0x5f6   :  { %5183 = vst [vmem:[#allocation2 + $0xd8] sm:$0x1] %v16431_v45  ;;  %5184 = vst [vmem:[#allocation2 + $0xf0] sm:$0x1] %v16431_v45  ;;  %15092 = vmatpush3.bf16.msra.mxu1 %v15089_v44 }
 0x5f7   :  { %5185 = vst [vmem:[#allocation2 + $0x108] sm:$0x1] %v16431_v45  ;;  %5186 = vst [vmem:[#allocation2 + $0x120] sm:$0x1] %v16431_v45  ;;  %v4918_v60 = vadd.f32 %v4917_v20, %v4855_v4  ;;  %v5377_v4 = vld [vmem:[#allocation3 + $0x10] sm:$0xff]  ;;  %v5378_v20 = vld [vmem:[#allocation3 + $0x18] sm:$0xff] }
 0x5f8   :  { %5187 = vst [vmem:[#allocation2 + $0x138] sm:$0x1] %v16431_v45  ;;  %5188 = vst [vmem:[#allocation2 + $0x150] sm:$0x1] %v16431_v45 }
 0x5f9   :  { %5189 = vst [vmem:[#allocation2 + $0x168] sm:$0x1] %v16431_v45  ;;  %5190 = vst [vmem:[#allocation2 + $0x180] sm:$0x1] %v16431_v45  ;;  %v4919_v9 = vadd.f32 %v4918_v60, %v4856_v49  ;;  %v15093_v60 = vpack.c.bf16 %v5378_v20, %v5377_v4  ;;  %v5379_v20 = vld [vmem:[#allocation3 + $0x20] sm:$0xff] }
 0x5fa   :  { %5193 = vst [vmem:[#allocation2 + $0x1c8] sm:$0x1] %v16431_v45  ;;  %5194 = vst [vmem:[#allocation2 + $0x1e0] sm:$0x1] %v16431_v45 }
 0x5fb   :  { %5195 = vst [vmem:[#allocation2 + $0x1f8] sm:$0x1] %v16431_v45  ;;  %5196 = vst [vmem:[#allocation2 + $0x210] sm:$0x1] %v16431_v45  ;;  %15094 = vmatprep.subr.bf16.mxu1 %v15093_v60 }
 0x5fc   :  { %5197 = vst [vmem:[#allocation2 + $0x228] sm:$0x1] %v16431_v45  ;;  %5198 = vst [vmem:[#allocation2 + $0x240] sm:$0x1] %v16431_v45  ;;  %15096 = vmatpush3.bf16.msra.mxu1 %v15093_v60  ;;  %v22802_v60 = vld [vmem:[#allocation38_spill] sm:$0xff] }
 0x5fd   :  { %5199 = vst [vmem:[#allocation2 + $0x258] sm:$0x1] %v16431_v45  ;;  %5200 = vst [vmem:[#allocation2 + $0x270] sm:$0x1] %v16431_v45 }
 0x5fe   :  { %5201 = vst [vmem:[#allocation2 + $0x288] sm:$0x1] %v16431_v45  ;;  %5202 = vst [vmem:[#allocation2 + $0x2a0] sm:$0x1] %v16431_v45 }
 0x5ff   :  { %5203 = vst [vmem:[#allocation2 + $0x2b8] sm:$0x1] %v16431_v45  ;;  %5204 = vst [vmem:[#allocation2 + $0x2d0] sm:$0x1] %v16431_v45 }
 0x600   :  { %5205 = vst [vmem:[#allocation2 + $0x2e8] sm:$0x1] %v16431_v45  ;;  %5206 = vst [vmem:[#allocation2 + $0x300] sm:$0x1] %v16431_v45 }
 0x601   :  { %5207 = vst [vmem:[#allocation2 + $0x318] sm:$0x1] %v16431_v45  ;;  %5208 = vst [vmem:[#allocation2 + $0x330] sm:$0x1] %v16431_v45 }
 0x602   :  { %5211 = vst [vmem:[#allocation2 + $0x29] sm:$0x1] %v16431_v45  ;;  %5212 = vst [vmem:[#allocation2 + $0x41] sm:$0x1] %v16431_v45 }
 0x603   :  { %5213 = vst [vmem:[#allocation2 + $0x59] sm:$0x1] %v16431_v45  ;;  %5214 = vst [vmem:[#allocation2 + $0x71] sm:$0x1] %v16431_v45 }
 0x604   :  { %5215 = vst [vmem:[#allocation2 + $0x89] sm:$0x1] %v16431_v45  ;;  %5216 = vst [vmem:[#allocation2 + $0xa1] sm:$0x1] %v16431_v45 }
 0x605   :  { %5217 = vst [vmem:[#allocation2 + $0xb9] sm:$0x1] %v16431_v45  ;;  %5218 = vst [vmem:[#allocation2 + $0xd1] sm:$0x1] %v16431_v45 }
 0x606   :  { %5219 = vst [vmem:[#allocation2 + $0xe9] sm:$0x1] %v16431_v45  ;;  %5220 = vst [vmem:[#allocation2 + $0x101] sm:$0x1] %v16431_v45 }
 0x607   :  { %5221 = vst [vmem:[#allocation2 + $0x119] sm:$0x1] %v16431_v45  ;;  %5222 = vst [vmem:[#allocation2 + $0x131] sm:$0x1] %v16431_v45 }
 0x608   :  { %5223 = vst [vmem:[#allocation2 + $0x149] sm:$0x1] %v16431_v45  ;;  %5224 = vst [vmem:[#allocation2 + $0x161] sm:$0x1] %v16431_v45 }
 0x609   :  { %5225 = vst [vmem:[#allocation2 + $0x179] sm:$0x1] %v16431_v45  ;;  %5226 = vst [vmem:[#allocation2 + $0x191] sm:$0x1] %v16431_v45 }
 0x60a   :  { %5229 = vst [vmem:[#allocation2 + $0x1d9] sm:$0x1] %v16431_v45  ;;  %5230 = vst [vmem:[#allocation2 + $0x1f1] sm:$0x1] %v16431_v45 }
 0x60b   :  { %5231 = vst [vmem:[#allocation2 + $0x209] sm:$0x1] %v16431_v45  ;;  %5232 = vst [vmem:[#allocation2 + $0x221] sm:$0x1] %v16431_v45 }
 0x60c   :  { %5233 = vst [vmem:[#allocation2 + $0x239] sm:$0x1] %v16431_v45  ;;  %5234 = vst [vmem:[#allocation2 + $0x251] sm:$0x1] %v16431_v45 }
 0x60d   :  { %5235 = vst [vmem:[#allocation2 + $0x269] sm:$0x1] %v16431_v45  ;;  %5236 = vst [vmem:[#allocation2 + $0x281] sm:$0x1] %v16431_v45 }
 0x60e   :  { %5237 = vst [vmem:[#allocation2 + $0x299] sm:$0x1] %v16431_v45  ;;  %5238 = vst [vmem:[#allocation2 + $0x2b1] sm:$0x1] %v16431_v45 }
 0x60f   :  { %5239 = vst [vmem:[#allocation2 + $0x2c9] sm:$0x1] %v16431_v45  ;;  %5240 = vst [vmem:[#allocation2 + $0x2e1] sm:$0x1] %v16431_v45 }
 0x610   :  { %5241 = vst [vmem:[#allocation2 + $0x2f9] sm:$0x1] %v16431_v45  ;;  %5242 = vst [vmem:[#allocation2 + $0x311] sm:$0x1] %v16431_v45 }
 0x611   :  { %5243 = vst [vmem:[#allocation2 + $0x329] sm:$0x1] %v16431_v45  ;;  %5244 = vst [vmem:[#allocation2 + $0x341] sm:$0x1] %v16431_v45 }
 0x612   :  { %5174 = vst [vmem:[#allocation2] sm:$0x1] %v16431_v45  ;;  %5210 = vst [vmem:[#allocation2 + $0x11] sm:$0x1] %v16431_v45 }
 0x613   :  { %5191 = vst [vmem:[#allocation2 + $0x198] sm:$0x1] %v16431_v45  ;;  %5192 = vst [vmem:[#allocation2 + $0x1b0] sm:$0x1] %v16431_v45 }
 0x614   :  { %5209 = vst [vmem:[#allocation2 + $0x348] sm:$0x1] %v16431_v45  ;;  %5227 = vst [vmem:[#allocation2 + $0x1a9] sm:$0x1] %v16431_v45 }
 0x615   :  { %5228 = vst [vmem:[#allocation2 + $0x1c1] sm:$0x1] %v16431_v45  ;;  %5245 = vst [vmem:[#allocation2 + $0x359] sm:$0x1] %v16431_v45  ;;  %v4920_v45 = vadd.f32 %v4919_v9, %v4857_v14  ;;  %v4862_v14 = vmul.f32 %v19236_v27, %v19236_v27 }
 0x617   :  { %v4921_v58 = vadd.f32 %v4920_v45, %v4858_v16  ;;  %v4863_v16 = vmul.f32 %v19240_v7, %v19240_v7 }
 0x619   :  { %v4922_v49 = vadd.f32 %v4921_v58, %v4859_v25  ;;  %v4864_v25 = vmul.f32 %v19244_v39, %v19244_v39 }
 0x61b   :  { %v4923_v1 = vadd.f32 %v4922_v49, %v4860_v47  ;;  %v22800_v47 = vld [vmem:[#allocation36_spill] sm:$0xff]  ;;  %v5380_v49 = vld [vmem:[#allocation3 + $0x28] sm:$0xff] }
 0x61c   :  { %v4866_v4 = vmul.f32 %v22800_v47, %v22800_v47  ;;  %v22805_v47 = vld [vmem:[#allocation41_spill] sm:$0xff] }
 0x61d   :  { %v4924_v9 = vadd.f32 %v4923_v1, %v4861_v41  ;;  %v15097_v41 = vpack.c.bf16 %v5380_v49, %v5379_v20  ;;  %v22801_v1 = vld [vmem:[#allocation37_spill] sm:$0xff]  ;;  %v4871_v20 = vmul.f32 %v22805_v47, %v22805_v47 }
 0x61e   :  { %v4867_v7 = vmul.f32 %v22801_v1, %v22801_v1 }
 0x61f   :  { %v4925_v45 = vadd.f32 %v4924_v9, %v4862_v14  ;;  %15098 = vmatprep.subr.bf16.mxu1 %v15097_v41  ;;  %v4868_v9 = vmul.f32 %v22802_v60, %v22802_v60 }
 0x620   :  { %15100 = vmatpush3.bf16.msra.mxu1 %v15097_v41 }
 0x621   :  { %v4926_v58 = vadd.f32 %v4925_v45, %v4863_v16  ;;  %v22803_v45 = vld [vmem:[#allocation39_spill] sm:$0xff] }
 0x623   :  { %v4927_v6 = vadd.f32 %v4926_v58, %v4864_v25  ;;  %v4869_v25 = vmul.f32 %v22803_v45, %v22803_v45  ;;  %v5382_v45 = vld [vmem:[#allocation3 + $0x38] sm:$0xff] }
 0x625   :  { %v4928_v44 = vadd.f32 %v4927_v6, %v4865_v12  ;;  %v4870_v12 = vmul.f32 %v22804_v63, %v22804_v63 }
 0x627   :  { %v4929_v14 = vadd.f32 %v4928_v44, %v4866_v4  ;;  %v4872_v4 = vmul.f32 %v19276_v57, %v19276_v57  ;;  %v5385_v57 = vld [vmem:[#allocation3 + $0x50] sm:$0xff] }
 0x629   :  { %v4930_v16 = vadd.f32 %v4929_v14, %v4867_v7  ;;  %v4873_v7 = vmul.f32 %v19280_v37, %v19280_v37  ;;  %v4874_v14 = vmul.f32 %v19284_v59, %v19284_v59  ;;  %v22808_v59 = vld [vmem:[#allocation49_spill] sm:$0xff] }
 0x62b   :  { %v4931_v58 = vadd.f32 %v4930_v16, %v4868_v9  ;;  %v5381_v16 = vld [vmem:[#allocation3 + $0x30] sm:$0xff] }
 0x62c   :  { %v15101_v63 = vpack.c.bf16 %v5382_v45, %v5381_v16  ;;  %v4879_v45 = vmul.f32 %v22808_v59, %v22808_v59 }
 0x62d   :  { %v4932_v6 = vadd.f32 %v4931_v58, %v4869_v25  ;;  %v4875_v25 = vmul.f32 %v19288_v50, %v19288_v50  ;;  %v22809_v50 = vld [vmem:[#allocation50_spill] sm:$0xff] }
 0x62e   :  { %15102 = vmatprep.subr.bf16.mxu1 %v15101_v63 }
 0x62f   :  { %v4933_v49 = vadd.f32 %v4932_v6, %v4870_v12  ;;  %v4876_v12 = vmul.f32 %v19292_v21, %v19292_v21  ;;  %15104 = vmatpush3.bf16.msra.mxu1 %v15101_v63  ;;  %v5383_v21 = vld [vmem:[#allocation3 + $0x40] sm:$0xff] }
 0x631   :  { %v4934_v44 = vadd.f32 %v4933_v49, %v4871_v20  ;;  %v22806_v20 = vld [vmem:[#allocation47_spill] sm:$0xff] }
 0x632   :  { %v4877_v49 = vmul.f32 %v22806_v20, %v22806_v20  ;;  %v5384_v20 = vld [vmem:[#allocation3 + $0x48] sm:$0xff] }
 0x633   :  { %v4935_v41 = vadd.f32 %v4934_v44, %v4872_v4  ;;  %v22807_v44 = vld [vmem:[#allocation48_spill] sm:$0xff] }
 0x635   :  { %v4936_v9 = vadd.f32 %v4935_v41, %v4873_v7  ;;  %v4878_v7 = vmul.f32 %v22807_v44, %v22807_v44 }
 0x637   :  { %v4937_v58 = vadd.f32 %v4936_v9, %v4874_v14  ;;  %v4880_v14 = vmul.f32 %v22809_v50, %v22809_v50 }
 0x639   :  { %v4938_v6 = vadd.f32 %v4937_v58, %v4875_v25  ;;  %v4881_v25 = vmul.f32 %v19312_v10, %v19312_v10  ;;  %v4957_v10 = vlaneseq }
 0x63b   :  { %v4939_v4 = vadd.f32 %v4938_v6, %v4876_v12  ;;  %v15105_v12 = vpack.c.bf16 %v5384_v20, %v5383_v21  ;;  %v4952_v21 = vld [vmem:[%s22306_s2] sm:$0x1] }
 0x63d   :  { %v4940_v41 = vadd.f32 %v4939_v4, %v4877_v49  ;;  %15106 = vmatprep.subr.bf16.mxu1 %v15105_v12 }
 0x63e   :  { %15108 = vmatpush3.bf16.msra.mxu1 %v15105_v12  ;;  %v22813_v12 = vld [vmem:[#allocation30_spill] sm:$0xff] }
 0x63f   :  { %v4941_v16 = vadd.f32 %v4940_v41, %v4878_v7 }
 0x641   :  { %v4942_v9 = vadd.f32 %v4941_v16, %v4879_v45  ;;  %v5386_v45 = vld [vmem:[#allocation3 + $0x58] sm:$0xff] }
 0x642   :  { %v15109_v16 = vpack.c.bf16 %v5386_v45, %v5385_v57  ;;  %v19549_v57 = vld [vmem:[%s22307_s3] ss:$0 sm:$0xff] }
 0x643   :  { %v4943_v63 = vadd.f32 %v4942_v9, %v4880_v14  ;;  %v19536_v14 = vshrl.u32 %v4957_v10, 7  ;;  %v22811_v10 = vld [vmem:[#allocation28_spill] sm:$0xff] }
 0x644   :  { %15110 = vmatprep.subr.bf16.mxu1 %v15109_v16 }
 0x645   :  { %v4944_v58 = vadd.f32 %v4943_v63, %v4881_v25  ;;  %15112 = vmatpush3.bf16.msra.mxu1 %v15109_v16  ;;  %22810 = vst [vmem:[#allocation52_spill] sm:$0xff] %v19536_v14  ;;  %v22426_v20 = vsub.s32 0, %v19536_v14  ;;  %v22812_v63 = vld [vmem:[#allocation29_spill] sm:$0xff]  ;;  %v22829_v14 = vld [vmem:[#allocation44_spill] sm:$0xff] }
 0x647   :  { %v4945_v6 = vrot.slane %v4944_v58, 4 }
 0x649   :  { %v4946_v44 = vadd.f32 %v4945_v6, %v4944_v58 }
 0x64b   :  { %v4947_v49 = vrot.slane %v4946_v44, 2 }
 0x64d   :  { %v4948_v4 = vadd.f32 %v4947_v49, %v4946_v44 }
 0x64f   :  { %v4949_v59 = vrot.slane %v4948_v4, 1 }
 0x651   :  { %v4950_v7 = vadd.f32 %v4949_v59, %v4948_v4 }
 0x653   :  { %v4951_v41 = vmul.f32 0.001953125, %v4950_v7 }
 0x655   :  { %v4953_v37 = vadd.f32 1e-05, %v4951_v41 }
 0x657   :  { %16374 = vrsqrt.f32 %v4953_v37 }
 0x661   :  { %v16375_v44 = vpop.eup %16374 }
 0x662   :  { %v4955_v9 = vmul.f32 %v16375_v44, %v4952_v21  ;;  %v22814_v21 = vld [vmem:[#allocation31_spill] sm:$0xff]  ;;  %v22815_v44 = vld [vmem:[#allocation32_spill] sm:$0xff] }
 0x664   :  { %v19544_v59 = vrot.slane %v4955_v9, %v22426_v20  ;;  %v22827_v20 = vld [vmem:[#allocation43_spill] sm:$0xff] }
 0x666   :  { %v5024_v37 = vmul.f32 %v19544_v59, %v22809_v50  ;;  %v19555_v25 = vmul.f32 %v19544_v59, %v22811_v10  ;;  %v19559_v58 = vmul.f32 %v19544_v59, %v22812_v63  ;;  %v19563_v6 = vmul.f32 %v19544_v59, %v22813_v12  ;;  %v22816_v10 = vld [vmem:[#allocation33_spill] sm:$0xff]  ;;  %v22817_v12 = vld [vmem:[#allocation34_spill] sm:$0xff] }
 0x667   :  { %v19567_v49 = vmul.f32 %v19544_v59, %v19072_v19  ;;  %v19571_v4 = vmul.f32 %v19544_v59, %v19076_v28  ;;  %v19575_v50 = vmul.f32 %v19544_v59, %v19080_v30  ;;  %v19579_v7 = vmul.f32 %v19544_v59, %v19084_v29 }
 0x668   :  { %v5095_v41 = vadd.f32 %v19549_v57, %v5024_v37  ;;  %v19584_v45 = vmul.f32 %v19544_v59, %v19088_v36  ;;  %v19588_v19 = vmul.f32 %v19544_v59, %v19092_v23  ;;  %v19592_v28 = vmul.f32 %v19544_v59, %v19096_v40 }
 0x669   :  { %v19596_v30 = vmul.f32 %v19544_v59, %v19100_v38  ;;  %v19600_v29 = vmul.f32 %v19544_v59, %v19104_v48  ;;  %v19604_v36 = vmul.f32 %v19544_v59, %v19108_v42  ;;  %v19608_v23 = vmul.f32 %v19544_v59, %v19112_v54 }
 0x66a   :  { %v5159_v16 = vmax.f32 %v5095_v41, 0.0  ;;  %v19612_v40 = vmul.f32 %v19544_v59, %v19116_v52  ;;  %v19616_v38 = vmul.f32 %v19544_v59, %v19120_v3  ;;  %v19620_v48 = vmul.f32 %v19544_v59, %v19124_v61  ;;  %v22818_v41 = vld [vmem:[#allocation35_spill] sm:$0xff] }
 0x66b   :  { %v19624_v42 = vmul.f32 %v19544_v59, %v22814_v21  ;;  %v19628_v54 = vmul.f32 %v19544_v59, %v22815_v44  ;;  %v19632_v52 = vmul.f32 %v19544_v59, %v19136_v34  ;;  %v19636_v3 = vmul.f32 %v19544_v59, %v19140_v22  ;;  %v22820_v44 = vld [vmem:[#allocation39_spill] sm:$0xff] }
 0x66c   :  { %5309 = vst [vmem:[#allocation2 + $0x331] sm:$0xff] %v5159_v16  ;;  %v19640_v61 = vmul.f32 %v19544_v59, %v19144_v35  ;;  %v19644_v9 = vmul.f32 %v19544_v59, %v19148_v18  ;;  %v19648_v37 = vmul.f32 %v19544_v59, %v19152_v33  ;;  %v19652_v34 = vmul.f32 %v19544_v59, %v19156_v46  ;;  %v22819_v16 = vld [vmem:[#allocation36_spill] sm:$0xff] }
 0x66d   :  { %v19656_v22 = vmul.f32 %v19544_v59, %v19160_v56  ;;  %v19660_v35 = vmul.f32 %v19544_v59, %v19164_v51  ;;  %v19664_v18 = vmul.f32 %v19544_v59, %v19168_v2  ;;  %v19668_v33 = vmul.f32 %v19544_v59, %v19172_v17 }
 0x66e   :  { %v19672_v46 = vmul.f32 %v19544_v59, %v19176_v55  ;;  %v19676_v56 = vmul.f32 %v19544_v59, %v19180_v8  ;;  %v19680_v51 = vmul.f32 %v19544_v59, %v19184_v5  ;;  %v19684_v2 = vmul.f32 %v19544_v59, %v19188_v0 }
 0x66f   :  { %v19688_v17 = vmul.f32 %v19544_v59, %v19192_v11  ;;  %v19692_v55 = vmul.f32 %v19544_v59, %v19196_v43  ;;  %v19696_v8 = vmul.f32 %v19544_v59, %v19200_v24  ;;  %v19700_v5 = vmul.f32 %v19544_v59, %v19204_v15 }
 0x670   :  { %v19704_v0 = vmul.f32 %v19544_v59, %v19208_v31  ;;  %v19708_v11 = vmul.f32 %v19544_v59, %v19212_v26  ;;  %v19712_v43 = vmul.f32 %v19544_v59, %v22816_v10  ;;  %v19716_v24 = vmul.f32 %v19544_v59, %v19220_v13  ;;  %v22822_v10 = vld [vmem:[#allocation40_spill] sm:$0xff] }
 0x671   :  { %v19720_v15 = vmul.f32 %v19544_v59, %v19224_v62  ;;  %v19724_v31 = vmul.f32 %v19544_v59, %v19228_v53  ;;  %v19728_v26 = vmul.f32 %v19544_v59, %v19232_v32  ;;  %v19732_v63 = vmul.f32 %v19544_v59, %v19236_v27 }
 0x672   :  { %v19736_v13 = vmul.f32 %v19544_v59, %v22817_v12  ;;  %v19740_v62 = vmul.f32 %v19544_v59, %v19244_v39  ;;  %v19744_v53 = vmul.f32 %v19544_v59, %v22818_v41  ;;  %v19748_v32 = vmul.f32 %v19544_v59, %v22819_v16  ;;  %v22825_v16 = vld [vmem:[#allocation42_spill] sm:$0xff] }
 0x673   :  { %v19752_v27 = vmul.f32 %v19544_v59, %v22801_v1  ;;  %v19756_v21 = vmul.f32 %v19544_v59, %v22802_v60  ;;  %v19760_v39 = vmul.f32 %v19544_v59, %v22820_v44  ;;  %v19764_v12 = vmul.f32 %v19544_v59, %v22822_v10 }
 0x674   :  { %v19768_v41 = vmul.f32 %v19544_v59, %v22805_v47  ;;  %v19772_v1 = vmul.f32 %v19544_v59, %v22825_v16  ;;  %v19776_v60 = vmul.f32 %v19544_v59, %v22827_v20  ;;  %v19780_v44 = vmul.f32 %v19544_v59, %v22829_v14 }
 0x675   :  { %22821 = vst [vmem:[#allocation53_spill] sm:$0xff] %v19760_v39  ;;  %22823 = vst [vmem:[#allocation54_spill] sm:$0xff] %v19764_v12  ;;  %v22831_v39 = vld [vmem:[#allocation45_spill] sm:$0xff]  ;;  %v22832_v12 = vld [vmem:[#allocation46_spill] sm:$0xff] }
 0x676   :  { %22824 = vst [vmem:[#allocation55_spill] sm:$0xff] %v19768_v41  ;;  %22826 = vst [vmem:[#allocation56_spill] sm:$0xff] %v19772_v1  ;;  %v19784_v10 = vmul.f32 %v19544_v59, %v22831_v39  ;;  %v19788_v47 = vmul.f32 %v19544_v59, %v22832_v12  ;;  %v22833_v41 = vld [vmem:[#allocation47_spill] sm:$0xff]  ;;  %v22834_v1 = vld [vmem:[#allocation48_spill] sm:$0xff]  ;;  %v19808_v12 = vadd.f32 %v19549_v57, %v19555_v25 }
 0x677   :  { %22828 = vst [vmem:[#allocation57_spill] sm:$0xff] %v19776_v60  ;;  %22830 = vst [vmem:[#allocation58_spill] sm:$0xff] %v19780_v44  ;;  %v19792_v16 = vmul.f32 %v19544_v59, %v22833_v41  ;;  %v19796_v20 = vmul.f32 %v19544_v59, %v22834_v1  ;;  %v22835_v60 = vld [vmem:[#allocation49_spill] sm:$0xff]  ;;  %v22836_v44 = vld [vmem:[#allocation51_spill] sm:$0xff]  ;;  %v19812_v41 = vadd.f32 %v19549_v57, %v19559_v58 }
 0x678   :  { %v19800_v14 = vmul.f32 %v19544_v59, %v22835_v60  ;;  %v19804_v39 = vmul.f32 %v19544_v59, %v22836_v44  ;;  %v19816_v1 = vadd.f32 %v19549_v57, %v19563_v6  ;;  %v19820_v60 = vadd.f32 %v19549_v57, %v19567_v49 }
 0x679   :  { %v19824_v59 = vadd.f32 %v19549_v57, %v19571_v4  ;;  %v19828_v25 = vadd.f32 %v19549_v57, %v19575_v50  ;;  %v19832_v58 = vadd.f32 %v19549_v57, %v19579_v7  ;;  %v19836_v6 = vadd.f32 %v19549_v57, %v19584_v45 }
 0x67a   :  { %v19840_v49 = vadd.f32 %v19549_v57, %v19588_v19  ;;  %v19844_v4 = vadd.f32 %v19549_v57, %v19592_v28  ;;  %v19848_v50 = vadd.f32 %v19549_v57, %v19596_v30  ;;  %v19852_v7 = vadd.f32 %v19549_v57, %v19600_v29 }
 0x67b   :  { %v19856_v45 = vadd.f32 %v19549_v57, %v19604_v36  ;;  %v19860_v19 = vadd.f32 %v19549_v57, %v19608_v23  ;;  %v19864_v28 = vadd.f32 %v19549_v57, %v19612_v40  ;;  %v19868_v30 = vadd.f32 %v19549_v57, %v19616_v38 }
 0x67c   :  { %v19872_v29 = vadd.f32 %v19549_v57, %v19620_v48  ;;  %v19876_v36 = vadd.f32 %v19549_v57, %v19624_v42  ;;  %v19880_v23 = vadd.f32 %v19549_v57, %v19628_v54  ;;  %v19884_v40 = vadd.f32 %v19549_v57, %v19632_v52  ;;  %v22842_v44 = vld [vmem:[#allocation53_spill] sm:$0xff] }
 0x67d   :  { %v19888_v38 = vadd.f32 %v19549_v57, %v19636_v3  ;;  %v19892_v48 = vadd.f32 %v19549_v57, %v19640_v61  ;;  %v19896_v42 = vadd.f32 %v19549_v57, %v19644_v9  ;;  %v19900_v54 = vadd.f32 %v19549_v57, %v19648_v37 }
 0x67e   :  { %v19904_v52 = vadd.f32 %v19549_v57, %v19652_v34  ;;  %v19908_v3 = vadd.f32 %v19549_v57, %v19656_v22  ;;  %v19912_v61 = vadd.f32 %v19549_v57, %v19660_v35  ;;  %v19916_v9 = vadd.f32 %v19549_v57, %v19664_v18 }
 0x67f   :  { %v19920_v37 = vadd.f32 %v19549_v57, %v19668_v33  ;;  %v19924_v34 = vadd.f32 %v19549_v57, %v19672_v46  ;;  %v19928_v22 = vadd.f32 %v19549_v57, %v19676_v56  ;;  %v19932_v35 = vadd.f32 %v19549_v57, %v19680_v51 }
 0x680   :  { %v19936_v18 = vadd.f32 %v19549_v57, %v19684_v2  ;;  %v19940_v33 = vadd.f32 %v19549_v57, %v19688_v17  ;;  %v19944_v46 = vadd.f32 %v19549_v57, %v19692_v55  ;;  %v19948_v56 = vadd.f32 %v19549_v57, %v19696_v8 }
 0x681   :  { %v19952_v51 = vadd.f32 %v19549_v57, %v19700_v5  ;;  %v19956_v2 = vadd.f32 %v19549_v57, %v19704_v0  ;;  %v19960_v17 = vadd.f32 %v19549_v57, %v19708_v11  ;;  %v19964_v55 = vadd.f32 %v19549_v57, %v19712_v43 }
 0x682   :  { %v19968_v8 = vadd.f32 %v19549_v57, %v19716_v24  ;;  %v19972_v5 = vadd.f32 %v19549_v57, %v19720_v15  ;;  %v19976_v0 = vadd.f32 %v19549_v57, %v19724_v31  ;;  %v19980_v11 = vadd.f32 %v19549_v57, %v19728_v26 }
 0x683   :  { %v19984_v43 = vadd.f32 %v19549_v57, %v19732_v63  ;;  %v19988_v24 = vadd.f32 %v19549_v57, %v19736_v13  ;;  %v19992_v15 = vadd.f32 %v19549_v57, %v19740_v62  ;;  %v19996_v31 = vadd.f32 %v19549_v57, %v19744_v53 }
 0x684   :  { %v20000_v26 = vadd.f32 %v19549_v57, %v19748_v32  ;;  %v20004_v63 = vadd.f32 %v19549_v57, %v19752_v27  ;;  %v20008_v13 = vadd.f32 %v19549_v57, %v19756_v21  ;;  %v20012_v62 = vadd.f32 %v19549_v57, %v22842_v44 }
 0x685   :  { %22837 = vst [vmem:[#allocation59_spill] sm:$0xff] %v19992_v15  ;;  %22838 = vst [vmem:[#allocation60_spill] sm:$0xff] %v19996_v31  ;;  %v22843_v15 = vld [vmem:[#allocation54_spill] sm:$0xff]  ;;  %v22844_v31 = vld [vmem:[#allocation55_spill] sm:$0xff] }
 0x686   :  { %22839 = vst [vmem:[#allocation61_spill] sm:$0xff] %v20000_v26  ;;  %22840 = vst [vmem:[#allocation62_spill] sm:$0xff] %v20004_v63  ;;  %v20016_v53 = vadd.f32 %v19549_v57, %v22843_v15  ;;  %v20020_v32 = vadd.f32 %v19549_v57, %v22844_v31  ;;  %v22845_v26 = vld [vmem:[#allocation56_spill] sm:$0xff]  ;;  %v22846_v63 = vld [vmem:[#allocation57_spill] sm:$0xff]  ;;  %v20036_v15 = vadd.f32 %v19549_v57, %v19784_v10 }
 0x687   :  { %22841 = vst [vmem:[#allocation63_spill] sm:$0xff] %v20008_v13  ;;  %v20024_v27 = vadd.f32 %v19549_v57, %v22845_v26  ;;  %v20028_v21 = vadd.f32 %v19549_v57, %v22846_v63  ;;  %v22847_v13 = vld [vmem:[#allocation58_spill] sm:$0xff]  ;;  %v20040_v31 = vadd.f32 %v19549_v57, %v19788_v47  ;;  %v20044_v26 = vadd.f32 %v19549_v57, %v19792_v16 }
 0x688   :  { %v20032_v44 = vadd.f32 %v19549_v57, %v22847_v13  ;;  %22848 = vst [vmem:[#allocation64_spill] sm:$0xff] %v20036_v15  ;;  %v20048_v63 = vadd.f32 %v19549_v57, %v19796_v20  ;;  %v20052_v13 = vadd.f32 %v19549_v57, %v19800_v14  ;;  %v20056_v10 = vadd.f32 %v19549_v57, %v19804_v39 }
 0x689   :  { %22849 = vst [vmem:[#allocation65_spill] sm:$0xff] %v20040_v31  ;;  %22850 = vst [vmem:[#allocation66_spill] sm:$0xff] %v20044_v26  ;;  %v5097_v15 = vmax.f32 %v19808_v12, 0.0  ;;  %v5098_v47 = vmax.f32 %v19812_v41, 0.0  ;;  %v5099_v31 = vmax.f32 %v19816_v1, 0.0  ;;  %v5100_v16 = vmax.f32 %v19820_v60, 0.0 }
 0x68a   :  { %22851 = vst [vmem:[#allocation67_spill] sm:$0xff] %v20048_v63  ;;  %22852 = vst [vmem:[#allocation68_spill] sm:$0xff] %v20052_v13  ;;  %v5101_v26 = vmax.f32 %v19824_v59, 0.0  ;;  %v22439_v20 = vmax.f32 %v19828_v25, 0.0  ;;  %v22438_v63 = vmax.f32 %v19832_v58, 0.0  ;;  %v22440_v14 = vmax.f32 %v19836_v6, 0.0 }
 0x68b   :  { %v22441_v13 = vmax.f32 %v19840_v49, 0.0  ;;  %v22443_v57 = vmax.f32 %v19844_v4, 0.0  ;;  %v22442_v39 = vmax.f32 %v19848_v50, 0.0  ;;  %5247 = vst [vmem:[#allocation2 + $0x19] sm:$0xff] %v5097_v15  ;;  %5248 = vst [vmem:[#allocation2 + $0x21] sm:$0xff] %v5098_v47  ;;  %13652 = vmatprep.mubr.f32.mxu1 %v5097_v15  ;;  %v22445_v1 = vmax.f32 %v19860_v19, 0.0 }
 0x68c   :  { %5249 = vst [vmem:[#allocation2 + $0x31] sm:$0xff] %v5099_v31  ;;  %v22444_v60 = vmax.f32 %v19864_v28, 0.0  ;;  %5250 = vst [vmem:[#allocation2 + $0x39] sm:$0xff] %v5100_v16  ;;  %13653 = vmatmul.mubr.f32.gmra.mrb[2].mxu1 %v5098_v47  ;;  %v22448_v59 = vmax.f32 %v19868_v30, 0.0  ;;  %v22447_v15 = vmax.f32 %v19872_v29, 0.0  ;;  %v22446_v12 = vmax.f32 %v19876_v36, 0.0 }
 0x68d   :  { %5251 = vst [vmem:[#allocation2 + $0x49] sm:$0xff] %v5101_v26  ;;  %5252 = vst [vmem:[#allocation2 + $0x51] sm:$0xff] %v22439_v20  ;;  %13655 = vmatprep.mubr.f32.mxu1 %v5099_v31  ;;  %v22460_v47 = vmax.f32 %v19884_v40, 0.0  ;;  %v22449_v20 = vmax.f32 %v19892_v48, 0.0  ;;  %v22456_v31 = vmax.f32 %v19900_v54, 0.0  ;;  %v5127_v41 = vmax.f32 %v19928_v22, 0.0 }
 0x68e   :  { %5253 = vst [vmem:[#allocation2 + $0x61] sm:$0xff] %v22438_v63  ;;  %5254 = vst [vmem:[#allocation2 + $0x69] sm:$0xff] %v22440_v14  ;;  %v22450_v63 = vmax.f32 %v19888_v38, 0.0  ;;  %v22853_v14 = vmax.f32 %v19852_v7, 0.0  ;;  %v22457_v22 = vmax.f32 %v19944_v46, 0.0 }
 0x68f   :  { %5255 = vst [vmem:[#allocation2 + $0x79] sm:$0xff] %v22441_v13  ;;  %5256 = vst [vmem:[#allocation2 + $0x81] sm:$0xff] %v22443_v57  ;;  %v22854_v13 = vmax.f32 %v19856_v45, 0.0  ;;  %v22451_v57 = vmax.f32 %v19908_v3, 0.0 }
 0x690   :  { %5257 = vst [vmem:[#allocation2 + $0x91] sm:$0xff] %v22442_v39  ;;  %5258 = vst [vmem:[#allocation2 + $0x99] sm:$0xff] %v22853_v14  ;;  %v22452_v39 = vmax.f32 %v19904_v52, 0.0  ;;  %v22455_v14 = vmax.f32 %v19916_v9, 0.0  ;;  %13656 = vmatmul.mubr.f32.gmra.mrb[4].mxu1 %v5100_v16  ;;  %v22468_v16 = vmax.f32 %v19952_v51, 0.0 }
 0x691   :  { %5259 = vst [vmem:[#allocation2 + $0xa9] sm:$0xff] %v22854_v13  ;;  %5260 = vst [vmem:[#allocation2 + $0xb1] sm:$0xff] %v22445_v1  ;;  %v22855_v13 = vmax.f32 %v19880_v23, 0.0  ;;  %v22453_v1 = vmax.f32 %v19924_v34, 0.0  ;;  %13658 = vmatprep.mubr.f32.mxu1 %v5101_v26  ;;  %v22464_v26 = vmax.f32 %v19964_v55, 0.0 }
 0x692   :  { %5261 = vst [vmem:[#allocation2 + $0xc1] sm:$0xff] %v22444_v60  ;;  %5262 = vst [vmem:[#allocation2 + $0xc9] sm:$0xff] %v22448_v59  ;;  %v22454_v60 = vmax.f32 %v19920_v37, 0.0  ;;  %v22458_v59 = vmax.f32 %v19940_v33, 0.0 }
 0x693   :  { %5263 = vst [vmem:[#allocation2 + $0xd9] sm:$0xff] %v22447_v15  ;;  %5264 = vst [vmem:[#allocation2 + $0xe1] sm:$0xff] %v22446_v12  ;;  %v22856_v12 = vmax.f32 %v19896_v42, 0.0  ;;  %v22459_v15 = vmax.f32 %v19936_v18, 0.0 }
 0x694   :  { %5265 = vst [vmem:[#allocation2 + $0xf1] sm:$0xff] %v22855_v13  ;;  %5266 = vst [vmem:[#allocation2 + $0xf9] sm:$0xff] %v22460_v47  ;;  %v5128_v13 = vmax.f32 %v19932_v35, 0.0  ;;  %v22461_v35 = vmax.f32 %v19948_v56, 0.0 }
 0x695   :  { %5267 = vst [vmem:[#allocation2 + $0x109] sm:$0xff] %v22450_v63  ;;  %5268 = vst [vmem:[#allocation2 + $0x111] sm:$0xff] %v22449_v20  ;;  %v22463_v20 = vmax.f32 %v19956_v2, 0.0  ;;  %v22462_v63 = vmax.f32 %v19960_v17, 0.0 }
 0x696   :  { %5269 = vst [vmem:[#allocation2 + $0x121] sm:$0xff] %v22856_v12  ;;  %5270 = vst [vmem:[#allocation2 + $0x129] sm:$0xff] %v22456_v31  ;;  %v22857_v12 = vmax.f32 %v19912_v61, 0.0  ;;  %v22862_v31 = vld [vmem:[#allocation62_spill] sm:$0xff] }
 0x697   :  { %5271 = vst [vmem:[#allocation2 + $0x139] sm:$0xff] %v22452_v39  ;;  %5272 = vst [vmem:[#allocation2 + $0x141] sm:$0xff] %v22451_v57  ;;  %v22466_v57 = vmax.f32 %v19972_v5, 0.0  ;;  %v22467_v39 = vmax.f32 %v19976_v0, 0.0 }
 0x698   :  { %5273 = vst [vmem:[#allocation2 + $0x151] sm:$0xff] %v22857_v12  ;;  %5274 = vst [vmem:[#allocation2 + $0x159] sm:$0xff] %v22455_v14  ;;  %v22465_v12 = vmax.f32 %v19968_v8, 0.0  ;;  %v22858_v14 = vld [vmem:[#allocation59_spill] sm:$0xff] }
 0x699   :  { %5275 = vst [vmem:[#allocation2 + $0x169] sm:$0xff] %v22454_v60  ;;  %5276 = vst [vmem:[#allocation2 + $0x171] sm:$0xff] %v22453_v1  ;;  %v22474_v60 = vmax.f32 %v22862_v31, 0.0  ;;  %v22863_v1 = vld [vmem:[#allocation63_spill] sm:$0xff] }
 0x69a   :  { %5277 = vst [vmem:[#allocation2 + $0x181] sm:$0xff] %v5127_v41  ;;  %5278 = vst [vmem:[#allocation2 + $0x189] sm:$0xff] %v5128_v13  ;;  %v22469_v41 = vmax.f32 %v19980_v11, 0.0  ;;  %v22859_v13 = vmax.f32 %v19828_v25, 0.0  ;;  %v22864_v25 = vmax.f32 %v19832_v58, 0.0  ;;  %v22867_v58 = vmax.f32 %v22858_v14, 0.0 }
 0x69b   :  { %5279 = vst [vmem:[#allocation2 + $0x1c9] sm:$0xff] %v22459_v15  ;;  %5280 = vst [vmem:[#allocation2 + $0x1d1] sm:$0xff] %v22458_v59  ;;  %v22861_v15 = vld [vmem:[#allocation61_spill] sm:$0xff]  ;;  %v22873_v14 = vld [vmem:[#allocation68_spill] sm:$0xff] }
 0x69c   :  { %5281 = vst [vmem:[#allocation2 + $0x1e1] sm:$0xff] %v22457_v22  ;;  %5282 = vst [vmem:[#allocation2 + $0x1e9] sm:$0xff] %v22461_v35  ;;  %13659 = vmatmul.mubr.f32.gmra.mrb[6].mxu1 %v22859_v13  ;;  %v22860_v22 = vld [vmem:[#allocation60_spill] sm:$0xff]  ;;  %v22473_v47 = vmax.f32 %v22861_v15, 0.0  ;;  %v22869_v13 = vld [vmem:[#allocation65_spill] sm:$0xff] }
 0x69d   :  { %5283 = vst [vmem:[#allocation2 + $0x1f9] sm:$0xff] %v22468_v16  ;;  %5284 = vst [vmem:[#allocation2 + $0x201] sm:$0xff] %v22463_v20  ;;  %v22472_v59 = vmax.f32 %v22860_v22, 0.0  ;;  %13661 = vmatprep.mubr.f32.mxu1 %v22864_v25  ;;  %v5387_v25 = vld [vmem:[#allocation3 + $0x60] sm:$0xff]  ;;  %v22872_v16 = vld [vmem:[#allocation67_spill] sm:$0xff]  ;;  %v5160_v22 = vmax.f32 %v20056_v10, 0.0 }
 0x69e   :  { %5285 = vst [vmem:[#allocation2 + $0x211] sm:$0xff] %v22462_v63  ;;  %5286 = vst [vmem:[#allocation2 + $0x219] sm:$0xff] %v22464_v26  ;;  %v22868_v63 = vld [vmem:[#allocation64_spill] sm:$0xff]  ;;  %v22878_v20 = vmax.f32 %v19836_v6, 0.0  ;;  %v22879_v26 = vmax.f32 %v20028_v21, 0.0  ;;  %v22880_v10 = vmax.f32 %v20032_v44, 0.0 }
 0x69f   :  { %5287 = vst [vmem:[#allocation2 + $0x229] sm:$0xff] %v22465_v12  ;;  %5288 = vst [vmem:[#allocation2 + $0x231] sm:$0xff] %v22466_v57  ;;  %v22865_v12 = vmax.f32 %v19984_v43, 0.0  ;;  %v22866_v57 = vmax.f32 %v19988_v24, 0.0  ;;  %v22885_v6 = vmax.f32 %v22872_v16, 0.0 }
 0x6a0   :  { %5289 = vst [vmem:[#allocation2 + $0x241] sm:$0xff] %v22467_v39  ;;  %5290 = vst [vmem:[#allocation2 + $0x249] sm:$0xff] %v22469_v41  ;;  %v5388_v39 = vld [vmem:[#allocation3 + $0x68] sm:$0xff]  ;;  %13662 = vmatmul.mubr.f32.gmra.mrb[8].mxu1 %v22878_v20  ;;  %v22886_v20 = vmax.f32 %v22873_v14, 0.0 }
 0x6a1   :  { %5291 = vst [vmem:[#allocation2 + $0x259] sm:$0xff] %v22865_v12  ;;  %5292 = vst [vmem:[#allocation2 + $0x261] sm:$0xff] %v22866_v57  ;;  %v22870_v57 = vmax.f32 %v22863_v1, 0.0  ;;  %v5389_v12 = vld [vmem:[#allocation3 + $0x70] sm:$0xff]  ;;  %v22871_v41 = vld [vmem:[#allocation66_spill] sm:$0xff]  ;;  %v15113_v35 = vpack.c.bf16 %v5388_v39, %v5387_v25  ;;  %v22889_v25 = vmax.f32 %v19852_v7, 0.0 }
 0x6a2   :  { %5293 = vst [vmem:[#allocation2 + $0x271] sm:$0xff] %v22867_v58  ;;  %5294 = vst [vmem:[#allocation2 + $0x279] sm:$0xff] %v22472_v59  ;;  %v5390_v58 = vld [vmem:[#allocation3 + $0x78] sm:$0xff]  ;;  %v22874_v59 = vmax.f32 %v20012_v62, 0.0  ;;  %v22895_v7 = vmax.f32 %v19876_v36, 0.0  ;;  %v22902_v36 = vmax.f32 %v19904_v52, 0.0 }
 0x6a3   :  { %5295 = vst [vmem:[#allocation2 + $0x289] sm:$0xff] %v22473_v47  ;;  %5296 = vst [vmem:[#allocation2 + $0x291] sm:$0xff] %v22474_v60  ;;  %v22875_v47 = vmax.f32 %v20016_v53, 0.0  ;;  %v22876_v60 = vmax.f32 %v20020_v32, 0.0  ;;  %15114 = vmatprep.subr.bf16.mxu1 %v15113_v35  ;;  %v22908_v52 = vmax.f32 %v19936_v18, 0.0  ;;  %v22915_v18 = vmax.f32 %v19964_v55, 0.0 }
 0x6a4   :  { %5297 = vst [vmem:[#allocation2 + $0x2a1] sm:$0xff] %v22870_v57  ;;  %5298 = vst [vmem:[#allocation2 + $0x2a9] sm:$0xff] %v22874_v59  ;;  %v22877_v57 = vmax.f32 %v20024_v27, 0.0  ;;  %v22881_v59 = vmax.f32 %v22868_v63, 0.0  ;;  %15116 = vmatpush3.bf16.msra.mxu1 %v15113_v35  ;;  %v22894_v35 = vmax.f32 %v19872_v29, 0.0  ;;  %v22901_v29 = vmax.f32 %v19900_v54, 0.0 }
 0x6a5   :  { %5299 = vst [vmem:[#allocation2 + $0x2b9] sm:$0xff] %v22875_v47  ;;  %5300 = vst [vmem:[#allocation2 + $0x2c1] sm:$0xff] %v22876_v60  ;;  %v22882_v47 = vmax.f32 %v22869_v13, 0.0  ;;  %v22883_v60 = vmax.f32 %v19840_v49, 0.0  ;;  %v22888_v49 = vmax.f32 %v19848_v50, 0.0  ;;  %v22893_v50 = vmax.f32 %v19868_v30, 0.0 }
 0x6a6   :  { %5301 = vst [vmem:[#allocation2 + $0x2d1] sm:$0xff] %v22877_v57  ;;  %5302 = vst [vmem:[#allocation2 + $0x2d9] sm:$0xff] %v22879_v26  ;;  %v22884_v57 = vmax.f32 %v22871_v41, 0.0  ;;  %v15117_v26 = vpack.c.bf16 %v5390_v58, %v5389_v12  ;;  %v22897_v12 = vmax.f32 %v19884_v40, 0.0  ;;  %v22900_v30 = vmax.f32 %v19896_v42, 0.0  ;;  %v5423_v42 = vld [vmem:[#allocation2 + $0x1b1] sm:$0xff] }
 0x6a7   :  { %5303 = vst [vmem:[#allocation2 + $0x2e9] sm:$0xff] %v22880_v10  ;;  %5304 = vst [vmem:[#allocation2 + $0x2f1] sm:$0xff] %v22881_v59  ;;  %13664 = vmatprep.mubr.f32.mxu1 %v22883_v60  ;;  %v6307_v10 = vld [vmem:[#allocation3 + $0x100] sm:$0xff]  ;;  %v6308_v59 = vld [vmem:[#allocation3 + $0x108] sm:$0xff]  ;;  %v22890_v60 = vmax.f32 %v19856_v45, 0.0  ;;  %v22896_v45 = vmax.f32 %v19880_v23, 0.0 }
 0x6a8   :  { %5305 = vst [vmem:[#allocation2 + $0x301] sm:$0xff] %v22882_v47  ;;  %5306 = vst [vmem:[#allocation2 + $0x309] sm:$0xff] %v22884_v57  ;;  %v22887_v47 = vmax.f32 %v19844_v4, 0.0  ;;  %15118 = vmatprep.subr.bf16.mxu1 %v15117_v26  ;;  %v20243_v39 = vpack.c.bf16 %v6308_v59, %v6307_v10  ;;  %v22892_v4 = vmax.f32 %v19864_v28, 0.0  ;;  %v22899_v28 = vmax.f32 %v19892_v48, 0.0  ;;  %v5424_v54 = vld [vmem:[#allocation2 + $0x1b9] sm:$0xff] }
 0x6a9   :  { %5307 = vst [vmem:[#allocation2 + $0x319] sm:$0xff] %v22885_v6  ;;  %5308 = vst [vmem:[#allocation2 + $0x321] sm:$0xff] %v22886_v20  ;;  %15120 = vmatpush3.bf16.msra.mxu1 %v15117_v26  ;;  %v22903_v23 = vmax.f32 %v19908_v3, 0.0  ;;  %v22904_v40 = vmax.f32 %v19912_v61, 0.0  ;;  %v22906_v48 = vmax.f32 %v19920_v37, 0.0  ;;  %v22907_v58 = vmax.f32 %v19924_v34, 0.0 }
 0x6aa   :  { %5310 = vst [vmem:[#allocation2 + $0x339] sm:$0xff] %v5160_v22  ;;  %13665 = vmatmul.mubr.f32.gmra.mrb[10].mxu1 %v22887_v47  ;;  %15122 = vmatprep.subr.bf16.mxu1 %v20243_v39  ;;  %v22891_v22 = vmax.f32 %v19860_v19, 0.0  ;;  %v22898_v19 = vmax.f32 %v19888_v38, 0.0  ;;  %v22905_v38 = vmax.f32 %v19916_v9, 0.0  ;;  %v22909_v3 = vmax.f32 %v19940_v33, 0.0  ;;  %v22922_v55 = vld [vmem:[#allocation59_spill] sm:$0xff] }
 0x6ab   :  { %13667 = vmatprep.mubr.f32.mxu1 %v22888_v49  ;;  %v22910_v61 = vmax.f32 %v19944_v46, 0.0  ;;  %v22911_v9 = vmax.f32 %v19948_v56, 0.0  ;;  %v22912_v37 = vmax.f32 %v19952_v51, 0.0  ;;  %v22913_v34 = vmax.f32 %v19956_v2, 0.0  ;;  %v6309_v59 = vld [vmem:[#allocation3 + $0x110] sm:$0xff]  ;;  %v6310_v47 = vld [vmem:[#allocation3 + $0x118] sm:$0xff] }
 0x6ac   :  { %v22914_v57 = vmax.f32 %v19960_v17, 0.0  ;;  %v22916_v33 = vmax.f32 %v19968_v8, 0.0  ;;  %v22917_v46 = vmax.f32 %v19972_v5, 0.0  ;;  %v22918_v56 = vmax.f32 %v19976_v0, 0.0  ;;  %v22924_v8 = vld [vmem:[#allocation60_spill] sm:$0xff]  ;;  %v6311_v49 = vld [vmem:[#allocation3 + $0x120] sm:$0xff] }
 0x6ad   :  { %v22919_v51 = vmax.f32 %v19980_v11, 0.0  ;;  %v22920_v2 = vmax.f32 %v19984_v43, 0.0  ;;  %v22921_v17 = vmax.f32 %v19988_v24, 0.0  ;;  %v22923_v6 = vmax.f32 %v22922_v55, 0.0  ;;  %v20411_v55 = vld [vmem:[#allocation2 + $0x108] sm:$0xff] }
 0x6ae   :  { %13668 = vmatmul.mubr.f32.gmra.mrb[12].mxu1 %v22889_v25  ;;  %v22925_v20 = vmax.f32 %v22924_v8, 0.0  ;;  %v22926_v5 = vmax.f32 %v22861_v15, 0.0  ;;  %v22927_v0 = vmax.f32 %v22862_v31, 0.0  ;;  %v22928_v11 = vmax.f32 %v22863_v1, 0.0  ;;  %v20344_v25 = vld [vmem:[#allocation2 + $0x8] sm:$0xff]  ;;  %v20417_v8 = vld [vmem:[#allocation2 + $0x120] sm:$0xff] }
 0x6af   :  { %13670 = vmatprep.mubr.f32.mxu1 %v22890_v60  ;;  %v22929_v43 = vmax.f32 %v20012_v62, 0.0  ;;  %v22930_v24 = vmax.f32 %v20016_v53, 0.0  ;;  %v22931_v26 = vmax.f32 %v20020_v32, 0.0  ;;  %v22932_v10 = vmax.f32 %v20024_v27, 0.0  ;;  %v5311_v27 = vld [vmem:[#allocation2] sm:$0xff]  ;;  %v6314_v60 = vld [vmem:[#allocation3 + $0x138] sm:$0xff] }
 0x6b0   :  { %v22933_v15 = vmax.f32 %v20028_v21, 0.0  ;;  %v22934_v31 = vmax.f32 %v20032_v44, 0.0  ;;  %v22935_v1 = vmax.f32 %v22868_v63, 0.0  ;;  %v22936_v62 = vmax.f32 %v22869_v13, 0.0  ;;  %v6312_v63 = vld [vmem:[#allocation3 + $0x128] sm:$0xff]  ;;  %v20347_v13 = vld [vmem:[#allocation2 + $0x18] sm:$0xff] }
 0x6b1   :  { %v22937_v53 = vmax.f32 %v22871_v41, 0.0  ;;  %v22938_v32 = vmax.f32 %v22872_v16, 0.0  ;;  %v22939_v21 = vmax.f32 %v22873_v14, 0.0  ;;  %v15125_v44 = vpack.c.bf16 %v6310_v47, %v6309_v59  ;;  %v20351_v41 = vld [vmem:[#allocation2 + $0x20] sm:$0xff]  ;;  %v6313_v14 = vld [vmem:[#allocation3 + $0x130] sm:$0xff]  ;;  %v20463_v59 = vld [vmem:[#allocation2 + $0x218] sm:$0xff] }
 0x6b2   :  { %13671 = vmatmul.mubr.f32.gmra.mrb[14].mxu1 %v22891_v22  ;;  %v15129_v16 = vpack.c.bf16 %v6312_v63, %v6311_v49  ;;  %v20354_v22 = vld [vmem:[#allocation2 + $0x30] sm:$0xff]  ;;  %v20466_v47 = vld [vmem:[#allocation2 + $0x228] sm:$0xff]  ;;  %v20478_v63 = vld [vmem:[#allocation2 + $0x258] sm:$0xff] }
 0x6b3   :  { %13673 = vmatprep.mubr.f32.mxu1 %v22892_v4  ;;  %v15133_v4 = vpack.c.bf16 %v6314_v60, %v6313_v14  ;;  %v20475_v49 = vld [vmem:[#allocation2 + $0x248] sm:$0xff]  ;;  %v20487_v14 = vld [vmem:[#allocation2 + $0x278] sm:$0xff] }
 0x6b4   :  { %v20490_v60 = vld [vmem:[#allocation2 + $0x288] sm:$0xff] }
 0x6b6   :  { %13674 = vmatmul.mubr.f32.gmra.mrb[16].mxu1 %v22893_v50  ;;  %v20357_v50 = vld [vmem:[#allocation2 + $0x38] sm:$0xff] }
 0x6b7   :  { %13676 = vmatprep.mubr.f32.mxu1 %v22894_v35  ;;  %v6315_v35 = vld [vmem:[#allocation3 + $0x140] sm:$0xff] }
 0x6ba   :  { %13677 = vmatmul.mubr.f32.gmra.mrb[18].mxu1 %v22895_v7  ;;  %v6316_v7 = vld [vmem:[#allocation3 + $0x148] sm:$0xff] }
 0x6bb   :  { %13679 = vmatprep.mubr.f32.mxu1 %v22896_v45  ;;  %v15137_v45 = vpack.c.bf16 %v6316_v7, %v6315_v35  ;;  %v20496_v35 = vld [vmem:[#allocation2 + $0x2a0] sm:$0xff]  ;;  %v20499_v7 = vld [vmem:[#allocation2 + $0x2a8] sm:$0xff] }
 0x6be   :  { %13680 = vmatmul.mubr.f32.gmra.mrb[20].mxu1 %v22897_v12  ;;  %v20363_v12 = vld [vmem:[#allocation2 + $0x50] sm:$0xff] }
 0x6bf   :  { %13682 = vmatprep.mubr.f32.mxu1 %v22898_v19  ;;  %v6317_v19 = vld [vmem:[#allocation3 + $0x150] sm:$0xff] }
 0x6c2   :  { %13683 = vmatmul.mubr.f32.gmra.mrb[22].mxu1 %v22899_v28  ;;  %v6318_v28 = vld [vmem:[#allocation3 + $0x158] sm:$0xff] }
 0x6c3   :  { %13685 = vmatprep.mubr.f32.mxu1 %v22900_v30  ;;  %v20366_v30 = vld [vmem:[#allocation2 + $0x60] sm:$0xff] }
 0x6c6   :  { %13686 = vmatmul.mubr.f32.gmra.mrb[24].mxu1 %v22901_v29  ;;  %v15141_v29 = vpack.c.bf16 %v6318_v28, %v6317_v19  ;;  %v20505_v19 = vld [vmem:[#allocation2 + $0x2c0] sm:$0xff]  ;;  %v20508_v28 = vld [vmem:[#allocation2 + $0x2d0] sm:$0xff] }
 0x6c7   :  { %13688 = vmatprep.mubr.f32.mxu1 %v22902_v36  ;;  %v20369_v36 = vld [vmem:[#allocation2 + $0x68] sm:$0xff]  ;;  %22941 = vst [vmem:[#allocation70_spill] sm:$0xff] %v20505_v19  ;;  %22942 = vst [vmem:[#allocation71_spill] sm:$0xff] %v20508_v28 }
 0x6ca   :  { %13689 = vmatmul.mubr.f32.gmra.mrb[26].mxu1 %v22903_v23  ;;  %v6319_v23 = vld [vmem:[#allocation3 + $0x160] sm:$0xff] }
 0x6cb   :  { %13691 = vmatprep.mubr.f32.mxu1 %v22904_v40  ;;  %v6320_v40 = vld [vmem:[#allocation3 + $0x168] sm:$0xff] }
 0x6ce   :  { %13692 = vmatmul.mubr.f32.gmra.mrb[28].mxu1 %v22905_v38  ;;  %v20372_v38 = vld [vmem:[#allocation2 + $0x78] sm:$0xff] }
 0x6cf   :  { %13694 = vmatprep.mubr.f32.mxu1 %v22906_v48  ;;  %v15145_v48 = vpack.c.bf16 %v6320_v40, %v6319_v23  ;;  %v20514_v23 = vld [vmem:[#allocation2 + $0x2e8] sm:$0xff]  ;;  %v20517_v40 = vld [vmem:[#allocation2 + $0x2f0] sm:$0xff] }
 0x6d0   :  { %22944 = vst [vmem:[#allocation10_spill] sm:$0xff] %v20514_v23  ;;  %22945 = vst [vmem:[#allocation11_spill] sm:$0xff] %v20517_v40 }
 0x6d2   :  { %13695 = vmatmul.mubr.f32.gmra.mrb[30].mxu1 %v22907_v58  ;;  %v6321_v58 = vld [vmem:[#allocation3 + $0x170] sm:$0xff] }
 0x6d3   :  { %13697 = vmatprep.mubr.f32.mxu1 %v5423_v42  ;;  %v20375_v42 = vld [vmem:[#allocation2 + $0x80] sm:$0xff] }
 0x6d6   :  { %13698 = vmatmul.mubr.f32.gmra.mrb[32].mxu1 %v5424_v54  ;;  %v6322_v54 = vld [vmem:[#allocation3 + $0x178] sm:$0xff] }
 0x6d7   :  { %13700 = vmatprep.mubr.f32.mxu1 %v22908_v52  ;;  %v20378_v52 = vld [vmem:[#allocation2 + $0x90] sm:$0xff] }
 0x6da   :  { %13701 = vmatmul.mubr.f32.gmra.mrb[34].mxu1 %v22909_v3  ;;  %v15149_v3 = vpack.c.bf16 %v6322_v54, %v6321_v58  ;;  %v20523_v58 = vld [vmem:[#allocation2 + $0x308] sm:$0xff]  ;;  %v20526_v54 = vld [vmem:[#allocation2 + $0x318] sm:$0xff] }
 0x6db   :  { %13703 = vmatprep.mubr.f32.mxu1 %v22910_v61  ;;  %v20381_v61 = vld [vmem:[#allocation2 + $0x98] sm:$0xff]  ;;  %22947 = vst [vmem:[#allocation13_spill] sm:$0xff] %v20523_v58  ;;  %22948 = vst [vmem:[#allocation14_spill] sm:$0xff] %v20526_v54 }
 0x6de   :  { %13704 = vmatmul.mubr.f32.gmra.mrb[36].mxu1 %v22911_v9  ;;  %v6837_v9 = vld [vmem:[#allocation3 + $0x180] sm:$0xff] }
 0x6df   :  { %13706 = vmatprep.mubr.f32.mxu1 %v22912_v37  ;;  %v6838_v37 = vld [vmem:[#allocation3 + $0x188] sm:$0xff] }
 0x6e2   :  { %13707 = vmatmul.mubr.f32.gmra.mrb[38].mxu1 %v22913_v34  ;;  %v20384_v34 = vld [vmem:[#allocation2 + $0xa8] sm:$0xff] }
 0x6e3   :  { %13709 = vmatprep.mubr.f32.mxu1 %v22914_v57  ;;  %v20387_v57 = vpack.c.bf16 %v6838_v37, %v6837_v9  ;;  %v20529_v9 = vld [vmem:[#allocation2 + $0x320] sm:$0xff]  ;;  %v6839_v37 = vld [vmem:[#allocation3 + $0x190] sm:$0xff] }
 0x6e6   :  { %13710 = vmatmul.mubr.f32.gmra.mrb[40].mxu1 %v22915_v18  ;;  %v20389_v18 = vld [vmem:[#allocation2 + $0xb0] sm:$0xff] }
 0x6e7   :  { %13712 = vmatprep.mubr.f32.mxu1 %v22916_v33  ;;  %v20392_v33 = vld [vmem:[#allocation2 + $0xc0] sm:$0xff] }
 0x6ea   :  { %13713 = vmatmul.mubr.f32.gmra.mrb[42].mxu1 %v22917_v46  ;;  %v20396_v46 = vld [vmem:[#allocation2 + $0xc8] sm:$0xff] }
 0x6eb   :  { %13715 = vmatprep.mubr.f32.mxu1 %v22918_v56  ;;  %v20399_v56 = vld [vmem:[#allocation2 + $0xd8] sm:$0xff] }
 0x6ee   :  { %13716 = vmatmul.mubr.f32.gmra.mrb[44].mxu1 %v22919_v51  ;;  %v20402_v51 = vld [vmem:[#allocation2 + $0xe0] sm:$0xff] }
 0x6ef   :  { %13718 = vmatprep.mubr.f32.mxu1 %v22920_v2  ;;  %v20405_v2 = vld [vmem:[#allocation2 + $0xf0] sm:$0xff] }
 0x6f2   :  { %13719 = vmatmul.mubr.f32.gmra.mrb[46].mxu1 %v22921_v17  ;;  %v20408_v17 = vld [vmem:[#allocation2 + $0xf8] sm:$0xff] }
 0x6f3   :  { %13721 = vmatprep.mubr.f32.mxu1 %v22923_v6  ;;  %v20414_v6 = vld [vmem:[#allocation2 + $0x110] sm:$0xff] }
 0x6f6   :  { %13722 = vmatmul.mubr.f32.gmra.mrb[48].mxu1 %v22925_v20  ;;  %v20420_v20 = vld [vmem:[#allocation2 + $0x128] sm:$0xff] }
 0x6f7   :  { %13724 = vmatprep.mubr.f32.mxu1 %v22926_v5  ;;  %v20423_v5 = vld [vmem:[#allocation2 + $0x138] sm:$0xff] }
 0x6fa   :  { %13725 = vmatmul.mubr.f32.gmra.mrb[50].mxu1 %v22927_v0  ;;  %v20426_v0 = vld [vmem:[#allocation2 + $0x140] sm:$0xff] }
 0x6fb   :  { %13727 = vmatprep.mubr.f32.mxu1 %v22928_v11  ;;  %v20429_v11 = vld [vmem:[#allocation2 + $0x150] sm:$0xff] }
 0x6fe   :  { %13728 = vmatmul.mubr.f32.gmra.mrb[52].mxu1 %v22929_v43  ;;  %v20432_v43 = vld [vmem:[#allocation2 + $0x158] sm:$0xff] }
 0x6ff   :  { %13730 = vmatprep.mubr.f32.mxu1 %v22930_v24  ;;  %v20435_v24 = vld [vmem:[#allocation2 + $0x168] sm:$0xff] }
 0x702   :  { %13731 = vmatmul.mubr.f32.gmra.mrb[54].mxu1 %v22931_v26  ;;  %v5343_v26 = vld [vmem:[#allocation2 + $0x1b0] sm:$0xff] }
 0x703   :  { %13733 = vmatprep.mubr.f32.mxu1 %v22932_v10  ;;  %v20438_v10 = vld [vmem:[#allocation2 + $0x170] sm:$0xff] }
 0x706   :  { %13734 = vmatmul.mubr.f32.gmra.mrb[56].mxu1 %v22933_v15  ;;  %v20442_v15 = vld [vmem:[#allocation2 + $0x1c8] sm:$0xff] }
 0x707   :  { %13736 = vmatprep.mubr.f32.mxu1 %v22934_v31  ;;  %v20445_v31 = vld [vmem:[#allocation2 + $0x1d0] sm:$0xff] }
 0x70a   :  { %13737 = vmatmul.mubr.f32.gmra.mrb[58].mxu1 %v22935_v1  ;;  %v20448_v1 = vld [vmem:[#allocation2 + $0x1e0] sm:$0xff] }
 0x70b   :  { %13739 = vmatprep.mubr.f32.mxu1 %v22936_v62  ;;  %v20451_v62 = vld [vmem:[#allocation2 + $0x1e8] sm:$0xff] }
 0x70e   :  { %13740 = vmatmul.mubr.f32.gmra.mrb[60].mxu1 %v22937_v53  ;;  %v20454_v53 = vld [vmem:[#allocation2 + $0x1f8] sm:$0xff] }
 0x70f   :  { %13742 = vmatprep.mubr.f32.mxu1 %v22938_v32  ;;  %v20457_v32 = vld [vmem:[#allocation2 + $0x200] sm:$0xff] }
 0x712   :  { %13743 = vmatmul.mubr.f32.gmra.mrb[62].mxu1 %v22939_v21  ;;  %v20469_v21 = vld [vmem:[#allocation2 + $0x230] sm:$0xff] }
 0x713   :  { %13777 = vmatprep.mubr.f32.mxu1 %v5311_v27  ;;  %v20460_v27 = vld [vmem:[#allocation2 + $0x210] sm:$0xff] }
 0x716   :  { %13778 = vmatmul.mubr.f32.vlgmr.msra.gmra.mrb[0].mxu1 %v20344_v25 }
 0x717   :  { %13780 = vmatprep.mubr.f32.mxu1 %v20347_v13  ;;  %15124 = vmatpush3.bf16.msra.mxu1 %v20243_v39  ;;  %v20360_v39 = vld [vmem:[#allocation2 + $0x48] sm:$0xff] }
 0x718   :  { %15126 = vmatprep.subr.bf16.mxu1 %v15125_v44 }
 0x71a   :  { %13781 = vmatmul.mubr.f32.gmra.mrb[2].mxu1 %v20351_v41 }
 0x71b   :  { %13783 = vmatprep.mubr.f32.mxu1 %v20354_v22  ;;  %15128 = vmatpush3.bf16.msra.mxu1 %v15125_v44  ;;  %v20472_v44 = vld [vmem:[#allocation2 + $0x240] sm:$0xff] }
 0x71c   :  { %15130 = vmatprep.subr.bf16.mxu1 %v15129_v16 }
 0x71e   :  { %13784 = vmatmul.mubr.f32.gmra.mrb[4].mxu1 %v20357_v50 }
 0x71f   :  { %13786 = vmatprep.mubr.f32.mxu1 %v20360_v39  ;;  %15132 = vmatpush3.bf16.msra.mxu1 %v15129_v16  ;;  %v20484_v16 = vld [vmem:[#allocation2 + $0x270] sm:$0xff] }
 0x720   :  { %15134 = vmatprep.subr.bf16.mxu1 %v15133_v4 }
 0x722   :  { %13787 = vmatmul.mubr.f32.gmra.mrb[6].mxu1 %v20363_v12 }
 0x723   :  { %13789 = vmatprep.mubr.f32.mxu1 %v20366_v30  ;;  %15136 = vmatpush3.bf16.msra.mxu1 %v15133_v4  ;;  %v20493_v4 = vld [vmem:[#allocation2 + $0x290] sm:$0xff] }
 0x724   :  { %15138 = vmatprep.subr.bf16.mxu1 %v15137_v45 }
 0x726   :  { %13790 = vmatmul.mubr.f32.gmra.mrb[8].mxu1 %v20369_v36 }
 0x727   :  { %13792 = vmatprep.mubr.f32.mxu1 %v20372_v38  ;;  %15140 = vmatpush3.bf16.msra.mxu1 %v15137_v45  ;;  %v20502_v45 = vld [vmem:[#allocation2 + $0x2b8] sm:$0xff] }
 0x728   :  { %15142 = vmatprep.subr.bf16.mxu1 %v15141_v29  ;;  %22940 = vst [vmem:[#allocation69_spill] sm:$0xff] %v20502_v45 }
 0x72a   :  { %13793 = vmatmul.mubr.f32.gmra.mrb[10].mxu1 %v20375_v42 }
 0x72b   :  { %13795 = vmatprep.mubr.f32.mxu1 %v20378_v52  ;;  %15144 = vmatpush3.bf16.msra.mxu1 %v15141_v29  ;;  %v20511_v29 = vld [vmem:[#allocation2 + $0x2d8] sm:$0xff] }
 0x72c   :  { %15146 = vmatprep.subr.bf16.mxu1 %v15145_v48  ;;  %22943 = vst [vmem:[#allocation9_spill] sm:$0xff] %v20511_v29 }
 0x72e   :  { %13796 = vmatmul.mubr.f32.gmra.mrb[12].mxu1 %v20381_v61 }
 0x72f   :  { %13798 = vmatprep.mubr.f32.mxu1 %v20384_v34  ;;  %15148 = vmatpush3.bf16.msra.mxu1 %v15145_v48  ;;  %v20520_v48 = vld [vmem:[#allocation2 + $0x300] sm:$0xff] }
 0x730   :  { %15150 = vmatprep.subr.bf16.mxu1 %v15149_v3  ;;  %22946 = vst [vmem:[#allocation12_spill] sm:$0xff] %v20520_v48 }
 0x732   :  { %13799 = vmatmul.mubr.f32.gmra.mrb[14].mxu1 %v20389_v18 }
 0x733   :  { %13801 = vmatprep.mubr.f32.mxu1 %v20392_v33  ;;  %15152 = vmatpush3.bf16.msra.mxu1 %v15149_v3  ;;  %v6242_v3 = vld [vmem:[#allocation2 + $0x2] sm:$0xff] }
 0x734   :  { %15154 = vmatprep.subr.bf16.mxu1 %v20387_v57 }
 0x736   :  { %13802 = vmatmul.mubr.f32.gmra.mrb[16].mxu1 %v20396_v46 }
 0x737   :  { %13804 = vmatprep.mubr.f32.mxu1 %v20399_v56 }
 0x73a   :  { %13805 = vmatmul.mubr.f32.gmra.mrb[18].mxu1 %v20402_v51 }
 0x73b   :  { %13807 = vmatprep.mubr.f32.mxu1 %v20405_v2 }
 0x73e   :  { %13808 = vmatmul.mubr.f32.gmra.mrb[20].mxu1 %v20408_v17 }
 0x73f   :  { %13810 = vmatprep.mubr.f32.mxu1 %v20411_v55 }
 0x742   :  { %13811 = vmatmul.mubr.f32.gmra.mrb[22].mxu1 %v20414_v6 }
 0x743   :  { %13813 = vmatprep.mubr.f32.mxu1 %v20417_v8 }
 0x746   :  { %13814 = vmatmul.mubr.f32.gmra.mrb[24].mxu1 %v20420_v20 }
 0x747   :  { %13816 = vmatprep.mubr.f32.mxu1 %v20423_v5 }
 0x74a   :  { %13817 = vmatmul.mubr.f32.gmra.mrb[26].mxu1 %v20426_v0 }
 0x74b   :  { %13819 = vmatprep.mubr.f32.mxu1 %v20429_v11 }
 0x74e   :  { %13820 = vmatmul.mubr.f32.gmra.mrb[28].mxu1 %v20432_v43 }
 0x74f   :  { %13822 = vmatprep.mubr.f32.mxu1 %v20435_v24 }
 0x752   :  { %13823 = vmatmul.mubr.f32.gmra.mrb[30].mxu1 %v20438_v10 }
 0x753   :  { %13825 = vmatprep.mubr.f32.mxu1 %v5343_v26  ;;  %v6840_v26 = vld [vmem:[#allocation3 + $0x198] sm:$0xff] }
 0x756   :  { %13826 = vmatmul.mubr.f32.gmra.mrb[32].mxu1 %v20344_v25  ;;  %v20481_v25 = vld [vmem:[#allocation2 + $0x260] sm:$0xff] }
 0x757   :  { %13828 = vmatprep.mubr.f32.mxu1 %v20442_v15 }
 0x75a   :  { %13829 = vmatmul.mubr.f32.gmra.mrb[34].mxu1 %v20445_v31 }
 0x75b   :  { %13831 = vmatprep.mubr.f32.mxu1 %v20448_v1 }
 0x75e   :  { %13832 = vmatmul.mubr.f32.gmra.mrb[36].mxu1 %v20451_v62 }
 0x75f   :  { %13834 = vmatprep.mubr.f32.mxu1 %v20454_v53 }
 0x762   :  { %13835 = vmatmul.mubr.f32.gmra.mrb[38].mxu1 %v20457_v32 }
 0x763   :  { %13837 = vmatprep.mubr.f32.mxu1 %v20460_v27 }
 0x766   :  { %13838 = vmatmul.mubr.f32.gmra.mrb[40].mxu1 %v20463_v59 }
 0x767   :  { %13840 = vmatprep.mubr.f32.mxu1 %v20466_v47 }
 0x76a   :  { %13841 = vmatmul.mubr.f32.gmra.mrb[42].mxu1 %v20469_v21 }
 0x76b   :  { %13843 = vmatprep.mubr.f32.mxu1 %v20472_v44 }
 0x76e   :  { %13844 = vmatmul.mubr.f32.gmra.mrb[44].mxu1 %v20475_v49 }
 0x76f   :  { %13846 = vmatprep.mubr.f32.mxu1 %v20478_v63 }
 0x772   :  { %13847 = vmatmul.mubr.f32.gmra.mrb[46].mxu1 %v20481_v25 }
 0x773   :  { %13849 = vmatprep.mubr.f32.mxu1 %v20484_v16 }
 0x776   :  { %13850 = vmatmul.mubr.f32.gmra.mrb[48].mxu1 %v20487_v14 }
 0x777   :  { %13852 = vmatprep.mubr.f32.mxu1 %v20490_v60 }
 0x77a   :  { %13853 = vmatmul.mubr.f32.gmra.mrb[50].mxu1 %v20493_v4 }
 0x77b   :  { %13855 = vmatprep.mubr.f32.mxu1 %v20496_v35 }
 0x77e   :  { %13856 = vmatmul.mubr.f32.gmra.mrb[52].mxu1 %v20499_v7 }
 0x77f   :  { %13858 = vmatprep.mubr.f32.mxu1 %v20502_v45  ;;  %v6844_v45 = vld [vmem:[#allocation3 + $0x1b8] sm:$0xff] }
 0x782   :  { %13859 = vmatmul.mubr.f32.gmra.mrb[54].mxu1 %v20505_v19  ;;  %v6843_v19 = vld [vmem:[#allocation3 + $0x1b0] sm:$0xff] }
 0x783   :  { %13861 = vmatprep.mubr.f32.mxu1 %v20508_v28  ;;  %v20532_v28 = vld [vmem:[#allocation2 + $0x1a] sm:$0xff] }
 0x784   :  { %22949 = vst [vmem:[#allocation72_spill] sm:$0xff] %v20532_v28 }
 0x786   :  { %13862 = vmatmul.mubr.f32.gmra.mrb[56].mxu1 %v20511_v29  ;;  %v6841_v29 = vld [vmem:[#allocation3 + $0x1a0] sm:$0xff] }
 0x787   :  { %13864 = vmatprep.mubr.f32.mxu1 %v20514_v23  ;;  %v15157_v23 = vpack.c.bf16 %v6840_v26, %v6839_v37  ;;  %v20542_v37 = vld [vmem:[#allocation2 + $0x3a] sm:$0xff] }
 0x788   :  { %22952 = vst [vmem:[#allocation75_spill] sm:$0xff] %v20542_v37  ;;  %v6845_v26 = vld [vmem:[#allocation3 + $0x1c0] sm:$0xff] }
 0x78a   :  { %13865 = vmatmul.mubr.f32.gmra.mrb[58].mxu1 %v20517_v40  ;;  %v6243_v40 = vld [vmem:[#allocation2 + $0xa] sm:$0xff] }
 0x78b   :  { %13867 = vmatprep.mubr.f32.mxu1 %v20520_v48  ;;  %v6842_v48 = vld [vmem:[#allocation3 + $0x1a8] sm:$0xff] }
 0x78e   :  { %13868 = vmatmul.mubr.f32.gmra.mrb[60].mxu1 %v20523_v58  ;;  %v20536_v58 = vld [vmem:[#allocation2 + $0x22] sm:$0xff] }
 0x78f   :  { %13870 = vmatprep.mubr.f32.mxu1 %v20526_v54  ;;  %v15161_v54 = vpack.c.bf16 %v6842_v48, %v6841_v29  ;;  %22950 = vst [vmem:[#allocation73_spill] sm:$0xff] %v20536_v58  ;;  %v20548_v48 = vld [vmem:[#allocation2 + $0x52] sm:$0xff] }
 0x790   :  { %22954 = vst [vmem:[#allocation77_spill] sm:$0xff] %v20548_v48 }
 0x792   :  { %13871 = vmatmul.mubr.f32.gmra.mrb[62].mxu1 %v20529_v9 }
 0x793   :  { %13905 = vmatprep.mubr.f32.mxu1 %v6242_v3  ;;  %v20539_v3 = vld [vmem:[#allocation2 + $0x32] sm:$0xff] }
 0x794   :  { %22951 = vst [vmem:[#allocation74_spill] sm:$0xff] %v20539_v3 }
 0x796   :  { %13906 = vmatmul.mubr.f32.vlgmr.msra.gmra.mrb[0].mxu1 %v6243_v40  ;;  %v15165_v40 = vpack.c.bf16 %v6844_v45, %v6843_v19  ;;  %v20551_v45 = vld [vmem:[#allocation2 + $0x62] sm:$0xff] }
 0x797   :  { %13908 = vmatprep.mubr.f32.mxu1 %v20532_v28  ;;  %15156 = vmatpush3.bf16.msra.mxu1 %v20387_v57  ;;  %v6846_v28 = vld [vmem:[#allocation3 + $0x1c8] sm:$0xff]  ;;  %22955 = vst [vmem:[#allocation78_spill] sm:$0xff] %v20551_v45 }
 0x798   :  { %15158 = vmatprep.subr.bf16.mxu1 %v15157_v23  ;;  %v20545_v57 = vld [vmem:[#allocation2 + $0x4a] sm:$0xff]  ;;  %v15169_v29 = vpack.c.bf16 %v6846_v28, %v6845_v26  ;;  %v20557_v28 = vld [vmem:[#allocation2 + $0x7a] sm:$0xff]  ;;  %v20560_v26 = vld [vmem:[#allocation2 + $0x82] sm:$0xff] }
 0x799   :  { %22953 = vst [vmem:[#allocation76_spill] sm:$0xff] %v20545_v57  ;;  %22957 = vst [vmem:[#allocation15_spill] sm:$0xff] %v20557_v28 }
 0x79a   :  { %13909 = vmatmul.mubr.f32.gmra.mrb[2].mxu1 %v20536_v58  ;;  %v6847_v58 = vld [vmem:[#allocation3 + $0x1d0] sm:$0xff] }
 0x79b   :  { %13911 = vmatprep.mubr.f32.mxu1 %v20539_v3  ;;  %15160 = vmatpush3.bf16.msra.mxu1 %v15157_v23  ;;  %v6848_v3 = vld [vmem:[#allocation3 + $0x1d8] sm:$0xff]  ;;  %v20554_v23 = vld [vmem:[#allocation2 + $0x6a] sm:$0xff] }
 0x79c   :  { %15162 = vmatprep.subr.bf16.mxu1 %v15161_v54  ;;  %v15173_v19 = vpack.c.bf16 %v6848_v3, %v6847_v58  ;;  %22956 = vst [vmem:[#allocation79_spill] sm:$0xff] %v20554_v23  ;;  %v20563_v58 = vld [vmem:[#allocation2 + $0x92] sm:$0xff] }
 0x79e   :  { %13912 = vmatmul.mubr.f32.gmra.mrb[4].mxu1 %v20542_v37  ;;  %v6849_v37 = vld [vmem:[#allocation3 + $0x1e0] sm:$0xff] }
 0x79f   :  { %13914 = vmatprep.mubr.f32.mxu1 %v20545_v57  ;;  %15164 = vmatpush3.bf16.msra.mxu1 %v15161_v54  ;;  %v6850_v57 = vld [vmem:[#allocation3 + $0x1e8] sm:$0xff] }
 0x7a0   :  { %15166 = vmatprep.subr.bf16.mxu1 %v15165_v40  ;;  %v15177_v54 = vpack.c.bf16 %v6850_v57, %v6849_v37  ;;  %v20569_v37 = vld [vmem:[#allocation2 + $0xaa] sm:$0xff] }
 0x7a1   :  { %22958 = vst [vmem:[#allocation17_spill] sm:$0xff] %v20569_v37 }
 0x7a2   :  { %13915 = vmatmul.mubr.f32.gmra.mrb[6].mxu1 %v20548_v48  ;;  %v6851_v48 = vld [vmem:[#allocation3 + $0x1f0] sm:$0xff] }
 0x7a3   :  { %13917 = vmatprep.mubr.f32.mxu1 %v20551_v45  ;;  %15168 = vmatpush3.bf16.msra.mxu1 %v15165_v40  ;;  %v6852_v45 = vld [vmem:[#allocation3 + $0x1f8] sm:$0xff] }
 0x7a4   :  { %15170 = vmatprep.subr.bf16.mxu1 %v15169_v29  ;;  %v15181_v3 = vpack.c.bf16 %v6852_v45, %v6851_v48  ;;  %v20566_v40 = vld [vmem:[#allocation2 + $0x9a] sm:$0xff]  ;;  %v20581_v48 = vld [vmem:[#allocation2 + $0xca] sm:$0xff] }
 0x7a5   :  { %22961 = vst [vmem:[#allocation18_spill] sm:$0xff] %v20581_v48  ;;  %v20584_v45 = vld [vmem:[#allocation2 + $0xda] sm:$0xff] }
 0x7a6   :  { %13918 = vmatmul.mubr.f32.gmra.mrb[8].mxu1 %v20554_v23  ;;  %v7367_v23 = vld [vmem:[#allocation3 + $0x200] sm:$0xff]  ;;  %22962 = vst [vmem:[#allocation21_spill] sm:$0xff] %v20584_v45 }
 0x7a7   :  { %13920 = vmatprep.mubr.f32.mxu1 %v20557_v28  ;;  %15172 = vmatpush3.bf16.msra.mxu1 %v15169_v29  ;;  %v7368_v28 = vld [vmem:[#allocation3 + $0x208] sm:$0xff]  ;;  %v20574_v29 = vld [vmem:[#allocation2 + $0xb2] sm:$0xff] }
 0x7a8   :  { %15174 = vmatprep.subr.bf16.mxu1 %v15173_v19  ;;  %v20572_v57 = vpack.c.bf16 %v7368_v28, %v7367_v23  ;;  %22959 = vst [vmem:[#allocation16_spill] sm:$0xff] %v20574_v29  ;;  %v20587_v23 = vld [vmem:[#allocation2 + $0xe2] sm:$0xff]  ;;  %v20590_v28 = vld [vmem:[#allocation2 + $0xf2] sm:$0xff] }
 0x7a9   :  { %22963 = vst [vmem:[#allocation20_spill] sm:$0xff] %v20587_v23  ;;  %22964 = vst [vmem:[#allocation23_spill] sm:$0xff] %v20590_v28 }
 0x7aa   :  { %13921 = vmatmul.mubr.f32.gmra.mrb[10].mxu1 %v20560_v26 }
 0x7ab   :  { %13923 = vmatprep.mubr.f32.mxu1 %v20563_v58  ;;  %15176 = vmatpush3.bf16.msra.mxu1 %v15173_v19  ;;  %v20577_v19 = vld [vmem:[#allocation2 + $0xc2] sm:$0xff] }
 0x7ac   :  { %15178 = vmatprep.subr.bf16.mxu1 %v15177_v54  ;;  %22960 = vst [vmem:[#allocation19_spill] sm:$0xff] %v20577_v19 }
 0x7ae   :  { %13924 = vmatmul.mubr.f32.gmra.mrb[12].mxu1 %v20566_v40 }
 0x7af   :  { %13926 = vmatprep.mubr.f32.mxu1 %v20569_v37  ;;  %15180 = vmatpush3.bf16.msra.mxu1 %v15177_v54  ;;  %v20593_v54 = vld [vmem:[#allocation2 + $0xfa] sm:$0xff]  ;;  %v7372_v37 = vld [vmem:[#allocation3 + $0x228] sm:$0xff] }
 0x7b0   :  { %15182 = vmatprep.subr.bf16.mxu1 %v15181_v3  ;;  %22965 = vst [vmem:[#allocation22_spill] sm:$0xff] %v20593_v54 }
 0x7b2   :  { %13927 = vmatmul.mubr.f32.gmra.mrb[14].mxu1 %v20574_v29  ;;  %v7371_v29 = vld [vmem:[#allocation3 + $0x220] sm:$0xff] }
 0x7b3   :  { %13929 = vmatprep.mubr.f32.mxu1 %v20577_v19  ;;  %15184 = vmatpush3.bf16.msra.mxu1 %v15181_v3  ;;  %v20596_v3 = vld [vmem:[#allocation2 + $0x10a] sm:$0xff]  ;;  %v20623_v19 = vld [vmem:[#allocation2 + $0x172] sm:$0xff] }
 0x7b4   :  { %15186 = vmatprep.subr.bf16.mxu1 %v20572_v57  ;;  %22966 = vst [vmem:[#allocation25_spill] sm:$0xff] %v20596_v3  ;;  %22975 = vst [vmem:[#allocation29_spill] sm:$0xff] %v20623_v19 }
 0x7b6   :  { %13930 = vmatmul.mubr.f32.gmra.mrb[16].mxu1 %v20581_v48  ;;  %v20599_v48 = vld [vmem:[#allocation2 + $0x112] sm:$0xff] }
 0x7b7   :  { %13932 = vmatprep.mubr.f32.mxu1 %v20584_v45  ;;  %22967 = vst [vmem:[#allocation24_spill] sm:$0xff] %v20599_v48  ;;  %v20602_v45 = vld [vmem:[#allocation2 + $0x122] sm:$0xff] }
 0x7b8   :  { %22968 = vst [vmem:[#allocation27_spill] sm:$0xff] %v20602_v45 }
 0x7ba   :  { %13933 = vmatmul.mubr.f32.gmra.mrb[18].mxu1 %v20587_v23  ;;  %v20605_v23 = vld [vmem:[#allocation2 + $0x12a] sm:$0xff] }
 0x7bb   :  { %13935 = vmatprep.mubr.f32.mxu1 %v20590_v28  ;;  %22969 = vst [vmem:[#allocation26_spill] sm:$0xff] %v20605_v23  ;;  %v20608_v28 = vld [vmem:[#allocation2 + $0x13a] sm:$0xff] }
 0x7bc   :  { %22970 = vst [vmem:[#allocation37_spill] sm:$0xff] %v20608_v28 }
 0x7be   :  { %13936 = vmatmul.mubr.f32.gmra.mrb[20].mxu1 %v20593_v54  ;;  %v20611_v54 = vld [vmem:[#allocation2 + $0x142] sm:$0xff] }
 0x7bf   :  { %13938 = vmatprep.mubr.f32.mxu1 %v20596_v3  ;;  %22971 = vst [vmem:[#allocation38_spill] sm:$0xff] %v20611_v54  ;;  %v20614_v3 = vld [vmem:[#allocation2 + $0x152] sm:$0xff] }
 0x7c0   :  { %22972 = vst [vmem:[#allocation41_spill] sm:$0xff] %v20614_v3 }
 0x7c2   :  { %13939 = vmatmul.mubr.f32.gmra.mrb[22].mxu1 %v20599_v48  ;;  %v20617_v48 = vld [vmem:[#allocation2 + $0x15a] sm:$0xff] }
 0x7c3   :  { %13941 = vmatprep.mubr.f32.mxu1 %v20602_v45  ;;  %22973 = vst [vmem:[#allocation50_spill] sm:$0xff] %v20617_v48  ;;  %v20620_v45 = vld [vmem:[#allocation2 + $0x16a] sm:$0xff] }
 0x7c4   :  { %22974 = vst [vmem:[#allocation28_spill] sm:$0xff] %v20620_v45 }
 0x7c6   :  { %13942 = vmatmul.mubr.f32.gmra.mrb[24].mxu1 %v20605_v23  ;;  %v6274_v23 = vld [vmem:[#allocation2 + $0x1b2] sm:$0xff] }
 0x7c7   :  { %13944 = vmatprep.mubr.f32.mxu1 %v20608_v28  ;;  %v6275_v28 = vld [vmem:[#allocation2 + $0x1ba] sm:$0xff] }
 0x7ca   :  { %13945 = vmatmul.mubr.f32.gmra.mrb[26].mxu1 %v20611_v54  ;;  %v20626_v54 = vld [vmem:[#allocation2 + $0x1ca] sm:$0xff] }
 0x7cb   :  { %13947 = vmatprep.mubr.f32.mxu1 %v20614_v3  ;;  %22976 = vst [vmem:[#allocation30_spill] sm:$0xff] %v20626_v54  ;;  %v20629_v3 = vld [vmem:[#allocation2 + $0x1d2] sm:$0xff] }
 0x7cc   :  { %22977 = vst [vmem:[#allocation31_spill] sm:$0xff] %v20629_v3 }
 0x7ce   :  { %13948 = vmatmul.mubr.f32.gmra.mrb[28].mxu1 %v20617_v48  ;;  %v20632_v48 = vld [vmem:[#allocation2 + $0x1e2] sm:$0xff] }
 0x7cf   :  { %13950 = vmatprep.mubr.f32.mxu1 %v20620_v45  ;;  %22978 = vst [vmem:[#allocation32_spill] sm:$0xff] %v20632_v48  ;;  %v20635_v45 = vld [vmem:[#allocation2 + $0x1ea] sm:$0xff] }
 0x7d0   :  { %22979 = vst [vmem:[#allocation33_spill] sm:$0xff] %v20635_v45 }
 0x7d2   :  { %13951 = vmatmul.mubr.f32.gmra.mrb[30].mxu1 %v20623_v19  ;;  %v20638_v19 = vld [vmem:[#allocation2 + $0x1fa] sm:$0xff] }
 0x7d3   :  { %13953 = vmatprep.mubr.f32.mxu1 %v6274_v23  ;;  %22980 = vst [vmem:[#allocation34_spill] sm:$0xff] %v20638_v19  ;;  %v20641_v23 = vld [vmem:[#allocation2 + $0x202] sm:$0xff] }
 0x7d4   :  { %22981 = vst [vmem:[#allocation35_spill] sm:$0xff] %v20641_v23 }
 0x7d6   :  { %13954 = vmatmul.mubr.f32.gmra.mrb[32].mxu1 %v6275_v28  ;;  %v20644_v28 = vld [vmem:[#allocation2 + $0x212] sm:$0xff] }
 0x7d7   :  { %13956 = vmatprep.mubr.f32.mxu1 %v20626_v54  ;;  %22982 = vst [vmem:[#allocation36_spill] sm:$0xff] %v20644_v28  ;;  %v7369_v54 = vld [vmem:[#allocation3 + $0x210] sm:$0xff] }
 0x7da   :  { %13957 = vmatmul.mubr.f32.gmra.mrb[34].mxu1 %v20629_v3  ;;  %v20647_v3 = vld [vmem:[#allocation2 + $0x21a] sm:$0xff] }
 0x7db   :  { %13959 = vmatprep.mubr.f32.mxu1 %v20632_v48  ;;  %22983 = vst [vmem:[#allocation39_spill] sm:$0xff] %v20647_v3  ;;  %v20650_v48 = vld [vmem:[#allocation2 + $0x22a] sm:$0xff] }
 0x7dc   :  { %22984 = vst [vmem:[#allocation40_spill] sm:$0xff] %v20650_v48 }
 0x7de   :  { %13960 = vmatmul.mubr.f32.gmra.mrb[36].mxu1 %v20635_v45  ;;  %v20653_v45 = vld [vmem:[#allocation2 + $0x232] sm:$0xff] }
 0x7df   :  { %13962 = vmatprep.mubr.f32.mxu1 %v20638_v19  ;;  %22985 = vst [vmem:[#allocation42_spill] sm:$0xff] %v20653_v45  ;;  %v20656_v19 = vld [vmem:[#allocation2 + $0x242] sm:$0xff] }
 0x7e0   :  { %22986 = vst [vmem:[#allocation43_spill] sm:$0xff] %v20656_v19 }
 0x7e2   :  { %13963 = vmatmul.mubr.f32.gmra.mrb[38].mxu1 %v20641_v23  ;;  %v20659_v23 = vld [vmem:[#allocation2 + $0x24a] sm:$0xff] }
 0x7e3   :  { %13965 = vmatprep.mubr.f32.mxu1 %v20644_v28  ;;  %22987 = vst [vmem:[#allocation44_spill] sm:$0xff] %v20659_v23  ;;  %v20662_v28 = vld [vmem:[#allocation2 + $0x25a] sm:$0xff] }
 0x7e4   :  { %22988 = vst [vmem:[#allocation45_spill] sm:$0xff] %v20662_v28 }
 0x7e6   :  { %13966 = vmatmul.mubr.f32.gmra.mrb[40].mxu1 %v20647_v3  ;;  %v20665_v3 = vld [vmem:[#allocation2 + $0x262] sm:$0xff] }
 0x7e7   :  { %13968 = vmatprep.mubr.f32.mxu1 %v20650_v48  ;;  %22989 = vst [vmem:[#allocation46_spill] sm:$0xff] %v20665_v3  ;;  %v20668_v48 = vld [vmem:[#allocation2 + $0x272] sm:$0xff] }
 0x7e8   :  { %22990 = vst [vmem:[#allocation47_spill] sm:$0xff] %v20668_v48 }
 0x7ea   :  { %13969 = vmatmul.mubr.f32.gmra.mrb[42].mxu1 %v20653_v45  ;;  %v20671_v45 = vld [vmem:[#allocation2 + $0x27a] sm:$0xff] }
 0x7eb   :  { %13971 = vmatprep.mubr.f32.mxu1 %v20656_v19  ;;  %22991 = vst [vmem:[#allocation48_spill] sm:$0xff] %v20671_v45  ;;  %v20674_v19 = vld [vmem:[#allocation2 + $0x28a] sm:$0xff] }
 0x7ec   :  { %22992 = vst [vmem:[#allocation49_spill] sm:$0xff] %v20674_v19 }
 0x7ee   :  { %13972 = vmatmul.mubr.f32.gmra.mrb[44].mxu1 %v20659_v23  ;;  %v20677_v23 = vld [vmem:[#allocation2 + $0x292] sm:$0xff] }
 0x7ef   :  { %13974 = vmatprep.mubr.f32.mxu1 %v20662_v28  ;;  %22993 = vst [vmem:[#allocation51_spill] sm:$0xff] %v20677_v23  ;;  %v20680_v28 = vld [vmem:[#allocation2 + $0x2a2] sm:$0xff] }
 0x7f0   :  { %22994 = vst [vmem:[#allocation53_spill] sm:$0xff] %v20680_v28 }
 0x7f2   :  { %13975 = vmatmul.mubr.f32.gmra.mrb[46].mxu1 %v20665_v3  ;;  %v20683_v3 = vld [vmem:[#allocation2 + $0x2aa] sm:$0xff] }
 0x7f3   :  { %13977 = vmatprep.mubr.f32.mxu1 %v20668_v48  ;;  %22995 = vst [vmem:[#allocation54_spill] sm:$0xff] %v20683_v3  ;;  %v20686_v48 = vld [vmem:[#allocation2 + $0x2ba] sm:$0xff] }
 0x7f4   :  { %22996 = vst [vmem:[#allocation55_spill] sm:$0xff] %v20686_v48 }
 0x7f6   :  { %13978 = vmatmul.mubr.f32.gmra.mrb[48].mxu1 %v20671_v45  ;;  %v20689_v45 = vld [vmem:[#allocation2 + $0x2c2] sm:$0xff] }
 0x7f7   :  { %13980 = vmatprep.mubr.f32.mxu1 %v20674_v19  ;;  %22997 = vst [vmem:[#allocation56_spill] sm:$0xff] %v20689_v45  ;;  %v20692_v19 = vld [vmem:[#allocation2 + $0x2d2] sm:$0xff] }
 0x7f8   :  { %22998 = vst [vmem:[#allocation57_spill] sm:$0xff] %v20692_v19 }
 0x7fa   :  { %13981 = vmatmul.mubr.f32.gmra.mrb[50].mxu1 %v20677_v23  ;;  %v20695_v23 = vld [vmem:[#allocation2 + $0x2da] sm:$0xff] }
 0x7fb   :  { %13983 = vmatprep.mubr.f32.mxu1 %v20680_v28  ;;  %22999 = vst [vmem:[#allocation58_spill] sm:$0xff] %v20695_v23  ;;  %v20698_v28 = vld [vmem:[#allocation2 + $0x2ea] sm:$0xff] }
 0x7fc   :  { %23000 = vst [vmem:[#allocation61_spill] sm:$0xff] %v20698_v28 }
 0x7fe   :  { %13984 = vmatmul.mubr.f32.gmra.mrb[52].mxu1 %v20683_v3  ;;  %v20701_v3 = vld [vmem:[#allocation2 + $0x2f2] sm:$0xff] }
 0x7ff   :  { %13986 = vmatprep.mubr.f32.mxu1 %v20686_v48  ;;  %23001 = vst [vmem:[#allocation62_spill] sm:$0xff] %v20701_v3  ;;  %v20704_v48 = vld [vmem:[#allocation2 + $0x302] sm:$0xff] }
 0x800   :  { %23002 = vst [vmem:[#allocation63_spill] sm:$0xff] %v20704_v48 }
 0x802   :  { %13987 = vmatmul.mubr.f32.gmra.mrb[54].mxu1 %v20689_v45  ;;  %v20707_v45 = vld [vmem:[#allocation2 + $0x30a] sm:$0xff] }
 0x803   :  { %13989 = vmatprep.mubr.f32.mxu1 %v20692_v19  ;;  %23003 = vst [vmem:[#allocation64_spill] sm:$0xff] %v20707_v45  ;;  %v20710_v19 = vld [vmem:[#allocation2 + $0x31a] sm:$0xff] }
 0x804   :  { %23004 = vst [vmem:[#allocation65_spill] sm:$0xff] %v20710_v19 }
 0x806   :  { %13990 = vmatmul.mubr.f32.gmra.mrb[56].mxu1 %v20695_v23  ;;  %v20713_v23 = vld [vmem:[#allocation2 + $0x322] sm:$0xff] }
 0x807   :  { %13992 = vmatprep.mubr.f32.mxu1 %v20698_v28  ;;  %v7370_v28 = vld [vmem:[#allocation3 + $0x218] sm:$0xff] }
 0x80a   :  { %13993 = vmatmul.mubr.f32.gmra.mrb[58].mxu1 %v20701_v3  ;;  %v15189_v3 = vpack.c.bf16 %v7370_v28, %v7369_v54  ;;  %v7375_v54 = vld [vmem:[#allocation3 + $0x240] sm:$0xff]  ;;  %v7376_v28 = vld [vmem:[#allocation3 + $0x248] sm:$0xff] }
 0x80b   :  { %13995 = vmatprep.mubr.f32.mxu1 %v20704_v48  ;;  %v7374_v48 = vld [vmem:[#allocation3 + $0x238] sm:$0xff] }
 0x80e   :  { %13996 = vmatmul.mubr.f32.gmra.mrb[60].mxu1 %v20707_v45  ;;  %v15193_v45 = vpack.c.bf16 %v7372_v37, %v7371_v29  ;;  %v7378_v37 = vld [vmem:[#allocation3 + $0x258] sm:$0xff] }
 0x80f   :  { %13998 = vmatprep.mubr.f32.mxu1 %v20710_v19  ;;  %v7373_v19 = vld [vmem:[#allocation3 + $0x230] sm:$0xff]  ;;  %v7382_v29 = vld [vmem:[#allocation3 + $0x278] sm:$0xff] }
 0x812   :  { %13999 = vmatmul.mubr.f32.gmra.mrb[62].mxu1 %v20713_v23 }
 0x813   :  { %14033 = vmatprep.mubr.f32.mxu1 %v20347_v13  ;;  %v15197_v13 = vpack.c.bf16 %v7374_v48, %v7373_v19  ;;  %v7898_v19 = vld [vmem:[#allocation3 + $0x288] sm:$0xff] }
 0x816   :  { %14034 = vmatmul.mubr.f32.vlgmr.msra.gmra.mrb[0].mxu1 %v20351_v41  ;;  %v15201_v41 = vpack.c.bf16 %v7376_v28, %v7375_v54  ;;  %v20823_v54 = vld [vmem:[#allocation2 + $0xa9] sm:$0xff] }
 0x817   :  { %14036 = vmatprep.mubr.f32.mxu1 %v20354_v22  ;;  %15188 = vmatpush3.bf16.msra.mxu1 %v20572_v57  ;;  %v7377_v22 = vld [vmem:[#allocation3 + $0x250] sm:$0xff]  ;;  %v7380_v57 = vld [vmem:[#allocation3 + $0x268] sm:$0xff] }
 0x818   :  { %15190 = vmatprep.subr.bf16.mxu1 %v15189_v3 }
 0x81a   :  { %14037 = vmatmul.mubr.f32.gmra.mrb[2].mxu1 %v20357_v50  ;;  %v15205_v50 = vpack.c.bf16 %v7378_v37, %v7377_v22  ;;  %v8428_v22 = vld [vmem:[#allocation3 + $0x300] sm:$0xff]  ;;  %v8429_v37 = vld [vmem:[#allocation3 + $0x308] sm:$0xff] }
 0x81b   :  { %14039 = vmatprep.mubr.f32.mxu1 %v20360_v39  ;;  %15192 = vmatpush3.bf16.msra.mxu1 %v15189_v3  ;;  %v7379_v39 = vld [vmem:[#allocation3 + $0x260] sm:$0xff]  ;;  %v7911_v3 = vld [vmem:[#allocation3 + $0x2f0] sm:$0xff] }
 0x81c   :  { %15194 = vmatprep.subr.bf16.mxu1 %v15193_v45 }
 0x81e   :  { %14040 = vmatmul.mubr.f32.gmra.mrb[4].mxu1 %v20363_v12  ;;  %v15209_v12 = vpack.c.bf16 %v7380_v57, %v7379_v39  ;;  %v20832_v39 = vpack.c.bf16 %v8429_v37, %v8428_v22  ;;  %v20834_v57 = vld [vmem:[#allocation2 + $0xc9] sm:$0xff]  ;;  %v20949_v22 = vld [vmem:[#allocation2 + $0x2d9] sm:$0xff] }
 0x81f   :  { %14042 = vmatprep.mubr.f32.mxu1 %v20366_v30  ;;  %15196 = vmatpush3.bf16.msra.mxu1 %v15193_v45  ;;  %v7381_v30 = vld [vmem:[#allocation3 + $0x270] sm:$0xff]  ;;  %v20820_v45 = vld [vmem:[#allocation2 + $0x99] sm:$0xff] }
 0x820   :  { %15198 = vmatprep.subr.bf16.mxu1 %v15197_v13  ;;  %v20952_v37 = vld [vmem:[#allocation2 + $0x2e9] sm:$0xff] }
 0x822   :  { %14043 = vmatmul.mubr.f32.gmra.mrb[6].mxu1 %v20369_v36  ;;  %v15213_v36 = vpack.c.bf16 %v7382_v29, %v7381_v30  ;;  %v20841_v30 = vld [vmem:[#allocation2 + $0xe1] sm:$0xff]  ;;  %v20844_v29 = vld [vmem:[#allocation2 + $0xf1] sm:$0xff] }
 0x823   :  { %14045 = vmatprep.mubr.f32.mxu1 %v20372_v38  ;;  %15200 = vmatpush3.bf16.msra.mxu1 %v15197_v13  ;;  %v7897_v38 = vld [vmem:[#allocation3 + $0x280] sm:$0xff]  ;;  %v7912_v13 = vld [vmem:[#allocation3 + $0x2f8] sm:$0xff] }
 0x824   :  { %15202 = vmatprep.subr.bf16.mxu1 %v15201_v41  ;;  %v15245_v28 = vpack.c.bf16 %v7912_v13, %v7911_v3  ;;  %v20940_v3 = vld [vmem:[#allocation2 + $0x2b9] sm:$0xff]  ;;  %v20943_v13 = vld [vmem:[#allocation2 + $0x2c1] sm:$0xff] }
 0x826   :  { %14046 = vmatmul.mubr.f32.gmra.mrb[8].mxu1 %v20375_v42  ;;  %v20732_v42 = vpack.c.bf16 %v7898_v19, %v7897_v38  ;;  %v20850_v38 = vld [vmem:[#allocation2 + $0x109] sm:$0xff]  ;;  %v20853_v19 = vld [vmem:[#allocation2 + $0x111] sm:$0xff] }
 0x827   :  { %14048 = vmatprep.mubr.f32.mxu1 %v20378_v52  ;;  %15204 = vmatpush3.bf16.msra.mxu1 %v15201_v41  ;;  %v20750_v52 = vld [vmem:[#allocation2 + $0x180] sm:$0xff]  ;;  %v20826_v41 = vld [vmem:[#allocation2 + $0xb1] sm:$0xff] }
 0x828   :  { %15206 = vmatprep.subr.bf16.mxu1 %v15205_v50 }
 0x82a   :  { %14049 = vmatmul.mubr.f32.gmra.mrb[10].mxu1 %v20381_v61  ;;  %v20753_v61 = vld [vmem:[#allocation2 + $0x188] sm:$0xff] }
 0x82b   :  { %14051 = vmatprep.mubr.f32.mxu1 %v20384_v34  ;;  %15208 = vmatpush3.bf16.msra.mxu1 %v15205_v50  ;;  %v23005_v34 = vld [vmem:[#allocation69_spill] sm:$0xff] }
 0x82c   :  { %15210 = vmatprep.subr.bf16.mxu1 %v15209_v12  ;;  %v20829_v50 = vld [vmem:[#allocation2 + $0xc1] sm:$0xff] }
 0x82e   :  { %14052 = vmatmul.mubr.f32.gmra.mrb[12].mxu1 %v20389_v18  ;;  %v23006_v18 = vld [vmem:[#allocation70_spill] sm:$0xff] }
 0x82f   :  { %14054 = vmatprep.mubr.f32.mxu1 %v20392_v33  ;;  %15212 = vmatpush3.bf16.msra.mxu1 %v15209_v12  ;;  %v23007_v33 = vld [vmem:[#allocation71_spill] sm:$0xff]  ;;  %v20837_v12 = vld [vmem:[#allocation2 + $0xd9] sm:$0xff] }
 0x830   :  { %15214 = vmatprep.subr.bf16.mxu1 %v15213_v36 }
 0x832   :  { %14055 = vmatmul.mubr.f32.gmra.mrb[14].mxu1 %v20396_v46  ;;  %v23008_v46 = vld [vmem:[#allocation9_spill] sm:$0xff] }
 0x833   :  { %14057 = vmatprep.mubr.f32.mxu1 %v20399_v56  ;;  %15216 = vmatpush3.bf16.msra.mxu1 %v15213_v36  ;;  %v23009_v56 = vld [vmem:[#allocation10_spill] sm:$0xff]  ;;  %v20847_v36 = vld [vmem:[#allocation2 + $0xf9] sm:$0xff]  ;;  %23022 = vst [vmem:[#allocation9_spill] sm:$0xff] %v20940_v3 }
 0x834   :  { %15218 = vmatprep.subr.bf16.mxu1 %v20732_v42  ;;  %23023 = vst [vmem:[#allocation10_spill] sm:$0xff] %v20943_v13 }
 0x836   :  { %14058 = vmatmul.mubr.f32.gmra.mrb[16].mxu1 %v20402_v51  ;;  %v23010_v51 = vld [vmem:[#allocation11_spill] sm:$0xff] }
 0x837   :  { %14060 = vmatprep.mubr.f32.mxu1 %v20405_v2  ;;  %v23011_v2 = vld [vmem:[#allocation12_spill] sm:$0xff] }
 0x838   :  { %23025 = vst [vmem:[#allocation12_spill] sm:$0xff] %v20949_v22 }
 0x83a   :  { %14061 = vmatmul.mubr.f32.gmra.mrb[18].mxu1 %v20408_v17  ;;  %v23012_v17 = vld [vmem:[#allocation13_spill] sm:$0xff] }
 0x83b   :  { %14063 = vmatprep.mubr.f32.mxu1 %v20411_v55  ;;  %v23013_v55 = vld [vmem:[#allocation14_spill] sm:$0xff]  ;;  %23026 = vst [vmem:[#allocation13_spill] sm:$0xff] %v20952_v37 }
 0x83e   :  { %14064 = vmatmul.mubr.f32.gmra.mrb[20].mxu1 %v20414_v6  ;;  %v20786_v6 = vld [vmem:[#allocation2 + $0x330] sm:$0xff] }
 0x83f   :  { %14066 = vmatprep.mubr.f32.mxu1 %v20417_v8  ;;  %v20789_v8 = vld [vmem:[#allocation2 + $0x338] sm:$0xff] }
 0x842   :  { %14067 = vmatmul.mubr.f32.gmra.mrb[22].mxu1 %v20420_v20  ;;  %v7899_v20 = vld [vmem:[#allocation3 + $0x290] sm:$0xff] }
 0x843   :  { %14069 = vmatprep.mubr.f32.mxu1 %v20423_v5  ;;  %v7900_v5 = vld [vmem:[#allocation3 + $0x298] sm:$0xff] }
 0x846   :  { %14070 = vmatmul.mubr.f32.gmra.mrb[24].mxu1 %v20426_v0  ;;  %v7302_v0 = vld [vmem:[#allocation2 + $0x19] sm:$0xff] }
 0x847   :  { %14072 = vmatprep.mubr.f32.mxu1 %v20429_v11  ;;  %v15221_v11 = vpack.c.bf16 %v7900_v5, %v7899_v20  ;;  %v7334_v20 = vld [vmem:[#allocation2 + $0x1c9] sm:$0xff]  ;;  %v7335_v5 = vld [vmem:[#allocation2 + $0x1d1] sm:$0xff] }
 0x84a   :  { %14073 = vmatmul.mubr.f32.gmra.mrb[26].mxu1 %v20432_v43  ;;  %v7303_v43 = vld [vmem:[#allocation2 + $0x21] sm:$0xff] }
 0x84b   :  { %14075 = vmatprep.mubr.f32.mxu1 %v20435_v24  ;;  %v7901_v24 = vld [vmem:[#allocation3 + $0x2a0] sm:$0xff] }
 0x84e   :  { %14076 = vmatmul.mubr.f32.gmra.mrb[28].mxu1 %v20438_v10  ;;  %v7902_v10 = vld [vmem:[#allocation3 + $0x2a8] sm:$0xff] }
 0x84f   :  { %14078 = vmatprep.mubr.f32.mxu1 %v20750_v52 }
 0x852   :  { %14079 = vmatmul.mubr.f32.gmra.mrb[30].mxu1 %v20753_v61 }
 0x853   :  { %14081 = vmatprep.mubr.f32.mxu1 %v20442_v15  ;;  %v20792_v15 = vld [vmem:[#allocation2 + $0x31] sm:$0xff] }
 0x856   :  { %14082 = vmatmul.mubr.f32.gmra.mrb[32].mxu1 %v20445_v31  ;;  %v15225_v31 = vpack.c.bf16 %v7902_v10, %v7901_v24  ;;  %v20895_v24 = vld [vmem:[#allocation2 + $0x201] sm:$0xff]  ;;  %v20898_v10 = vld [vmem:[#allocation2 + $0x211] sm:$0xff] }
 0x857   :  { %14084 = vmatprep.mubr.f32.mxu1 %v20448_v1  ;;  %v20796_v1 = vld [vmem:[#allocation2 + $0x39] sm:$0xff] }
 0x85a   :  { %14085 = vmatmul.mubr.f32.gmra.mrb[34].mxu1 %v20451_v62  ;;  %v7903_v62 = vld [vmem:[#allocation3 + $0x2b0] sm:$0xff] }
 0x85b   :  { %14087 = vmatprep.mubr.f32.mxu1 %v20454_v53  ;;  %v7904_v53 = vld [vmem:[#allocation3 + $0x2b8] sm:$0xff] }
 0x85e   :  { %14088 = vmatmul.mubr.f32.gmra.mrb[36].mxu1 %v20457_v32  ;;  %v20799_v32 = vld [vmem:[#allocation2 + $0x49] sm:$0xff] }
 0x85f   :  { %14090 = vmatprep.mubr.f32.mxu1 %v20460_v27  ;;  %v15229_v27 = vpack.c.bf16 %v7904_v53, %v7903_v62  ;;  %v20904_v62 = vld [vmem:[#allocation2 + $0x229] sm:$0xff]  ;;  %v20907_v53 = vld [vmem:[#allocation2 + $0x231] sm:$0xff] }
 0x862   :  { %14091 = vmatmul.mubr.f32.gmra.mrb[38].mxu1 %v20463_v59  ;;  %v20802_v59 = vld [vmem:[#allocation2 + $0x51] sm:$0xff] }
 0x863   :  { %14093 = vmatprep.mubr.f32.mxu1 %v20466_v47  ;;  %v7905_v47 = vld [vmem:[#allocation3 + $0x2c0] sm:$0xff] }
 0x866   :  { %14094 = vmatmul.mubr.f32.gmra.mrb[40].mxu1 %v20469_v21  ;;  %v7906_v21 = vld [vmem:[#allocation3 + $0x2c8] sm:$0xff] }
 0x867   :  { %14096 = vmatprep.mubr.f32.mxu1 %v20472_v44  ;;  %v20805_v44 = vld [vmem:[#allocation2 + $0x61] sm:$0xff] }
 0x86a   :  { %14097 = vmatmul.mubr.f32.gmra.mrb[42].mxu1 %v20475_v49  ;;  %v15233_v49 = vpack.c.bf16 %v7906_v21, %v7905_v47  ;;  %v20913_v47 = vld [vmem:[#allocation2 + $0x249] sm:$0xff]  ;;  %v20916_v21 = vld [vmem:[#allocation2 + $0x259] sm:$0xff] }
 0x86b   :  { %14099 = vmatprep.mubr.f32.mxu1 %v20478_v63  ;;  %v20808_v63 = vld [vmem:[#allocation2 + $0x69] sm:$0xff]  ;;  %23014 = vst [vmem:[#allocation66_spill] sm:$0xff] %v20916_v21 }
 0x86e   :  { %14100 = vmatmul.mubr.f32.gmra.mrb[44].mxu1 %v20481_v25  ;;  %v7907_v25 = vld [vmem:[#allocation3 + $0x2d0] sm:$0xff] }
 0x86f   :  { %14102 = vmatprep.mubr.f32.mxu1 %v20484_v16  ;;  %v7908_v16 = vld [vmem:[#allocation3 + $0x2d8] sm:$0xff] }
 0x872   :  { %14103 = vmatmul.mubr.f32.gmra.mrb[46].mxu1 %v20487_v14  ;;  %v20811_v14 = vld [vmem:[#allocation2 + $0x79] sm:$0xff] }
 0x873   :  { %14105 = vmatprep.mubr.f32.mxu1 %v20490_v60  ;;  %v15237_v60 = vpack.c.bf16 %v7908_v16, %v7907_v25  ;;  %v20922_v25 = vld [vmem:[#allocation2 + $0x271] sm:$0xff]  ;;  %v20925_v16 = vld [vmem:[#allocation2 + $0x279] sm:$0xff] }
 0x874   :  { %23016 = vst [vmem:[#allocation68_spill] sm:$0xff] %v20922_v25  ;;  %23017 = vst [vmem:[#allocation59_spill] sm:$0xff] %v20925_v16 }
 0x876   :  { %14106 = vmatmul.mubr.f32.gmra.mrb[48].mxu1 %v20493_v4  ;;  %v20814_v4 = vld [vmem:[#allocation2 + $0x81] sm:$0xff] }
 0x877   :  { %14108 = vmatprep.mubr.f32.mxu1 %v20496_v35  ;;  %v7909_v35 = vld [vmem:[#allocation3 + $0x2e0] sm:$0xff] }
 0x87a   :  { %14109 = vmatmul.mubr.f32.gmra.mrb[50].mxu1 %v20499_v7  ;;  %v7910_v7 = vld [vmem:[#allocation3 + $0x2e8] sm:$0xff] }
 0x87b   :  { %14111 = vmatprep.mubr.f32.mxu1 %v23005_v34  ;;  %v15241_v48 = vpack.c.bf16 %v7910_v7, %v7909_v35  ;;  %v20859_v34 = vld [vmem:[#allocation2 + $0x129] sm:$0xff]  ;;  %v20931_v35 = vld [vmem:[#allocation2 + $0x291] sm:$0xff]  ;;  %v20934_v7 = vld [vmem:[#allocation2 + $0x2a1] sm:$0xff] }
 0x87c   :  { %23019 = vst [vmem:[#allocation69_spill] sm:$0xff] %v20931_v35  ;;  %23020 = vst [vmem:[#allocation70_spill] sm:$0xff] %v20934_v7 }
 0x87e   :  { %14112 = vmatmul.mubr.f32.gmra.mrb[52].mxu1 %v23006_v18  ;;  %v20862_v18 = vld [vmem:[#allocation2 + $0x139] sm:$0xff] }
 0x87f   :  { %14114 = vmatprep.mubr.f32.mxu1 %v23007_v33  ;;  %v20865_v33 = vld [vmem:[#allocation2 + $0x141] sm:$0xff] }
 0x882   :  { %14115 = vmatmul.mubr.f32.gmra.mrb[54].mxu1 %v23008_v46  ;;  %v20868_v46 = vld [vmem:[#allocation2 + $0x151] sm:$0xff] }
 0x883   :  { %14117 = vmatprep.mubr.f32.mxu1 %v23009_v56  ;;  %v20871_v56 = vld [vmem:[#allocation2 + $0x159] sm:$0xff] }
 0x886   :  { %14118 = vmatmul.mubr.f32.gmra.mrb[56].mxu1 %v23010_v51  ;;  %v20874_v51 = vld [vmem:[#allocation2 + $0x169] sm:$0xff] }
 0x887   :  { %14120 = vmatprep.mubr.f32.mxu1 %v23011_v2  ;;  %v20877_v2 = vld [vmem:[#allocation2 + $0x171] sm:$0xff] }
 0x88a   :  { %14121 = vmatmul.mubr.f32.gmra.mrb[58].mxu1 %v23012_v17  ;;  %v20880_v17 = vld [vmem:[#allocation2 + $0x181] sm:$0xff] }
 0x88b   :  { %14123 = vmatprep.mubr.f32.mxu1 %v23013_v55  ;;  %v20883_v55 = vld [vmem:[#allocation2 + $0x189] sm:$0xff] }
 0x88e   :  { %14124 = vmatmul.mubr.f32.gmra.mrb[60].mxu1 %v20529_v9  ;;  %v20817_v9 = vld [vmem:[#allocation2 + $0x91] sm:$0xff] }
 0x88f   :  { %14126 = vmatprep.mubr.f32.mxu1 %v20786_v6 }
 0x892   :  { %14127 = vmatmul.mubr.f32.gmra.mrb[62].mxu1 %v20789_v8 }
 0x893   :  { %14161 = vmatprep.mubr.f32.mxu1 %v7302_v0  ;;  %v20886_v0 = vld [vmem:[#allocation2 + $0x1e1] sm:$0xff] }
 0x896   :  { %14162 = vmatmul.mubr.f32.vlgmr.msra.gmra.mrb[0].mxu1 %v7303_v43  ;;  %v20892_v43 = vld [vmem:[#allocation2 + $0x1f9] sm:$0xff] }
 0x897   :  { %14164 = vmatprep.mubr.f32.mxu1 %v20792_v15  ;;  %15220 = vmatpush3.bf16.msra.mxu1 %v20732_v42  ;;  %v20856_v42 = vld [vmem:[#allocation2 + $0x121] sm:$0xff] }
 0x898   :  { %15222 = vmatprep.subr.bf16.mxu1 %v15221_v11 }
 0x89a   :  { %14165 = vmatmul.mubr.f32.gmra.mrb[2].mxu1 %v20796_v1 }
 0x89b   :  { %14167 = vmatprep.mubr.f32.mxu1 %v20799_v32  ;;  %15224 = vmatpush3.bf16.msra.mxu1 %v15221_v11  ;;  %v20889_v11 = vld [vmem:[#allocation2 + $0x1e9] sm:$0xff] }
 0x89c   :  { %15226 = vmatprep.subr.bf16.mxu1 %v15225_v31 }
 0x89e   :  { %14168 = vmatmul.mubr.f32.gmra.mrb[4].mxu1 %v20802_v59 }
 0x89f   :  { %14170 = vmatprep.mubr.f32.mxu1 %v20805_v44  ;;  %15228 = vmatpush3.bf16.msra.mxu1 %v15225_v31  ;;  %v20901_v31 = vld [vmem:[#allocation2 + $0x219] sm:$0xff] }
 0x8a0   :  { %15230 = vmatprep.subr.bf16.mxu1 %v15229_v27 }
 0x8a2   :  { %14171 = vmatmul.mubr.f32.gmra.mrb[6].mxu1 %v20808_v63 }
 0x8a3   :  { %14173 = vmatprep.mubr.f32.mxu1 %v20811_v14  ;;  %15232 = vmatpush3.bf16.msra.mxu1 %v15229_v27  ;;  %v20910_v27 = vld [vmem:[#allocation2 + $0x241] sm:$0xff] }
 0x8a4   :  { %15234 = vmatprep.subr.bf16.mxu1 %v15233_v49 }
 0x8a6   :  { %14174 = vmatmul.mubr.f32.gmra.mrb[8].mxu1 %v20814_v4 }
 0x8a7   :  { %14176 = vmatprep.mubr.f32.mxu1 %v20817_v9  ;;  %15236 = vmatpush3.bf16.msra.mxu1 %v15233_v49  ;;  %v20919_v49 = vld [vmem:[#allocation2 + $0x261] sm:$0xff] }
 0x8a8   :  { %15238 = vmatprep.subr.bf16.mxu1 %v15237_v60  ;;  %23015 = vst [vmem:[#allocation67_spill] sm:$0xff] %v20919_v49 }
 0x8aa   :  { %14177 = vmatmul.mubr.f32.gmra.mrb[10].mxu1 %v20820_v45 }
 0x8ab   :  { %14179 = vmatprep.mubr.f32.mxu1 %v20823_v54  ;;  %15240 = vmatpush3.bf16.msra.mxu1 %v15237_v60  ;;  %v20928_v60 = vld [vmem:[#allocation2 + $0x289] sm:$0xff] }
 0x8ac   :  { %15242 = vmatprep.subr.bf16.mxu1 %v15241_v48  ;;  %23018 = vst [vmem:[#allocation60_spill] sm:$0xff] %v20928_v60 }
 0x8ae   :  { %14180 = vmatmul.mubr.f32.gmra.mrb[12].mxu1 %v20826_v41 }
 0x8af   :  { %14182 = vmatprep.mubr.f32.mxu1 %v20829_v50  ;;  %15244 = vmatpush3.bf16.msra.mxu1 %v15241_v48  ;;  %v20937_v48 = vld [vmem:[#allocation2 + $0x2a9] sm:$0xff] }
 0x8b0   :  { %15246 = vmatprep.subr.bf16.mxu1 %v15245_v28  ;;  %23021 = vst [vmem:[#allocation71_spill] sm:$0xff] %v20937_v48 }
 0x8b2   :  { %14183 = vmatmul.mubr.f32.gmra.mrb[14].mxu1 %v20834_v57 }
 0x8b3   :  { %14185 = vmatprep.mubr.f32.mxu1 %v20837_v12  ;;  %15248 = vmatpush3.bf16.msra.mxu1 %v15245_v28  ;;  %v20946_v28 = vld [vmem:[#allocation2 + $0x2d1] sm:$0xff] }
 0x8b4   :  { %15250 = vmatprep.subr.bf16.mxu1 %v20832_v39  ;;  %23024 = vst [vmem:[#allocation11_spill] sm:$0xff] %v20946_v28 }
 0x8b6   :  { %14186 = vmatmul.mubr.f32.gmra.mrb[16].mxu1 %v20841_v30 }
 0x8b7   :  { %14188 = vmatprep.mubr.f32.mxu1 %v20844_v29 }
 0x8ba   :  { %14189 = vmatmul.mubr.f32.gmra.mrb[18].mxu1 %v20847_v36 }
 0x8bb   :  { %14191 = vmatprep.mubr.f32.mxu1 %v20850_v38 }
 0x8be   :  { %14192 = vmatmul.mubr.f32.gmra.mrb[20].mxu1 %v20853_v19 }
 0x8bf   :  { %14194 = vmatprep.mubr.f32.mxu1 %v20856_v42 }
 0x8c2   :  { %14195 = vmatmul.mubr.f32.gmra.mrb[22].mxu1 %v20859_v34 }
 0x8c3   :  { %14197 = vmatprep.mubr.f32.mxu1 %v20862_v18 }
 0x8c6   :  { %14198 = vmatmul.mubr.f32.gmra.mrb[24].mxu1 %v20865_v33 }
 0x8c7   :  { %14200 = vmatprep.mubr.f32.mxu1 %v20868_v46 }
 0x8ca   :  { %14201 = vmatmul.mubr.f32.gmra.mrb[26].mxu1 %v20871_v56 }
 0x8cb   :  { %14203 = vmatprep.mubr.f32.mxu1 %v20874_v51 }
 0x8ce   :  { %14204 = vmatmul.mubr.f32.gmra.mrb[28].mxu1 %v20877_v2 }
 0x8cf   :  { %14206 = vmatprep.mubr.f32.mxu1 %v20880_v17 }
 0x8d2   :  { %14207 = vmatmul.mubr.f32.gmra.mrb[30].mxu1 %v20883_v55 }
 0x8d3   :  { %14209 = vmatprep.mubr.f32.mxu1 %v7334_v20  ;;  %v20955_v20 = vld [vmem:[#allocation2 + $0x2f1] sm:$0xff] }
 0x8d4   :  { %23027 = vst [vmem:[#allocation14_spill] sm:$0xff] %v20955_v20 }
 0x8d6   :  { %14210 = vmatmul.mubr.f32.gmra.mrb[32].mxu1 %v7335_v5  ;;  %v20958_v5 = vld [vmem:[#allocation2 + $0x301] sm:$0xff] }
 0x8d7   :  { %14212 = vmatprep.mubr.f32.mxu1 %v20886_v0  ;;  %23028 = vst [vmem:[#allocation80_spill] sm:$0xff] %v20958_v5 }
 0x8da   :  { %14213 = vmatmul.mubr.f32.gmra.mrb[34].mxu1 %v20889_v11 }
 0x8db   :  { %14215 = vmatprep.mubr.f32.mxu1 %v20892_v43 }
 0x8de   :  { %14216 = vmatmul.mubr.f32.gmra.mrb[36].mxu1 %v20895_v24 }
 0x8df   :  { %14218 = vmatprep.mubr.f32.mxu1 %v20898_v10 }
 0x8e2   :  { %14219 = vmatmul.mubr.f32.gmra.mrb[38].mxu1 %v20901_v31 }
 0x8e3   :  { %14221 = vmatprep.mubr.f32.mxu1 %v20904_v62 }
 0x8e6   :  { %14222 = vmatmul.mubr.f32.gmra.mrb[40].mxu1 %v20907_v53 }
 0x8e7   :  { %14224 = vmatprep.mubr.f32.mxu1 %v20910_v27 }
 0x8ea   :  { %14225 = vmatmul.mubr.f32.gmra.mrb[42].mxu1 %v20913_v47 }
 0x8eb   :  { %14227 = vmatprep.mubr.f32.mxu1 %v20916_v21  ;;  %v23042_v21 = vld [vmem:[#allocation15_spill] sm:$0xff] }
 0x8ee   :  { %14228 = vmatmul.mubr.f32.gmra.mrb[44].mxu1 %v20919_v49  ;;  %v23038_v49 = vld [vmem:[#allocation76_spill] sm:$0xff] }
 0x8ef   :  { %14230 = vmatprep.mubr.f32.mxu1 %v20922_v25  ;;  %v23037_v25 = vld [vmem:[#allocation75_spill] sm:$0xff] }
 0x8f2   :  { %14231 = vmatmul.mubr.f32.gmra.mrb[46].mxu1 %v20925_v16  ;;  %v8435_v16 = vld [vmem:[#allocation3 + $0x338] sm:$0xff] }
 0x8f3   :  { %14233 = vmatprep.mubr.f32.mxu1 %v20928_v60  ;;  %v23036_v60 = vld [vmem:[#allocation74_spill] sm:$0xff] }
 0x8f6   :  { %14234 = vmatmul.mubr.f32.gmra.mrb[48].mxu1 %v20931_v35  ;;  %v8433_v35 = vld [vmem:[#allocation3 + $0x328] sm:$0xff] }
 0x8f7   :  { %14236 = vmatprep.mubr.f32.mxu1 %v20934_v7  ;;  %v8432_v7 = vld [vmem:[#allocation3 + $0x320] sm:$0xff] }
 0x8fa   :  { %14237 = vmatmul.mubr.f32.gmra.mrb[50].mxu1 %v20937_v48  ;;  %v23034_v48 = vld [vmem:[#allocation72_spill] sm:$0xff] }
 0x8fb   :  { %14239 = vmatprep.mubr.f32.mxu1 %v20940_v3  ;;  %v8430_v3 = vld [vmem:[#allocation3 + $0x310] sm:$0xff] }
 0x8fe   :  { %14240 = vmatmul.mubr.f32.gmra.mrb[52].mxu1 %v20943_v13  ;;  %v20961_v13 = vld [vmem:[#allocation2 + $0x309] sm:$0xff] }
 0x8ff   :  { %14242 = vmatprep.mubr.f32.mxu1 %v20946_v28  ;;  %23029 = vst [vmem:[#allocation81_spill] sm:$0xff] %v20961_v13  ;;  %v20964_v28 = vld [vmem:[#allocation2 + $0x319] sm:$0xff] }
 0x900   :  { %23030 = vst [vmem:[#allocation82_spill] sm:$0xff] %v20964_v28 }
 0x902   :  { %14243 = vmatmul.mubr.f32.gmra.mrb[54].mxu1 %v20949_v22  ;;  %v20967_v22 = vld [vmem:[#allocation2 + $0x321] sm:$0xff] }
 0x903   :  { %14245 = vmatprep.mubr.f32.mxu1 %v20952_v37  ;;  %23031 = vst [vmem:[#allocation83_spill] sm:$0xff] %v20967_v22  ;;  %v20970_v37 = vld [vmem:[#allocation2 + $0x331] sm:$0xff] }
 0x904   :  { %23032 = vst [vmem:[#allocation84_spill] sm:$0xff] %v20970_v37 }
 0x906   :  { %14246 = vmatmul.mubr.f32.gmra.mrb[56].mxu1 %v20955_v20  ;;  %v20973_v20 = vld [vmem:[#allocation2 + $0x339] sm:$0xff] }
 0x907   :  { %14248 = vmatprep.mubr.f32.mxu1 %v20958_v5  ;;  %23033 = vst [vmem:[#allocation85_spill] sm:$0xff] %v20973_v20  ;;  %v8431_v5 = vld [vmem:[#allocation3 + $0x318] sm:$0xff] }
 0x90a   :  { %14249 = vmatmul.mubr.f32.gmra.mrb[58].mxu1 %v20961_v13  ;;  %v15253_v13 = vpack.c.bf16 %v8431_v5, %v8430_v3  ;;  %v8436_v3 = vld [vmem:[#allocation3 + $0x340] sm:$0xff]  ;;  %v8437_v5 = vld [vmem:[#allocation3 + $0x348] sm:$0xff] }
 0x90b   :  { %14251 = vmatprep.mubr.f32.mxu1 %v20964_v28  ;;  %v23035_v28 = vld [vmem:[#allocation73_spill] sm:$0xff] }
 0x90e   :  { %14252 = vmatmul.mubr.f32.gmra.mrb[60].mxu1 %v20967_v22  ;;  %v15257_v22 = vpack.c.bf16 %v8433_v35, %v8432_v7  ;;  %v8439_v35 = vld [vmem:[#allocation3 + $0x358] sm:$0xff]  ;;  %v23041_v7 = vld [vmem:[#allocation79_spill] sm:$0xff] }
 0x90f   :  { %14254 = vmatprep.mubr.f32.mxu1 %v20970_v37  ;;  %v8434_v37 = vld [vmem:[#allocation3 + $0x330] sm:$0xff] }
 0x912   :  { %14255 = vmatmul.mubr.f32.gmra.mrb[62].mxu1 %v20973_v20  ;;  %v23039_v20 = vld [vmem:[#allocation77_spill] sm:$0xff] }
 0x913   :  { %14289 = vmatprep.mubr.f32.mxu1 %v23034_v48  ;;  %v15261_v48 = vpack.c.bf16 %v8435_v16, %v8434_v37  ;;  %v8441_v16 = vld [vmem:[#allocation3 + $0x368] sm:$0xff]  ;;  %v8443_v37 = vld [vmem:[#allocation3 + $0x378] sm:$0xff] }
 0x916   :  { %14290 = vmatmul.mubr.f32.vlgmr.msra.gmra.mrb[0].mxu1 %v23035_v28  ;;  %v23040_v28 = vld [vmem:[#allocation78_spill] sm:$0xff] }
 0x917   :  { %14292 = vmatprep.mubr.f32.mxu1 %v23036_v60  ;;  %15252 = vmatpush3.bf16.msra.mxu1 %v20832_v39  ;;  %v15265_v39 = vpack.c.bf16 %v8437_v5, %v8436_v3  ;;  %v8438_v60 = vld [vmem:[#allocation3 + $0x350] sm:$0xff]  ;;  %v8959_v3 = vld [vmem:[#allocation3 + $0x388] sm:$0xff]  ;;  %v23044_v5 = vld [vmem:[#allocation16_spill] sm:$0xff] }
 0x918   :  { %15254 = vmatprep.subr.bf16.mxu1 %v15253_v13 }
 0x91a   :  { %14293 = vmatmul.mubr.f32.gmra.mrb[2].mxu1 %v23037_v25  ;;  %v8440_v25 = vld [vmem:[#allocation3 + $0x360] sm:$0xff] }
 0x91b   :  { %14295 = vmatprep.mubr.f32.mxu1 %v23038_v49  ;;  %15256 = vmatpush3.bf16.msra.mxu1 %v15253_v13  ;;  %v15269_v49 = vpack.c.bf16 %v8439_v35, %v8438_v60  ;;  %v15273_v13 = vpack.c.bf16 %v8441_v16, %v8440_v25  ;;  %v23049_v60 = vld [vmem:[#allocation23_spill] sm:$0xff]  ;;  %v23050_v35 = vld [vmem:[#allocation22_spill] sm:$0xff] }
 0x91c   :  { %15258 = vmatprep.subr.bf16.mxu1 %v15257_v22  ;;  %v23053_v25 = vld [vmem:[#allocation27_spill] sm:$0xff]  ;;  %v23054_v16 = vld [vmem:[#allocation26_spill] sm:$0xff] }
 0x91e   :  { %14296 = vmatmul.mubr.f32.gmra.mrb[4].mxu1 %v23039_v20  ;;  %v23043_v20 = vld [vmem:[#allocation17_spill] sm:$0xff] }
 0x91f   :  { %14298 = vmatprep.mubr.f32.mxu1 %v23040_v28  ;;  %15260 = vmatpush3.bf16.msra.mxu1 %v15257_v22  ;;  %v8442_v22 = vld [vmem:[#allocation3 + $0x370] sm:$0xff] }
 0x920   :  { %15262 = vmatprep.subr.bf16.mxu1 %v15261_v48  ;;  %v23045_v28 = vld [vmem:[#allocation19_spill] sm:$0xff] }
 0x922   :  { %14299 = vmatmul.mubr.f32.gmra.mrb[6].mxu1 %v23041_v7  ;;  %v23051_v7 = vld [vmem:[#allocation25_spill] sm:$0xff] }
 0x923   :  { %14301 = vmatprep.mubr.f32.mxu1 %v23042_v21  ;;  %15264 = vmatpush3.bf16.msra.mxu1 %v15261_v48  ;;  %v15277_v21 = vpack.c.bf16 %v8443_v37, %v8442_v22  ;;  %v8958_v48 = vld [vmem:[#allocation3 + $0x380] sm:$0xff]  ;;  %v23056_v22 = vld [vmem:[#allocation38_spill] sm:$0xff] }
 0x924   :  { %15266 = vmatprep.subr.bf16.mxu1 %v15265_v39  ;;  %v23057_v37 = vld [vmem:[#allocation41_spill] sm:$0xff] }
 0x926   :  { %14302 = vmatmul.mubr.f32.gmra.mrb[8].mxu1 %v20560_v26  ;;  %v20992_v26 = vpack.c.bf16 %v8959_v3, %v8958_v48  ;;  %v23060_v48 = vld [vmem:[#allocation29_spill] sm:$0xff] }
 0x927   :  { %14304 = vmatprep.mubr.f32.mxu1 %v20563_v58  ;;  %15268 = vmatpush3.bf16.msra.mxu1 %v15265_v39  ;;  %v23046_v58 = vld [vmem:[#allocation18_spill] sm:$0xff]  ;;  %v23047_v39 = vld [vmem:[#allocation21_spill] sm:$0xff] }
 0x928   :  { %15270 = vmatprep.subr.bf16.mxu1 %v15269_v49  ;;  %v21010_v3 = vld [vmem:[#allocation2 + $0x182] sm:$0xff] }
 0x92a   :  { %14305 = vmatmul.mubr.f32.gmra.mrb[10].mxu1 %v20566_v40  ;;  %v23048_v40 = vld [vmem:[#allocation20_spill] sm:$0xff] }
 0x92b   :  { %14307 = vmatprep.mubr.f32.mxu1 %v23043_v20  ;;  %15272 = vmatpush3.bf16.msra.mxu1 %v15269_v49  ;;  %v23052_v49 = vld [vmem:[#allocation24_spill] sm:$0xff]  ;;  %v23058_v20 = vld [vmem:[#allocation50_spill] sm:$0xff] }
 0x92c   :  { %15274 = vmatprep.subr.bf16.mxu1 %v15273_v13 }
 0x92e   :  { %14308 = vmatmul.mubr.f32.gmra.mrb[12].mxu1 %v23044_v5  ;;  %v21013_v5 = vld [vmem:[#allocation2 + $0x18a] sm:$0xff] }
 0x92f   :  { %14310 = vmatprep.mubr.f32.mxu1 %v23045_v28  ;;  %15276 = vmatpush3.bf16.msra.mxu1 %v15273_v13  ;;  %v23055_v13 = vld [vmem:[#allocation37_spill] sm:$0xff]  ;;  %v23061_v28 = vld [vmem:[#allocation30_spill] sm:$0xff] }
 0x930   :  { %15278 = vmatprep.subr.bf16.mxu1 %v15277_v21 }
 0x932   :  { %14311 = vmatmul.mubr.f32.gmra.mrb[14].mxu1 %v23046_v58  ;;  %v23062_v58 = vld [vmem:[#allocation31_spill] sm:$0xff] }
 0x933   :  { %14313 = vmatprep.mubr.f32.mxu1 %v23047_v39  ;;  %15280 = vmatpush3.bf16.msra.mxu1 %v15277_v21  ;;  %v23059_v21 = vld [vmem:[#allocation28_spill] sm:$0xff] }
 0x934   :  { %15282 = vmatprep.subr.bf16.mxu1 %v20992_v26  ;;  %v23063_v39 = vld [vmem:[#allocation32_spill] sm:$0xff] }
 0x936   :  { %14314 = vmatmul.mubr.f32.gmra.mrb[16].mxu1 %v23048_v40  ;;  %v23064_v40 = vld [vmem:[#allocation33_spill] sm:$0xff] }
 0x937   :  { %14316 = vmatprep.mubr.f32.mxu1 %v23049_v60  ;;  %v23065_v60 = vld [vmem:[#allocation34_spill] sm:$0xff] }
 0x93a   :  { %14317 = vmatmul.mubr.f32.gmra.mrb[18].mxu1 %v23050_v35  ;;  %v23066_v35 = vld [vmem:[#allocation35_spill] sm:$0xff] }
 0x93b   :  { %14319 = vmatprep.mubr.f32.mxu1 %v23051_v7  ;;  %v23067_v7 = vld [vmem:[#allocation36_spill] sm:$0xff] }
 0x93e   :  { %14320 = vmatmul.mubr.f32.gmra.mrb[20].mxu1 %v23052_v49  ;;  %v23068_v49 = vld [vmem:[#allocation39_spill] sm:$0xff] }
 0x93f   :  { %14322 = vmatprep.mubr.f32.mxu1 %v23053_v25  ;;  %v23069_v25 = vld [vmem:[#allocation40_spill] sm:$0xff] }
 0x942   :  { %14323 = vmatmul.mubr.f32.gmra.mrb[22].mxu1 %v23054_v16  ;;  %v23070_v16 = vld [vmem:[#allocation42_spill] sm:$0xff] }
 0x943   :  { %14325 = vmatprep.mubr.f32.mxu1 %v23055_v13  ;;  %v23071_v13 = vld [vmem:[#allocation43_spill] sm:$0xff] }
 0x946   :  { %14326 = vmatmul.mubr.f32.gmra.mrb[24].mxu1 %v23056_v22  ;;  %v23072_v22 = vld [vmem:[#allocation44_spill] sm:$0xff] }
 0x947   :  { %14328 = vmatprep.mubr.f32.mxu1 %v23057_v37  ;;  %v23073_v37 = vld [vmem:[#allocation45_spill] sm:$0xff] }
 0x94a   :  { %14329 = vmatmul.mubr.f32.gmra.mrb[26].mxu1 %v23058_v20  ;;  %v23074_v20 = vld [vmem:[#allocation46_spill] sm:$0xff] }
 0x94b   :  { %14331 = vmatprep.mubr.f32.mxu1 %v23059_v21  ;;  %v23075_v21 = vld [vmem:[#allocation47_spill] sm:$0xff] }
 0x94e   :  { %14332 = vmatmul.mubr.f32.gmra.mrb[28].mxu1 %v23060_v48  ;;  %v23076_v48 = vld [vmem:[#allocation48_spill] sm:$0xff] }
 0x94f   :  { %14334 = vmatprep.mubr.f32.mxu1 %v21010_v3 }
 0x952   :  { %14335 = vmatmul.mubr.f32.gmra.mrb[30].mxu1 %v21013_v5 }
 0x953   :  { %14337 = vmatprep.mubr.f32.mxu1 %v23061_v28  ;;  %v23077_v28 = vld [vmem:[#allocation49_spill] sm:$0xff] }
 0x956   :  { %14338 = vmatmul.mubr.f32.gmra.mrb[32].mxu1 %v23062_v58  ;;  %v23078_v58 = vld [vmem:[#allocation51_spill] sm:$0xff] }
 0x957   :  { %14340 = vmatprep.mubr.f32.mxu1 %v23063_v39  ;;  %v23079_v39 = vld [vmem:[#allocation53_spill] sm:$0xff] }
 0x95a   :  { %14341 = vmatmul.mubr.f32.gmra.mrb[34].mxu1 %v23064_v40  ;;  %v23080_v40 = vld [vmem:[#allocation54_spill] sm:$0xff] }
 0x95b   :  { %14343 = vmatprep.mubr.f32.mxu1 %v23065_v60  ;;  %v23081_v60 = vld [vmem:[#allocation55_spill] sm:$0xff] }
 0x95e   :  { %14344 = vmatmul.mubr.f32.gmra.mrb[36].mxu1 %v23066_v35  ;;  %v23082_v35 = vld [vmem:[#allocation56_spill] sm:$0xff] }
 0x95f   :  { %14346 = vmatprep.mubr.f32.mxu1 %v23067_v7  ;;  %v23083_v7 = vld [vmem:[#allocation57_spill] sm:$0xff] }
 0x962   :  { %14347 = vmatmul.mubr.f32.gmra.mrb[38].mxu1 %v23068_v49  ;;  %v23084_v49 = vld [vmem:[#allocation58_spill] sm:$0xff] }
 0x963   :  { %14349 = vmatprep.mubr.f32.mxu1 %v23069_v25  ;;  %v23085_v25 = vld [vmem:[#allocation61_spill] sm:$0xff] }
 0x966   :  { %14350 = vmatmul.mubr.f32.gmra.mrb[40].mxu1 %v23070_v16  ;;  %v23086_v16 = vld [vmem:[#allocation62_spill] sm:$0xff] }
 0x967   :  { %14352 = vmatprep.mubr.f32.mxu1 %v23071_v13  ;;  %v23087_v13 = vld [vmem:[#allocation63_spill] sm:$0xff] }
 0x96a   :  { %14353 = vmatmul.mubr.f32.gmra.mrb[42].mxu1 %v23072_v22  ;;  %v23088_v22 = vld [vmem:[#allocation64_spill] sm:$0xff] }
 0x96b   :  { %14355 = vmatprep.mubr.f32.mxu1 %v23073_v37  ;;  %v23089_v37 = vld [vmem:[#allocation65_spill] sm:$0xff] }
 0x96e   :  { %14356 = vmatmul.mubr.f32.gmra.mrb[44].mxu1 %v23074_v20  ;;  %v21046_v20 = vld [vmem:[#allocation2 + $0x332] sm:$0xff] }
 0x96f   :  { %14358 = vmatprep.mubr.f32.mxu1 %v23075_v21  ;;  %v21049_v21 = vld [vmem:[#allocation2 + $0x33a] sm:$0xff] }
 0x972   :  { %14359 = vmatmul.mubr.f32.gmra.mrb[46].mxu1 %v23076_v48  ;;  %v8960_v48 = vld [vmem:[#allocation3 + $0x390] sm:$0xff] }
 0x973   :  { %14361 = vmatprep.mubr.f32.mxu1 %v23077_v28  ;;  %v8961_v28 = vld [vmem:[#allocation3 + $0x398] sm:$0xff] }
 0x976   :  { %14362 = vmatmul.mubr.f32.gmra.mrb[48].mxu1 %v23078_v58  ;;  %v8363_v58 = vld [vmem:[#allocation2 + $0x30] sm:$0xff] }
 0x977   :  { %14364 = vmatprep.mubr.f32.mxu1 %v23079_v39  ;;  %v15285_v39 = vpack.c.bf16 %v8961_v28, %v8960_v48  ;;  %v8966_v48 = vld [vmem:[#allocation3 + $0x3c0] sm:$0xff]  ;;  %v8967_v28 = vld [vmem:[#allocation3 + $0x3c8] sm:$0xff] }
 0x97a   :  { %14365 = vmatmul.mubr.f32.gmra.mrb[50].mxu1 %v23080_v40  ;;  %v8364_v40 = vld [vmem:[#allocation2 + $0x38] sm:$0xff] }
 0x97b   :  { %14367 = vmatprep.mubr.f32.mxu1 %v23081_v60  ;;  %v8962_v60 = vld [vmem:[#allocation3 + $0x3a0] sm:$0xff] }
 0x97e   :  { %14368 = vmatmul.mubr.f32.gmra.mrb[52].mxu1 %v23082_v35  ;;  %v8963_v35 = vld [vmem:[#allocation3 + $0x3a8] sm:$0xff] }
 0x97f   :  { %14370 = vmatprep.mubr.f32.mxu1 %v23083_v7  ;;  %v8365_v7 = vld [vmem:[#allocation2 + $0x48] sm:$0xff] }
 0x982   :  { %14371 = vmatmul.mubr.f32.gmra.mrb[54].mxu1 %v23084_v49  ;;  %v8366_v49 = vld [vmem:[#allocation2 + $0x50] sm:$0xff] }
 0x983   :  { %14373 = vmatprep.mubr.f32.mxu1 %v23085_v25  ;;  %v8964_v25 = vld [vmem:[#allocation3 + $0x3b0] sm:$0xff] }
 0x986   :  { %14374 = vmatmul.mubr.f32.gmra.mrb[56].mxu1 %v23086_v16  ;;  %v8965_v16 = vld [vmem:[#allocation3 + $0x3b8] sm:$0xff] }
 0x987   :  { %14376 = vmatprep.mubr.f32.mxu1 %v23087_v13  ;;  %v8367_v13 = vld [vmem:[#allocation2 + $0x60] sm:$0xff] }
 0x98a   :  { %14377 = vmatmul.mubr.f32.gmra.mrb[58].mxu1 %v23088_v22  ;;  %v15293_v22 = vpack.c.bf16 %v8965_v16, %v8964_v25  ;;  %v8970_v25 = vld [vmem:[#allocation3 + $0x3e0] sm:$0xff]  ;;  %v8971_v16 = vld [vmem:[#allocation3 + $0x3e8] sm:$0xff] }
 0x98b   :  { %14379 = vmatprep.mubr.f32.mxu1 %v23089_v37  ;;  %v8368_v37 = vld [vmem:[#allocation2 + $0x68] sm:$0xff] }
 0x98e   :  { %14380 = vmatmul.mubr.f32.gmra.mrb[60].mxu1 %v20713_v23  ;;  %v15289_v23 = vpack.c.bf16 %v8963_v35, %v8962_v60  ;;  %v8968_v60 = vld [vmem:[#allocation3 + $0x3d0] sm:$0xff]  ;;  %v8969_v35 = vld [vmem:[#allocation3 + $0x3d8] sm:$0xff] }
 0x98f   :  { %14382 = vmatprep.mubr.f32.mxu1 %v21046_v20 }
 0x992   :  { %14383 = vmatmul.mubr.f32.gmra.mrb[62].mxu1 %v21049_v21 }
 0x993   :  { %14417 = vmatprep.mubr.f32.mxu1 %v8363_v58  ;;  %v8369_v58 = vld [vmem:[#allocation2 + $0x78] sm:$0xff] }
 0x996   :  { %14418 = vmatmul.mubr.f32.vlgmr.msra.gmra.mrb[0].mxu1 %v8364_v40  ;;  %v8370_v40 = vld [vmem:[#allocation2 + $0x80] sm:$0xff] }
 0x997   :  { %14420 = vmatprep.mubr.f32.mxu1 %v8365_v7  ;;  %15284 = vmatpush3.bf16.msra.mxu1 %v20992_v26  ;;  %v15297_v26 = vpack.c.bf16 %v8967_v28, %v8966_v48  ;;  %v8371_v7 = vld [vmem:[#allocation2 + $0x90] sm:$0xff]  ;;  %v8973_v28 = vld [vmem:[#allocation3 + $0x3f8] sm:$0xff] }
 0x998   :  { %15286 = vmatprep.subr.bf16.mxu1 %v15285_v39  ;;  %v8972_v48 = vld [vmem:[#allocation3 + $0x3f0] sm:$0xff] }
 0x99a   :  { %14421 = vmatmul.mubr.f32.gmra.mrb[2].mxu1 %v8366_v49  ;;  %v8372_v49 = vld [vmem:[#allocation2 + $0x98] sm:$0xff] }
 0x99b   :  { %14423 = vmatprep.mubr.f32.mxu1 %v8367_v13  ;;  %15288 = vmatpush3.bf16.msra.mxu1 %v15285_v39  ;;  %v15301_v39 = vpack.c.bf16 %v8969_v35, %v8968_v60  ;;  %v8373_v13 = vld [vmem:[#allocation2 + $0xa8] sm:$0xff]  ;;  %v9488_v60 = vld [vmem:[#allocation3 + $0x400] sm:$0xff] }
 0x99c   :  { %15290 = vmatprep.subr.bf16.mxu1 %v15289_v23  ;;  %v9489_v35 = vld [vmem:[#allocation3 + $0x408] sm:$0xff] }
 0x99e   :  { %14424 = vmatmul.mubr.f32.gmra.mrb[4].mxu1 %v8368_v37  ;;  %v8374_v37 = vld [vmem:[#allocation2 + $0xb0] sm:$0xff] }
 0x99f   :  { %14426 = vmatprep.mubr.f32.mxu1 %v8369_v58  ;;  %15292 = vmatpush3.bf16.msra.mxu1 %v15289_v23  ;;  %v15305_v23 = vpack.c.bf16 %v8971_v16, %v8970_v25  ;;  %v8375_v58 = vld [vmem:[#allocation2 + $0xc0] sm:$0xff]  ;;  %v8379_v25 = vld [vmem:[#allocation2 + $0xf0] sm:$0xff]  ;;  %v8381_v16 = vld [vmem:[#allocation2 + $0x108] sm:$0xff] }
 0x9a0   :  { %15294 = vmatprep.subr.bf16.mxu1 %v15293_v22 }
 0x9a2   :  { %14427 = vmatmul.mubr.f32.gmra.mrb[6].mxu1 %v8370_v40  ;;  %v8376_v40 = vld [vmem:[#allocation2 + $0xc8] sm:$0xff] }
 0x9a3   :  { %14429 = vmatprep.mubr.f32.mxu1 %v8371_v7  ;;  %15296 = vmatpush3.bf16.msra.mxu1 %v15293_v22  ;;  %v15309_v22 = vpack.c.bf16 %v8973_v28, %v8972_v48  ;;  %v8377_v7 = vld [vmem:[#allocation2 + $0xd8] sm:$0xff]  ;;  %v8384_v48 = vld [vmem:[#allocation2 + $0x128] sm:$0xff]  ;;  %v8386_v28 = vld [vmem:[#allocation2 + $0x140] sm:$0xff] }
 0x9a4   :  { %15298 = vmatprep.subr.bf16.mxu1 %v15297_v26 }
 0x9a6   :  { %14430 = vmatmul.mubr.f32.gmra.mrb[8].mxu1 %v8372_v49  ;;  %v8378_v49 = vld [vmem:[#allocation2 + $0xe0] sm:$0xff] }
 0x9a7   :  { %14432 = vmatprep.mubr.f32.mxu1 %v8373_v13  ;;  %15300 = vmatpush3.bf16.msra.mxu1 %v15297_v26  ;;  %v21053_v26 = vpack.c.bf16 %v9489_v35, %v9488_v60  ;;  %v8382_v13 = vld [vmem:[#allocation2 + $0x110] sm:$0xff]  ;;  %v8393_v35 = vld [vmem:[#allocation2 + $0x198] sm:$0xff] }
 0x9a8   :  { %15302 = vmatprep.subr.bf16.mxu1 %v15301_v39  ;;  %v8390_v60 = vld [vmem:[#allocation2 + $0x170] sm:$0xff] }
 0x9aa   :  { %14433 = vmatmul.mubr.f32.gmra.mrb[10].mxu1 %v8374_v37  ;;  %v8383_v37 = vld [vmem:[#allocation2 + $0x120] sm:$0xff] }
 0x9ab   :  { %14435 = vmatprep.mubr.f32.mxu1 %v8375_v58  ;;  %15304 = vmatpush3.bf16.msra.mxu1 %v15301_v39  ;;  %v8380_v39 = vld [vmem:[#allocation2 + $0xf8] sm:$0xff]  ;;  %v8387_v58 = vld [vmem:[#allocation2 + $0x150] sm:$0xff] }
 0x9ac   :  { %15306 = vmatprep.subr.bf16.mxu1 %v15305_v23 }
 0x9ae   :  { %14436 = vmatmul.mubr.f32.gmra.mrb[12].mxu1 %v8376_v40  ;;  %v8388_v40 = vld [vmem:[#allocation2 + $0x158] sm:$0xff] }
 0x9af   :  { %14438 = vmatprep.mubr.f32.mxu1 %v8377_v7  ;;  %15308 = vmatpush3.bf16.msra.mxu1 %v15305_v23  ;;  %v8385_v23 = vld [vmem:[#allocation2 + $0x138] sm:$0xff]  ;;  %v21058_v7 = vld [vmem:[#allocation2 + $0x8] sm:$0xff] }
 0x9b0   :  { %15310 = vmatprep.subr.bf16.mxu1 %v15309_v22 }
 0x9b2   :  { %14439 = vmatmul.mubr.f32.gmra.mrb[14].mxu1 %v8378_v49  ;;  %v8395_v49 = vld [vmem:[#allocation2 + $0x1e0] sm:$0xff] }
 0x9b3   :  { %14441 = vmatprep.mubr.f32.mxu1 %v8379_v25  ;;  %15312 = vmatpush3.bf16.msra.mxu1 %v15309_v22  ;;  %v8389_v22 = vld [vmem:[#allocation2 + $0x168] sm:$0xff] }
 0x9b4   :  { %15314 = vmatprep.subr.bf16.mxu1 %v21053_v26  ;;  %v8396_v25 = vld [vmem:[#allocation2 + $0x1e8] sm:$0xff] }
 0x9b6   :  { %14442 = vmatmul.mubr.f32.gmra.mrb[16].mxu1 %v8380_v39  ;;  %v8397_v39 = vld [vmem:[#allocation2 + $0x1f8] sm:$0xff] }
 0x9b7   :  { %14444 = vmatprep.mubr.f32.mxu1 %v8381_v16  ;;  %v8398_v16 = vld [vmem:[#allocation2 + $0x200] sm:$0xff] }
 0x9ba   :  { %14445 = vmatmul.mubr.f32.gmra.mrb[18].mxu1 %v8382_v13  ;;  %v8399_v13 = vld [vmem:[#allocation2 + $0x210] sm:$0xff] }
 0x9bb   :  { %14447 = vmatprep.mubr.f32.mxu1 %v8383_v37  ;;  %v8400_v37 = vld [vmem:[#allocation2 + $0x218] sm:$0xff] }
 0x9be   :  { %14448 = vmatmul.mubr.f32.gmra.mrb[20].mxu1 %v8384_v48  ;;  %v8403_v48 = vld [vmem:[#allocation2 + $0x240] sm:$0xff] }
 0x9bf   :  { %14450 = vmatprep.mubr.f32.mxu1 %v8385_v23  ;;  %v8404_v23 = vld [vmem:[#allocation2 + $0x248] sm:$0xff] }
 0x9c2   :  { %14451 = vmatmul.mubr.f32.gmra.mrb[22].mxu1 %v8386_v28  ;;  %v8405_v28 = vld [vmem:[#allocation2 + $0x258] sm:$0xff] }
 0x9c3   :  { %14453 = vmatprep.mubr.f32.mxu1 %v8387_v58  ;;  %v8406_v58 = vld [vmem:[#allocation2 + $0x260] sm:$0xff] }
 0x9c6   :  { %14454 = vmatmul.mubr.f32.gmra.mrb[24].mxu1 %v8388_v40  ;;  %v8407_v40 = vld [vmem:[#allocation2 + $0x270] sm:$0xff] }
 0x9c7   :  { %14456 = vmatprep.mubr.f32.mxu1 %v8389_v22  ;;  %v8408_v22 = vld [vmem:[#allocation2 + $0x278] sm:$0xff] }
 0x9ca   :  { %14457 = vmatmul.mubr.f32.gmra.mrb[26].mxu1 %v8390_v60  ;;  %v8409_v60 = vld [vmem:[#allocation2 + $0x288] sm:$0xff] }
 0x9cb   :  { %14459 = vmatprep.mubr.f32.mxu1 %v20750_v52  ;;  %v8401_v52 = vld [vmem:[#allocation2 + $0x228] sm:$0xff] }
 0x9ce   :  { %14460 = vmatmul.mubr.f32.gmra.mrb[28].mxu1 %v20753_v61  ;;  %v8402_v61 = vld [vmem:[#allocation2 + $0x230] sm:$0xff] }
 0x9cf   :  { %14462 = vmatprep.mubr.f32.mxu1 %v8393_v35  ;;  %v8410_v35 = vld [vmem:[#allocation2 + $0x290] sm:$0xff] }
 0x9d2   :  { %14463 = vmatmul.mubr.f32.gmra.mrb[30].mxu1 %v21058_v7 }
 0x9d3   :  { %14465 = vmatprep.mubr.f32.mxu1 %v8395_v49  ;;  %v8411_v49 = vld [vmem:[#allocation2 + $0x2a0] sm:$0xff] }
 0x9d6   :  { %14466 = vmatmul.mubr.f32.gmra.mrb[32].mxu1 %v8396_v25  ;;  %v8412_v25 = vld [vmem:[#allocation2 + $0x2a8] sm:$0xff] }
 0x9d7   :  { %14468 = vmatprep.mubr.f32.mxu1 %v8397_v39  ;;  %v8413_v39 = vld [vmem:[#allocation2 + $0x2b8] sm:$0xff] }
 0x9da   :  { %14469 = vmatmul.mubr.f32.gmra.mrb[34].mxu1 %v8398_v16  ;;  %v8414_v16 = vld [vmem:[#allocation2 + $0x2c0] sm:$0xff] }
 0x9db   :  { %14471 = vmatprep.mubr.f32.mxu1 %v8399_v13  ;;  %v8415_v13 = vld [vmem:[#allocation2 + $0x2d0] sm:$0xff] }
 0x9de   :  { %14472 = vmatmul.mubr.f32.gmra.mrb[36].mxu1 %v8400_v37  ;;  %v8416_v37 = vld [vmem:[#allocation2 + $0x2d8] sm:$0xff] }
 0x9df   :  { %14474 = vmatprep.mubr.f32.mxu1 %v8401_v52  ;;  %v8417_v52 = vld [vmem:[#allocation2 + $0x2e8] sm:$0xff] }
 0x9e2   :  { %14475 = vmatmul.mubr.f32.gmra.mrb[38].mxu1 %v8402_v61  ;;  %v8418_v61 = vld [vmem:[#allocation2 + $0x2f0] sm:$0xff] }
 0x9e3   :  { %14477 = vmatprep.mubr.f32.mxu1 %v8403_v48  ;;  %v8419_v48 = vld [vmem:[#allocation2 + $0x300] sm:$0xff] }
 0x9e6   :  { %14478 = vmatmul.mubr.f32.gmra.mrb[40].mxu1 %v8404_v23  ;;  %v8420_v23 = vld [vmem:[#allocation2 + $0x308] sm:$0xff] }
 0x9e7   :  { %14480 = vmatprep.mubr.f32.mxu1 %v8405_v28  ;;  %v8421_v28 = vld [vmem:[#allocation2 + $0x318] sm:$0xff] }
 0x9ea   :  { %14481 = vmatmul.mubr.f32.gmra.mrb[42].mxu1 %v8406_v58  ;;  %v8422_v58 = vld [vmem:[#allocation2 + $0x320] sm:$0xff] }
 0x9eb   :  { %14483 = vmatprep.mubr.f32.mxu1 %v8407_v40  ;;  %v8425_v40 = vld [vmem:[#allocation2 + $0x348] sm:$0xff] }
 0x9ee   :  { %14484 = vmatmul.mubr.f32.gmra.mrb[44].mxu1 %v8408_v22  ;;  %v9490_v22 = vld [vmem:[#allocation3 + $0x410] sm:$0xff] }
 0x9ef   :  { %14486 = vmatprep.mubr.f32.mxu1 %v8409_v60  ;;  %v9491_v60 = vld [vmem:[#allocation3 + $0x418] sm:$0xff] }
 0x9f2   :  { %14487 = vmatmul.mubr.f32.gmra.mrb[46].mxu1 %v8410_v35  ;;  %v15317_v35 = vpack.c.bf16 %v9491_v60, %v9490_v22  ;;  %v9438_v22 = vld [vmem:[#allocation2 + $0xe2] sm:$0xff]  ;;  %v9439_v60 = vld [vmem:[#allocation2 + $0xf2] sm:$0xff] }
 0x9f3   :  { %14489 = vmatprep.mubr.f32.mxu1 %v8411_v49  ;;  %v9492_v49 = vld [vmem:[#allocation3 + $0x420] sm:$0xff] }
 0x9f6   :  { %14490 = vmatmul.mubr.f32.gmra.mrb[48].mxu1 %v8412_v25  ;;  %v9493_v25 = vld [vmem:[#allocation3 + $0x428] sm:$0xff] }
 0x9f7   :  { %14492 = vmatprep.mubr.f32.mxu1 %v8413_v39  ;;  %v9494_v39 = vld [vmem:[#allocation3 + $0x430] sm:$0xff] }
 0x9fa   :  { %14493 = vmatmul.mubr.f32.gmra.mrb[50].mxu1 %v8414_v16  ;;  %v9497_v16 = vld [vmem:[#allocation3 + $0x448] sm:$0xff] }
 0x9fb   :  { %14495 = vmatprep.mubr.f32.mxu1 %v8415_v13  ;;  %v9501_v13 = vld [vmem:[#allocation3 + $0x468] sm:$0xff] }
 0x9fe   :  { %14496 = vmatmul.mubr.f32.gmra.mrb[52].mxu1 %v8416_v37  ;;  %v9503_v37 = vld [vmem:[#allocation3 + $0x478] sm:$0xff] }
 0x9ff   :  { %14498 = vmatprep.mubr.f32.mxu1 %v8417_v52  ;;  %v9431_v52 = vld [vmem:[#allocation2 + $0x92] sm:$0xff] }
 0xa02   :  { %14499 = vmatmul.mubr.f32.gmra.mrb[54].mxu1 %v8418_v61  ;;  %v9432_v61 = vld [vmem:[#allocation2 + $0x9a] sm:$0xff] }
 0xa03   :  { %14501 = vmatprep.mubr.f32.mxu1 %v8419_v48  ;;  %v9433_v48 = vld [vmem:[#allocation2 + $0xaa] sm:$0xff] }
 0xa06   :  { %14502 = vmatmul.mubr.f32.gmra.mrb[56].mxu1 %v8420_v23  ;;  %v9434_v23 = vld [vmem:[#allocation2 + $0xb2] sm:$0xff] }
 0xa07   :  { %14504 = vmatprep.mubr.f32.mxu1 %v8421_v28  ;;  %v9435_v28 = vld [vmem:[#allocation2 + $0xc2] sm:$0xff] }
 0xa0a   :  { %14505 = vmatmul.mubr.f32.gmra.mrb[58].mxu1 %v8422_v58  ;;  %v9436_v58 = vld [vmem:[#allocation2 + $0xca] sm:$0xff] }
 0xa0b   :  { %14507 = vmatprep.mubr.f32.mxu1 %v20786_v6  ;;  %v15321_v6 = vpack.c.bf16 %v9493_v25, %v9492_v49  ;;  %v9441_v49 = vld [vmem:[#allocation2 + $0x10a] sm:$0xff]  ;;  %v9442_v25 = vld [vmem:[#allocation2 + $0x112] sm:$0xff] }
 0xa0e   :  { %14508 = vmatmul.mubr.f32.gmra.mrb[60].mxu1 %v20789_v8  ;;  %v9495_v8 = vld [vmem:[#allocation3 + $0x438] sm:$0xff] }
 0xa0f   :  { %14510 = vmatprep.mubr.f32.mxu1 %v8425_v40  ;;  %v9437_v40 = vld [vmem:[#allocation2 + $0xda] sm:$0xff] }
 0xa12   :  { %14511 = vmatmul.mubr.f32.gmra.mrb[62].mxu1 %v21058_v7  ;;  %v9496_v7 = vld [vmem:[#allocation3 + $0x440] sm:$0xff] }
 0xa13   :  { %14545 = vmatprep.mubr.f32.mxu1 %v20792_v15  ;;  %v15325_v15 = vpack.c.bf16 %v9495_v8, %v9494_v39  ;;  %v9444_v39 = vld [vmem:[#allocation2 + $0x12a] sm:$0xff]  ;;  %v9445_v8 = vld [vmem:[#allocation2 + $0x13a] sm:$0xff] }
 0xa16   :  { %14546 = vmatmul.mubr.f32.vlgmr.msra.gmra.mrb[0].mxu1 %v20796_v1  ;;  %v15329_v1 = vpack.c.bf16 %v9497_v16, %v9496_v7  ;;  %v9447_v7 = vld [vmem:[#allocation2 + $0x152] sm:$0xff]  ;;  %v9448_v16 = vld [vmem:[#allocation2 + $0x15a] sm:$0xff] }
 0xa17   :  { %14548 = vmatprep.mubr.f32.mxu1 %v20799_v32  ;;  %15316 = vmatpush3.bf16.msra.mxu1 %v21053_v26  ;;  %v9498_v32 = vld [vmem:[#allocation3 + $0x450] sm:$0xff]  ;;  %v9499_v26 = vld [vmem:[#allocation3 + $0x458] sm:$0xff] }
 0xa18   :  { %15318 = vmatprep.subr.bf16.mxu1 %v15317_v35 }
 0xa1a   :  { %14549 = vmatmul.mubr.f32.gmra.mrb[2].mxu1 %v20802_v59  ;;  %v15333_v59 = vpack.c.bf16 %v9499_v26, %v9498_v32  ;;  %v9450_v32 = vld [vmem:[#allocation2 + $0x172] sm:$0xff]  ;;  %v9453_v26 = vld [vmem:[#allocation2 + $0x19a] sm:$0xff] }
 0xa1b   :  { %14551 = vmatprep.mubr.f32.mxu1 %v20805_v44  ;;  %15320 = vmatpush3.bf16.msra.mxu1 %v15317_v35  ;;  %v9500_v44 = vld [vmem:[#allocation3 + $0x460] sm:$0xff] }
 0xa1c   :  { %15322 = vmatprep.subr.bf16.mxu1 %v15321_v6  ;;  %v9440_v35 = vld [vmem:[#allocation2 + $0xfa] sm:$0xff] }
 0xa1e   :  { %14552 = vmatmul.mubr.f32.gmra.mrb[4].mxu1 %v20808_v63  ;;  %v15337_v63 = vpack.c.bf16 %v9501_v13, %v9500_v44  ;;  %v9455_v44 = vld [vmem:[#allocation2 + $0x1e2] sm:$0xff]  ;;  %v9456_v13 = vld [vmem:[#allocation2 + $0x1ea] sm:$0xff] }
 0xa1f   :  { %14554 = vmatprep.mubr.f32.mxu1 %v20811_v14  ;;  %15324 = vmatpush3.bf16.msra.mxu1 %v15321_v6  ;;  %v9502_v14 = vld [vmem:[#allocation3 + $0x470] sm:$0xff]  ;;  %v9443_v6 = vld [vmem:[#allocation2 + $0x122] sm:$0xff] }
 0xa20   :  { %15326 = vmatprep.subr.bf16.mxu1 %v15325_v15 }
 0xa22   :  { %14555 = vmatmul.mubr.f32.gmra.mrb[6].mxu1 %v20814_v4  ;;  %v15341_v4 = vpack.c.bf16 %v9503_v37, %v9502_v14  ;;  %v9458_v14 = vld [vmem:[#allocation2 + $0x202] sm:$0xff]  ;;  %v9459_v37 = vld [vmem:[#allocation2 + $0x212] sm:$0xff] }
 0xa23   :  { %14557 = vmatprep.mubr.f32.mxu1 %v20817_v9  ;;  %15328 = vmatpush3.bf16.msra.mxu1 %v15325_v15  ;;  %v8923_v9 = vld [vmem:[#allocation2 + $0x199] sm:$0xff]  ;;  %v9446_v15 = vld [vmem:[#allocation2 + $0x142] sm:$0xff] }
 0xa24   :  { %15330 = vmatprep.subr.bf16.mxu1 %v15329_v1 }
 0xa26   :  { %14558 = vmatmul.mubr.f32.gmra.mrb[8].mxu1 %v20820_v45  ;;  %v8924_v45 = vld [vmem:[#allocation2 + $0x1a1] sm:$0xff] }
 0xa27   :  { %14560 = vmatprep.mubr.f32.mxu1 %v20823_v54  ;;  %15332 = vmatpush3.bf16.msra.mxu1 %v15329_v1  ;;  %v23090_v54 = vld [vmem:[#allocation66_spill] sm:$0xff] }
 0xa28   :  { %15334 = vmatprep.subr.bf16.mxu1 %v15333_v59  ;;  %v9449_v1 = vld [vmem:[#allocation2 + $0x16a] sm:$0xff] }
 0xa2a   :  { %14561 = vmatmul.mubr.f32.gmra.mrb[10].mxu1 %v20826_v41  ;;  %v23091_v41 = vld [vmem:[#allocation67_spill] sm:$0xff] }
 0xa2b   :  { %14563 = vmatprep.mubr.f32.mxu1 %v20829_v50  ;;  %15336 = vmatpush3.bf16.msra.mxu1 %v15333_v59  ;;  %v23092_v50 = vld [vmem:[#allocation68_spill] sm:$0xff]  ;;  %v9454_v59 = vld [vmem:[#allocation2 + $0x1a2] sm:$0xff] }
 0xa2c   :  { %15338 = vmatprep.subr.bf16.mxu1 %v15337_v63 }
 0xa2e   :  { %14564 = vmatmul.mubr.f32.gmra.mrb[12].mxu1 %v20834_v57  ;;  %v23093_v57 = vld [vmem:[#allocation59_spill] sm:$0xff] }
 0xa2f   :  { %14566 = vmatprep.mubr.f32.mxu1 %v20837_v12  ;;  %15340 = vmatpush3.bf16.msra.mxu1 %v15337_v63  ;;  %v23094_v12 = vld [vmem:[#allocation60_spill] sm:$0xff] }
 0xa30   :  { %15342 = vmatprep.subr.bf16.mxu1 %v15341_v4  ;;  %v9457_v63 = vld [vmem:[#allocation2 + $0x1fa] sm:$0xff] }
 0xa32   :  { %14567 = vmatmul.mubr.f32.gmra.mrb[14].mxu1 %v20841_v30  ;;  %v23095_v30 = vld [vmem:[#allocation69_spill] sm:$0xff] }
 0xa33   :  { %14569 = vmatprep.mubr.f32.mxu1 %v20844_v29  ;;  %15344 = vmatpush3.bf16.msra.mxu1 %v15341_v4  ;;  %v23096_v29 = vld [vmem:[#allocation70_spill] sm:$0xff]  ;;  %v9460_v4 = vld [vmem:[#allocation2 + $0x21a] sm:$0xff] }
 0xa36   :  { %14570 = vmatmul.mubr.f32.gmra.mrb[16].mxu1 %v20847_v36  ;;  %v23097_v36 = vld [vmem:[#allocation71_spill] sm:$0xff] }
 0xa37   :  { %14572 = vmatprep.mubr.f32.mxu1 %v20850_v38  ;;  %v23098_v38 = vld [vmem:[#allocation9_spill] sm:$0xff] }
 0xa3a   :  { %14573 = vmatmul.mubr.f32.gmra.mrb[18].mxu1 %v20853_v19  ;;  %v23099_v19 = vld [vmem:[#allocation10_spill] sm:$0xff] }
 0xa3b   :  { %14575 = vmatprep.mubr.f32.mxu1 %v20856_v42  ;;  %v23100_v42 = vld [vmem:[#allocation11_spill] sm:$0xff] }
 0xa3e   :  { %14576 = vmatmul.mubr.f32.gmra.mrb[20].mxu1 %v20859_v34  ;;  %v23101_v34 = vld [vmem:[#allocation12_spill] sm:$0xff] }
 0xa3f   :  { %14578 = vmatprep.mubr.f32.mxu1 %v20862_v18  ;;  %v23102_v18 = vld [vmem:[#allocation13_spill] sm:$0xff] }
 0xa42   :  { %14579 = vmatmul.mubr.f32.gmra.mrb[22].mxu1 %v20865_v33  ;;  %v23103_v33 = vld [vmem:[#allocation14_spill] sm:$0xff] }
 0xa43   :  { %14581 = vmatprep.mubr.f32.mxu1 %v20868_v46  ;;  %v23104_v46 = vld [vmem:[#allocation80_spill] sm:$0xff] }
 0xa46   :  { %14582 = vmatmul.mubr.f32.gmra.mrb[24].mxu1 %v20871_v56  ;;  %v23105_v56 = vld [vmem:[#allocation81_spill] sm:$0xff] }
 0xa47   :  { %14584 = vmatprep.mubr.f32.mxu1 %v20874_v51  ;;  %v23106_v51 = vld [vmem:[#allocation82_spill] sm:$0xff] }
 0xa4a   :  { %14585 = vmatmul.mubr.f32.gmra.mrb[26].mxu1 %v20877_v2  ;;  %v23107_v2 = vld [vmem:[#allocation83_spill] sm:$0xff] }
 0xa4b   :  { %14587 = vmatprep.mubr.f32.mxu1 %v20880_v17  ;;  %v23108_v17 = vld [vmem:[#allocation84_spill] sm:$0xff] }
 0xa4e   :  { %14588 = vmatmul.mubr.f32.gmra.mrb[28].mxu1 %v20883_v55  ;;  %v8955_v55 = vld [vmem:[#allocation2 + $0x349] sm:$0xff] }
 0xa4f   :  { %14590 = vmatprep.mubr.f32.mxu1 %v8923_v9  ;;  %v9461_v9 = vld [vmem:[#allocation2 + $0x22a] sm:$0xff] }
 0xa52   :  { %14591 = vmatmul.mubr.f32.gmra.mrb[30].mxu1 %v8924_v45  ;;  %v9464_v45 = vld [vmem:[#allocation2 + $0x24a] sm:$0xff] }
 0xa53   :  { %14593 = vmatprep.mubr.f32.mxu1 %v20886_v0  ;;  %v23109_v0 = vld [vmem:[#allocation85_spill] sm:$0xff] }
 0xa56   :  { %14594 = vmatmul.mubr.f32.gmra.mrb[32].mxu1 %v20889_v11  ;;  %v8956_v11 = vld [vmem:[#allocation2 + $0x351] sm:$0xff] }
 0xa57   :  { %14596 = vmatprep.mubr.f32.mxu1 %v20892_v43  ;;  %v9423_v43 = vld [vmem:[#allocation2 + $0x32] sm:$0xff] }
 0xa5a   :  { %14597 = vmatmul.mubr.f32.gmra.mrb[34].mxu1 %v20895_v24  ;;  %v9424_v24 = vld [vmem:[#allocation2 + $0x3a] sm:$0xff] }
 0xa5b   :  { %14599 = vmatprep.mubr.f32.mxu1 %v20898_v10  ;;  %v9425_v10 = vld [vmem:[#allocation2 + $0x4a] sm:$0xff] }
 0xa5e   :  { %14600 = vmatmul.mubr.f32.gmra.mrb[36].mxu1 %v20901_v31  ;;  %v9426_v31 = vld [vmem:[#allocation2 + $0x52] sm:$0xff] }
 0xa5f   :  { %14602 = vmatprep.mubr.f32.mxu1 %v20904_v62  ;;  %v9427_v62 = vld [vmem:[#allocation2 + $0x62] sm:$0xff] }
 0xa62   :  { %14603 = vmatmul.mubr.f32.gmra.mrb[38].mxu1 %v20907_v53  ;;  %v9428_v53 = vld [vmem:[#allocation2 + $0x6a] sm:$0xff] }
 0xa63   :  { %14605 = vmatprep.mubr.f32.mxu1 %v20910_v27  ;;  %v9429_v27 = vld [vmem:[#allocation2 + $0x7a] sm:$0xff] }
 0xa66   :  { %14606 = vmatmul.mubr.f32.gmra.mrb[40].mxu1 %v20913_v47  ;;  %v9430_v47 = vld [vmem:[#allocation2 + $0x82] sm:$0xff] }
 0xa67   :  { %14608 = vmatprep.mubr.f32.mxu1 %v23090_v54  ;;  %v9465_v54 = vld [vmem:[#allocation2 + $0x25a] sm:$0xff] }
 0xa6a   :  { %14609 = vmatmul.mubr.f32.gmra.mrb[42].mxu1 %v23091_v41  ;;  %v9466_v41 = vld [vmem:[#allocation2 + $0x262] sm:$0xff] }
 0xa6b   :  { %14611 = vmatprep.mubr.f32.mxu1 %v23092_v50  ;;  %v9467_v50 = vld [vmem:[#allocation2 + $0x272] sm:$0xff] }
 0xa6e   :  { %14612 = vmatmul.mubr.f32.gmra.mrb[44].mxu1 %v23093_v57  ;;  %v9468_v57 = vld [vmem:[#allocation2 + $0x27a] sm:$0xff] }
 0xa6f   :  { %14614 = vmatprep.mubr.f32.mxu1 %v23094_v12  ;;  %v9469_v12 = vld [vmem:[#allocation2 + $0x28a] sm:$0xff] }
 0xa72   :  { %14615 = vmatmul.mubr.f32.gmra.mrb[46].mxu1 %v23095_v30  ;;  %v9470_v30 = vld [vmem:[#allocation2 + $0x292] sm:$0xff] }
 0xa73   :  { %14617 = vmatprep.mubr.f32.mxu1 %v23096_v29  ;;  %v9471_v29 = vld [vmem:[#allocation2 + $0x2a2] sm:$0xff] }
 0xa76   :  { %14618 = vmatmul.mubr.f32.gmra.mrb[48].mxu1 %v23097_v36  ;;  %v9472_v36 = vld [vmem:[#allocation2 + $0x2aa] sm:$0xff] }
 0xa77   :  { %14620 = vmatprep.mubr.f32.mxu1 %v23098_v38  ;;  %v9473_v38 = vld [vmem:[#allocation2 + $0x2ba] sm:$0xff] }
 0xa7a   :  { %14621 = vmatmul.mubr.f32.gmra.mrb[50].mxu1 %v23099_v19  ;;  %v9474_v19 = vld [vmem:[#allocation2 + $0x2c2] sm:$0xff] }
 0xa7b   :  { %14623 = vmatprep.mubr.f32.mxu1 %v23100_v42  ;;  %v9475_v42 = vld [vmem:[#allocation2 + $0x2d2] sm:$0xff] }
 0xa7e   :  { %14624 = vmatmul.mubr.f32.gmra.mrb[52].mxu1 %v23101_v34  ;;  %v9476_v34 = vld [vmem:[#allocation2 + $0x2da] sm:$0xff] }
 0xa7f   :  { %14626 = vmatprep.mubr.f32.mxu1 %v23102_v18  ;;  %v9477_v18 = vld [vmem:[#allocation2 + $0x2ea] sm:$0xff] }
 0xa82   :  { %14627 = vmatmul.mubr.f32.gmra.mrb[54].mxu1 %v23103_v33  ;;  %v9478_v33 = vld [vmem:[#allocation2 + $0x2f2] sm:$0xff] }
 0xa83   :  { %14629 = vmatprep.mubr.f32.mxu1 %v23104_v46  ;;  %v9479_v46 = vld [vmem:[#allocation2 + $0x302] sm:$0xff] }
 0xa86   :  { %14630 = vmatmul.mubr.f32.gmra.mrb[56].mxu1 %v23105_v56  ;;  %v9480_v56 = vld [vmem:[#allocation2 + $0x30a] sm:$0xff] }
 0xa87   :  { %14632 = vmatprep.mubr.f32.mxu1 %v23106_v51  ;;  %v9481_v51 = vld [vmem:[#allocation2 + $0x31a] sm:$0xff] }
 0xa8a   :  { %14633 = vmatmul.mubr.f32.gmra.mrb[58].mxu1 %v23107_v2  ;;  %v9482_v2 = vld [vmem:[#allocation2 + $0x322] sm:$0xff] }
 0xa8b   :  { %14635 = vmatprep.mubr.f32.mxu1 %v23108_v17  ;;  %v9485_v17 = vld [vmem:[#allocation2 + $0x34a] sm:$0xff] }
 0xa8e   :  { %14636 = vmatmul.mubr.f32.gmra.mrb[60].mxu1 %v23109_v0 }
 0xa8f   :  { %14638 = vmatprep.mubr.f32.mxu1 %v8955_v55  ;;  %v9486_v55 = vld [vmem:[#allocation2 + $0x352] sm:$0xff] }
 0xa92   :  { %14639 = vmatmul.mubr.f32.gmra.mrb[62].mxu1 %v8956_v11 }
 0xa93   :  { %14673 = vmatprep.mubr.f32.mxu1 %v9423_v43 }
 0xa96   :  { %14674 = vmatmul.mubr.f32.vlgmr.msra.gmra.mrb[0].mxu1 %v9424_v24 }
 0xa97   :  { %14676 = vmatprep.mubr.f32.mxu1 %v9425_v10 }
 0xa9a   :  { %14677 = vmatmul.mubr.f32.gmra.mrb[2].mxu1 %v9426_v31 }
 0xa9b   :  { %14679 = vmatprep.mubr.f32.mxu1 %v9427_v62 }
 0xa9e   :  { %14680 = vmatmul.mubr.f32.gmra.mrb[4].mxu1 %v9428_v53 }
 0xa9f   :  { %14682 = vmatprep.mubr.f32.mxu1 %v9429_v27 }
 0xaa2   :  { %14683 = vmatmul.mubr.f32.gmra.mrb[6].mxu1 %v9430_v47 }
 0xaa3   :  { %14685 = vmatprep.mubr.f32.mxu1 %v9431_v52 }
 0xaa6   :  { %14686 = vmatmul.mubr.f32.gmra.mrb[8].mxu1 %v9432_v61 }
 0xaa7   :  { %14688 = vmatprep.mubr.f32.mxu1 %v9433_v48 }
 0xaaa   :  { %14689 = vmatmul.mubr.f32.gmra.mrb[10].mxu1 %v9434_v23 }
 0xaab   :  { %14691 = vmatprep.mubr.f32.mxu1 %v9435_v28 }
 0xaae   :  { %14692 = vmatmul.mubr.f32.gmra.mrb[12].mxu1 %v9436_v58 }
 0xaaf   :  { %14694 = vmatprep.mubr.f32.mxu1 %v9437_v40 }
 0xab2   :  { %14695 = vmatmul.mubr.f32.gmra.mrb[14].mxu1 %v9438_v22 }
 0xab3   :  { %14697 = vmatprep.mubr.f32.mxu1 %v9439_v60 }
 0xab6   :  { %14698 = vmatmul.mubr.f32.gmra.mrb[16].mxu1 %v9440_v35 }
 0xab7   :  { %14700 = vmatprep.mubr.f32.mxu1 %v9441_v49 }
 0xaba   :  { %14701 = vmatmul.mubr.f32.gmra.mrb[18].mxu1 %v9442_v25 }
 0xabb   :  { %14703 = vmatprep.mubr.f32.mxu1 %v9443_v6 }
 0xabe   :  { %14704 = vmatmul.mubr.f32.gmra.mrb[20].mxu1 %v9444_v39 }
 0xabf   :  { %14706 = vmatprep.mubr.f32.mxu1 %v9445_v8 }
 0xac2   :  { %14707 = vmatmul.mubr.f32.gmra.mrb[22].mxu1 %v9446_v15 }
 0xac3   :  { %14709 = vmatprep.mubr.f32.mxu1 %v9447_v7 }
 0xac6   :  { %14710 = vmatmul.mubr.f32.gmra.mrb[24].mxu1 %v9448_v16 }
 0xac7   :  { %14712 = vmatprep.mubr.f32.mxu1 %v9449_v1 }
 0xaca   :  { %14713 = vmatmul.mubr.f32.gmra.mrb[26].mxu1 %v9450_v32 }
 0xacb   :  { %14715 = vmatprep.mubr.f32.mxu1 %v21010_v3  ;;  %v9462_v3 = vld [vmem:[#allocation2 + $0x232] sm:$0xff] }
 0xace   :  { %14716 = vmatmul.mubr.f32.gmra.mrb[28].mxu1 %v21013_v5  ;;  %v9463_v5 = vld [vmem:[#allocation2 + $0x242] sm:$0xff] }
 0xacf   :  { %14718 = vmatprep.mubr.f32.mxu1 %v9453_v26 }
 0xad2   :  { %14719 = vmatmul.mubr.f32.gmra.mrb[30].mxu1 %v9454_v59 }
 0xad3   :  { %14721 = vmatprep.mubr.f32.mxu1 %v9455_v44 }
 0xad6   :  { %14722 = vmatmul.mubr.f32.gmra.mrb[32].mxu1 %v9456_v13 }
 0xad7   :  { %14724 = vmatprep.mubr.f32.mxu1 %v9457_v63 }
 0xada   :  { %14725 = vmatmul.mubr.f32.gmra.mrb[34].mxu1 %v9458_v14 }
 0xadb   :  { %14727 = vmatprep.mubr.f32.mxu1 %v9459_v37 }
 0xade   :  { %14728 = vmatmul.mubr.f32.gmra.mrb[36].mxu1 %v9460_v4 }
 0xadf   :  { %14730 = vmatprep.mubr.f32.mxu1 %v9461_v9 }
 0xae2   :  { %14731 = vmatmul.mubr.f32.gmra.mrb[38].mxu1 %v9462_v3 }
 0xae3   :  { %14733 = vmatprep.mubr.f32.mxu1 %v9463_v5 }
 0xae6   :  { %14734 = vmatmul.mubr.f32.gmra.mrb[40].mxu1 %v9464_v45 }
 0xae7   :  { %14736 = vmatprep.mubr.f32.mxu1 %v9465_v54 }
 0xaea   :  { %14737 = vmatmul.mubr.f32.gmra.mrb[42].mxu1 %v9466_v41 }
 0xaeb   :  { %14739 = vmatprep.mubr.f32.mxu1 %v9467_v50 }
 0xaee   :  { %14740 = vmatmul.mubr.f32.gmra.mrb[44].mxu1 %v9468_v57 }
 0xaef   :  { %14742 = vmatprep.mubr.f32.mxu1 %v9469_v12 }
 0xaf2   :  { %14743 = vmatmul.mubr.f32.gmra.mrb[46].mxu1 %v9470_v30 }
 0xaf3   :  { %14745 = vmatprep.mubr.f32.mxu1 %v9471_v29 }
 0xaf6   :  { %14746 = vmatmul.mubr.f32.gmra.mrb[48].mxu1 %v9472_v36 }
 0xaf7   :  { %14748 = vmatprep.mubr.f32.mxu1 %v9473_v38 }
 0xafa   :  { %14749 = vmatmul.mubr.f32.gmra.mrb[50].mxu1 %v9474_v19 }
 0xafb   :  { %14751 = vmatprep.mubr.f32.mxu1 %v9475_v42 }
 0xafe   :  { %14752 = vmatmul.mubr.f32.gmra.mrb[52].mxu1 %v9476_v34 }
 0xaff   :  { %14754 = vmatprep.mubr.f32.mxu1 %v9477_v18 }
 0xb02   :  { %14755 = vmatmul.mubr.f32.gmra.mrb[54].mxu1 %v9478_v33 }
 0xb03   :  { %14757 = vmatprep.mubr.f32.mxu1 %v9479_v46 }
 0xb06   :  { %14758 = vmatmul.mubr.f32.gmra.mrb[56].mxu1 %v9480_v56 }
 0xb07   :  { %14760 = vmatprep.mubr.f32.mxu1 %v9481_v51 }
 0xb0a   :  { %14761 = vmatmul.mubr.f32.gmra.mrb[58].mxu1 %v9482_v2 }
 0xb0b   :  { %14763 = vmatprep.mubr.f32.mxu1 %v21046_v20 }
 0xb0e   :  { %14764 = vmatmul.mubr.f32.gmra.mrb[60].mxu1 %v21049_v21 }
 0xb0f   :  { %14766 = vmatprep.mubr.f32.mxu1 %v9485_v17 }
 0xb12   :  { %14767 = vmatmul.mubr.f32.gmra.mrb[62].mxu1 %v9486_v55 }
 0xb69   :  { %v21129_v0 = vpop.f32.mrb[0].mxu1 }
 0xb6a   :  { %v21131_v11 = vpop.f32.mrb[1].mxu1 }
 0xb6b   :  { %v9953_v43 = vadd.f32 %v21129_v0, %v21131_v11 }
 0xb6d   :  { %v21135_v24 = vpop.f32.mrb[2].mxu1 }
 0xb6e   :  { %v21137_v10 = vpop.f32.mrb[3].mxu1 }
 0xb6f   :  { %v9954_v31 = vadd.f32 %v9953_v43, %v21137_v10 }
 0xb71   :  { %v9955_v20 = vadd.f32 %v21135_v24, %v9954_v31  ;;  %v21141_v62 = vpop.f32.mrb[4].mxu1 }
 0xb72   :  { %v21143_v21 = vpop.f32.mrb[5].mxu1 }
 0xb73   :  { %v9956_v53 = vadd.f32 %v9955_v20, %v21143_v21 }
 0xb75   :  { %v21146_v27 = vpop.f32.mrb[6].mxu1  ;;  %v9957_v47 = vadd.f32 %v21141_v62, %v9956_v53 }
 0xb76   :  { %v21149_v52 = vpop.f32.mrb[7].mxu1 }
 0xb77   :  { %v9958_v61 = vadd.f32 %v9957_v47, %v21149_v52 }
 0xb79   :  { %v21152_v48 = vpop.f32.mrb[8].mxu1  ;;  %v9959_v23 = vadd.f32 %v21146_v27, %v9958_v61 }
 0xb7a   :  { %v21155_v28 = vpop.f32.mrb[9].mxu1 }
 0xb7b   :  { %v9960_v58 = vadd.f32 %v9959_v23, %v21155_v28 }
 0xb7d   :  { %v21158_v40 = vpop.f32.mrb[10].mxu1  ;;  %v9961_v22 = vadd.f32 %v21152_v48, %v9960_v58 }
 0xb7e   :  { %v21161_v60 = vpop.f32.mrb[11].mxu1 }
 0xb7f   :  { %v9962_v35 = vadd.f32 %v9961_v22, %v21161_v60 }
 0xb81   :  { %v21164_v49 = vpop.f32.mrb[12].mxu1  ;;  %v9963_v25 = vadd.f32 %v21158_v40, %v9962_v35 }
 0xb82   :  { %v21167_v6 = vpop.f32.mrb[13].mxu1 }
 0xb83   :  { %v9964_v39 = vadd.f32 %v9963_v25, %v21167_v6 }
 0xb85   :  { %v21170_v8 = vpop.f32.mrb[14].mxu1  ;;  %v9965_v15 = vadd.f32 %v21164_v49, %v9964_v39 }
 0xb86   :  { %v21173_v7 = vpop.f32.mrb[15].mxu1 }
 0xb87   :  { %v9966_v16 = vadd.f32 %v9965_v15, %v21173_v7 }
 0xb89   :  { %v21176_v1 = vpop.f32.mrb[16].mxu1  ;;  %v9967_v32 = vadd.f32 %v21170_v8, %v9966_v16 }
 0xb8a   :  { %v21179_v26 = vpop.f32.mrb[17].mxu1 }
 0xb8b   :  { %v9968_v59 = vadd.f32 %v9967_v32, %v21179_v26 }
 0xb8d   :  { %v21182_v44 = vpop.f32.mrb[18].mxu1  ;;  %v9969_v13 = vadd.f32 %v21176_v1, %v9968_v59 }
 0xb8e   :  { %v21185_v63 = vpop.f32.mrb[19].mxu1 }
 0xb8f   :  { %v9970_v14 = vadd.f32 %v9969_v13, %v21185_v63 }
 0xb91   :  { %v21188_v37 = vpop.f32.mrb[20].mxu1  ;;  %v9971_v4 = vadd.f32 %v21182_v44, %v9970_v14 }
 0xb92   :  { %v21191_v9 = vpop.f32.mrb[21].mxu1 }
 0xb93   :  { %v9972_v3 = vadd.f32 %v9971_v4, %v21191_v9 }
 0xb95   :  { %v21194_v5 = vpop.f32.mrb[22].mxu1  ;;  %v9973_v45 = vadd.f32 %v21188_v37, %v9972_v3 }
 0xb96   :  { %v21197_v54 = vpop.f32.mrb[23].mxu1 }
 0xb97   :  { %v9974_v41 = vadd.f32 %v9973_v45, %v21197_v54 }
 0xb99   :  { %v21200_v50 = vpop.f32.mrb[24].mxu1  ;;  %v9975_v57 = vadd.f32 %v21194_v5, %v9974_v41 }
 0xb9a   :  { %v21203_v12 = vpop.f32.mrb[25].mxu1 }
 0xb9b   :  { %v9976_v30 = vadd.f32 %v9975_v57, %v21203_v12 }
 0xb9d   :  { %v21206_v29 = vpop.f32.mrb[26].mxu1  ;;  %v9977_v36 = vadd.f32 %v21200_v50, %v9976_v30 }
 0xb9e   :  { %v21209_v38 = vpop.f32.mrb[27].mxu1 }
 0xb9f   :  { %v9978_v19 = vadd.f32 %v9977_v36, %v21209_v38 }
 0xba1   :  { %v21212_v42 = vpop.f32.mrb[28].mxu1  ;;  %v9979_v34 = vadd.f32 %v21206_v29, %v9978_v19 }
 0xba2   :  { %v21215_v18 = vpop.f32.mrb[29].mxu1 }
 0xba3   :  { %v9980_v33 = vadd.f32 %v9979_v34, %v21215_v18 }
 0xba5   :  { %v21218_v46 = vpop.f32.mrb[30].mxu1  ;;  %v9981_v56 = vadd.f32 %v21212_v42, %v9980_v33 }
 0xba6   :  { %v21221_v51 = vpop.f32.mrb[31].mxu1 }
 0xba7   :  { %v9982_v2 = vadd.f32 %v9981_v56, %v21221_v51 }
 0xba9   :  { %v21224_v17 = vpop.f32.mrb[32].mxu1  ;;  %v9983_v55 = vadd.f32 %v21218_v46, %v9982_v2 }
 0xbaa   :  { %v21227_v43 = vpop.f32.mrb[33].mxu1 }
 0xbab   :  { %v9984_v31 = vadd.f32 %v9983_v55, %v21227_v43 }
 0xbad   :  { %v21230_v20 = vpop.f32.mrb[34].mxu1  ;;  %v9985_v53 = vadd.f32 %v21224_v17, %v9984_v31 }
 0xbae   :  { %v21233_v47 = vpop.f32.mrb[35].mxu1 }
 0xbaf   :  { %v9986_v61 = vadd.f32 %v9985_v53, %v21233_v47 }
 0xbb1   :  { %v21236_v23 = vpop.f32.mrb[36].mxu1  ;;  %v9987_v58 = vadd.f32 %v21230_v20, %v9986_v61 }
 0xbb2   :  { %v21239_v22 = vpop.f32.mrb[37].mxu1 }
 0xbb3   :  { %v9988_v35 = vadd.f32 %v9987_v58, %v21239_v22 }
 0xbb5   :  { %v21242_v25 = vpop.f32.mrb[38].mxu1  ;;  %v9989_v39 = vadd.f32 %v21236_v23, %v9988_v35 }
 0xbb6   :  { %v21245_v15 = vpop.f32.mrb[39].mxu1 }
 0xbb7   :  { %v9990_v16 = vadd.f32 %v9989_v39, %v21245_v15 }
 0xbb9   :  { %v21248_v32 = vpop.f32.mrb[40].mxu1  ;;  %v9991_v59 = vadd.f32 %v21242_v25, %v9990_v16 }
 0xbba   :  { %v21251_v13 = vpop.f32.mrb[41].mxu1 }
 0xbbb   :  { %v9992_v14 = vadd.f32 %v9991_v59, %v21251_v13 }
 0xbbd   :  { %v21254_v4 = vpop.f32.mrb[42].mxu1  ;;  %v9993_v3 = vadd.f32 %v21248_v32, %v9992_v14 }
 0xbbe   :  { %v21257_v45 = vpop.f32.mrb[43].mxu1 }
 0xbbf   :  { %v9994_v41 = vadd.f32 %v9993_v3, %v21257_v45 }
 0xbc1   :  { %v21260_v57 = vpop.f32.mrb[44].mxu1  ;;  %v9995_v30 = vadd.f32 %v21254_v4, %v9994_v41 }
 0xbc2   :  { %v21263_v36 = vpop.f32.mrb[45].mxu1 }
 0xbc3   :  { %v9996_v19 = vadd.f32 %v9995_v30, %v21263_v36 }
 0xbc5   :  { %v21266_v34 = vpop.f32.mrb[46].mxu1  ;;  %v9997_v33 = vadd.f32 %v21260_v57, %v9996_v19 }
 0xbc6   :  { %v21269_v56 = vpop.f32.mrb[47].mxu1 }
 0xbc7   :  { %v9998_v2 = vadd.f32 %v9997_v33, %v21269_v56 }
 0xbc9   :  { %v21272_v55 = vpop.f32.mrb[48].mxu1  ;;  %v9999_v31 = vadd.f32 %v21266_v34, %v9998_v2 }
 0xbca   :  { %23110 = vst [vmem:[#allocation72_spill] sm:$0xff] %v21272_v55  ;;  %v21275_v53 = vpop.f32.mrb[49].mxu1 }
 0xbcb   :  { %23111 = vst [vmem:[#allocation73_spill] sm:$0xff] %v21275_v53  ;;  %v10000_v61 = vadd.f32 %v9999_v31, %v21275_v53 }
 0xbcd   :  { %v21278_v58 = vpop.f32.mrb[50].mxu1  ;;  %v10001_v35 = vadd.f32 %v21272_v55, %v10000_v61 }
 0xbce   :  { %23112 = vst [vmem:[#allocation74_spill] sm:$0xff] %v21278_v58  ;;  %v21281_v39 = vpop.f32.mrb[51].mxu1 }
 0xbcf   :  { %23113 = vst [vmem:[#allocation75_spill] sm:$0xff] %v21281_v39  ;;  %v10002_v16 = vadd.f32 %v10001_v35, %v21281_v39 }
 0xbd1   :  { %v21284_v59 = vpop.f32.mrb[52].mxu1  ;;  %v10003_v14 = vadd.f32 %v21278_v58, %v10002_v16 }
 0xbd2   :  { %23114 = vst [vmem:[#allocation76_spill] sm:$0xff] %v21284_v59  ;;  %v21287_v3 = vpop.f32.mrb[53].mxu1 }
 0xbd3   :  { %23115 = vst [vmem:[#allocation77_spill] sm:$0xff] %v21287_v3  ;;  %v10004_v41 = vadd.f32 %v10003_v14, %v21287_v3 }
 0xbd5   :  { %v21290_v30 = vpop.f32.mrb[54].mxu1  ;;  %v10005_v19 = vadd.f32 %v21284_v59, %v10004_v41 }
 0xbd6   :  { %23116 = vst [vmem:[#allocation78_spill] sm:$0xff] %v21290_v30  ;;  %v21293_v33 = vpop.f32.mrb[55].mxu1 }
 0xbd7   :  { %23117 = vst [vmem:[#allocation79_spill] sm:$0xff] %v21293_v33  ;;  %v10006_v2 = vadd.f32 %v10005_v19, %v21293_v33 }
 0xbd9   :  { %v21296_v31 = vpop.f32.mrb[56].mxu1  ;;  %v10007_v61 = vadd.f32 %v21290_v30, %v10006_v2 }
 0xbda   :  { %23118 = vst [vmem:[#allocation15_spill] sm:$0xff] %v21296_v31  ;;  %v21299_v35 = vpop.f32.mrb[57].mxu1 }
 0xbdb   :  { %23119 = vst [vmem:[#allocation17_spill] sm:$0xff] %v21299_v35  ;;  %v10008_v16 = vadd.f32 %v10007_v61, %v21299_v35 }
 0xbdd   :  { %v21302_v58 = vpop.f32.mrb[58].mxu1  ;;  %v10009_v14 = vadd.f32 %v21296_v31, %v10008_v16 }
 0xbde   :  { %23120 = vst [vmem:[#allocation16_spill] sm:$0xff] %v21302_v58  ;;  %v21305_v3 = vpop.f32.mrb[59].mxu1 }
 0xbdf   :  { %23121 = vst [vmem:[#allocation19_spill] sm:$0xff] %v21305_v3  ;;  %v10010_v41 = vadd.f32 %v10009_v14, %v21305_v3 }
 0xbe1   :  { %v21308_v59 = vpop.f32.mrb[60].mxu1  ;;  %v10011_v19 = vadd.f32 %v21302_v58, %v10010_v41 }
 0xbe2   :  { %v21311_v33 = vpop.f32.mrb[61].mxu1 }
 0xbe3   :  { %v10012_v2 = vadd.f32 %v10011_v19, %v21311_v33 }
 0xbe5   :  { %v21314_v30 = vpop.f32.mrb[62].mxu1  ;;  %v10013_v61 = vadd.f32 %v21308_v59, %v10012_v2 }
 0xbe6   :  { %v21317_v35 = vpop.f32.mrb[63].mxu1 }
 0xbe7   :  { %v10014_v16 = vadd.f32 %v10013_v61, %v21317_v35 }
 0xbe9   :  { %v10015_v31 = vadd.f32 %v21314_v30, %v10014_v16  ;;  %v23136_v16 = vld [vmem:[#allocation74_spill] sm:$0xff] }
 0xbeb   :  { %v10016_v39 = vrot.slane %v10015_v31, 4 }
 0xbed   :  { %v10017_v14 = vadd.f32 %v10016_v39, %v10015_v31  ;;  %v23134_v31 = vld [vmem:[#allocation75_spill] sm:$0xff] }
 0xbef   :  { %v10018_v3 = vrot.slane %v10017_v14, 2 }
 0xbf1   :  { %v10019_v55 = vadd.f32 %v10018_v3, %v10017_v14  ;;  %v23132_v3 = vld [vmem:[#allocation72_spill] sm:$0xff]  ;;  %v23138_v14 = vld [vmem:[#allocation77_spill] sm:$0xff] }
 0xbf3   :  { %v10020_v53 = vrot.slane %v10019_v55, 1 }
 0xbf5   :  { %v10021_v41 = vadd.f32 %v10020_v53, %v10019_v55  ;;  %v23130_v53 = vld [vmem:[#allocation73_spill] sm:$0xff] }
 0xbf7   :  { %v21321_v58 = vmul.f32 0.001953125, %v10021_v41  ;;  %v23140_v41 = vld [vmem:[#allocation76_spill] sm:$0xff] }
 0xbf9   :  { %v21325_v19 = vsub.f32 %v21131_v11, %v21321_v58  ;;  %v21329_v2 = vsub.f32 %v21129_v0, %v21321_v58  ;;  %v21333_v61 = vsub.f32 %v21137_v10, %v21321_v58  ;;  %v21337_v39 = vsub.f32 %v21135_v24, %v21321_v58 }
 0xbfa   :  { %v21341_v55 = vsub.f32 %v21143_v21, %v21321_v58  ;;  %v21345_v11 = vsub.f32 %v21141_v62, %v21321_v58  ;;  %v21349_v0 = vsub.f32 %v21149_v52, %v21321_v58  ;;  %v21353_v10 = vsub.f32 %v21146_v27, %v21321_v58 }
 0xbfb   :  { %23122 = vst [vmem:[#allocation18_spill] sm:$0xff] %v21325_v19  ;;  %23123 = vst [vmem:[#allocation21_spill] sm:$0xff] %v21329_v2  ;;  %v21357_v24 = vsub.f32 %v21155_v28, %v21321_v58  ;;  %v21361_v21 = vsub.f32 %v21152_v48, %v21321_v58  ;;  %v21365_v62 = vsub.f32 %v21161_v60, %v21321_v58 }
 0xbfc   :  { %23124 = vst [vmem:[#allocation20_spill] sm:$0xff] %v21333_v61  ;;  %v21369_v52 = vsub.f32 %v21158_v40, %v21321_v58  ;;  %v21373_v27 = vsub.f32 %v21167_v6, %v21321_v58  ;;  %v21377_v28 = vsub.f32 %v21164_v49, %v21321_v58  ;;  %v21381_v48 = vsub.f32 %v21173_v7, %v21321_v58 }
 0xbfd   :  { %v21385_v60 = vsub.f32 %v21170_v8, %v21321_v58  ;;  %v21389_v40 = vsub.f32 %v21179_v26, %v21321_v58  ;;  %v21393_v6 = vsub.f32 %v21176_v1, %v21321_v58  ;;  %v21397_v49 = vsub.f32 %v21185_v63, %v21321_v58 }
 0xbfe   :  { %v21401_v7 = vsub.f32 %v21182_v44, %v21321_v58  ;;  %v21405_v8 = vsub.f32 %v21191_v9, %v21321_v58  ;;  %v21409_v26 = vsub.f32 %v21188_v37, %v21321_v58  ;;  %v21413_v1 = vsub.f32 %v21197_v54, %v21321_v58 }
 0xbff   :  { %v21417_v63 = vsub.f32 %v21194_v5, %v21321_v58  ;;  %v21421_v44 = vsub.f32 %v21203_v12, %v21321_v58  ;;  %v21425_v9 = vsub.f32 %v21200_v50, %v21321_v58  ;;  %v21429_v37 = vsub.f32 %v21209_v38, %v21321_v58 }
 0xc00   :  { %v21433_v54 = vsub.f32 %v21206_v29, %v21321_v58  ;;  %v21437_v5 = vsub.f32 %v21215_v18, %v21321_v58  ;;  %v21441_v12 = vsub.f32 %v21212_v42, %v21321_v58  ;;  %v21445_v50 = vsub.f32 %v21221_v51, %v21321_v58 }
 0xc01   :  { %v21449_v38 = vsub.f32 %v21218_v46, %v21321_v58  ;;  %v21453_v29 = vsub.f32 %v21227_v43, %v21321_v58  ;;  %v21457_v18 = vsub.f32 %v21224_v17, %v21321_v58  ;;  %v21461_v42 = vsub.f32 %v21233_v47, %v21321_v58 }
 0xc02   :  { %v21465_v51 = vsub.f32 %v21230_v20, %v21321_v58  ;;  %v21469_v46 = vsub.f32 %v21239_v22, %v21321_v58  ;;  %v21473_v43 = vsub.f32 %v21236_v23, %v21321_v58  ;;  %v21477_v17 = vsub.f32 %v21245_v15, %v21321_v58 }
 0xc03   :  { %v21481_v47 = vsub.f32 %v21242_v25, %v21321_v58  ;;  %v21485_v20 = vsub.f32 %v21251_v13, %v21321_v58  ;;  %v21489_v22 = vsub.f32 %v21248_v32, %v21321_v58  ;;  %v21493_v23 = vsub.f32 %v21257_v45, %v21321_v58 }
 0xc04   :  { %v21497_v15 = vsub.f32 %v21254_v4, %v21321_v58  ;;  %v21501_v25 = vsub.f32 %v21263_v36, %v21321_v58  ;;  %v21505_v13 = vsub.f32 %v21260_v57, %v21321_v58  ;;  %v21509_v32 = vsub.f32 %v21269_v56, %v21321_v58 }
 0xc05   :  { %v21513_v45 = vsub.f32 %v21266_v34, %v21321_v58  ;;  %v21517_v4 = vsub.f32 %v23130_v53, %v21321_v58  ;;  %v21521_v36 = vsub.f32 %v23132_v3, %v21321_v58  ;;  %v21525_v57 = vsub.f32 %v23134_v31, %v21321_v58 }
 0xc06   :  { %23125 = vst [vmem:[#allocation23_spill] sm:$0xff] %v21497_v15  ;;  %23126 = vst [vmem:[#allocation22_spill] sm:$0xff] %v21501_v25  ;;  %v21529_v56 = vsub.f32 %v23136_v16, %v21321_v58  ;;  %v21533_v34 = vsub.f32 %v23138_v14, %v21321_v58  ;;  %v21537_v53 = vsub.f32 %v23140_v41, %v21321_v58 }
 0xc07   :  { %23127 = vst [vmem:[#allocation25_spill] sm:$0xff] %v21505_v13  ;;  %23128 = vst [vmem:[#allocation24_spill] sm:$0xff] %v21509_v32 }
 0xc08   :  { %23129 = vst [vmem:[#allocation27_spill] sm:$0xff] %v21513_v45  ;;  %23131 = vst [vmem:[#allocation26_spill] sm:$0xff] %v21517_v4  ;;  %v23142_v4 = vld [vmem:[#allocation79_spill] sm:$0xff] }
 0xc09   :  { %23133 = vst [vmem:[#allocation37_spill] sm:$0xff] %v21521_v36  ;;  %23135 = vst [vmem:[#allocation38_spill] sm:$0xff] %v21525_v57  ;;  %v21541_v3 = vsub.f32 %v23142_v4, %v21321_v58  ;;  %v23144_v36 = vld [vmem:[#allocation78_spill] sm:$0xff]  ;;  %v23146_v57 = vld [vmem:[#allocation17_spill] sm:$0xff] }
 0xc0a   :  { %23137 = vst [vmem:[#allocation41_spill] sm:$0xff] %v21529_v56  ;;  %23139 = vst [vmem:[#allocation50_spill] sm:$0xff] %v21533_v34  ;;  %v21545_v31 = vsub.f32 %v23144_v36, %v21321_v58  ;;  %v21549_v16 = vsub.f32 %v23146_v57, %v21321_v58  ;;  %v23148_v56 = vld [vmem:[#allocation15_spill] sm:$0xff]  ;;  %v21565_v36 = vsub.f32 %v21311_v33, %v21321_v58 }
 0xc0b   :  { %23141 = vst [vmem:[#allocation28_spill] sm:$0xff] %v21537_v53  ;;  %23143 = vst [vmem:[#allocation29_spill] sm:$0xff] %v21541_v3  ;;  %v21553_v14 = vsub.f32 %v23148_v56, %v21321_v58  ;;  %v23150_v34 = vld [vmem:[#allocation19_spill] sm:$0xff]  ;;  %v23152_v53 = vld [vmem:[#allocation16_spill] sm:$0xff]  ;;  %v21569_v57 = vsub.f32 %v21308_v59, %v21321_v58  ;;  %v21573_v56 = vsub.f32 %v21317_v35, %v21321_v58 }
 0xc0c   :  { %23145 = vst [vmem:[#allocation30_spill] sm:$0xff] %v21545_v31  ;;  %23147 = vst [vmem:[#allocation31_spill] sm:$0xff] %v21549_v16  ;;  %v21557_v41 = vsub.f32 %v23150_v34, %v21321_v58  ;;  %v21561_v4 = vsub.f32 %v23152_v53, %v21321_v58  ;;  %v21577_v34 = vsub.f32 %v21314_v30, %v21321_v58 }
 0xc0d   :  { %23149 = vst [vmem:[#allocation32_spill] sm:$0xff] %v21553_v14  ;;  %23154 = vst [vmem:[#allocation35_spill] sm:$0xff] %v21565_v36  ;;  %v10087_v53 = vmul.f32 %v21325_v19, %v21325_v19  ;;  %v10089_v33 = vmul.f32 %v21333_v61, %v21333_v61  ;;  %v10090_v59 = vmul.f32 %v21337_v39, %v21337_v39 }
 0xc0e   :  { %23151 = vst [vmem:[#allocation33_spill] sm:$0xff] %v21557_v41  ;;  %23153 = vst [vmem:[#allocation34_spill] sm:$0xff] %v21561_v4  ;;  %v10088_v4 = vmul.f32 %v21329_v2, %v21329_v2  ;;  %v10091_v35 = vmul.f32 %v21341_v55, %v21341_v55  ;;  %v10092_v58 = vmul.f32 %v21345_v11, %v21345_v11 }
 0xc0f   :  { %23155 = vst [vmem:[#allocation36_spill] sm:$0xff] %v21569_v57  ;;  %23156 = vst [vmem:[#allocation39_spill] sm:$0xff] %v21573_v56  ;;  %v10093_v19 = vmul.f32 %v21349_v0, %v21349_v0  ;;  %v10094_v61 = vmul.f32 %v21353_v10, %v21353_v10 }
 0xc10   :  { %23157 = vst [vmem:[#allocation40_spill] sm:$0xff] %v21577_v34  ;;  %v10151_v36 = vadd.f32 %v10088_v4, %v10087_v53  ;;  %v10095_v53 = vmul.f32 %v21357_v24, %v21357_v24 }
 0xc12   :  { %v10152_v57 = vadd.f32 %v10151_v36, %v10089_v33  ;;  %v10096_v33 = vmul.f32 %v21361_v21, %v21361_v21 }
 0xc14   :  { %v10153_v56 = vadd.f32 %v10152_v57, %v10090_v59  ;;  %v10097_v59 = vmul.f32 %v21365_v62, %v21365_v62 }
 0xc16   :  { %v10154_v30 = vadd.f32 %v10153_v56, %v10091_v35  ;;  %v10098_v35 = vmul.f32 %v21369_v52, %v21369_v52 }
 0xc18   :  { %v10155_v2 = vadd.f32 %v10154_v30, %v10092_v58  ;;  %v10099_v30 = vmul.f32 %v21373_v27, %v21373_v27 }
 0xc1a   :  { %v10156_v4 = vadd.f32 %v10155_v2, %v10093_v19  ;;  %v10100_v2 = vmul.f32 %v21377_v28, %v21377_v28 }
 0xc1c   :  { %v10157_v36 = vadd.f32 %v10156_v4, %v10094_v61  ;;  %v10101_v4 = vmul.f32 %v21381_v48, %v21381_v48 }
 0xc1e   :  { %v10158_v57 = vadd.f32 %v10157_v36, %v10095_v53  ;;  %v10102_v36 = vmul.f32 %v21385_v60, %v21385_v60 }
 0xc20   :  { %v10159_v56 = vadd.f32 %v10158_v57, %v10096_v33  ;;  %v10103_v57 = vmul.f32 %v21389_v40, %v21389_v40 }
 0xc22   :  { %v10160_v58 = vadd.f32 %v10159_v56, %v10097_v59  ;;  %v10104_v56 = vmul.f32 %v21393_v6, %v21393_v6 }
 0xc24   :  { %v10161_v19 = vadd.f32 %v10160_v58, %v10098_v35  ;;  %v10105_v58 = vmul.f32 %v21397_v49, %v21397_v49 }
 0xc26   :  { %v10162_v61 = vadd.f32 %v10161_v19, %v10099_v30  ;;  %v10106_v19 = vmul.f32 %v21401_v7, %v21401_v7 }
 0xc28   :  { %v10163_v53 = vadd.f32 %v10162_v61, %v10100_v2  ;;  %v10107_v61 = vmul.f32 %v21405_v8, %v21405_v8 }
 0xc2a   :  { %v10164_v33 = vadd.f32 %v10163_v53, %v10101_v4  ;;  %v10108_v53 = vmul.f32 %v21409_v26, %v21409_v26 }
 0xc2c   :  { %v10165_v59 = vadd.f32 %v10164_v33, %v10102_v36  ;;  %v10109_v33 = vmul.f32 %v21413_v1, %v21413_v1 }
 0xc2e   :  { %v10166_v35 = vadd.f32 %v10165_v59, %v10103_v57  ;;  %v10110_v59 = vmul.f32 %v21417_v63, %v21417_v63 }
 0xc30   :  { %v10167_v30 = vadd.f32 %v10166_v35, %v10104_v56  ;;  %v10111_v35 = vmul.f32 %v21421_v44, %v21421_v44 }
 0xc32   :  { %v10168_v2 = vadd.f32 %v10167_v30, %v10105_v58  ;;  %v10112_v30 = vmul.f32 %v21425_v9, %v21425_v9 }
 0xc34   :  { %v10169_v4 = vadd.f32 %v10168_v2, %v10106_v19  ;;  %v10113_v2 = vmul.f32 %v21429_v37, %v21429_v37 }
 0xc36   :  { %v10170_v36 = vadd.f32 %v10169_v4, %v10107_v61  ;;  %v10114_v4 = vmul.f32 %v21433_v54, %v21433_v54 }
 0xc38   :  { %v10171_v57 = vadd.f32 %v10170_v36, %v10108_v53  ;;  %v10115_v36 = vmul.f32 %v21437_v5, %v21437_v5 }
 0xc3a   :  { %v10172_v56 = vadd.f32 %v10171_v57, %v10109_v33  ;;  %v10116_v57 = vmul.f32 %v21441_v12, %v21441_v12 }
 0xc3c   :  { %v10173_v58 = vadd.f32 %v10172_v56, %v10110_v59  ;;  %v10117_v56 = vmul.f32 %v21445_v50, %v21445_v50 }
 0xc3e   :  { %v10174_v19 = vadd.f32 %v10173_v58, %v10111_v35  ;;  %v10118_v58 = vmul.f32 %v21449_v38, %v21449_v38 }
 0xc40   :  { %v10175_v61 = vadd.f32 %v10174_v19, %v10112_v30  ;;  %v10119_v19 = vmul.f32 %v21453_v29, %v21453_v29 }
 0xc42   :  { %v10176_v53 = vadd.f32 %v10175_v61, %v10113_v2  ;;  %v10120_v61 = vmul.f32 %v21457_v18, %v21457_v18 }
 0xc44   :  { %v10177_v33 = vadd.f32 %v10176_v53, %v10114_v4  ;;  %v10121_v53 = vmul.f32 %v21461_v42, %v21461_v42 }
 0xc46   :  { %v10178_v59 = vadd.f32 %v10177_v33, %v10115_v36  ;;  %v10122_v33 = vmul.f32 %v21465_v51, %v21465_v51 }
 0xc48   :  { %v10179_v35 = vadd.f32 %v10178_v59, %v10116_v57  ;;  %v10123_v59 = vmul.f32 %v21469_v46, %v21469_v46 }
 0xc4a   :  { %v10180_v30 = vadd.f32 %v10179_v35, %v10117_v56  ;;  %v10124_v35 = vmul.f32 %v21473_v43, %v21473_v43 }
 0xc4c   :  { %v10181_v2 = vadd.f32 %v10180_v30, %v10118_v58  ;;  %v10125_v30 = vmul.f32 %v21477_v17, %v21477_v17 }
 0xc4e   :  { %v10182_v4 = vadd.f32 %v10181_v2, %v10119_v19  ;;  %v10126_v2 = vmul.f32 %v21481_v47, %v21481_v47 }
 0xc50   :  { %v10183_v36 = vadd.f32 %v10182_v4, %v10120_v61  ;;  %v10127_v4 = vmul.f32 %v21485_v20, %v21485_v20 }
 0xc52   :  { %v10184_v57 = vadd.f32 %v10183_v36, %v10121_v53  ;;  %v10128_v36 = vmul.f32 %v21489_v22, %v21489_v22 }
 0xc54   :  { %v10185_v56 = vadd.f32 %v10184_v57, %v10122_v33  ;;  %v10129_v57 = vmul.f32 %v21493_v23, %v21493_v23 }
 0xc56   :  { %v10186_v58 = vadd.f32 %v10185_v56, %v10123_v59  ;;  %v10130_v56 = vmul.f32 %v21497_v15, %v21497_v15 }
 0xc58   :  { %v10187_v19 = vadd.f32 %v10186_v58, %v10124_v35  ;;  %v10131_v58 = vmul.f32 %v21501_v25, %v21501_v25 }
 0xc5a   :  { %v10188_v61 = vadd.f32 %v10187_v19, %v10125_v30  ;;  %v10132_v19 = vmul.f32 %v21505_v13, %v21505_v13 }
 0xc5c   :  { %v10189_v53 = vadd.f32 %v10188_v61, %v10126_v2  ;;  %v10133_v61 = vmul.f32 %v21509_v32, %v21509_v32 }
 0xc5e   :  { %v10190_v33 = vadd.f32 %v10189_v53, %v10127_v4  ;;  %v10134_v53 = vmul.f32 %v21513_v45, %v21513_v45 }
 0xc60   :  { %v10191_v59 = vadd.f32 %v10190_v33, %v10128_v36  ;;  %v23158_v33 = vld [vmem:[#allocation26_spill] sm:$0xff] }
 0xc61   :  { %v10135_v15 = vmul.f32 %v23158_v33, %v23158_v33 }
 0xc62   :  { %v10192_v35 = vadd.f32 %v10191_v59, %v10129_v57  ;;  %v23159_v59 = vld [vmem:[#allocation37_spill] sm:$0xff] }
 0xc63   :  { %v10136_v25 = vmul.f32 %v23159_v59, %v23159_v59 }
 0xc64   :  { %v10193_v30 = vadd.f32 %v10192_v35, %v10130_v56  ;;  %v23160_v35 = vld [vmem:[#allocation38_spill] sm:$0xff] }
 0xc65   :  { %v10137_v13 = vmul.f32 %v23160_v35, %v23160_v35 }
 0xc66   :  { %v10194_v2 = vadd.f32 %v10193_v30, %v10131_v58  ;;  %v23161_v30 = vld [vmem:[#allocation41_spill] sm:$0xff] }
 0xc67   :  { %v10138_v32 = vmul.f32 %v23161_v30, %v23161_v30 }
 0xc68   :  { %v10195_v4 = vadd.f32 %v10194_v2, %v10132_v19  ;;  %v23162_v2 = vld [vmem:[#allocation50_spill] sm:$0xff] }
 0xc69   :  { %v10139_v45 = vmul.f32 %v23162_v2, %v23162_v2 }
 0xc6a   :  { %v10196_v36 = vadd.f32 %v10195_v4, %v10133_v61  ;;  %v23163_v4 = vld [vmem:[#allocation28_spill] sm:$0xff] }
 0xc6b   :  { %v10140_v33 = vmul.f32 %v23163_v4, %v23163_v4 }
 0xc6c   :  { %v10197_v57 = vadd.f32 %v10196_v36, %v10134_v53  ;;  %v10141_v36 = vmul.f32 %v21541_v3, %v21541_v3 }
 0xc6e   :  { %v10198_v56 = vadd.f32 %v10197_v57, %v10135_v15  ;;  %v10142_v57 = vmul.f32 %v21545_v31, %v21545_v31 }
 0xc70   :  { %v10199_v58 = vadd.f32 %v10198_v56, %v10136_v25  ;;  %v10143_v56 = vmul.f32 %v21549_v16, %v21549_v16 }
 0xc72   :  { %v10200_v19 = vadd.f32 %v10199_v58, %v10137_v13  ;;  %v10144_v58 = vmul.f32 %v21553_v14, %v21553_v14 }
 0xc74   :  { %v10201_v61 = vadd.f32 %v10200_v19, %v10138_v32  ;;  %v10145_v19 = vmul.f32 %v21557_v41, %v21557_v41 }
 0xc76   :  { %v10202_v53 = vadd.f32 %v10201_v61, %v10139_v45  ;;  %v23164_v61 = vld [vmem:[#allocation34_spill] sm:$0xff] }
 0xc77   :  { %v10146_v3 = vmul.f32 %v23164_v61, %v23164_v61 }
 0xc78   :  { %v10203_v15 = vadd.f32 %v10202_v53, %v10140_v33  ;;  %v23165_v53 = vld [vmem:[#allocation35_spill] sm:$0xff] }
 0xc79   :  { %v10147_v31 = vmul.f32 %v23165_v53, %v23165_v53 }
 0xc7a   :  { %v10204_v25 = vadd.f32 %v10203_v15, %v10141_v36  ;;  %v23166_v15 = vld [vmem:[#allocation36_spill] sm:$0xff] }
 0xc7b   :  { %v10148_v16 = vmul.f32 %v23166_v15, %v23166_v15 }
 0xc7c   :  { %v10205_v13 = vadd.f32 %v10204_v25, %v10142_v57  ;;  %v23167_v25 = vld [vmem:[#allocation39_spill] sm:$0xff] }
 0xc7d   :  { %v10149_v14 = vmul.f32 %v23167_v25, %v23167_v25 }
 0xc7e   :  { %v10206_v32 = vadd.f32 %v10205_v13, %v10143_v56  ;;  %v10150_v13 = vmul.f32 %v21577_v34, %v21577_v34 }
 0xc80   :  { %v10207_v45 = vadd.f32 %v10206_v32, %v10144_v58 }
 0xc82   :  { %v10208_v33 = vadd.f32 %v10207_v45, %v10145_v19 }
 0xc84   :  { %v10209_v36 = vadd.f32 %v10208_v33, %v10146_v3 }
 0xc86   :  { %v10210_v57 = vadd.f32 %v10209_v36, %v10147_v31  ;;  %v10221_v31 = vld [vmem:[%s22309_s5] sm:$0x1]  ;;  %s16432_s5 = smov [#allocation6]  }
 0xc88   :  { %v10211_v56 = vadd.f32 %v10210_v57, %v10148_v16  ;;  %v23168_v57 = vld [vmem:[#allocation52_spill] sm:$0xff] }
 0xc89   :  { %v23169_v15 = vsub.s32 0, %v23168_v57  ;;  %v23176_v57 = vld [vmem:[#allocation24_spill] sm:$0xff] }
 0xc8a   :  { %v10212_v58 = vadd.f32 %v10211_v56, %v10149_v14  ;;  %v21717_v14 = vld [vmem:[%s22310_s6] ss:$0 sm:$0xff]  ;;  %s10499_s6 = sshll.u32 %s16432_s5, 4  ;;  %s10500_s6 = int_to_ptr.vmem [resolvable:$true] %s10499_s6 }
 0xc8b   :  { %s16402_s22 = scalar_lea.vmem %s10500_s6, 8192  ;;  %p16407_p9 = scmp.lt.s32.totalorder %s10500_s6, %s10500_s6 }
 0xc8c   :  { %v10213_v32 = vadd.f32 %v10212_v58, %v10150_v13  ;;  %v23172_v13 = vld [vmem:[#allocation20_spill] sm:$0xff]  ;;  %p16403_p8 = scmp.ne.s32.totalorder %s10500_s6, %s16402_s22  ;;  %p16408_p10 = scmp.lt.s32.totalorder %s16402_s22, %s16402_s22 }
 0xc8e   :  { %v10214_v41 = vrot.slane %v10213_v32, 4  ;;  %p16409_p11 = por %p16408_p10, %p16407_p9 }
 0xc90   :  { %v10215_v61 = vadd.f32 %v10214_v41, %v10213_v32  ;;  %p16410_p12 = pnand %p16409_p11, %p16403_p8 }
 0xc92   :  { %v10216_v19 = vrot.slane %v10215_v61, 2 }
 0xc94   :  { %v10217_v45 = vadd.f32 %v10216_v19, %v10215_v61 }
 0xc96   :  { %v10218_v4 = vrot.slane %v10217_v45, 1 }
 0xc98   :  { %v10219_v53 = vadd.f32 %v10218_v4, %v10217_v45  ;;  %v23170_v4 = vld [vmem:[#allocation18_spill] sm:$0xff] }
 0xc9a   :  { %v10220_v3 = vmul.f32 0.001953125, %v10219_v53  ;;  %v23171_v53 = vld [vmem:[#allocation21_spill] sm:$0xff] }
 0xc9c   :  { %v10222_v33 = vadd.f32 1e-05, %v10220_v3 }
 0xc9e   :  { %16376 = vrsqrt.f32 %v10222_v33 }
 0xca8   :  { %v16377_v36 = vpop.eup %16376 }
 0xca9   :  { %v10224_v16 = vmul.f32 %v16377_v36, %v10221_v31  ;;  %v23173_v31 = vld [vmem:[#allocation23_spill] sm:$0xff]  ;;  %v23174_v36 = vld [vmem:[#allocation22_spill] sm:$0xff] }
 0xcab   :  { %v21712_v34 = vrot.slane %v10224_v16, %v23169_v15  ;;  %v23175_v16 = vld [vmem:[#allocation25_spill] sm:$0xff] }
 0xcad   :  { %v10293_v41 = vmul.f32 %v21712_v34, %v23167_v25  ;;  %v21723_v61 = vmul.f32 %v21712_v34, %v23170_v4  ;;  %v21727_v56 = vmul.f32 %v21712_v34, %v23171_v53  ;;  %v21731_v15 = vmul.f32 %v21712_v34, %v23172_v13  ;;  %v23178_v4 = vld [vmem:[#allocation26_spill] sm:$0xff] }
 0xcae   :  { %v21735_v58 = vmul.f32 %v21712_v34, %v21337_v39  ;;  %v21739_v32 = vmul.f32 %v21712_v34, %v21341_v55  ;;  %v21743_v25 = vmul.f32 %v21712_v34, %v21345_v11  ;;  %v21747_v19 = vmul.f32 %v21712_v34, %v21349_v0 }
 0xcaf   :  { %v10364_v45 = vadd.f32 %v21717_v14, %v10293_v41  ;;  %v21752_v3 = vmul.f32 %v21712_v34, %v21353_v10  ;;  %v21756_v39 = vmul.f32 %v21712_v34, %v21357_v24  ;;  %v21760_v55 = vmul.f32 %v21712_v34, %v21361_v21  ;;  %v23177_v41 = vld [vmem:[#allocation27_spill] sm:$0xff] }
 0xcb0   :  { %v21764_v11 = vmul.f32 %v21712_v34, %v21365_v62  ;;  %v21768_v0 = vmul.f32 %v21712_v34, %v21369_v52  ;;  %v21772_v10 = vmul.f32 %v21712_v34, %v21373_v27  ;;  %v21776_v24 = vmul.f32 %v21712_v34, %v21377_v28 }
 0xcb1   :  { %v10428_v33 = vmax.f32 %v10364_v45, 0.0  ;;  %v21780_v21 = vmul.f32 %v21712_v34, %v21381_v48  ;;  %v21784_v62 = vmul.f32 %v21712_v34, %v21385_v60  ;;  %v21788_v52 = vmul.f32 %v21712_v34, %v21389_v40 }
 0xcb2   :  { %v21792_v27 = vmul.f32 %v21712_v34, %v21393_v6  ;;  %v21796_v28 = vmul.f32 %v21712_v34, %v21397_v49  ;;  %v21800_v48 = vmul.f32 %v21712_v34, %v21401_v7  ;;  %v21804_v60 = vmul.f32 %v21712_v34, %v21405_v8 }
 0xcb3   :  { %10492 = vst [vmem:[#allocation6 + $0x1f0] sm:$0xff] %v10428_v33  ;;  %v21808_v40 = vmul.f32 %v21712_v34, %v21409_v26  ;;  %v21812_v6 = vmul.f32 %v21712_v34, %v21413_v1  ;;  %v21816_v49 = vmul.f32 %v21712_v34, %v21417_v63  ;;  %v21820_v7 = vmul.f32 %v21712_v34, %v21421_v44 }
 0xcb4   :  { %v21824_v8 = vmul.f32 %v21712_v34, %v21425_v9  ;;  %v21828_v26 = vmul.f32 %v21712_v34, %v21429_v37  ;;  %v21832_v1 = vmul.f32 %v21712_v34, %v21433_v54  ;;  %v21836_v63 = vmul.f32 %v21712_v34, %v21437_v5 }
 0xcb5   :  { %v21840_v44 = vmul.f32 %v21712_v34, %v21441_v12  ;;  %v21844_v9 = vmul.f32 %v21712_v34, %v21445_v50  ;;  %v21848_v37 = vmul.f32 %v21712_v34, %v21449_v38  ;;  %v21852_v54 = vmul.f32 %v21712_v34, %v21453_v29 }
 0xcb6   :  { %v21856_v5 = vmul.f32 %v21712_v34, %v21457_v18  ;;  %v21860_v12 = vmul.f32 %v21712_v34, %v21461_v42  ;;  %v21864_v50 = vmul.f32 %v21712_v34, %v21465_v51  ;;  %v21868_v38 = vmul.f32 %v21712_v34, %v21469_v46 }
 0xcb7   :  { %v21872_v29 = vmul.f32 %v21712_v34, %v21473_v43  ;;  %v21876_v18 = vmul.f32 %v21712_v34, %v21477_v17  ;;  %v21880_v42 = vmul.f32 %v21712_v34, %v21481_v47  ;;  %v21884_v51 = vmul.f32 %v21712_v34, %v21485_v20 }
 0xcb8   :  { %v21888_v46 = vmul.f32 %v21712_v34, %v21489_v22  ;;  %v21892_v43 = vmul.f32 %v21712_v34, %v21493_v23  ;;  %v21896_v17 = vmul.f32 %v21712_v34, %v23173_v31  ;;  %v21900_v47 = vmul.f32 %v21712_v34, %v23174_v36  ;;  %v23181_v36 = vld [vmem:[#allocation28_spill] sm:$0xff] }
 0xcb9   :  { %v21904_v20 = vmul.f32 %v21712_v34, %v23175_v16  ;;  %v21908_v22 = vmul.f32 %v21712_v34, %v23176_v57  ;;  %v21912_v23 = vmul.f32 %v21712_v34, %v23177_v41  ;;  %v21916_v53 = vmul.f32 %v21712_v34, %v23178_v4  ;;  %v23183_v57 = vld [vmem:[#allocation29_spill] sm:$0xff]  ;;  %v23185_v41 = vld [vmem:[#allocation30_spill] sm:$0xff]  ;;  %v23187_v4 = vld [vmem:[#allocation31_spill] sm:$0xff] }
 0xcba   :  { %v21920_v13 = vmul.f32 %v21712_v34, %v23159_v59  ;;  %v21924_v45 = vmul.f32 %v21712_v34, %v23160_v35  ;;  %v21928_v33 = vmul.f32 %v21712_v34, %v23161_v30  ;;  %v21932_v31 = vmul.f32 %v21712_v34, %v23162_v2 }
 0xcbb   :  { %v21936_v16 = vmul.f32 %v21712_v34, %v23181_v36  ;;  %v21940_v59 = vmul.f32 %v21712_v34, %v23183_v57  ;;  %v21944_v35 = vmul.f32 %v21712_v34, %v23185_v41  ;;  %v21948_v30 = vmul.f32 %v21712_v34, %v23187_v4 }
 0xcbc   :  { %23179 = vst [vmem:[#allocation42_spill] sm:$0xff] %v21928_v33  ;;  %23180 = vst [vmem:[#allocation43_spill] sm:$0xff] %v21932_v31  ;;  %v23189_v33 = vld [vmem:[#allocation32_spill] sm:$0xff]  ;;  %v23190_v31 = vld [vmem:[#allocation33_spill] sm:$0xff] }
 0xcbd   :  { %23182 = vst [vmem:[#allocation44_spill] sm:$0xff] %v21936_v16  ;;  %23184 = vst [vmem:[#allocation45_spill] sm:$0xff] %v21940_v59  ;;  %v21952_v2 = vmul.f32 %v21712_v34, %v23189_v33  ;;  %v21956_v36 = vmul.f32 %v21712_v34, %v23190_v31  ;;  %v23191_v16 = vld [vmem:[#allocation34_spill] sm:$0xff]  ;;  %v23192_v59 = vld [vmem:[#allocation35_spill] sm:$0xff]  ;;  %v21976_v31 = vadd.f32 %v21717_v14, %v21723_v61 }
 0xcbe   :  { %23186 = vst [vmem:[#allocation46_spill] sm:$0xff] %v21944_v35  ;;  %23188 = vst [vmem:[#allocation47_spill] sm:$0xff] %v21948_v30  ;;  %v21960_v57 = vmul.f32 %v21712_v34, %v23191_v16  ;;  %v21964_v41 = vmul.f32 %v21712_v34, %v23192_v59  ;;  %v23193_v35 = vld [vmem:[#allocation36_spill] sm:$0xff]  ;;  %v21980_v16 = vadd.f32 %v21717_v14, %v21727_v56 }
 0xcbf   :  { %v21968_v4 = vmul.f32 %v21712_v34, %v23193_v35  ;;  %v23194_v30 = vld [vmem:[#allocation40_spill] sm:$0xff]  ;;  %v21984_v59 = vadd.f32 %v21717_v14, %v21731_v15  ;;  %v21988_v35 = vadd.f32 %v21717_v14, %v21735_v58  ;;  %v21996_v61 = vadd.f32 %v21717_v14, %v21743_v25 }
 0xcc0   :  { %v21972_v33 = vmul.f32 %v21712_v34, %v23194_v30  ;;  %v21992_v34 = vadd.f32 %v21717_v14, %v21739_v32  ;;  %v22000_v56 = vadd.f32 %v21717_v14, %v21747_v19  ;;  %v22004_v15 = vadd.f32 %v21717_v14, %v21752_v3 }
 0xcc1   :  { %v22008_v58 = vadd.f32 %v21717_v14, %v21756_v39  ;;  %v22012_v32 = vadd.f32 %v21717_v14, %v21760_v55  ;;  %v22016_v25 = vadd.f32 %v21717_v14, %v21764_v11  ;;  %v22020_v19 = vadd.f32 %v21717_v14, %v21768_v0 }
 0xcc2   :  { %v22024_v3 = vadd.f32 %v21717_v14, %v21772_v10  ;;  %v22028_v39 = vadd.f32 %v21717_v14, %v21776_v24  ;;  %v22032_v55 = vadd.f32 %v21717_v14, %v21780_v21  ;;  %v22036_v11 = vadd.f32 %v21717_v14, %v21784_v62 }
 0xcc3   :  { %v22040_v0 = vadd.f32 %v21717_v14, %v21788_v52  ;;  %v22044_v10 = vadd.f32 %v21717_v14, %v21792_v27  ;;  %v22048_v24 = vadd.f32 %v21717_v14, %v21796_v28  ;;  %v22052_v21 = vadd.f32 %v21717_v14, %v21800_v48  ;;  %v23200_v30 = vld [vmem:[#allocation42_spill] sm:$0xff] }
 0xcc4   :  { %v22056_v62 = vadd.f32 %v21717_v14, %v21804_v60  ;;  %v22060_v52 = vadd.f32 %v21717_v14, %v21808_v40  ;;  %v22064_v27 = vadd.f32 %v21717_v14, %v21812_v6  ;;  %v22068_v28 = vadd.f32 %v21717_v14, %v21816_v49 }
 0xcc5   :  { %v22072_v48 = vadd.f32 %v21717_v14, %v21820_v7  ;;  %v22076_v60 = vadd.f32 %v21717_v14, %v21824_v8  ;;  %v22080_v40 = vadd.f32 %v21717_v14, %v21828_v26  ;;  %v22084_v6 = vadd.f32 %v21717_v14, %v21832_v1 }
 0xcc6   :  { %v22088_v49 = vadd.f32 %v21717_v14, %v21836_v63  ;;  %v22092_v7 = vadd.f32 %v21717_v14, %v21840_v44  ;;  %v22096_v8 = vadd.f32 %v21717_v14, %v21844_v9  ;;  %v22100_v26 = vadd.f32 %v21717_v14, %v21848_v37 }
 0xcc7   :  { %v22104_v1 = vadd.f32 %v21717_v14, %v21852_v54  ;;  %v22108_v63 = vadd.f32 %v21717_v14, %v21856_v5  ;;  %v22112_v44 = vadd.f32 %v21717_v14, %v21860_v12  ;;  %v22116_v9 = vadd.f32 %v21717_v14, %v21864_v50 }
 0xcc8   :  { %v22120_v37 = vadd.f32 %v21717_v14, %v21868_v38  ;;  %v22124_v54 = vadd.f32 %v21717_v14, %v21872_v29  ;;  %v22128_v5 = vadd.f32 %v21717_v14, %v21876_v18  ;;  %v22132_v12 = vadd.f32 %v21717_v14, %v21880_v42 }
 0xcc9   :  { %v22136_v50 = vadd.f32 %v21717_v14, %v21884_v51  ;;  %v22140_v38 = vadd.f32 %v21717_v14, %v21888_v46  ;;  %v22144_v29 = vadd.f32 %v21717_v14, %v21892_v43  ;;  %v22148_v18 = vadd.f32 %v21717_v14, %v21896_v17 }
 0xcca   :  { %v22152_v42 = vadd.f32 %v21717_v14, %v21900_v47  ;;  %v22156_v51 = vadd.f32 %v21717_v14, %v21904_v20  ;;  %v22160_v46 = vadd.f32 %v21717_v14, %v21908_v22  ;;  %v22164_v43 = vadd.f32 %v21717_v14, %v21912_v23 }
 0xccb   :  { %v22168_v17 = vadd.f32 %v21717_v14, %v21916_v53  ;;  %v22172_v47 = vadd.f32 %v21717_v14, %v21920_v13  ;;  %v22176_v20 = vadd.f32 %v21717_v14, %v21924_v45  ;;  %v22180_v22 = vadd.f32 %v21717_v14, %v23200_v30 }
 0xccc   :  { %23195 = vst [vmem:[#allocation48_spill] sm:$0xff] %v22160_v46  ;;  %23196 = vst [vmem:[#allocation49_spill] sm:$0xff] %v22164_v43  ;;  %v23201_v46 = vld [vmem:[#allocation43_spill] sm:$0xff]  ;;  %v23202_v43 = vld [vmem:[#allocation44_spill] sm:$0xff] }
 0xccd   :  { %23197 = vst [vmem:[#allocation51_spill] sm:$0xff] %v22168_v17  ;;  %23198 = vst [vmem:[#allocation53_spill] sm:$0xff] %v22172_v47  ;;  %v22184_v23 = vadd.f32 %v21717_v14, %v23201_v46  ;;  %v22188_v53 = vadd.f32 %v21717_v14, %v23202_v43  ;;  %v23203_v17 = vld [vmem:[#allocation45_spill] sm:$0xff]  ;;  %v23204_v47 = vld [vmem:[#allocation46_spill] sm:$0xff]  ;;  %v22204_v46 = vadd.f32 %v21717_v14, %v21952_v2 }
 0xcce   :  { %23199 = vst [vmem:[#allocation54_spill] sm:$0xff] %v22176_v20  ;;  %v22192_v13 = vadd.f32 %v21717_v14, %v23203_v17  ;;  %v22196_v45 = vadd.f32 %v21717_v14, %v23204_v47  ;;  %v23205_v20 = vld [vmem:[#allocation47_spill] sm:$0xff]  ;;  %v22208_v43 = vadd.f32 %v21717_v14, %v21956_v36  ;;  %v22212_v17 = vadd.f32 %v21717_v14, %v21960_v57 }
 0xccf   :  { %v22200_v30 = vadd.f32 %v21717_v14, %v23205_v20  ;;  %23206 = vst [vmem:[#allocation55_spill] sm:$0xff] %v22204_v46  ;;  %v22216_v47 = vadd.f32 %v21717_v14, %v21964_v41  ;;  %v22220_v20 = vadd.f32 %v21717_v14, %v21968_v4  ;;  %v22224_v2 = vadd.f32 %v21717_v14, %v21972_v33 }
 0xcd0   :  { %23207 = vst [vmem:[#allocation56_spill] sm:$0xff] %v22208_v43  ;;  %23208 = vst [vmem:[#allocation57_spill] sm:$0xff] %v22212_v17  ;;  %v10366_v46 = vmax.f32 %v21976_v31, 0.0  ;;  %v10367_v36 = vmax.f32 %v21980_v16, 0.0  ;;  %v10368_v43 = vmax.f32 %v21984_v59, 0.0  ;;  %v10369_v57 = vmax.f32 %v21988_v35, 0.0 }
 0xcd1   :  { %23209 = vst [vmem:[#allocation58_spill] sm:$0xff] %v22216_v47  ;;  %23210 = vst [vmem:[#allocation61_spill] sm:$0xff] %v22220_v20  ;;  %v10370_v17 = vmax.f32 %v21992_v34, 0.0  ;;  %v10371_v41 = vmax.f32 %v21996_v61, 0.0  ;;  %v10372_v47 = vmax.f32 %v22000_v56, 0.0  ;;  %v10373_v4 = vmax.f32 %v22004_v15, 0.0 }
 0xcd2   :  { %v10374_v20 = vmax.f32 %v22008_v58, 0.0  ;;  %v10375_v14 = vmax.f32 %v22012_v32, 0.0  ;;  %v10376_v33 = vmax.f32 %v22016_v25, 0.0  ;;  %10430 = vst [vmem:[#allocation6] sm:$0xff] %v10366_v46  ;;  %10431 = vst [vmem:[#allocation6 + $0x8] sm:$0xff] %v10367_v36  ;;  %v10377_v31 = vmax.f32 %v22020_v19, 0.0 }
 0xcd3   :  { %10432 = vst [vmem:[#allocation6 + $0x10] sm:$0xff] %v10368_v43  ;;  %v10378_v16 = vmax.f32 %v22024_v3, 0.0  ;;  %v10379_v59 = vmax.f32 %v22028_v39, 0.0  ;;  %v10380_v35 = vmax.f32 %v22032_v55, 0.0  ;;  %10433 = vst [vmem:[#allocation6 + $0x18] sm:$0xff] %v10369_v57  ;;  %v10381_v34 = vmax.f32 %v22036_v11, 0.0 }
 0xcd4   :  { %10434 = vst [vmem:[#allocation6 + $0x20] sm:$0xff] %v10370_v17  ;;  %10435 = vst [vmem:[#allocation6 + $0x28] sm:$0xff] %v10371_v41  ;;  %v10382_v61 = vmax.f32 %v22040_v0, 0.0  ;;  %v10383_v56 = vmax.f32 %v22044_v10, 0.0  ;;  %v10384_v15 = vmax.f32 %v22048_v24, 0.0  ;;  %v10385_v58 = vmax.f32 %v22052_v21, 0.0 }
 0xcd5   :  { %10436 = vst [vmem:[#allocation6 + $0x30] sm:$0xff] %v10372_v47  ;;  %10437 = vst [vmem:[#allocation6 + $0x38] sm:$0xff] %v10373_v4  ;;  %v10386_v32 = vmax.f32 %v22056_v62, 0.0  ;;  %v10387_v25 = vmax.f32 %v22060_v52, 0.0  ;;  %v10388_v19 = vmax.f32 %v22064_v27, 0.0  ;;  %v10389_v3 = vmax.f32 %v22068_v28, 0.0 }
 0xcd6   :  { %10438 = vst [vmem:[#allocation6 + $0x40] sm:$0xff] %v10374_v20  ;;  %10439 = vst [vmem:[#allocation6 + $0x48] sm:$0xff] %v10375_v14  ;;  %v10390_v39 = vmax.f32 %v22072_v48, 0.0  ;;  %v10391_v55 = vmax.f32 %v22076_v60, 0.0  ;;  %v10392_v11 = vmax.f32 %v22080_v40, 0.0  ;;  %v10393_v0 = vmax.f32 %v22084_v6, 0.0 }
 0xcd7   :  { %10440 = vst [vmem:[#allocation6 + $0x50] sm:$0xff] %v10376_v33  ;;  %10441 = vst [vmem:[#allocation6 + $0x58] sm:$0xff] %v10377_v31  ;;  %v10394_v10 = vmax.f32 %v22088_v49, 0.0  ;;  %v10395_v24 = vmax.f32 %v22092_v7, 0.0  ;;  %v10396_v21 = vmax.f32 %v22096_v8, 0.0  ;;  %v10397_v62 = vmax.f32 %v22100_v26, 0.0 }
 0xcd8   :  { %10442 = vst [vmem:[#allocation6 + $0x60] sm:$0xff] %v10378_v16  ;;  %10443 = vst [vmem:[#allocation6 + $0x68] sm:$0xff] %v10379_v59  ;;  %v10398_v52 = vmax.f32 %v22104_v1, 0.0  ;;  %v10399_v27 = vmax.f32 %v22108_v63, 0.0  ;;  %v10400_v28 = vmax.f32 %v22112_v44, 0.0  ;;  %v10401_v48 = vmax.f32 %v22116_v9, 0.0 }
 0xcd9   :  { %10444 = vst [vmem:[#allocation6 + $0x70] sm:$0xff] %v10380_v35  ;;  %10445 = vst [vmem:[#allocation6 + $0x78] sm:$0xff] %v10381_v34  ;;  %v10402_v60 = vmax.f32 %v22120_v37, 0.0  ;;  %v10403_v40 = vmax.f32 %v22124_v54, 0.0  ;;  %v10404_v6 = vmax.f32 %v22128_v5, 0.0  ;;  %v10405_v49 = vmax.f32 %v22132_v12, 0.0 }
 0xcda   :  { %10446 = vst [vmem:[#allocation6 + $0x80] sm:$0xff] %v10382_v61  ;;  %10447 = vst [vmem:[#allocation6 + $0x88] sm:$0xff] %v10383_v56  ;;  %v10406_v7 = vmax.f32 %v22136_v50, 0.0  ;;  %v10407_v8 = vmax.f32 %v22140_v38, 0.0  ;;  %v10408_v26 = vmax.f32 %v22144_v29, 0.0  ;;  %v10409_v1 = vmax.f32 %v22148_v18, 0.0 }
 0xcdb   :  { %10448 = vst [vmem:[#allocation6 + $0x90] sm:$0xff] %v10384_v15  ;;  %10449 = vst [vmem:[#allocation6 + $0x98] sm:$0xff] %v10385_v58  ;;  %v10410_v63 = vmax.f32 %v22152_v42, 0.0  ;;  %v10411_v44 = vmax.f32 %v22156_v51, 0.0  ;;  %v23211_v9 = vld [vmem:[#allocation48_spill] sm:$0xff]  ;;  %v23212_v54 = vld [vmem:[#allocation49_spill] sm:$0xff] }
 0xcdc   :  { %10450 = vst [vmem:[#allocation6 + $0xa0] sm:$0xff] %v10386_v32  ;;  %10451 = vst [vmem:[#allocation6 + $0xa8] sm:$0xff] %v10387_v25  ;;  %v10412_v37 = vmax.f32 %v23211_v9, 0.0  ;;  %v10413_v5 = vmax.f32 %v23212_v54, 0.0  ;;  %v23213_v12 = vld [vmem:[#allocation51_spill] sm:$0xff]  ;;  %v23214_v38 = vld [vmem:[#allocation53_spill] sm:$0xff] }
 0xcdd   :  { %10452 = vst [vmem:[#allocation6 + $0xb0] sm:$0xff] %v10388_v19  ;;  %10453 = vst [vmem:[#allocation6 + $0xb8] sm:$0xff] %v10389_v3  ;;  %v10414_v50 = vmax.f32 %v23213_v12, 0.0  ;;  %v10415_v29 = vmax.f32 %v23214_v38, 0.0  ;;  %v23215_v46 = vld [vmem:[#allocation54_spill] sm:$0xff]  ;;  %v10417_v18 = vmax.f32 %v22180_v22, 0.0 }
 0xcde   :  { %10454 = vst [vmem:[#allocation6 + $0xc0] sm:$0xff] %v10390_v39  ;;  %10455 = vst [vmem:[#allocation6 + $0xc8] sm:$0xff] %v10391_v55  ;;  %v10416_v43 = vmax.f32 %v23215_v46, 0.0  ;;  %v10418_v42 = vmax.f32 %v22184_v23, 0.0  ;;  %v10419_v51 = vmax.f32 %v22188_v53, 0.0  ;;  %v10420_v17 = vmax.f32 %v22192_v13, 0.0 }
 0xcdf   :  { %10456 = vst [vmem:[#allocation6 + $0xd0] sm:$0xff] %v10392_v11  ;;  %10457 = vst [vmem:[#allocation6 + $0xd8] sm:$0xff] %v10393_v0  ;;  %v10421_v47 = vmax.f32 %v22196_v45, 0.0  ;;  %v10422_v20 = vmax.f32 %v22200_v30, 0.0  ;;  %v23216_v36 = vld [vmem:[#allocation55_spill] sm:$0xff]  ;;  %v23217_v41 = vld [vmem:[#allocation56_spill] sm:$0xff] }
 0xce0   :  { %10458 = vst [vmem:[#allocation6 + $0xe0] sm:$0xff] %v10394_v10  ;;  %10459 = vst [vmem:[#allocation6 + $0xe8] sm:$0xff] %v10395_v24  ;;  %v10423_v57 = vmax.f32 %v23216_v36, 0.0  ;;  %v10424_v4 = vmax.f32 %v23217_v41, 0.0  ;;  %v23218_v22 = vld [vmem:[#allocation57_spill] sm:$0xff]  ;;  %v23219_v53 = vld [vmem:[#allocation58_spill] sm:$0xff] }
 0xce1   :  { %10460 = vst [vmem:[#allocation6 + $0xf0] sm:$0xff] %v10396_v21  ;;  %10461 = vst [vmem:[#allocation6 + $0xf8] sm:$0xff] %v10397_v62  ;;  %v10425_v23 = vmax.f32 %v23218_v22, 0.0  ;;  %v10426_v13 = vmax.f32 %v23219_v53, 0.0  ;;  %v23220_v14 = vld [vmem:[#allocation61_spill] sm:$0xff]  ;;  %v10429_v31 = vmax.f32 %v22224_v2, 0.0 }
 0xce2   :  { %10462 = vst [vmem:[#allocation6 + $0x100] sm:$0xff] %v10398_v52  ;;  %10463 = vst [vmem:[#allocation6 + $0x108] sm:$0xff] %v10399_v27  ;;  %v10427_v33 = vmax.f32 %v23220_v14, 0.0 }
 0xce3   :  { %10464 = vst [vmem:[#allocation6 + $0x110] sm:$0xff] %v10400_v28  ;;  %10465 = vst [vmem:[#allocation6 + $0x118] sm:$0xff] %v10401_v48 }
 0xce4   :  { %10466 = vst [vmem:[#allocation6 + $0x120] sm:$0xff] %v10402_v60  ;;  %10467 = vst [vmem:[#allocation6 + $0x128] sm:$0xff] %v10403_v40 }
 0xce5   :  { %10468 = vst [vmem:[#allocation6 + $0x130] sm:$0xff] %v10404_v6  ;;  %10469 = vst [vmem:[#allocation6 + $0x138] sm:$0xff] %v10405_v49 }
 0xce6   :  { %10470 = vst [vmem:[#allocation6 + $0x140] sm:$0xff] %v10406_v7  ;;  %10471 = vst [vmem:[#allocation6 + $0x148] sm:$0xff] %v10407_v8 }
 0xce7   :  { %10472 = vst [vmem:[#allocation6 + $0x150] sm:$0xff] %v10408_v26  ;;  %10473 = vst [vmem:[#allocation6 + $0x158] sm:$0xff] %v10409_v1 }
 0xce8   :  { %10474 = vst [vmem:[#allocation6 + $0x160] sm:$0xff] %v10410_v63  ;;  %10475 = vst [vmem:[#allocation6 + $0x168] sm:$0xff] %v10411_v44 }
 0xce9   :  { %10476 = vst [vmem:[#allocation6 + $0x170] sm:$0xff] %v10412_v37  ;;  %10477 = vst [vmem:[#allocation6 + $0x178] sm:$0xff] %v10413_v5 }
 0xcea   :  { %10478 = vst [vmem:[#allocation6 + $0x180] sm:$0xff] %v10414_v50  ;;  %10479 = vst [vmem:[#allocation6 + $0x188] sm:$0xff] %v10415_v29 }
 0xceb   :  { %10480 = vst [vmem:[#allocation6 + $0x190] sm:$0xff] %v10416_v43  ;;  %10481 = vst [vmem:[#allocation6 + $0x198] sm:$0xff] %v10417_v18 }
 0xcec   :  { %10482 = vst [vmem:[#allocation6 + $0x1a0] sm:$0xff] %v10418_v42  ;;  %10483 = vst [vmem:[#allocation6 + $0x1a8] sm:$0xff] %v10419_v51 }
 0xced   :  { %10484 = vst [vmem:[#allocation6 + $0x1b0] sm:$0xff] %v10420_v17  ;;  %10485 = vst [vmem:[#allocation6 + $0x1b8] sm:$0xff] %v10421_v47 }
 0xcee   :  { %10486 = vst [vmem:[#allocation6 + $0x1c0] sm:$0xff] %v10422_v20  ;;  %10487 = vst [vmem:[#allocation6 + $0x1c8] sm:$0xff] %v10423_v57 }
 0xcef   :  { %10488 = vst [vmem:[#allocation6 + $0x1d0] sm:$0xff] %v10424_v4  ;;  %10489 = vst [vmem:[#allocation6 + $0x1d8] sm:$0xff] %v10425_v23 }
 0xcf0   :  { %10490 = vst [vmem:[#allocation6 + $0x1e0] sm:$0xff] %v10426_v13  ;;  %10491 = vst [vmem:[#allocation6 + $0x1e8] sm:$0xff] %v10427_v33 }
 0xcf1   :  { %10493 = vst [vmem:[#allocation6 + $0x1f8] sm:$0xff] %v10429_v31 }
 0xcf2   :  { %16413 = shalt.err (!%p16410_p12)
}
 0xcf3   :  { %s16414_s24 = scalar_lea.hbm %s22311_s7, 8192 }
 0xcf4   :  { %p16415_p13 = scmp.ne.s32.totalorder %s22311_s7, %s16414_s24  ;;  %p16418_p0 = scmp.lt.u32.totalorder %s16414_s24, %s22311_s7 }
 0xcf6   :  { %p16420_p1 = pnand %p16418_p0, %p16415_p13 }
 0xcf8   :  { %16423 = shalt.err (!%p16420_p1)
}
 0xcf9   :  { %10505 = dma.vmem_to_hbm [thread:$0]  %s10500_s6, 8192, %s22311_s7, [#allocation5], %s16429_s11, %s16429_s11, %s16430_s12  }
 0xcfa   :  { %16426 = dma.done.wait [#allocation5], 8192  }
 0xcfb   :  { %16427 = vsyncadd [#allocation5], 4294959104 }
 0xcfc   :  { %10509 = vsyncpa [#allocation4], 1 }
 0xcfd   :  { %10510 = vsyncpa [#allocation5], 1 }

</bundles_post_ra>
